<compile_context>
chip_gen: v5e
topology: v5e:2x2
jax: 0.10.0
libtpu: 0.0.40
codegen_flags: <defaults>
</compile_context>

<pallas_src>
import jax
import jax.numpy as jnp
from jax.experimental import pallas as pl
from jax.experimental.pallas import tpu as pltpu

B = 8          # batch of independent graphs
G = 4          # graphs per grid step  ->  grid = (B // G,) = (2,)
N = 128        # number of graph nodes per graph
IN_C = 32      # in_channels
HID = 32       # hidden_channels
OUT_C = 16     # out_channels
K_PROP = 3     # round(nbeta) propagation steps in prop2  (nbeta init = 3.0)
GAMMA = 0.5    # gamma init value, baked as a compile-time constant

assert B % G == 0


def _bf16(a):
    return a.astype(jnp.bfloat16)


def pernet_kernel(x_ref, adj_ref, w1_ref, b1_ref, w2_ref, b2_ref, out_ref):
    x = x_ref[...]                        # (G, N, IN_C)  f32
    adj = adj_ref[...]                    # (G, N, N)     bf16 (cast in wrapper)

    # --- x = F.dropout(x) : eval mode -> identity ---

    # --- prop_lin1: A @ (x @ W1 + b1), then ReLU ---
    # Shared-weight dot done once over all G graphs as a (G*N, IN_C) matmul.
    h0 = jnp.dot(_bf16(x.reshape(G * N, IN_C)), _bf16(w1_ref[...]),
                 preferred_element_type=jnp.float32) + b1_ref[...]
    h0 = h0.reshape(G, N, HID)
    h = jnp.einsum("gij,gjk->gik", adj, _bf16(h0),
                   preferred_element_type=jnp.float32)
    h = jnp.maximum(h, 0.0)

    # --- prop_lin2: A @ (h @ W2 + b2) ---
    z0 = jnp.dot(_bf16(h.reshape(G * N, HID)), _bf16(w2_ref[...]),
                 preferred_element_type=jnp.float32) + b2_ref[...]
    z0 = z0.reshape(G, N, OUT_C)
    z = jnp.einsum("gij,gjk->gik", adj, _bf16(z0),
                   preferred_element_type=jnp.float32)

    # --- dropout (eval -> identity) ---

    # --- prop2: K steps of  z <- gamma*(A @ z) + (1-gamma)*z  (f32 axpy) ---
    for _ in range(K_PROP):               # static unroll, K_PROP = 3
        az = jnp.einsum("gij,gjk->gik", adj, _bf16(z),
                        preferred_element_type=jnp.float32)
        z = GAMMA * az + (1.0 - GAMMA) * z

    # --- log_softmax over the class dim, f32 ---
    mx = jnp.max(z, axis=2, keepdims=True)
    s = z - mx
    lse = jnp.log(jnp.sum(jnp.exp(s), axis=2, keepdims=True))
    logsm = s - lse

    # Lane-dense packed output slab: per graph g the 2*OUT_C-wide block
    # [logsm_g | z_g] at lanes [g*2*OUT_C, (g+1)*2*OUT_C)  ->  (N, 128).
    cols = []
    for g in range(G):                    # static unroll
        cols.append(logsm[g])             # (N, OUT_C)
        cols.append(z[g])                 # (N, OUT_C)
    out_ref[...] = jnp.concatenate(cols, axis=1)


def pernet_gnn_forward(x, adj, w1, b1, w2, b2):
    """Batched fused PerNetGNN forward.

    Args:
      x:   (B, N, IN_C)   node features per graph
      adj: (B, N, N)      dense row-normalized adjacency per graph (f32)
      w1/b1/w2/b2: shared linear-layer parameters
    Returns:
      (log_softmax(z), z) each of shape (B, N, OUT_C).
    """
    adj_bf = adj.astype(jnp.bfloat16)     # halve the dominant DMA stream

    flops_per_graph = (2 * N * IN_C * HID          # x @ W1
                       + 2 * N * N * HID           # A @ h
                       + 2 * N * HID * OUT_C       # h @ W2
                       + 2 * N * N * OUT_C         # A @ z
                       + K_PROP * (2 * N * N * OUT_C + 3 * N * OUT_C))
    transc_per_graph = N * OUT_C + N               # exp + log
    bytes_per_graph = (4 * N * IN_C                # x (f32)
                       + 2 * N * N                 # adj (bf16)
                       + 4 * N * 2 * OUT_C)        # packed output (f32)
    bytes_weights = 4 * (IN_C * HID + HID + HID * OUT_C + OUT_C)
    cost = pl.CostEstimate(
        flops=B * flops_per_graph,
        transcendentals=B * transc_per_graph,
        bytes_accessed=B * bytes_per_graph + bytes_weights,
    )

    packed = pl.pallas_call(
        pernet_kernel,
        out_shape=jax.ShapeDtypeStruct((B // G, N, 2 * G * OUT_C), jnp.float32),
        grid=(B // G,),
        in_specs=[
            pl.BlockSpec((G, N, IN_C), lambda b: (b, 0, 0)),      # x
            pl.BlockSpec((G, N, N),    lambda b: (b, 0, 0)),      # adj (bf16)
            pl.BlockSpec((IN_C, HID),  lambda b: (0, 0)),         # w1 (shared)
            pl.BlockSpec((1, HID),     lambda b: (0, 0)),         # b1 (shared)
            pl.BlockSpec((HID, OUT_C), lambda b: (0, 0)),         # w2 (shared)
            pl.BlockSpec((1, OUT_C),   lambda b: (0, 0)),         # b2 (shared)
        ],
        out_specs=pl.BlockSpec((None, N, 2 * G * OUT_C), lambda b: (b, 0, 0)),
        compiler_params=pltpu.CompilerParams(
            dimension_semantics=("parallel",)),                   # 2 steps -> both v7x TCs
        cost_estimate=cost,
    )(x, adj_bf, w1, b1, w2, b2)

    # Unpack the lane-dense slab (pure layout plumbing, fused by XLA).
    packed = packed.reshape(B // G, N, G, 2 * OUT_C)
    packed = jnp.transpose(packed, (0, 2, 1, 3)).reshape(B, N, 2 * OUT_C)
    log_probs = packed[:, :, :OUT_C]
    logits = packed[:, :, OUT_C:]
    return log_probs, logits


def reference_forward_f32(x, adj, w1, b1, w2, b2):
    """Pure-f32 reference (single graph)."""
    h = jnp.maximum(adj @ (x @ w1 + b1), 0.0)
    z = adj @ (h @ w2 + b2)
    for _ in range(K_PROP):
        z = GAMMA * (adj @ z) + (1.0 - GAMMA) * z
    return jax.nn.log_softmax(z, axis=1), z


def reference_forward_bf16(x, adj_bf, w1, b1, w2, b2):
    """Reference mirroring the kernel's bf16-MXU / f32-accumulate casts
    (adjacency is already bf16, as fed to the kernel)."""
    dot = lambda a, b: jnp.dot(a.astype(jnp.bfloat16), b.astype(jnp.bfloat16),
                               preferred_element_type=jnp.float32)
    h = jnp.maximum(dot(adj_bf, dot(x, w1) + b1), 0.0)
    z = dot(adj_bf, dot(h, w2) + b2)
    for _ in range(K_PROP):
        z = GAMMA * dot(adj_bf, z) + (1.0 - GAMMA) * z
    return jax.nn.log_softmax(z, axis=1), z


if __name__ == "__main__":
    key = jax.random.PRNGKey(0)
    kx, ka, kw1, kb1, kw2, kb2 = jax.random.split(key, 6)

    # Batched node features.
    x = jax.random.normal(kx, (B, N, IN_C), dtype=jnp.float32)

    # Per-graph symmetric dense adjacency with self-loops, row-normalized
    # (stand-in for the SparseTensor adj_t of the PyG data object).
    a = (jax.random.uniform(ka, (B, N, N)) < 0.05).astype(jnp.float32)
    a = jnp.maximum(a, jnp.swapaxes(a, 1, 2)) + jnp.eye(N, dtype=jnp.float32)[None]
    adj = a / jnp.sum(a, axis=2, keepdims=True)

    # Deterministic synthetic parameters (Linear-layer shapes implied by the
    # module's channel arguments), shared across the batch.
    w1 = jax.random.normal(kw1, (IN_C, HID), dtype=jnp.float32) * (1.0 / jnp.sqrt(IN_C))
    b1 = jax.random.normal(kb1, (1, HID), dtype=jnp.float32) * 0.01
    w2 = jax.random.normal(kw2, (HID, OUT_C), dtype=jnp.float32) * (1.0 / jnp.sqrt(HID))
    b2 = jax.random.normal(kb2, (1, OUT_C), dtype=jnp.float32) * 0.01

    log_probs, logits = pernet_gnn_forward(x, adj, w1, b1, w2, b2)
    jax.block_until_ready((log_probs, logits))

    # Tight check against a reference with the same bf16 dot-operand casts
    # (same bf16 adjacency as fed to the kernel).
    adj_bf = adj.astype(jnp.bfloat16)
    ref_lp_bf, ref_z_bf = jax.vmap(
        lambda xg, ag: reference_forward_bf16(xg, ag, w1, b1, w2, b2))(x, adj_bf)
    assert jnp.allclose(logits, ref_z_bf, atol=1e-3, rtol=1e-3)
    assert jnp.allclose(log_probs, ref_lp_bf, atol=1e-3, rtol=1e-3)

    # Loose semantic check against the full-f32 reference.
    ref_lp, ref_z = jax.vmap(
        lambda xg, ag: reference_forward_f32(xg, ag, w1, b1, w2, b2))(x, adj)
    assert jnp.allclose(logits, ref_z, atol=5e-2, rtol=5e-2)
    assert jnp.allclose(log_probs, ref_lp, atol=5e-2, rtol=5e-2)

    print("KERNEL_OK")
</pallas_src>

<mosaic_0001>
module attributes {stable_mosaic.version = 11 : i64} {
  func.func @pernet_kernel(%arg0: i32, %arg1: memref<4x128x32xf32, #tpu.memory_space<vmem>>, %arg2: memref<4x128x128xbf16, #tpu.memory_space<vmem>>, %arg3: memref<32x32xf32, #tpu.memory_space<vmem>>, %arg4: memref<1x32xf32, #tpu.memory_space<vmem>>, %arg5: memref<32x16xf32, #tpu.memory_space<vmem>>, %arg6: memref<1x16xf32, #tpu.memory_space<vmem>>, %arg7: memref<1x128x128xf32, #tpu.memory_space<vmem>>) attributes {dimension_semantics = [#tpu.dimension_semantics<parallel>], iteration_bounds = array<i64: 2>, scalar_prefetch = 0 : i64, scratch_operands = 0 : i64, tpu.core_type = #tpu.core_type<tc>, window_params = [{transform_indices = @transform_0, window_bounds = array<i64: 4, 128, 32>}, {transform_indices = @transform_1, window_bounds = array<i64: 4, 128, 128>}, {pipeline_mode = #tpu.pipeline_mode<synchronous>, transform_indices = @transform_2, window_bounds = array<i64: 32, 32>}, {pipeline_mode = #tpu.pipeline_mode<synchronous>, transform_indices = @transform_3, window_bounds = array<i64: 1, 32>}, {pipeline_mode = #tpu.pipeline_mode<synchronous>, transform_indices = @transform_4, window_bounds = array<i64: 32, 16>}, {pipeline_mode = #tpu.pipeline_mode<synchronous>, transform_indices = @transform_5, window_bounds = array<i64: 1, 16>}, {transform_indices = @transform_6, window_bounds = array<i64: 1, 128, 128>}]} {
    %c0 = arith.constant 0 : index
    %c0_0 = arith.constant 0 : index
    %c0_1 = arith.constant 0 : index
    %0 = vector.load %arg1[%c0, %c0_0, %c0_1] : memref<4x128x32xf32, #tpu.memory_space<vmem>>, vector<4x128x32xf32>
    %c0_2 = arith.constant 0 : index
    %c0_3 = arith.constant 0 : index
    %c0_4 = arith.constant 0 : index
    %1 = vector.load %arg2[%c0_2, %c0_3, %c0_4] : memref<4x128x128xbf16, #tpu.memory_space<vmem>>, vector<4x128x128xbf16>
    %2 = vector.shape_cast %0 : vector<4x128x32xf32> to vector<512x32xf32>
    %3 = arith.truncf %2 : vector<512x32xf32> to vector<512x32xbf16>
    %c0_5 = arith.constant 0 : index
    %c0_6 = arith.constant 0 : index
    %4 = vector.load %arg3[%c0_5, %c0_6] : memref<32x32xf32, #tpu.memory_space<vmem>>, vector<32x32xf32>
    %5 = arith.truncf %4 : vector<32x32xf32> to vector<32x32xbf16>
    %cst = arith.constant dense<0.000000e+00> : vector<512x32xf32>
    %6 = tpu.matmul %3, %5, %cst {dimension_numbers = #tpu.dot_dimension_numbers<[1], [0], [0], [1], [0, 0, 1, 1], [], []>} : vector<512x32xbf16>, vector<32x32xbf16>, vector<512x32xf32> -> vector<512x32xf32>
    %c0_7 = arith.constant 0 : index
    %c0_8 = arith.constant 0 : index
    %7 = vector.load %arg4[%c0_7, %c0_8] : memref<1x32xf32, #tpu.memory_space<vmem>>, vector<1x32xf32>
    %8 = vector.broadcast %7 : vector<1x32xf32> to vector<512x32xf32>
    %9 = arith.addf %6, %8 : vector<512x32xf32>
    %10 = vector.shape_cast %9 : vector<512x32xf32> to vector<4x128x32xf32>
    %11 = arith.truncf %10 : vector<4x128x32xf32> to vector<4x128x32xbf16>
    "tpu.trace_start"() <{level = 10 : i32, message = "gij,gjk->gik"}> : () -> ()
    %cst_9 = arith.constant dense<0.000000e+00> : vector<4x128x32xf32>
    %12 = tpu.matmul %1, %11, %cst_9 {dimension_numbers = #tpu.dot_dimension_numbers<[2], [1], [1], [2], [0, 0, 0, 1, 1, 2], [0], [0]>} : vector<4x128x128xbf16>, vector<4x128x32xbf16>, vector<4x128x32xf32> -> vector<4x128x32xf32>
    "tpu.trace_stop"() : () -> ()
    %cst_10 = arith.constant 0.000000e+00 : f32
    %13 = vector.broadcast %cst_10 : f32 to vector<4x128x32xf32>
    %14 = arith.maximumf %12, %13 : vector<4x128x32xf32>
    %15 = vector.shape_cast %14 : vector<4x128x32xf32> to vector<512x32xf32>
    %16 = arith.truncf %15 : vector<512x32xf32> to vector<512x32xbf16>
    %c0_11 = arith.constant 0 : index
    %c0_12 = arith.constant 0 : index
    %17 = vector.load %arg5[%c0_11, %c0_12] : memref<32x16xf32, #tpu.memory_space<vmem>>, vector<32x16xf32>
    %18 = arith.truncf %17 : vector<32x16xf32> to vector<32x16xbf16>
    %cst_13 = arith.constant dense<0.000000e+00> : vector<512x16xf32>
    %19 = tpu.matmul %16, %18, %cst_13 {dimension_numbers = #tpu.dot_dimension_numbers<[1], [0], [0], [1], [0, 0, 1, 1], [], []>} : vector<512x32xbf16>, vector<32x16xbf16>, vector<512x16xf32> -> vector<512x16xf32>
    %c0_14 = arith.constant 0 : index
    %c0_15 = arith.constant 0 : index
    %20 = vector.load %arg6[%c0_14, %c0_15] : memref<1x16xf32, #tpu.memory_space<vmem>>, vector<1x16xf32>
    %21 = vector.broadcast %20 : vector<1x16xf32> to vector<512x16xf32>
    %22 = arith.addf %19, %21 : vector<512x16xf32>
    %23 = vector.shape_cast %22 : vector<512x16xf32> to vector<4x128x16xf32>
    %24 = arith.truncf %23 : vector<4x128x16xf32> to vector<4x128x16xbf16>
    "tpu.trace_start"() <{level = 10 : i32, message = "gij,gjk->gik"}> : () -> ()
    %cst_16 = arith.constant dense<0.000000e+00> : vector<4x128x16xf32>
    %25 = tpu.matmul %1, %24, %cst_16 {dimension_numbers = #tpu.dot_dimension_numbers<[2], [1], [1], [2], [0, 0, 0, 1, 1, 2], [0], [0]>} : vector<4x128x128xbf16>, vector<4x128x16xbf16>, vector<4x128x16xf32> -> vector<4x128x16xf32>
    "tpu.trace_stop"() : () -> ()
    %26 = arith.truncf %25 : vector<4x128x16xf32> to vector<4x128x16xbf16>
    "tpu.trace_start"() <{level = 10 : i32, message = "gij,gjk->gik"}> : () -> ()
    %cst_17 = arith.constant dense<0.000000e+00> : vector<4x128x16xf32>
    %27 = tpu.matmul %1, %26, %cst_17 {dimension_numbers = #tpu.dot_dimension_numbers<[2], [1], [1], [2], [0, 0, 0, 1, 1, 2], [0], [0]>} : vector<4x128x128xbf16>, vector<4x128x16xbf16>, vector<4x128x16xf32> -> vector<4x128x16xf32>
    "tpu.trace_stop"() : () -> ()
    %cst_18 = arith.constant 5.000000e-01 : f32
    %28 = vector.broadcast %cst_18 : f32 to vector<4x128x16xf32>
    %29 = arith.mulf %28, %27 : vector<4x128x16xf32>
    %cst_19 = arith.constant 5.000000e-01 : f32
    %30 = vector.broadcast %cst_19 : f32 to vector<4x128x16xf32>
    %31 = arith.mulf %30, %25 : vector<4x128x16xf32>
    %32 = arith.addf %29, %31 : vector<4x128x16xf32>
    %33 = arith.truncf %32 : vector<4x128x16xf32> to vector<4x128x16xbf16>
    "tpu.trace_start"() <{level = 10 : i32, message = "gij,gjk->gik"}> : () -> ()
    %cst_20 = arith.constant dense<0.000000e+00> : vector<4x128x16xf32>
    %34 = tpu.matmul %1, %33, %cst_20 {dimension_numbers = #tpu.dot_dimension_numbers<[2], [1], [1], [2], [0, 0, 0, 1, 1, 2], [0], [0]>} : vector<4x128x128xbf16>, vector<4x128x16xbf16>, vector<4x128x16xf32> -> vector<4x128x16xf32>
    "tpu.trace_stop"() : () -> ()
    %cst_21 = arith.constant 5.000000e-01 : f32
    %35 = vector.broadcast %cst_21 : f32 to vector<4x128x16xf32>
    %36 = arith.mulf %35, %34 : vector<4x128x16xf32>
    %cst_22 = arith.constant 5.000000e-01 : f32
    %37 = vector.broadcast %cst_22 : f32 to vector<4x128x16xf32>
    %38 = arith.mulf %37, %32 : vector<4x128x16xf32>
    %39 = arith.addf %36, %38 : vector<4x128x16xf32>
    %40 = arith.truncf %39 : vector<4x128x16xf32> to vector<4x128x16xbf16>
    "tpu.trace_start"() <{level = 10 : i32, message = "gij,gjk->gik"}> : () -> ()
    %cst_23 = arith.constant dense<0.000000e+00> : vector<4x128x16xf32>
    %41 = tpu.matmul %1, %40, %cst_23 {dimension_numbers = #tpu.dot_dimension_numbers<[2], [1], [1], [2], [0, 0, 0, 1, 1, 2], [0], [0]>} : vector<4x128x128xbf16>, vector<4x128x16xbf16>, vector<4x128x16xf32> -> vector<4x128x16xf32>
    "tpu.trace_stop"() : () -> ()
    %cst_24 = arith.constant 5.000000e-01 : f32
    %42 = vector.broadcast %cst_24 : f32 to vector<4x128x16xf32>
    %43 = arith.mulf %42, %41 : vector<4x128x16xf32>
    %cst_25 = arith.constant 5.000000e-01 : f32
    %44 = vector.broadcast %cst_25 : f32 to vector<4x128x16xf32>
    %45 = arith.mulf %44, %39 : vector<4x128x16xf32>
    %46 = arith.addf %43, %45 : vector<4x128x16xf32>
    %cst_26 = arith.constant dense<0xFF800000> : vector<4x128xf32>
    %47 = vector.multi_reduction <maximumf>, %46, %cst_26 [2] : vector<4x128x16xf32> to vector<4x128xf32>
    %48 = vector.shape_cast %47 : vector<4x128xf32> to vector<4x128x1xf32>
    %49 = vector.broadcast %48 : vector<4x128x1xf32> to vector<4x128x16xf32>
    %50 = arith.subf %46, %49 : vector<4x128x16xf32>
    %51 = math.exp %50 : vector<4x128x16xf32>
    %cst_27 = arith.constant dense<0.000000e+00> : vector<4x128xf32>
    %52 = vector.multi_reduction <add>, %51, %cst_27 [2] : vector<4x128x16xf32> to vector<4x128xf32>
    %53 = vector.shape_cast %52 : vector<4x128xf32> to vector<4x128x1xf32>
    %54 = math.log %53 : vector<4x128x1xf32>
    %55 = vector.broadcast %54 : vector<4x128x1xf32> to vector<4x128x16xf32>
    %56 = arith.subf %50, %55 : vector<4x128x16xf32>
    %57 = vector.extract_strided_slice %56 {offsets = [0, 0, 0], sizes = [1, 128, 16], strides = [1, 1, 1]} : vector<4x128x16xf32> to vector<1x128x16xf32>
    %58 = vector.shape_cast %57 : vector<1x128x16xf32> to vector<128x16xf32>
    %59 = vector.extract_strided_slice %46 {offsets = [0, 0, 0], sizes = [1, 128, 16], strides = [1, 1, 1]} : vector<4x128x16xf32> to vector<1x128x16xf32>
    %60 = vector.shape_cast %59 : vector<1x128x16xf32> to vector<128x16xf32>
    %61 = vector.extract_strided_slice %56 {offsets = [1, 0, 0], sizes = [1, 128, 16], strides = [1, 1, 1]} : vector<4x128x16xf32> to vector<1x128x16xf32>
    %62 = vector.shape_cast %61 : vector<1x128x16xf32> to vector<128x16xf32>
    %63 = vector.extract_strided_slice %46 {offsets = [1, 0, 0], sizes = [1, 128, 16], strides = [1, 1, 1]} : vector<4x128x16xf32> to vector<1x128x16xf32>
    %64 = vector.shape_cast %63 : vector<1x128x16xf32> to vector<128x16xf32>
    %65 = vector.extract_strided_slice %56 {offsets = [2, 0, 0], sizes = [1, 128, 16], strides = [1, 1, 1]} : vector<4x128x16xf32> to vector<1x128x16xf32>
    %66 = vector.shape_cast %65 : vector<1x128x16xf32> to vector<128x16xf32>
    %67 = vector.extract_strided_slice %46 {offsets = [2, 0, 0], sizes = [1, 128, 16], strides = [1, 1, 1]} : vector<4x128x16xf32> to vector<1x128x16xf32>
    %68 = vector.shape_cast %67 : vector<1x128x16xf32> to vector<128x16xf32>
    %69 = vector.extract_strided_slice %56 {offsets = [3, 0, 0], sizes = [1, 128, 16], strides = [1, 1, 1]} : vector<4x128x16xf32> to vector<1x128x16xf32>
    %70 = vector.shape_cast %69 : vector<1x128x16xf32> to vector<128x16xf32>
    %71 = vector.extract_strided_slice %46 {offsets = [3, 0, 0], sizes = [1, 128, 16], strides = [1, 1, 1]} : vector<4x128x16xf32> to vector<1x128x16xf32>
    %72 = vector.shape_cast %71 : vector<1x128x16xf32> to vector<128x16xf32>
    %73 = tpu.concatenate %58, %60, %62, %64, %66, %68, %70, %72 in 1 : vector<128x16xf32>, vector<128x16xf32>, vector<128x16xf32>, vector<128x16xf32>, vector<128x16xf32>, vector<128x16xf32>, vector<128x16xf32>, vector<128x16xf32> -> vector<128x128xf32>
    %c0_28 = arith.constant 0 : index
    %c0_29 = arith.constant 0 : index
    %c0_30 = arith.constant 0 : index
    %74 = vector.load %arg7[%c0_28, %c0_29, %c0_30] : memref<1x128x128xf32, #tpu.memory_space<vmem>>, vector<1x128x128xf32>
    %75 = vector.shape_cast %74 : vector<1x128x128xf32> to vector<128x128xf32>
    %76 = vector.shape_cast %73 : vector<128x128xf32> to vector<1x128x128xf32>
    tpu.vector_store %arg7[%c0_28, %c0_29, %c0_30], %76 {strides = array<i32>} : memref<1x128x128xf32, #tpu.memory_space<vmem>>, vector<1x128x128xf32>,
    return
  }
  func.func @transform_0(%arg0: i32) -> (i32, i32, i32) {
    %c0_i32 = arith.constant 0 : i32
    %c0_i32_0 = arith.constant 0 : i32
    %c0_i32_1 = arith.constant 0 : i32
    return %arg0, %c0_i32, %c0_i32_0 : i32, i32, i32
  }
  func.func @transform_1(%arg0: i32) -> (i32, i32, i32) {
    %c0_i32 = arith.constant 0 : i32
    %c0_i32_0 = arith.constant 0 : i32
    %c0_i32_1 = arith.constant 0 : i32
    return %arg0, %c0_i32, %c0_i32_0 : i32, i32, i32
  }
  func.func @transform_2(%arg0: i32) -> (i32, i32) {
    %c0_i32 = arith.constant 0 : i32
    %c0_i32_0 = arith.constant 0 : i32
    %c0_i32_1 = arith.constant 0 : i32
    return %c0_i32, %c0_i32_0 : i32, i32
  }
  func.func @transform_3(%arg0: i32) -> (i32, i32) {
    %c0_i32 = arith.constant 0 : i32
    %c0_i32_0 = arith.constant 0 : i32
    %c0_i32_1 = arith.constant 0 : i32
    return %c0_i32, %c0_i32_0 : i32, i32
  }
  func.func @transform_4(%arg0: i32) -> (i32, i32) {
    %c0_i32 = arith.constant 0 : i32
    %c0_i32_0 = arith.constant 0 : i32
    %c0_i32_1 = arith.constant 0 : i32
    return %c0_i32, %c0_i32_0 : i32, i32
  }
  func.func @transform_5(%arg0: i32) -> (i32, i32) {
    %c0_i32 = arith.constant 0 : i32
    %c0_i32_0 = arith.constant 0 : i32
    %c0_i32_1 = arith.constant 0 : i32
    return %c0_i32, %c0_i32_0 : i32, i32
  }
  func.func @transform_6(%arg0: i32) -> (i32, i32, i32) {
    %c0_i32 = arith.constant 0 : i32
    %c0_i32_0 = arith.constant 0 : i32
    %c0_i32_1 = arith.constant 0 : i32
    return %arg0, %c0_i32, %c0_i32_0 : i32, i32, i32
  }
}

</mosaic_0001>

<bundles_post_ra>
// kernel: tpu_custom_call.1
= control target key start
LH: loop header
LB: loop body
LE: loop exit
PB: predicated region body
PF: predicated region fallthrough
CT: control target
= control target key end

     0   :  { %11 = vsyncpa [#allocation3], 0  ;;  %s10053_s0 = inlined_call_operand.vmem [shape: f32[8,128,32], index: 0, kind: input, shape index: {}]   ;;  %s10054_s1 = inlined_call_operand.vmem [shape: bf16[8,128,128], index: 1, kind: input, shape index: {}]   ;;  %s10055_s2 = inlined_call_operand.vmem [shape: f32[32,32], index: 2, kind: input, shape index: {}]   ;;  %s10056_s3 = inlined_call_operand.vmem [shape: f32[1,32], index: 3, kind: input, shape index: {}]   ;;  %s10057_s4 = inlined_call_operand.vmem [shape: f32[32,16], index: 4, kind: input, shape index: {}]   ;;  %s10058_s5 = inlined_call_operand.vmem [shape: f32[1,16], index: 5, kind: input, shape index: {}]   ;;  %s10059_s6 = inlined_call_operand.hbm [shape: f32[2,128,128], index: 6, kind: output, shape index: {}]  }
   0x1   :  { %13 = vsyncpa [#allocation3 + $0x1], 0  ;;  %s6279_s21 = smov 0   ;;  %s6281_s22 = smov 0  }
   0x2   :  { %s6283_s23 = smov 0   ;;  %s6285_s24 = smov 0  }
   0x3 LB: > { %s6300_s25 = sadd.s32 4294967295, %s6233_s24   ;;  %s5556_s26 = sadd.s32 4294967294, %s6233_s24   ;;  %s6233_s24 = sphi %s6285_s24, %s10785_s24   ;;  %s6229_s23 = sphi %s6283_s23, %s10784_s23   ;;  %s6225_s22 = sphi %s6281_s22, %s10783_s22   ;;  %s6221_s21 = sphi %s6279_s21, %s10782_s21  }
   0x4   : > { %s6304_s27 = sadd.s32 1, %s6233_s24   ;;  %s162_s28 = sadd.s32 1, %s6229_s23 }
   0x5   : > { %s159_s29 = ssub.s32 %s6233_s24, %s6304_s27  ;;  %p172_p0 = scmp.ne.s32.totalorder %s6229_s23, %s6225_s22 }
   0x6   : > { %p160_p1 = scmp.eq.s32.totalorder %s159_s29, 0  ;;  %p173_p2 = scmp.eq.s32.totalorder %s6300_s25, 1 }
   0x7   : > { %p178_p3 = scmp.ne.s32.totalorder %s6225_s22, %s6221_s21  ;;  %p179_p4 = scmp.eq.s32.totalorder %s5556_s26, 1 }
   0x8   : > { %s6315_s30 = scalar_select %p160_p1, %s6229_s23, %s162_s28  }
   0x9   : > { %p6317_p5 = por %p173_p2, %p172_p0  ;;  %p6321_p6 = por %p179_p4, %p178_p3 }
   0xa   : > { %p5559_p7 = scmp.ge.s32.totalorder %s6233_s24, 1  ;;  %p229_p8 = scmp.lt.s32.totalorder %s6233_s24, 3 }
   0xc   : > { %p230_p9 = pnand %p5559_p7, %p229_p8 }
   0xe   : > { %233 = sbr.rel (%p230_p9) target bundleno = 3903 (0xf3f), region = 44 }
  0x13   : > { %v443_v0 = vld [vmem:[%s10055_s2 + $0x10] sm:$0xff]  ;;  %v444_v1 = vld [vmem:[%s10055_s2 + $0x18] sm:$0xff]  ;;  %v441_v2 = vld [vmem:[%s10055_s2] sm:$0xff]  ;;  %s5561_s15 = sshll.u32 %s6300_s25, 2  ;;  %vm451_vm0 = vcmask 261120   ;;  %vm4116_vm1 = vcmask 130048  }
  0x14   : > { %v446_v3 = vpack.c.bf16 %v444_v1, %v443_v0  ;;  %v442_v4 = vld [vmem:[%s10055_s2 + $0x8] sm:$0xff]  ;;  %p267_p10 = scmp.lt.s32.totalorder %s5561_s15, 7  ;;  %v6377_v34 = vld [vmem:[%s10056_s3] ss:$0 sm:$0xff]  ;;  %s6235_s13 = smov 16   ;;  %vm5382_vm2 = vcmask 523264  }
  0x15   : > { %v445_v5 = vpack.c.bf16 %v442_v4, %v441_v2  ;;  %s6236_s14 = smov 48   ;;  %s6239_s16 = smov 112   ;;  %vm5365_vm3 = vcmask 392192   ;;  %vm5416_vm4 = vcmask 785408   ;;  %vm5399_vm5 = vcmask 654336  }
  0x16   : > { %554 = vmatpush.bf16.msra.mxu0 %v446_v3  ;;  %s10787_s15 = smov (!%p267_p10, %s5561_s15), 7  ;;  %s6240_s17 = smov 64   ;;  %vm5433_vm6 = vcmask 916480  }
  0x17   : > { %s5764_s18 = sshll.u32 %s10787_s15, 7  ;;  %s5765_s9 = sshll.u32 %s10787_s15, 6 }
  0x18   : > { %s6346_s26 = scalar_lea.vmem %s10053_s0, %s5764_s18  ;;  %s6510_s12 = scalar_lea.vmem %s10054_s1, %s5765_s9 }
  0x19   : > { %v281_v6 = vld [vmem:[%s6346_s26] sm:$0xff]  ;;  %v282_v7 = vld [vmem:[%s6346_s26 + $0x8] sm:$0xff]  ;;  %v283_v9 = vld [vmem:[%s6346_s26 + $0x10] sm:$0xff]  ;;  %s6238_s15 = smov 32   ;;  %s6241_s18 = smov 96  }
  0x1a   : > { %555 = vmatpush.bf16.msra.mxu0 %v445_v5  ;;  %v409_v8 = vpack.c.bf16 %v282_v7, %v281_v6  ;;  %v284_v10 = vld [vmem:[%s6346_s26 + $0x18] sm:$0xff]  ;;  %v285_v12 = vld [vmem:[%s6346_s26 + $0x20] sm:$0xff]  ;;  %v286_v13 = vld [vmem:[%s6346_s26 + $0x28] sm:$0xff]  ;;  %s263_s19 = sand.u32 1, %s6225_s22   ;;  %s5798_s28 = sshll.u32 %s6300_s25, 7 }
  0x1b   : > { %v410_v11 = vpack.c.bf16 %v284_v10, %v283_v9  ;;  %v411_v14 = vpack.c.bf16 %v286_v13, %v285_v12  ;;  %v287_v15 = vld [vmem:[%s6346_s26 + $0x30] sm:$0xff]  ;;  %v288_v16 = vld [vmem:[%s6346_s26 + $0x38] sm:$0xff]  ;;  %v289_v18 = vld [vmem:[%s6346_s26 + $0x40] sm:$0xff]  ;;  %s5560_s20 = sshll.u32 %s263_s19, 7  ;;  %s5478_s10 = scalar_lea.hbm %s10059_s6, %s5798_s28 }
  0x1c   : > { %v412_v17 = vpack.c.bf16 %v288_v16, %v287_v15  ;;  %v290_v19 = vld [vmem:[%s6346_s26 + $0x48] sm:$0xff]  ;;  %v291_v21 = vld [vmem:[%s6346_s26 + $0x50] sm:$0xff]  ;;  %v292_v22 = vld [vmem:[%s6346_s26 + $0x58] sm:$0xff]  ;;  %s5481_s25 = sshll.u32 %s5478_s10, 4  ;;  %s5482_s25 = int_to_ptr.hbm [resolvable:$true] %s5481_s25 }
  0x1d   : > { %5567 = vmatmul.msk.bf16.vlgmr.msra.gmra.mxu0 %vm451_vm0, %v409_v8  ;;  %v413_v20 = vpack.c.bf16 %v290_v19, %v289_v18  ;;  %v414_v23 = vpack.c.bf16 %v292_v22, %v291_v21  ;;  %v293_v24 = vld [vmem:[%s6346_s26 + $0x60] sm:$0xff]  ;;  %v294_v25 = vld [vmem:[%s6346_s26 + $0x68] sm:$0xff]  ;;  %v295_v27 = vld [vmem:[%s6346_s26 + $0x70] sm:$0xff] }
  0x1e   : > { %v415_v26 = vpack.c.bf16 %v294_v25, %v293_v24  ;;  %v296_v28 = vld [vmem:[%s6346_s26 + $0x78] sm:$0xff]  ;;  %v297_v30 = vld [vmem:[%s6346_s26 + $0x80] sm:$0xff]  ;;  %v298_v31 = vld [vmem:[%s6346_s26 + $0x88] sm:$0xff] }
  0x1f   : > { %v416_v29 = vpack.c.bf16 %v296_v28, %v295_v27  ;;  %v417_v32 = vpack.c.bf16 %v298_v31, %v297_v30  ;;  %v299_v40 = vld [vmem:[%s6346_s26 + $0x90] sm:$0xff]  ;;  %v300_v41 = vld [vmem:[%s6346_s26 + $0x98] sm:$0xff]  ;;  %v301_v52 = vld [vmem:[%s6346_s26 + $0xa0] sm:$0xff] }
  0x20   : > { %v418_v44 = vpack.c.bf16 %v300_v41, %v299_v40  ;;  %v302_v53 = vld [vmem:[%s6346_s26 + $0xa8] sm:$0xff]  ;;  %v303_v0 = vld [vmem:[%s6346_s26 + $0xb0] sm:$0xff]  ;;  %v304_v1 = vld [vmem:[%s6346_s26 + $0xb8] sm:$0xff] }
  0x21   : > { %v419_v56 = vpack.c.bf16 %v302_v53, %v301_v52  ;;  %v420_v4 = vpack.c.bf16 %v304_v1, %v303_v0  ;;  %v305_v12 = vld [vmem:[%s6346_s26 + $0xc0] sm:$0xff]  ;;  %v306_v13 = vld [vmem:[%s6346_s26 + $0xc8] sm:$0xff]  ;;  %v308_v21 = vld [vmem:[%s6346_s26 + $0xd8] sm:$0xff] }
  0x22   : > { %v421_v16 = vpack.c.bf16 %v306_v13, %v305_v12  ;;  %v309_v25 = vld [vmem:[%s6346_s26 + $0xe0] sm:$0xff]  ;;  %v311_v30 = vld [vmem:[%s6346_s26 + $0xf0] sm:$0xff]  ;;  %v312_v31 = vld [vmem:[%s6346_s26 + $0xf8] sm:$0xff] }
  0x2d   : > { %5568 = vmatmul.msk.bf16.gmra.mxu0 %vm451_vm0, %v410_v11 }
  0x3d   : > { %5569 = vmatmul.msk.bf16.gmra.mxu0 %vm451_vm0, %v411_v14 }
  0x4d   : > { %5570 = vmatmul.msk.bf16.gmra.mxu0 %vm451_vm0, %v412_v17 }
  0x5d   : > { %5571 = vmatmul.msk.bf16.gmra.mxu0 %vm451_vm0, %v413_v20  ;;  %v307_v20 = vld [vmem:[%s6346_s26 + $0xd0] sm:$0xff] }
  0x5e   : > { %v422_v22 = vpack.c.bf16 %v308_v21, %v307_v20  ;;  %v315_v21 = vld [vmem:[%s6346_s26 + $0x110] sm:$0xff] }
  0x6d   : > { %5572 = vmatmul.msk.bf16.gmra.mxu0 %vm451_vm0, %v414_v23 }
  0x7d   : > { %5573 = vmatmul.msk.bf16.gmra.mxu0 %vm451_vm0, %v415_v26  ;;  %v310_v26 = vld [vmem:[%s6346_s26 + $0xe8] sm:$0xff] }
  0x7e   : > { %v423_v27 = vpack.c.bf16 %v310_v26, %v309_v25 }
  0x8d   : > { %5574 = vmatmul.msk.bf16.gmra.mxu0 %vm451_vm0, %v416_v29 }
  0x9a   : > { %v557_v33 = vpop.f32.mrf.mxu0 }
  0x9b   : > { %v558_v35 = vadd.f32 %v6377_v34, %v557_v33 }
  0x9d   : > { %5575 = vmatmul.msk.bf16.gmra.mxu0 %vm451_vm0, %v417_v32  ;;  %v717_v37 = vpack.c.bf16 %v558_v35, %v558_v35  ;;  %v424_v32 = vpack.c.bf16 %v312_v31, %v311_v30 }
  0x9f   : > { %v6384_v42 = vunpack.c.l.b16 %v717_v37 }
  0xa2   : > { %v559_v36 = vpop.f32.mrf.mxu0 }
  0xa3   : > { %v560_v38 = vadd.f32 %v6377_v34, %v559_v36 }
  0xa5   : > { %v718_v39 = vpack.c.bf16 %v560_v38, %v560_v38 }
  0xa7   : > { %v6386_v43 = vunpack.c.l.b16 %v718_v39 }
  0xa9   : > { %v861_v45 = vpack.c.b16 %v6386_v43, %v6384_v42 }
  0xaa   : > { %v562_v46 = vpop.f32.mrf.mxu0 }
  0xab   : > { %v563_v47 = vadd.f32 %v6377_v34, %v562_v46 }
  0xad   : > { %5576 = vmatmul.msk.bf16.gmra.mxu0 %vm451_vm0, %v418_v44  ;;  %v719_v49 = vpack.c.bf16 %v563_v47, %v563_v47  ;;  %v313_v47 = vld [vmem:[%s6346_s26 + $0x100] sm:$0xff] }
  0xaf   : > { %v6395_v54 = vunpack.c.l.b16 %v719_v49 }
  0xb2   : > { %v564_v48 = vpop.f32.mrf.mxu0 }
  0xb3   : > { %v565_v50 = vadd.f32 %v6377_v34, %v564_v48  ;;  %v314_v48 = vld [vmem:[%s6346_s26 + $0x108] sm:$0xff] }
  0xb5   : > { %v720_v51 = vpack.c.bf16 %v565_v50, %v565_v50 }
  0xb7   : > { %v6397_v55 = vunpack.c.l.b16 %v720_v51 }
  0xb9   : > { %v862_v57 = vpack.c.b16 %v6397_v55, %v6395_v54 }
  0xba   : > { %v567_v58 = vpop.f32.mrf.mxu0 }
  0xbb   : > { %v568_v59 = vadd.f32 %v6377_v34, %v567_v58 }
  0xbd   : > { %5577 = vmatmul.msk.bf16.gmra.mxu0 %vm451_vm0, %v419_v56  ;;  %v721_v61 = vpack.c.bf16 %v568_v59, %v568_v59 }
  0xbf   : > { %v6406_v2 = vunpack.c.l.b16 %v721_v61 }
  0xc2   : > { %v569_v60 = vpop.f32.mrf.mxu0 }
  0xc3   : > { %v570_v62 = vadd.f32 %v6377_v34, %v569_v60  ;;  %v425_v60 = vpack.c.bf16 %v314_v48, %v313_v47 }
  0xc5   : > { %v722_v63 = vpack.c.bf16 %v570_v62, %v570_v62 }
  0xc7   : > { %v6408_v3 = vunpack.c.l.b16 %v722_v63 }
  0xc9   : > { %v863_v5 = vpack.c.b16 %v6408_v3, %v6406_v2 }
  0xca   : > { %v572_v6 = vpop.f32.mrf.mxu0 }
  0xcb   : > { %v573_v7 = vadd.f32 %v6377_v34, %v572_v6 }
  0xcd   : > { %5578 = vmatmul.msk.bf16.gmra.mxu0 %vm451_vm0, %v420_v4  ;;  %v723_v9 = vpack.c.bf16 %v573_v7, %v573_v7 }
  0xcf   : > { %v6417_v14 = vunpack.c.l.b16 %v723_v9 }
  0xd2   : > { %v574_v8 = vpop.f32.mrf.mxu0 }
  0xd3   : > { %v575_v10 = vadd.f32 %v6377_v34, %v574_v8 }
  0xd5   : > { %v724_v11 = vpack.c.bf16 %v575_v10, %v575_v10 }
  0xd7   : > { %v6419_v15 = vunpack.c.l.b16 %v724_v11 }
  0xd9   : > { %v864_v17 = vpack.c.b16 %v6419_v15, %v6417_v14  ;;  %v317_v14 = vld [vmem:[%s6346_s26 + $0x120] sm:$0xff]  ;;  %v318_v15 = vld [vmem:[%s6346_s26 + $0x128] sm:$0xff] }
  0xda   : > { %v577_v18 = vpop.f32.mrf.mxu0  ;;  %v427_v2 = vpack.c.bf16 %v318_v15, %v317_v14 }
  0xdb   : > { %v578_v62 = vadd.f32 %v6377_v34, %v577_v18 }
  0xdd   : > { %5579 = vmatmul.msk.bf16.gmra.mxu0 %vm451_vm0, %v421_v16  ;;  %v725_v7 = vpack.c.bf16 %v578_v62, %v578_v62 }
  0xdf   : > { %v853_v13 = vunpack.c.l.b16 %v725_v7 }
  0xe2   : > { %v579_v19 = vpop.f32.mrf.mxu0 }
  0xe3   : > { %v580_v53 = vadd.f32 %v6377_v34, %v579_v19 }
  0xe5   : > { %v726_v1 = vpack.c.bf16 %v580_v53, %v580_v53 }
  0xe7   : > { %v854_v10 = vunpack.c.l.b16 %v726_v1  ;;  %v325_v1 = vld [vmem:[%s6346_s26 + $0x160] sm:$0xff] }
  0xe9   : > { %v865_v20 = vpack.c.b16 %v854_v10, %v853_v13  ;;  %v328_v10 = vld [vmem:[%s6346_s26 + $0x178] sm:$0xff] }
  0xea   : > { %v582_v23 = vpop.f32.mrf.mxu0 }
  0xeb   : > { %v583_v49 = vadd.f32 %v6377_v34, %v582_v23 }
  0xed   : > { %5580 = vmatmul.msk.bf16.gmra.mxu0 %vm451_vm0, %v422_v22  ;;  %v727_v63 = vpack.c.bf16 %v583_v49, %v583_v49  ;;  %v316_v22 = vld [vmem:[%s6346_s26 + $0x118] sm:$0xff]  ;;  %v321_v49 = vld [vmem:[%s6346_s26 + $0x140] sm:$0xff] }
  0xee   : > { %v426_v25 = vpack.c.bf16 %v316_v22, %v315_v21 }
  0xef   : > { %v855_v8 = vunpack.c.l.b16 %v727_v63 }
  0xf2   : > { %v584_v24 = vpop.f32.mrf.mxu0 }
  0xf3   : > { %v585_v41 = vadd.f32 %v6377_v34, %v584_v24 }
  0xf5   : > { %v728_v56 = vpack.c.bf16 %v585_v41, %v585_v41 }
  0xf7   : > { %v856_v4 = vunpack.c.l.b16 %v728_v56 }
  0xf9   : > { %v866_v11 = vpack.c.b16 %v856_v4, %v855_v8  ;;  %v326_v4 = vld [vmem:[%s6346_s26 + $0x168] sm:$0xff] }
  0xfa   : > { %v587_v28 = vpop.f32.mrf.mxu0 }
  0xfb   : > { %v588_v38 = vadd.f32 %v6377_v34, %v587_v28 }
  0xfd   : > { %5581 = vmatmul.msk.bf16.gmra.mxu0 %vm451_vm0, %v423_v27  ;;  %v729_v50 = vpack.c.bf16 %v588_v38, %v588_v38  ;;  %v320_v38 = vld [vmem:[%s6346_s26 + $0x138] sm:$0xff] }
  0xff   : > { %v857_v0 = vunpack.c.l.b16 %v729_v50  ;;  %v322_v50 = vld [vmem:[%s6346_s26 + $0x148] sm:$0xff] }
 0x100   : > { %v429_v53 = vpack.c.bf16 %v322_v50, %v321_v49 }
 0x102   : > { %v589_v29 = vpop.f32.mrf.mxu0 }
 0x103   : > { %v590_v36 = vadd.f32 %v6377_v34, %v589_v29 }
 0x105   : > { %v730_v44 = vpack.c.bf16 %v590_v36, %v590_v36 }
 0x107   : > { %v858_v58 = vunpack.c.l.b16 %v730_v44 }
 0x109   : > { %v867_v6 = vpack.c.b16 %v858_v58, %v857_v0 }
 0x10a   : > { %v592_v33 = vpop.f32.mrf.mxu0 }
 0x10b   : > { %v593_v35 = vadd.f32 %v6377_v34, %v592_v33 }
 0x10d   : > { %5582 = vmatmul.msk.bf16.gmra.mxu0 %vm451_vm0, %v424_v32  ;;  %v731_v39 = vpack.c.bf16 %v593_v35, %v593_v35 }
 0x10f   : > { %v859_v51 = vunpack.c.l.b16 %v731_v39 }
 0x112   : > { %v594_v37 = vpop.f32.mrf.mxu0 }
 0x113   : > { %v595_v40 = vadd.f32 %v6377_v34, %v594_v37  ;;  %v319_v37 = vld [vmem:[%s6346_s26 + $0x130] sm:$0xff] }
 0x115   : > { %v732_v46 = vpack.c.bf16 %v595_v40, %v595_v40 }
 0x117   : > { %v860_v52 = vunpack.c.l.b16 %v732_v46 }
 0x119   : > { %v868_v59 = vpack.c.b16 %v860_v52, %v859_v51 }
 0x11a   : > { %v597_v61 = vpop.f32.mrf.mxu0 }
 0x11b   : > { %877 = vmatpush.bf16.msra.mxu1 %v868_v59  ;;  %v598_v9 = vadd.f32 %v6377_v34, %v597_v61  ;;  %v324_v61 = vld [vmem:[%s6346_s26 + $0x158] sm:$0xff] }
 0x11d   : > { %5583 = vmatmul.msk.bf16.gmra.mxu0 %vm451_vm0, %v425_v60  ;;  %v733_v16 = vpack.c.bf16 %v598_v9, %v598_v9  ;;  %v323_v60 = vld [vmem:[%s6346_s26 + $0x150] sm:$0xff] }
 0x11e   : > { %v430_v62 = vpack.c.bf16 %v324_v61, %v323_v60  ;;  %v327_v9 = vld [vmem:[%s6346_s26 + $0x170] sm:$0xff]  ;;  %v332_v61 = vld [vmem:[%s6346_s26 + $0x198] sm:$0xff] }
 0x11f   : > { %878 = vmatpush.bf16.msra.mxu1 %v867_v6  ;;  %v6448_v23 = vunpack.c.l.b16 %v733_v16  ;;  %v431_v6 = vpack.c.bf16 %v326_v4, %v325_v1  ;;  %v331_v60 = vld [vmem:[%s6346_s26 + $0x190] sm:$0xff]  ;;  %v6547_v1 = vld [vmem:[%s6510_s12 + $0x18] sm:$0xff]  ;;  %v5774_v4 = vld [vmem:[%s6510_s12 + $0x40] sm:$0xff] }
 0x122   : > { %v599_v12 = vpop.f32.mrf.mxu0 }
 0x123   : > { %v600_v18 = vadd.f32 %v6377_v34, %v599_v12  ;;  %879 = vmatpush.bf16.msra.mxu1 %v866_v11  ;;  %v5766_v11 = vld [vmem:[%s6510_s12] sm:$0xff]  ;;  %v432_v12 = vpack.c.bf16 %v328_v10, %v327_v9  ;;  %v338_v9 = vld [vmem:[%s6346_s26 + $0x1c8] sm:$0xff] }
 0x125   : > { %v734_v19 = vpack.c.bf16 %v600_v18, %v600_v18 }
 0x127   : > { %v6450_v24 = vunpack.c.l.b16 %v734_v19  ;;  %880 = vmatpush.bf16.msra.mxu1 %v865_v20 }
 0x129   : > { %v1006_v26 = vpack.c.b16 %v6450_v24, %v6448_v23 }
 0x12a   : > { %v602_v27 = vpop.f32.mrf.mxu0 }
 0x12b   : > { %881 = vmatpush.bf16.msra.mxu1 %v864_v17  ;;  %v603_v28 = vadd.f32 %v6377_v34, %v602_v27 }
 0x12d   : > { %5584 = vmatmul.msk.bf16.gmra.mxu0 %vm451_vm0, %v426_v25  ;;  %v735_v30 = vpack.c.bf16 %v603_v28, %v603_v28 }
 0x12f   : > { %882 = vmatpush.bf16.msra.mxu1 %v863_v5  ;;  %v6468_v17 = vunpack.c.l.b16 %v735_v30  ;;  %v330_v30 = vld [vmem:[%s6346_s26 + $0x188] sm:$0xff] }
 0x132   : > { %v604_v29 = vpop.f32.mrf.mxu0 }
 0x133   : > { %v605_v31 = vadd.f32 %v6377_v34, %v604_v29  ;;  %883 = vmatpush.bf16.msra.mxu1 %v862_v57  ;;  %v329_v29 = vld [vmem:[%s6346_s26 + $0x180] sm:$0xff] }
 0x135   : > { %v736_v32 = vpack.c.bf16 %v605_v31, %v605_v31  ;;  %v5767_v31 = vld [vmem:[%s6510_s12 + $0x8] sm:$0xff] }
 0x137   : > { %v6470_v33 = vunpack.c.l.b16 %v736_v32  ;;  %884 = vmatpush.bf16.msra.mxu1 %v861_v45  ;;  %v428_v45 = vpack.c.bf16 %v320_v38, %v319_v37 }
 0x139   : > { %v1007_v3 = vpack.c.b16 %v6470_v33, %v6468_v17  ;;  %v6558_v33 = vld [vmem:[%s6510_s12 + $0x20] sm:$0xff] }
 0x13a   : > { %v607_v5 = vpop.f32.mrf.mxu0  ;;  %885 = vmatmul.bf16.vlgmr.msra.gmra.mxu1 %v5766_v11 }
 0x13b   : > { %v608_v54 = vadd.f32 %v6377_v34, %v607_v5 }
 0x13d   : > { %5585 = vmatmul.msk.bf16.gmra.mxu0 %vm451_vm0, %v427_v2  ;;  %v737_v57 = vpack.c.bf16 %v608_v54, %v608_v54 }
 0x13f   : > { %v6482_v42 = vunpack.c.l.b16 %v737_v57 }
 0x142   : > { %v609_v55 = vpop.f32.mrf.mxu0 }
 0x143   : > { %v610_v35 = vadd.f32 %v6377_v34, %v609_v55 }
 0x145   : > { %v738_v36 = vpack.c.bf16 %v610_v35, %v610_v35  ;;  %v433_v35 = vpack.c.bf16 %v330_v30, %v329_v29 }
 0x147   : > { %v6484_v43 = vunpack.c.l.b16 %v738_v36 }
 0x149   : > { %v1008_v39 = vpack.c.b16 %v6484_v43, %v6482_v42 }
 0x14a   : > { %v612_v40 = vpop.f32.mrf.mxu0  ;;  %890 = vmatmul.bf16.gmra.mxu1 %v5767_v31 }
 0x14b   : > { %v613_v41 = vadd.f32 %v6377_v34, %v612_v40 }
 0x14d   : > { %5586 = vmatmul.msk.bf16.gmra.mxu0 %vm451_vm0, %v428_v45  ;;  %v739_v46 = vpack.c.bf16 %v613_v41, %v613_v41 }
 0x14f   : > { %v6493_v51 = vunpack.c.l.b16 %v739_v46 }
 0x152   : > { %v614_v44 = vpop.f32.mrf.mxu0 }
 0x153   : > { %v615_v47 = vadd.f32 %v6377_v34, %v614_v44 }
 0x155   : > { %v740_v48 = vpack.c.bf16 %v615_v47, %v615_v47 }
 0x157   : > { %v6495_v52 = vunpack.c.l.b16 %v740_v48 }
 0x159   : > { %v1009_v56 = vpack.c.b16 %v6495_v52, %v6493_v51  ;;  %v333_v51 = vld [vmem:[%s6346_s26 + $0x1a0] sm:$0xff]  ;;  %v334_v52 = vld [vmem:[%s6346_s26 + $0x1a8] sm:$0xff] }
 0x15a   : > { %v617_v58 = vpop.f32.mrf.mxu0  ;;  %v435_v42 = vpack.c.bf16 %v334_v52, %v333_v51 }
 0x15b   : > { %v618_v37 = vadd.f32 %v6377_v34, %v617_v58  ;;  %v6531_v58 = vld [vmem:[%s6510_s12 + $0x10] sm:$0xff] }
 0x15c   : > { %895 = vmatmul.bf16.gmra.mxu1 %v6531_v58 }
 0x15d   : > { %5587 = vmatmul.msk.bf16.gmra.mxu0 %vm451_vm0, %v429_v53  ;;  %v741_v46 = vpack.c.bf16 %v618_v37, %v618_v37 }
 0x15f   : > { %v998_v53 = vunpack.c.l.b16 %v741_v46 }
 0x162   : > { %v619_v59 = vpop.f32.mrf.mxu0 }
 0x163   : > { %v620_v5 = vadd.f32 %v6377_v34, %v619_v59 }
 0x165   : > { %v742_v40 = vpack.c.bf16 %v620_v5, %v620_v5 }
 0x167   : > { %v999_v48 = vunpack.c.l.b16 %v742_v40 }
 0x169   : > { %v1010_v59 = vpack.c.b16 %v999_v48, %v998_v53 }
 0x16a   : > { %v622_v63 = vpop.f32.mrf.mxu0 }
 0x16b   : > { %v623_v32 = vadd.f32 %v6377_v34, %v622_v63 }
 0x16c   : > { %900 = vmatmul.bf16.gmra.mxu1 %v6547_v1 }
 0x16d   : > { %5588 = vmatmul.msk.bf16.gmra.mxu0 %vm451_vm0, %v430_v62  ;;  %v743_v38 = vpack.c.bf16 %v623_v32, %v623_v32  ;;  %v434_v62 = vpack.c.bf16 %v332_v61, %v331_v60  ;;  %v5773_v32 = vld [vmem:[%s6510_s12 + $0x38] sm:$0xff]  ;;  %v5779_v61 = vld [vmem:[%s6510_s12 + $0x68] sm:$0xff] }
 0x16f   : > { %v1000_v47 = vunpack.c.l.b16 %v743_v38 }
 0x172   : > { %v624_v0 = vpop.f32.mrf.mxu0 }
 0x173   : > { %v625_v25 = vadd.f32 %v6377_v34, %v624_v0 }
 0x175   : > { %v744_v54 = vpack.c.bf16 %v625_v25, %v625_v25 }
 0x177   : > { %v1001_v41 = vunpack.c.l.b16 %v744_v54 }
 0x179   : > { %v1011_v49 = vpack.c.b16 %v1001_v41, %v1000_v47 }
 0x17a   : > { %v627_v7 = vpop.f32.mrf.mxu0 }
 0x17b   : > { %v628_v20 = vadd.f32 %v6377_v34, %v627_v7  ;;  %v5776_v7 = vld [vmem:[%s6510_s12 + $0x50] sm:$0xff] }
 0x17c   : > { %905 = vmatmul.bf16.gmra.mxu1 %v6558_v33 }
 0x17d   : > { %5589 = vmatmul.msk.bf16.gmra.mxu0 %vm451_vm0, %v431_v6  ;;  %v745_v14 = vpack.c.bf16 %v628_v20, %v628_v20  ;;  %v6566_v6 = vld [vmem:[%s6510_s12 + $0x28] sm:$0xff] }
 0x17f   : > { %v1002_v45 = vunpack.c.l.b16 %v745_v14  ;;  %v5778_v14 = vld [vmem:[%s6510_s12 + $0x60] sm:$0xff] }
 0x182   : > { %v629_v8 = vpop.f32.mrf.mxu0 }
 0x183   : > { %v630_v18 = vadd.f32 %v6377_v34, %v629_v8  ;;  %v337_v8 = vld [vmem:[%s6346_s26 + $0x1c0] sm:$0xff] }
 0x184   : > { %v437_v10 = vpack.c.bf16 %v338_v9, %v337_v8 }
 0x185   : > { %v746_v27 = vpack.c.bf16 %v630_v18, %v630_v18  ;;  %v339_v18 = vld [vmem:[%s6346_s26 + $0x1d0] sm:$0xff] }
 0x187   : > { %v1003_v55 = vunpack.c.l.b16 %v746_v27 }
 0x189   : > { %v1012_v44 = vpack.c.b16 %v1003_v55, %v1002_v45 }
 0x18a   : > { %v632_v13 = vpop.f32.mrf.mxu0 }
 0x18b   : > { %v633_v16 = vadd.f32 %v6377_v34, %v632_v13  ;;  %v5772_v13 = vld [vmem:[%s6510_s12 + $0x30] sm:$0xff] }
 0x18c   : > { %910 = vmatmul.bf16.gmra.mxu1 %v6566_v6 }
 0x18d   : > { %5590 = vmatmul.msk.bf16.gmra.mxu0 %vm451_vm0, %v432_v12  ;;  %v747_v21 = vpack.c.bf16 %v633_v16, %v633_v16  ;;  %v5777_v16 = vld [vmem:[%s6510_s12 + $0x58] sm:$0xff] }
 0x18f   : > { %v1004_v15 = vunpack.c.l.b16 %v747_v21 }
 0x192   : > { %v634_v19 = vpop.f32.mrf.mxu0 }
 0x193   : > { %v635_v22 = vadd.f32 %v6377_v34, %v634_v19  ;;  %v340_v19 = vld [vmem:[%s6346_s26 + $0x1d8] sm:$0xff] }
 0x194   : > { %v438_v20 = vpack.c.bf16 %v340_v19, %v339_v18 }
 0x195   : > { %v748_v28 = vpack.c.bf16 %v635_v22, %v635_v22 }
 0x197   : > { %v1005_v2 = vunpack.c.l.b16 %v748_v28 }
 0x199   : > { %v1013_v57 = vpack.c.b16 %v1005_v2, %v1004_v15  ;;  %v341_v15 = vld [vmem:[%s6346_s26 + $0x1e0] sm:$0xff]  ;;  %v342_v2 = vld [vmem:[%s6346_s26 + $0x1e8] sm:$0xff] }
 0x19a   : > { %v6526_v36 = vpop.f32.mrf.mxu0  ;;  %v439_v54 = vpack.c.bf16 %v342_v2, %v341_v15 }
 0x19b   : > { %1022 = vmatpush.bf16.msra.mxu2 %v1013_v57  ;;  %v638_v21 = vadd.f32 %v6377_v34, %v6526_v36 }
 0x19c   : > { %915 = vmatmul.bf16.gmra.mxu1 %v5772_v13 }
 0x19d   : > { %5591 = vmatmul.msk.bf16.gmra.mxu0 %vm451_vm0, %v433_v35  ;;  %v749_v27 = vpack.c.bf16 %v638_v21, %v638_v21 }
 0x19f   : > { %1023 = vmatpush.bf16.msra.mxu2 %v1012_v44  ;;  %v6585_v29 = vunpack.c.l.b16 %v749_v27 }
 0x1a2   : > { %v639_v50 = vpop.f32.mrf.mxu0 }
 0x1a3   : > { %1024 = vmatpush.bf16.msra.mxu2 %v1011_v49  ;;  %v640_v22 = vadd.f32 %v6377_v34, %v639_v50 }
 0x1a5   : > { %v750_v28 = vpack.c.bf16 %v640_v22, %v640_v22 }
 0x1a7   : > { %1025 = vmatpush.bf16.msra.mxu2 %v1010_v59  ;;  %v6587_v30 = vunpack.c.l.b16 %v750_v28 }
 0x1a9   : > { %v1151_v5 = vpack.c.b16 %v6587_v30, %v6585_v29 }
 0x1aa   : > { %v642_v63 = vpop.f32.mrf.mxu0 }
 0x1ab   : > { %1026 = vmatpush.bf16.msra.mxu2 %v1009_v56  ;;  %v336_v56 = vld [vmem:[%s6346_s26 + $0x1b8] sm:$0xff]  ;;  %v643_v55 = vadd.f32 %v6377_v34, %v642_v63 }
 0x1ac   : > { %920 = vmatmul.bf16.gmra.mxu1 %v5773_v32  ;;  %v344_v63 = vld [vmem:[%s6346_s26 + $0x1f8] sm:$0xff] }
 0x1ad   : > { %5592 = vmatmul.msk.bf16.gmra.mxu0 %vm451_vm0, %v434_v62  ;;  %v751_v38 = vpack.c.bf16 %v643_v55, %v643_v55  ;;  %v343_v62 = vld [vmem:[%s6346_s26 + $0x1f0] sm:$0xff] }
 0x1ae   : > { %v440_v52 = vpack.c.bf16 %v344_v63, %v343_v62 }
 0x1af   : > { %1027 = vmatpush.bf16.msra.mxu2 %v1008_v39  ;;  %v335_v39 = vld [vmem:[%s6346_s26 + $0x1b0] sm:$0xff]  ;;  %v6602_v47 = vunpack.c.l.b16 %v751_v38  ;;  %s9873_s26 = scalar_lea.vmem [#allocation2], %s5560_s20 }
 0x1b0   : > { %v436_v23 = vpack.c.bf16 %v336_v56, %v335_v39  ;;  %v1457_v39 = vld [vmem:[%s10057_s4] sm:$0xff]  ;;  %s5479_s11 = sshll.u32 %s9873_s26, 4  ;;  %s5480_s11 = int_to_ptr.vmem [resolvable:$true] %s5479_s11 }
 0x1b2   : > { %v644_v0 = vpop.f32.mrf.mxu0 }
 0x1b3   : > { %1028 = vmatpush.bf16.msra.mxu2 %v1007_v3  ;;  %v5775_v3 = vld [vmem:[%s6510_s12 + $0x48] sm:$0xff]  ;;  %v645_v57 = vadd.f32 %v6377_v34, %v644_v0 }
 0x1b5   : > { %v752_v45 = vpack.c.bf16 %v645_v57, %v645_v57 }
 0x1b7   : > { %1029 = vmatpush.bf16.msra.mxu2 %v1006_v26  ;;  %v6604_v48 = vunpack.c.l.b16 %v752_v45  ;;  %v886_v56 = vpop.f32.mrf.mxu1 }
 0x1b8   : > { %v1361_v63 = vmax.f32 %v886_v56, 0.0 }
 0x1b9   : > { %v1152_v0 = vpack.c.b16 %v6604_v48, %v6602_v47 }
 0x1ba   : > { %1030 = vmatmul.bf16.vlgmr.msra.gmra.mxu2 %v5774_v4  ;;  %v647_v43 = vpop.f32.mrf.mxu0 }
 0x1bb   : > { %v648_v40 = vadd.f32 %v6377_v34, %v647_v43 }
 0x1bd   : > { %5593 = vmatmul.msk.bf16.gmra.mxu0 %vm451_vm0, %v435_v42  ;;  %v753_v50 = vpack.c.bf16 %v648_v40, %v648_v40 }
 0x1bf   : > { %v1139_v4 = vunpack.c.l.b16 %v753_v50  ;;  %v888_v32 = vpop.f32.mrf.mxu1 }
 0x1c2   : > { %v649_v17 = vpop.f32.mrf.mxu0 }
 0x1c3   : > { %v650_v41 = vadd.f32 %v6377_v34, %v649_v17  ;;  %v1459_v17 = vld [vmem:[%s10057_s4 + $0x10] sm:$0xff] }
 0x1c5   : > { %v754_v53 = vpack.c.bf16 %v650_v41, %v650_v41 }
 0x1c7   : > { %v1140_v51 = vunpack.c.l.b16 %v754_v53  ;;  %v5781_v53 = vld [vmem:[%s6510_s12 + $0x78] sm:$0xff] }
 0x1c9   : > { %v1153_v8 = vpack.c.b16 %v1140_v51, %v1139_v4  ;;  %v1362_v4 = vmax.f32 %v888_v32, 0.0 }
 0x1ca   : > { %1035 = vmatmul.bf16.gmra.mxu2 %v5775_v3  ;;  %v652_v24 = vpop.f32.mrf.mxu0  ;;  %v1460_v3 = vld [vmem:[%s10057_s4 + $0x18] sm:$0xff] }
 0x1cb   : > { %v653_v36 = vadd.f32 %v6377_v34, %v652_v24  ;;  %v1458_v24 = vld [vmem:[%s10057_s4 + $0x8] sm:$0xff]  ;;  %v1425_v51 = vpack.c.bf16 %v1362_v4, %v1361_v63 }
 0x1cd   : > { %5594 = vmatmul.msk.bf16.gmra.mxu0 %vm451_vm0, %v436_v23  ;;  %v755_v44 = vpack.c.bf16 %v653_v36, %v653_v36  ;;  %v1462_v23 = vpack.c.bf16 %v1460_v3, %v1459_v17 }
 0x1cf   : > { %v6606_v59 = vunpack.c.l.b16 %v755_v44  ;;  %1569 = vmatpush.bf16.msrb.mxu2 %v1462_v23 }
 0x1d2   : > { %v654_v26 = vpop.f32.mrf.mxu0 }
 0x1d3   : > { %v655_v37 = vadd.f32 %v6377_v34, %v654_v26 }
 0x1d5   : > { %v756_v46 = vpack.c.bf16 %v655_v37, %v655_v37 }
 0x1d7   : > { %v6608_v60 = vunpack.c.l.b16 %v756_v46  ;;  %v891_v46 = vpop.f32.mrf.mxu1 }
 0x1d8   : > { %v1363_v3 = vmax.f32 %v891_v46, 0.0 }
 0x1d9   : > { %v1154_v42 = vpack.c.b16 %v6608_v60, %v6606_v59 }
 0x1da   : > { %1040 = vmatmul.bf16.gmra.mxu2 %v5776_v7  ;;  %v6572_v11 = vpop.f32.mrf.mxu0  ;;  %v1461_v7 = vpack.c.bf16 %v1458_v24, %v1457_v39 }
 0x1dc   : > { %1570 = vmatpush.bf16.msrb.mxu2 %v1461_v7 }
 0x1dd   : > { %5595 = vmatmul.msk.bf16.gmra.mxu0 %vm451_vm0, %v437_v10 }
 0x1df   : > { %v893_v59 = vpop.f32.mrf.mxu1 }
 0x1e0   : > { %v1364_v39 = vmax.f32 %v893_v59, 0.0 }
 0x1e2   : > { %v6575_v12 = vpop.f32.mrf.mxu0  ;;  %v1426_v23 = vpack.c.bf16 %v1364_v39, %v1363_v3 }
 0x1e3   : > { %v660_v15 = vadd.f32 %v6377_v34, %v6575_v12 }
 0x1e5   : > { %v758_v38 = vpack.c.bf16 %v660_v15, %v660_v15 }
 0x1e7   : > { %v1144_v44 = vunpack.c.l.b16 %v758_v38  ;;  %v896_v62 = vpop.f32.mrf.mxu1 }
 0x1e8   : > { %v1365_v7 = vmax.f32 %v896_v62, 0.0 }
 0x1ea   : > { %1045 = vmatmul.bf16.gmra.mxu2 %v5777_v16  ;;  %v662_v25 = vpop.f32.mrf.mxu0 }
 0x1eb   : > { %v663_v16 = vadd.f32 %v6377_v34, %v662_v25 }
 0x1ed   : > { %5596 = vmatmul.msk.bf16.gmra.mxu0 %vm451_vm0, %v438_v20  ;;  %v759_v2 = vpack.c.bf16 %v663_v16, %v663_v16 }
 0x1ef   : > { %v1145_v45 = vunpack.c.l.b16 %v759_v2 }
 0x1f2   : > { %v664_v31 = vpop.f32.mrf.mxu0 }
 0x1f3   : > { %v665_v19 = vadd.f32 %v6377_v34, %v664_v31 }
 0x1f5   : > { %v760_v55 = vpack.c.bf16 %v665_v19, %v665_v19 }
 0x1f7   : > { %v1146_v40 = vunpack.c.l.b16 %v760_v55 }
 0x1f9   : > { %v1156_v12 = vpack.c.b16 %v1146_v40, %v1145_v45 }
 0x1fa   : > { %1050 = vmatmul.bf16.gmra.mxu2 %v5778_v14  ;;  %v667_v35 = vpop.f32.mrf.mxu0  ;;  %v658_v14 = vadd.f32 %v6377_v34, %v6572_v11 }
 0x1fb   : > { %v668_v9 = vadd.f32 %v6377_v34, %v667_v35 }
 0x1fc   : > { %v757_v36 = vpack.c.bf16 %v658_v14, %v658_v14 }
 0x1fd   : > { %5597 = vmatmul.msk.bf16.gmra.mxu0 %vm451_vm0, %v439_v54  ;;  %v761_v20 = vpack.c.bf16 %v668_v9, %v668_v9  ;;  %v5780_v54 = vld [vmem:[%s6510_s12 + $0x70] sm:$0xff] }
 0x1fe   : > { %v1143_v41 = vunpack.c.l.b16 %v757_v36 }
 0x1ff   : > { %v1147_v25 = vunpack.c.l.b16 %v761_v20 }
 0x200   : > { %v1155_v50 = vpack.c.b16 %v1144_v44, %v1143_v41 }
 0x202   : > { %v669_v49 = vpop.f32.mrf.mxu0 }
 0x203   : > { %v670_v10 = vadd.f32 %v6377_v34, %v669_v49 }
 0x205   : > { %v762_v21 = vpack.c.bf16 %v670_v10, %v670_v10 }
 0x207   : > { %v1148_v57 = vunpack.c.l.b16 %v762_v21 }
 0x209   : > { %v1157_v11 = vpack.c.b16 %v1148_v57, %v1147_v25 }
 0x20a   : > { %1055 = vmatmul.bf16.gmra.mxu2 %v5779_v61  ;;  %v672_v43 = vpop.f32.mrf.mxu0 }
 0x20b   : > { %v673_v26 = vadd.f32 %v6377_v34, %v672_v43  ;;  %v898_v43 = vpop.f32.mrf.mxu1 }
 0x20d   : > { %5598 = vmatmul.msk.bf16.gmra.mxu0 %vm451_vm0, %v440_v52  ;;  %v763_v13 = vpack.c.bf16 %v673_v26, %v673_v26 }
 0x20f   : > { %v1149_v27 = vunpack.c.l.b16 %v763_v13 }
 0x212   : > { %v674_v18 = vpop.f32.mrf.mxu0 }
 0x213   : > { %v675_v22 = vadd.f32 %v6377_v34, %v674_v18  ;;  %v901_v56 = vpop.f32.mrf.mxu1 }
 0x215   : > { %v764_v28 = vpack.c.bf16 %v675_v22, %v675_v22 }
 0x217   : > { %v1150_v35 = vunpack.c.l.b16 %v764_v28 }
 0x219   : > { %v1158_v31 = vpack.c.b16 %v1150_v35, %v1149_v27  ;;  %v1367_v27 = vmax.f32 %v901_v56, 0.0 }
 0x21a   : > { %1060 = vmatmul.bf16.gmra.mxu2 %v5780_v54  ;;  %v6641_v37 = vpop.f32.mrf.mxu0 }
 0x21b   : > { %1167 = vmatpush.bf16.msra.mxu3 %v1158_v31 }
 0x21f   : > { %1168 = vmatpush.bf16.msra.mxu3 %v1157_v11 }
 0x222   : > { %v6643_v49 = vpop.f32.mrf.mxu0 }
 0x223   : > { %1169 = vmatpush.bf16.msra.mxu3 %v1156_v12 }
 0x227   : > { %1170 = vmatpush.bf16.msra.mxu3 %v1155_v50 }
 0x22a   : > { %1065 = vmatmul.bf16.gmra.mxu2 %v5781_v53  ;;  %v6646_v60 = vpop.f32.mrf.mxu0 }
 0x22b   : > { %1171 = vmatpush.bf16.msra.mxu3 %v1154_v42 }
 0x22f   : > { %1172 = vmatpush.bf16.msra.mxu3 %v1153_v8  ;;  %v1366_v8 = vmax.f32 %v898_v43, 0.0 }
 0x231   : > { %v1427_v16 = vpack.c.bf16 %v1366_v8, %v1365_v7 }
 0x232   : > { %v6648_v61 = vpop.f32.mrf.mxu0 }
 0x233   : > { %1173 = vmatpush.bf16.msra.mxu3 %v1152_v0 }
 0x237   : > { %1174 = vmatpush.bf16.msra.mxu3 %v1151_v5  ;;  %v903_v5 = vpop.f32.mrf.mxu1 }
 0x238   : > { %v1368_v28 = vmax.f32 %v903_v5, 0.0 }
 0x23a   : > { %5727 = vmatmul.msk.bf16.vlgmr.msrb.gmra.mxu2 %vm451_vm0, %v1425_v51  ;;  %v6657_v52 = vpop.f32.mrf.mxu0  ;;  %v1428_v54 = vpack.c.bf16 %v1368_v28, %v1367_v27  ;;  %v5782_v51 = vld [vmem:[%s6510_s12 + $0x80] sm:$0xff] }
 0x23b   : > { %1175 = vmatmul.bf16.vlgmr.msra.gmra.mxu3 %v5782_v51 }
 0x23d   : > { %v1031_v42 = vpop.f32.mrf.mxu2 }
 0x23e   : > { %v1377_v48 = vmax.f32 %v1031_v42, 0.0 }
 0x23f   : > { %v906_v20 = vpop.f32.mrf.mxu1 }
 0x240   : > { %v1369_v36 = vmax.f32 %v906_v20, 0.0 }
 0x242   : > { %v6659_v17 = vpop.f32.mrf.mxu0 }
 0x245   : > { %v1033_v47 = vpop.f32.mrf.mxu2 }
 0x246   : > { %v1378_v0 = vmax.f32 %v1033_v47, 0.0 }
 0x247   : > { %v908_v14 = vpop.f32.mrf.mxu1 }
 0x248   : > { %v6661_v24 = vpack.c.bf16 %v1378_v0, %v1377_v48  ;;  %v1370_v38 = vmax.f32 %v908_v14, 0.0 }
 0x24a   : > { %5728 = vmatmul.msk.bf16.gmra.mxu2 %vm451_vm0, %v1426_v23  ;;  %v6664_v29 = vpop.f32.mrf.mxu0  ;;  %v1429_v41 = vpack.c.bf16 %v1370_v38, %v1369_v36 }
 0x24d   : > { %v1036_v30 = vpop.f32.mrf.mxu2 }
 0x24e   : > { %v1379_v10 = vmax.f32 %v1036_v30, 0.0 }
 0x24f   : > { %v911_v35 = vpop.f32.mrf.mxu1 }
 0x250   : > { %v1371_v62 = vmax.f32 %v911_v35, 0.0 }
 0x252   : > { %v6666_v26 = vpop.f32.mrf.mxu0 }
 0x255   : > { %v1038_v9 = vpop.f32.mrf.mxu2 }
 0x256   : > { %v1380_v13 = vmax.f32 %v1038_v9, 0.0 }
 0x257   : > { %v913_v12 = vpop.f32.mrf.mxu1 }
 0x258   : > { %v6668_v18 = vpack.c.bf16 %v1380_v13, %v1379_v10  ;;  %v1372_v63 = vmax.f32 %v913_v12, 0.0  ;;  %v695_v12 = vadd.f32 %v6377_v34, %v6666_v26 }
 0x25a   : > { %5729 = vmatmul.msk.bf16.gmra.mxu2 %vm451_vm0, %v1427_v16  ;;  %v697_v19 = vpop.f32.mrf.mxu0  ;;  %v1430_v3 = vpack.c.bf16 %v1372_v63, %v1371_v62  ;;  %v688_v63 = vadd.f32 %v6377_v34, %v6657_v52 }
 0x25b   : > { %v698_v27 = vadd.f32 %v6377_v34, %v697_v19  ;;  %v693_v19 = vadd.f32 %v6377_v34, %v6664_v29  ;;  %v772_v29 = vpack.c.bf16 %v695_v12, %v695_v12  ;;  %v6728_v12 = vld [vmem:[%s10058_s5] ss:$0 sm:$0xff] }
 0x25d   : > { %v1041_v21 = vpop.f32.mrf.mxu2  ;;  %v771_v51 = vpack.c.bf16 %v693_v19, %v693_v19 }
 0x25e   : > { %v1381_v15 = vmax.f32 %v1041_v21, 0.0 }
 0x25f   : > { %v916_v59 = vpop.f32.mrf.mxu1  ;;  %v1286_v52 = vunpack.c.l.b16 %v771_v51 }
 0x260   : > { %v1373_v20 = vmax.f32 %v916_v59, 0.0 }
 0x262   : > { %v699_v22 = vpop.f32.mrf.mxu0 }
 0x265   : > { %v1043_v32 = vpop.f32.mrf.mxu2 }
 0x266   : > { %v1382_v2 = vmax.f32 %v1043_v32, 0.0 }
 0x267   : > { %v918_v48 = vpop.f32.mrf.mxu1 }
 0x268   : > { %v6671_v55 = vpack.c.bf16 %v1382_v2, %v1381_v15  ;;  %v1374_v21 = vmax.f32 %v918_v48, 0.0  ;;  %v5783_v15 = vld [vmem:[%s6510_s12 + $0x88] sm:$0xff]  ;;  %v700_v2 = vadd.f32 %v6377_v34, %v699_v22  ;;  %v773_v22 = vpack.c.bf16 %v698_v27, %v698_v27 }
 0x269   : > { %1180 = vmatmul.bf16.gmra.mxu3 %v5783_v15  ;;  %v685_v48 = vadd.f32 %v6377_v34, %v6648_v61 }
 0x26a   : > { %5730 = vmatmul.msk.bf16.gmra.mxu2 %vm451_vm0, %v1428_v54  ;;  %v702_v25 = vpop.f32.mrf.mxu0 }
 0x26b   : > { %v703_v7 = vadd.f32 %v6377_v34, %v702_v25 }
 0x26d   : > { %v1046_v57 = vpop.f32.mrf.mxu2  ;;  %v775_v54 = vpack.c.bf16 %v703_v7, %v703_v7  ;;  %v6105_v7 = vld [vmem:[%s10056_s3] ss:$0 sm:$0xff] }
 0x26e   : > { %v1383_v40 = vmax.f32 %v1046_v57, 0.0 }
 0x26f   : > { %v921_v38 = vpop.f32.mrf.mxu1 }
 0x272   : > { %v704_v31 = vpop.f32.mrf.mxu0 }
 0x273   : > { %v705_v9 = vadd.f32 %v6377_v34, %v704_v31 }
 0x275   : > { %v1048_v45 = vpop.f32.mrf.mxu2  ;;  %v776_v35 = vpack.c.bf16 %v705_v9, %v705_v9 }
 0x276   : > { %v1384_v11 = vmax.f32 %v1048_v45, 0.0 }
 0x278   : > { %v6674_v44 = vpack.c.bf16 %v1384_v11, %v1383_v40  ;;  %v1431_v40 = vpack.c.bf16 %v1374_v21, %v1373_v20 }
 0x27a   : > { %5731 = vmatmul.msk.bf16.gmra.mxu2 %vm451_vm0, %v1429_v41  ;;  %v707_v46 = vpop.f32.mrf.mxu0 }
 0x27b   : > { %v708_v23 = vadd.f32 %v6377_v34, %v707_v46  ;;  %v774_v46 = vpack.c.bf16 %v700_v2, %v700_v2 }
 0x27d   : > { %v1051_v50 = vpop.f32.mrf.mxu2  ;;  %v777_v10 = vpack.c.bf16 %v708_v23, %v708_v23  ;;  %v1287_v23 = vunpack.c.l.b16 %v772_v29 }
 0x27e   : > { %v1385_v42 = vmax.f32 %v1051_v50, 0.0  ;;  %v1290_v50 = vunpack.c.l.b16 %v775_v54 }
 0x27f   : > { %v1292_v36 = vunpack.c.l.b16 %v777_v10  ;;  %v6710_v10 = vld [vmem:[%s6510_s12 + $0x90] sm:$0xff]  ;;  %v1299_v27 = vpack.c.b16 %v1287_v23, %v1286_v52 }
 0x280   : > { %1185 = vmatmul.bf16.gmra.mxu3 %v6710_v10 }
 0x282   : > { %v709_v53 = vpop.f32.mrf.mxu0 }
 0x283   : > { %v710_v30 = vadd.f32 %v6377_v34, %v709_v53  ;;  %v1291_v53 = vunpack.c.l.b16 %v776_v35 }
 0x285   : > { %v1053_v4 = vpop.f32.mrf.mxu2  ;;  %v778_v13 = vpack.c.bf16 %v710_v30, %v710_v30  ;;  %v1301_v26 = vpack.c.b16 %v1291_v53, %v1290_v50  ;;  %v1375_v30 = vmax.f32 %v921_v38, 0.0  ;;  %v6718_v38 = vld [vmem:[%s6510_s12 + $0x98] sm:$0xff]  ;;  %v6732_v50 = vld [vmem:[%s6510_s12 + $0xa0] sm:$0xff] }
 0x286   : > { %v1386_v43 = vmax.f32 %v1053_v4, 0.0  ;;  %v690_v4 = vadd.f32 %v6377_v34, %v6659_v17 }
 0x287   : > { %v1293_v31 = vunpack.c.l.b16 %v778_v13 }
 0x288   : > { %v6678_v39 = vpack.c.bf16 %v1386_v43, %v1385_v42  ;;  %v1288_v42 = vunpack.c.l.b16 %v773_v22  ;;  %v1289_v43 = vunpack.c.l.b16 %v774_v46 }
 0x289   : > { %v1302_v59 = vpack.c.b16 %v1293_v31, %v1292_v36 }
 0x28a   : > { %5732 = vmatmul.msk.bf16.gmra.mxu2 %vm451_vm0, %v1430_v3  ;;  %v712_v47 = vpop.f32.mrf.mxu0  ;;  %v923_v3 = vpop.f32.mrf.mxu1  ;;  %v1300_v17 = vpack.c.b16 %v1289_v43, %v1288_v42  ;;  %v6746_v43 = vld [vmem:[%s6510_s12 + $0xa8] sm:$0xff] }
 0x28b   : > { %v713_v56 = vadd.f32 %v6377_v34, %v712_v47  ;;  %v683_v47 = vadd.f32 %v6377_v34, %v6646_v60  ;;  %v680_v60 = vadd.f32 %v6105_v7, %v6643_v49 }
 0x28d   : > { %v1056_v0 = vpop.f32.mrf.mxu2  ;;  %v779_v5 = vpack.c.bf16 %v713_v56, %v713_v56  ;;  %v770_v56 = vpack.c.bf16 %v690_v4, %v690_v4 }
 0x28e   : > { %v1387_v57 = vmax.f32 %v1056_v0, 0.0  ;;  %v769_v0 = vpack.c.bf16 %v688_v63, %v688_v63 }
 0x28f   : > { %v1294_v32 = vunpack.c.l.b16 %v779_v5  ;;  %v1376_v5 = vmax.f32 %v923_v3, 0.0  ;;  %v1285_v21 = vunpack.c.l.b16 %v770_v56 }
 0x290   : > { %v1284_v20 = vunpack.c.l.b16 %v769_v0  ;;  %1190 = vmatmul.bf16.gmra.mxu3 %v6718_v38 }
 0x292   : > { %v714_v8 = vpop.f32.mrf.mxu0  ;;  %v1298_v2 = vpack.c.b16 %v1285_v21, %v1284_v20 }
 0x293   : > { %v715_v16 = vadd.f32 %v6377_v34, %v714_v8  ;;  %v678_v8 = vadd.f32 %v6105_v7, %v6641_v37  ;;  %v767_v34 = vpack.c.bf16 %v683_v47, %v683_v47 }
 0x295   : > { %v1058_v28 = vpop.f32.mrf.mxu2  ;;  %v780_v14 = vpack.c.bf16 %v715_v16, %v715_v16  ;;  %v768_v16 = vpack.c.bf16 %v685_v48, %v685_v48  ;;  %v765_v37 = vpack.c.bf16 %v678_v8, %v678_v8  ;;  %v1282_v15 = vunpack.c.l.b16 %v767_v34 }
 0x296   : > { %v1388_v25 = vmax.f32 %v1058_v28, 0.0  ;;  %v1432_v28 = vpack.c.bf16 %v1376_v5, %v1375_v30 }
 0x297   : > { %v1295_v45 = vunpack.c.l.b16 %v780_v14  ;;  %v766_v14 = vpack.c.bf16 %v680_v60, %v680_v60  ;;  %v1283_v49 = vunpack.c.l.b16 %v768_v16 }
 0x298   : > { %v6690_v11 = vpack.c.bf16 %v1388_v25, %v1387_v57  ;;  %v1280_v57 = vunpack.c.l.b16 %v765_v37 }
 0x299   : > { %v1303_v41 = vpack.c.b16 %v1295_v45, %v1294_v32  ;;  %v1281_v25 = vunpack.c.l.b16 %v766_v14  ;;  %v1297_v35 = vpack.c.b16 %v1283_v49, %v1282_v15 }
 0x29a   : > { %5733 = vmatmul.msk.bf16.gmra.mxu2 %vm451_vm0, %v1431_v40 }
 0x29b   : > { %1312 = vmatpush.bf16.msrb.mxu1 %v1303_v41  ;;  %v1296_v36 = vpack.c.b16 %v1281_v25, %v1280_v57 }
 0x29d   : > { %v1061_v62 = vpop.f32.mrf.mxu2 }
 0x29e   : > { %v1389_v61 = vmax.f32 %v1061_v62, 0.0 }
 0x29f   : > { %1313 = vmatpush.bf16.msrb.mxu1 %v1302_v59 }
 0x2a0   : > { %1195 = vmatmul.bf16.gmra.mxu3 %v6732_v50 }
 0x2a3   : > { %1314 = vmatpush.bf16.msrb.mxu1 %v1301_v26 }
 0x2a5   : > { %v1063_v9 = vpop.f32.mrf.mxu2 }
 0x2a6   : > { %v1390_v13 = vmax.f32 %v1063_v9, 0.0 }
 0x2a7   : > { %1315 = vmatpush.bf16.msrb.mxu1 %v1300_v17  ;;  %v6760_v17 = vld [vmem:[%s6510_s12 + $0xb0] sm:$0xff] }
 0x2a8   : > { %v6714_v32 = vpack.c.bf16 %v1390_v13, %v1389_v61  ;;  %v6774_v13 = vld [vmem:[%s6510_s12 + $0xb8] sm:$0xff] }
 0x2aa   : > { %5734 = vmatmul.msk.bf16.gmra.mxu2 %vm451_vm0, %v1432_v28 }
 0x2ab   : > { %1316 = vmatpush.bf16.msrb.mxu1 %v1299_v27 }
 0x2ad   : > { %v1066_v54 = vpop.f32.mrf.mxu2 }
 0x2ae   : > { %v1391_v45 = vmax.f32 %v1066_v54, 0.0 }
 0x2af   : > { %1317 = vmatpush.bf16.msrb.mxu1 %v1298_v2  ;;  %v5790_v2 = vld [vmem:[%s6510_s12 + $0xc0] sm:$0xff] }
 0x2b0   : > { %1200 = vmatmul.bf16.gmra.mxu3 %v6746_v43 }
 0x2b3   : > { %1318 = vmatpush.bf16.msrb.mxu1 %v1297_v35  ;;  %v5791_v35 = vld [vmem:[%s6510_s12 + $0xc8] sm:$0xff] }
 0x2b5   : > { %v1068_v31 = vpop.f32.mrf.mxu2 }
 0x2b6   : > { %v1392_v40 = vmax.f32 %v1068_v31, 0.0 }
 0x2b7   : > { %1319 = vmatpush.bf16.msrb.mxu1 %v1296_v36 }
 0x2b8   : > { %v6721_v41 = vpack.c.bf16 %v1392_v40, %v1391_v45  ;;  %v5792_v45 = vld [vmem:[%s6510_s12 + $0xd0] sm:$0xff] }
 0x2ba   : > { %5735 = vmatmul.msk.bf16.gmra.mxu2 %vm451_vm0, %v6661_v24  ;;  %1320 = vmatmul.bf16.vlgmr.msrb.gmra.mxu1 %v5790_v2 }
 0x2bd   : > { %v1572_v19 = vpop.f32.mrf.mxu2 }
 0x2be   : > { %v1573_v22 = vadd.f32 %v6728_v12, %v1572_v19  ;;  %v1176_v15 = vpop.f32.mrf.mxu3 }
 0x2c0   : > { %v1732_v53 = vpack.c.bf16 %v1573_v22, %v1573_v22  ;;  %1205 = vmatmul.bf16.gmra.mxu3 %v6760_v17 }
 0x2c2   : > { %v6736_v63 = vunpack.c.l.b16 %v1732_v53 }
 0x2c5   : > { %v1574_v46 = vpop.f32.mrf.mxu2 }
 0x2c6   : > { %v1575_v59 = vadd.f32 %v6728_v12, %v1574_v46  ;;  %v1178_v54 = vpop.f32.mrf.mxu3  ;;  %v1393_v46 = vmax.f32 %v1176_v15, 0.0 }
 0x2c8   : > { %v1733_v62 = vpack.c.bf16 %v1575_v59, %v1575_v59 }
 0x2ca   : > { %v6738_v24 = vunpack.c.l.b16 %v1733_v62  ;;  %5736 = vmatmul.msk.bf16.gmra.mxu2 %vm451_vm0, %v6668_v18  ;;  %1325 = vmatmul.bf16.gmra.mxu1 %v5791_v35 }
 0x2cc   : > { %v1828_v4 = vpack.c.b16 %v6738_v24, %v6736_v63 }
 0x2cd   : > { %v1577_v51 = vpop.f32.mrf.mxu2 }
 0x2ce   : > { %v1578_v29 = vadd.f32 %v6728_v12, %v1577_v51 }
 0x2d0   : > { %v1734_v26 = vpack.c.bf16 %v1578_v29, %v1578_v29  ;;  %1210 = vmatmul.bf16.gmra.mxu3 %v6774_v13 }
 0x2d2   : > { %v6750_v48 = vunpack.c.l.b16 %v1734_v26 }
 0x2d5   : > { %v1579_v42 = vpop.f32.mrf.mxu2 }
 0x2d6   : > { %v1580_v3 = vadd.f32 %v6728_v12, %v1579_v42 }
 0x2d8   : > { %v1735_v47 = vpack.c.bf16 %v1580_v3, %v1580_v3 }
 0x2da   : > { %v6752_v0 = vunpack.c.l.b16 %v1735_v47  ;;  %5737 = vmatmul.msk.bf16.gmra.mxu2 %vm451_vm0, %v6671_v55  ;;  %1330 = vmatmul.bf16.gmra.mxu1 %v5792_v45 }
 0x2dc   : > { %v1829_v18 = vpack.c.b16 %v6752_v0, %v6750_v48  ;;  %v6844_v48 = vld [vmem:[%s6510_s12 + $0xe8] sm:$0xff] }
 0x2dd   : > { %v1582_v56 = vpop.f32.mrf.mxu2 }
 0x2de   : > { %v1583_v52 = vadd.f32 %v6728_v12, %v1582_v56 }
 0x2e0   : > { %v1736_v30 = vpack.c.bf16 %v1583_v52, %v1583_v52 }
 0x2e2   : > { %v6764_v8 = vunpack.c.l.b16 %v1736_v30 }
 0x2e5   : > { %v1584_v23 = vpop.f32.mrf.mxu2 }
 0x2e6   : > { %v1585_v5 = vadd.f32 %v6728_v12, %v1584_v23 }
 0x2e8   : > { %v1737_v7 = vpack.c.bf16 %v1585_v5, %v1585_v5 }
 0x2ea   : > { %v6766_v9 = vunpack.c.l.b16 %v1737_v7  ;;  %5738 = vmatmul.msk.bf16.gmra.mxu2 %vm451_vm0, %v6674_v44 }
 0x2ec   : > { %v1830_v55 = vpack.c.b16 %v6766_v9, %v6764_v8 }
 0x2ed   : > { %v1587_v60 = vpop.f32.mrf.mxu2 }
 0x2ee   : > { %v1588_v34 = vadd.f32 %v6728_v12, %v1587_v60 }
 0x2f0   : > { %v1738_v16 = vpack.c.bf16 %v1588_v34, %v1588_v34 }
 0x2f2   : > { %v6778_v27 = vunpack.c.l.b16 %v1738_v16 }
 0x2f5   : > { %v1589_v61 = vpop.f32.mrf.mxu2 }
 0x2f6   : > { %v1590_v20 = vadd.f32 %v6728_v12, %v1589_v61 }
 0x2f8   : > { %v1739_v21 = vpack.c.bf16 %v1590_v20, %v1590_v20 }
 0x2fa   : > { %v6780_v44 = vunpack.c.l.b16 %v1739_v21  ;;  %5739 = vmatmul.msk.bf16.gmra.mxu2 %vm451_vm0, %v6678_v39  ;;  %v1181_v39 = vpop.f32.mrf.mxu3  ;;  %v5793_v21 = vld [vmem:[%s6510_s12 + $0xd8] sm:$0xff] }
 0x2fb   : > { %1335 = vmatmul.bf16.gmra.mxu1 %v5793_v21  ;;  %v1395_v35 = vmax.f32 %v1181_v39, 0.0  ;;  %v6857_v21 = vld [vmem:[%s6510_s12 + $0x8] sm:$0xff] }
 0x2fc   : > { %v1831_v28 = vpack.c.b16 %v6780_v44, %v6778_v27 }
 0x2fd   : > { %v1592_v37 = vpop.f32.mrf.mxu2 }
 0x2fe   : > { %v1593_v61 = vadd.f32 %v6728_v12, %v1592_v37 }
 0x302   : > { %v1183_v31 = vpop.f32.mrf.mxu3 }
 0x305   : > { %v1594_v14 = vpop.f32.mrf.mxu2 }
 0x306   : > { %v1595_v23 = vadd.f32 %v6728_v12, %v1594_v14 }
 0x308   : > { %v1741_v15 = vpack.c.bf16 %v1595_v23, %v1595_v23 }
 0x30a   : > { %5740 = vmatmul.msk.bf16.gmra.mxu2 %vm451_vm0, %v6690_v11  ;;  %v6796_v19 = vpop.f32.mrf.mxu3  ;;  %v1821_v14 = vunpack.c.l.b16 %v1741_v15 }
 0x30d   : > { %v1597_v49 = vpop.f32.mrf.mxu2 }
 0x30e   : > { %v1598_v3 = vadd.f32 %v6728_v12, %v1597_v49 }
 0x310   : > { %v1742_v16 = vpack.c.bf16 %v1598_v3, %v1598_v3 }
 0x312   : > { %v1188_v60 = vpop.f32.mrf.mxu3 }
 0x313   : > { %v1398_v3 = vmax.f32 %v1188_v60, 0.0 }
 0x315   : > { %v1599_v57 = vpop.f32.mrf.mxu2 }
 0x316   : > { %v1600_v29 = vadd.f32 %v6728_v12, %v1599_v57  ;;  %v1822_v57 = vunpack.c.l.b16 %v1742_v16 }
 0x318   : > { %v1743_v30 = vpack.c.bf16 %v1600_v29, %v1600_v29  ;;  %v5794_v29 = vld [vmem:[%s6510_s12 + $0xe0] sm:$0xff] }
 0x319   : > { %1340 = vmatmul.bf16.gmra.mxu1 %v5794_v29 }
 0x31a   : > { %5741 = vmatmul.msk.bf16.gmra.mxu2 %vm451_vm0, %v6714_v32  ;;  %v1394_v32 = vmax.f32 %v1178_v54, 0.0  ;;  %v1823_v49 = vunpack.c.l.b16 %v1743_v30  ;;  %v1740_v54 = vpack.c.bf16 %v1593_v61, %v1593_v61 }
 0x31c   : > { %v1441_v42 = vpack.c.bf16 %v1394_v32, %v1393_v46  ;;  %v1820_v37 = vunpack.c.l.b16 %v1740_v54  ;;  %v1191_v46 = vpop.f32.mrf.mxu3 }
 0x31d   : > { %v1602_v25 = vpop.f32.mrf.mxu2 }
 0x31e   : > { %v1603_v59 = vadd.f32 %v6728_v12, %v1602_v25 }
 0x320   : > { %v1744_v47 = vpack.c.bf16 %v1603_v59, %v1603_v59  ;;  %v1832_v59 = vpack.c.b16 %v1821_v14, %v1820_v37 }
 0x322   : > { %v1824_v20 = vunpack.c.l.b16 %v1744_v47 }
 0x325   : > { %v1604_v36 = vpop.f32.mrf.mxu2 }
 0x326   : > { %v1605_v22 = vadd.f32 %v6728_v12, %v1604_v36  ;;  %v1396_v36 = vmax.f32 %v1183_v31, 0.0 }
 0x328   : > { %v1442_v32 = vpack.c.bf16 %v1396_v36, %v1395_v35 }
 0x329   : > { %1345 = vmatmul.bf16.gmra.mxu1 %v6844_v48 }
 0x32a   : > { %5742 = vmatmul.msk.bf16.gmra.mxu2 %vm451_vm0, %v6721_v41  ;;  %v1745_v41 = vpack.c.bf16 %v1605_v22, %v1605_v22 }
 0x32c   : > { %v1825_v5 = vunpack.c.l.b16 %v1745_v41  ;;  %v1193_v41 = vpop.f32.mrf.mxu3 }
 0x32d   : > { %v1607_v11 = vpop.f32.mrf.mxu2  ;;  %v1400_v63 = vmax.f32 %v1193_v41, 0.0 }
 0x32e   : > { %v1608_v40 = vadd.f32 %v6728_v12, %v1607_v11  ;;  %v1834_v2 = vpack.c.b16 %v1825_v5, %v1824_v20  ;;  %v1833_v11 = vpack.c.b16 %v1823_v49, %v1822_v57  ;;  %v6861_v49 = vld [vmem:[%s6510_s12 + $0xf0] sm:$0xff] }
 0x330   : > { %v1746_v62 = vpack.c.bf16 %v1608_v40, %v1608_v40 }
 0x332   : > { %v1826_v56 = vunpack.c.l.b16 %v1746_v62 }
 0x334   : > { %v1196_v8 = vpop.f32.mrf.mxu3 }
 0x335   : > { %v1609_v53 = vpop.f32.mrf.mxu2  ;;  %v1401_v54 = vmax.f32 %v1196_v8, 0.0 }
 0x336   : > { %v1610_v51 = vadd.f32 %v6728_v12, %v1609_v53 }
 0x338   : > { %v1747_v26 = vpack.c.bf16 %v1610_v51, %v1610_v51 }
 0x339   : > { %1350 = vmatmul.bf16.gmra.mxu1 %v6861_v49 }
 0x33a   : > { %v1827_v52 = vunpack.c.l.b16 %v1747_v26  ;;  %5743 = vmatmul.msk.bf16.gmra.mxu2 %vm451_vm0, %v1441_v42  ;;  %v1397_v26 = vmax.f32 %v6796_v19, 0.0  ;;  %v6840_v19 = vld [vmem:[%s6510_s12] sm:$0xff] }
 0x33c   : > { %v1835_v7 = vpack.c.b16 %v1827_v52, %v1826_v56  ;;  %v1443_v27 = vpack.c.bf16 %v1398_v3, %v1397_v26  ;;  %v1198_v24 = vpop.f32.mrf.mxu3  ;;  %v1321_v3 = vpop.f32.mrf.mxu1 }
 0x33d   : > { %v1612_v34 = vpop.f32.mrf.mxu2  ;;  %v1402_v57 = vmax.f32 %v1198_v24, 0.0 }
 0x33e   : > { %1844 = vmatpush.bf16.msrb.mxu3 %v1835_v7  ;;  %v1613_v25 = vadd.f32 %v6728_v12, %v1612_v34 }
 0x33f   : > { %v1445_v36 = vpack.c.bf16 %v1402_v57, %v1401_v54 }
 0x340   : > { %v1748_v40 = vpack.c.bf16 %v1613_v25, %v1613_v25 }
 0x342   : > { %1845 = vmatpush.bf16.msrb.mxu3 %v1834_v2  ;;  %v6809_v62 = vunpack.c.l.b16 %v1748_v40 }
 0x344   : > { %v1201_v15 = vpop.f32.mrf.mxu3 }
 0x345   : > { %v1614_v45 = vpop.f32.mrf.mxu2 }
 0x346   : > { %v1615_v22 = vadd.f32 %v6728_v12, %v1614_v45  ;;  %1846 = vmatpush.bf16.msrb.mxu3 %v1833_v11 }
 0x348   : > { %v1749_v53 = vpack.c.bf16 %v1615_v22, %v1615_v22 }
 0x34a   : > { %v6811_v51 = vunpack.c.l.b16 %v1749_v53  ;;  %5744 = vmatmul.msk.bf16.gmra.mxu2 %vm451_vm0, %v1442_v32  ;;  %1847 = vmatpush.bf16.msrb.mxu3 %v1832_v59  ;;  %v6875_v32 = vld [vmem:[%s6510_s12 + $0xf8] sm:$0xff]  ;;  %v1403_v59 = vmax.f32 %v1201_v15, 0.0 }
 0x34b   : > { %1355 = vmatmul.bf16.gmra.mxu1 %v6875_v32 }
 0x34c   : > { %v1925_v39 = vpack.c.b16 %v6811_v51, %v6809_v62  ;;  %v1203_v45 = vpop.f32.mrf.mxu3 }
 0x34d   : > { %v1617_v31 = vpop.f32.mrf.mxu2 }
 0x34e   : > { %1848 = vmatpush.bf16.msrb.mxu3 %v1831_v28  ;;  %v1618_v42 = vadd.f32 %v6728_v12, %v1617_v31  ;;  %v1404_v31 = vmax.f32 %v1203_v45, 0.0 }
 0x350   : > { %v1750_v56 = vpack.c.bf16 %v1618_v42, %v1618_v42  ;;  %v1446_v41 = vpack.c.bf16 %v1404_v31, %v1403_v59 }
 0x352   : > { %1849 = vmatpush.bf16.msrb.mxu3 %v1830_v55  ;;  %v6829_v28 = vunpack.c.l.b16 %v1750_v56 }
 0x354   : > { %v1206_v53 = vpop.f32.mrf.mxu3 }
 0x355   : > { %v1619_v47 = vpop.f32.mrf.mxu2 }
 0x356   : > { %v1620_v52 = vadd.f32 %v6728_v12, %v1619_v47  ;;  %1850 = vmatpush.bf16.msrb.mxu3 %v1829_v18  ;;  %v1399_v18 = vmax.f32 %v1191_v46, 0.0  ;;  %v1405_v47 = vmax.f32 %v1206_v53, 0.0 }
 0x358   : > { %v1751_v44 = vpack.c.bf16 %v1620_v52, %v1620_v52  ;;  %v1444_v7 = vpack.c.bf16 %v1400_v63, %v1399_v18 }
 0x35a   : > { %v6831_v23 = vunpack.c.l.b16 %v1751_v44  ;;  %5745 = vmatmul.msk.bf16.gmra.mxu2 %vm451_vm0, %v1443_v27  ;;  %1851 = vmatpush.bf16.msrb.mxu3 %v1828_v4 }
 0x35c   : > { %v1926_v9 = vpack.c.b16 %v6831_v23, %v6829_v28  ;;  %v1208_v42 = vpop.f32.mrf.mxu3 }
 0x35d   : > { %v1622_v55 = vpop.f32.mrf.mxu2  ;;  %1852 = vmatmul.bf16.vlgmr.msrb.gmra.mxu3 %v6840_v19  ;;  %v1406_v56 = vmax.f32 %v1208_v42, 0.0 }
 0x35e   : > { %v1623_v0 = vadd.f32 %v6728_v12, %v1622_v55 }
 0x35f   : > { %v1447_v44 = vpack.c.bf16 %v1406_v56, %v1405_v47 }
 0x360   : > { %v1752_v30 = vpack.c.bf16 %v1623_v0, %v1623_v0 }
 0x362   : > { %v6849_v34 = vunpack.c.l.b16 %v1752_v30 }
 0x364   : > { %v1211_v27 = vpop.f32.mrf.mxu3 }
 0x365   : > { %v1624_v4 = vpop.f32.mrf.mxu2  ;;  %v1407_v18 = vmax.f32 %v1211_v27, 0.0 }
 0x366   : > { %v1625_v5 = vadd.f32 %v6728_v12, %v1624_v4 }
 0x368   : > { %v1753_v60 = vpack.c.bf16 %v1625_v5, %v1625_v5 }
 0x36a   : > { %v6851_v61 = vunpack.c.l.b16 %v1753_v60  ;;  %5746 = vmatmul.msk.bf16.gmra.mxu2 %vm451_vm0, %v1444_v7  ;;  %v1409_v7 = vmax.f32 %v1321_v3, 0.0 }
 0x36c   : > { %v1927_v16 = vpack.c.b16 %v6851_v61, %v6849_v34  ;;  %v1213_v0 = vpop.f32.mrf.mxu3 }
 0x36d   : > { %v1627_v20 = vpop.f32.mrf.mxu2  ;;  %1857 = vmatmul.bf16.gmra.mxu3 %v6857_v21  ;;  %v1408_v63 = vmax.f32 %v1213_v0, 0.0 }
 0x36e   : > { %v1628_v2 = vadd.f32 %v6728_v12, %v1627_v20 }
 0x36f   : > { %v1448_v30 = vpack.c.bf16 %v1408_v63, %v1407_v18 }
 0x370   : > { %v1754_v14 = vpack.c.bf16 %v1628_v2, %v1628_v2 }
 0x372   : > { %v6866_v37 = vunpack.c.l.b16 %v1754_v14 }
 0x375   : > { %v1629_v25 = vpop.f32.mrf.mxu2 }
 0x376   : > { %v1630_v35 = vadd.f32 %v6728_v12, %v1629_v25 }
 0x378   : > { %v1755_v11 = vpack.c.bf16 %v1630_v35, %v1630_v35 }
 0x37a   : > { %v6868_v40 = vunpack.c.l.b16 %v1755_v11  ;;  %5747 = vmatmul.msk.bf16.gmra.mxu2 %vm451_vm0, %v1445_v36 }
 0x37c   : > { %v1928_v22 = vpack.c.b16 %v6868_v40, %v6866_v37 }
 0x37d   : > { %v1632_v46 = vpop.f32.mrf.mxu2  ;;  %1862 = vmatmul.bf16.gmra.mxu3 %v6531_v58  ;;  %v1323_v58 = vpop.f32.mrf.mxu1 }
 0x37e   : > { %v1410_v20 = vmax.f32 %v1323_v58, 0.0  ;;  %v1633_v47 = vadd.f32 %v6728_v12, %v1632_v46  ;;  %v6896_v58 = vld [vmem:[%s6510_s12 + $0x30] sm:$0xff] }
 0x380   : > { %v1449_v57 = vpack.c.bf16 %v1410_v20, %v1409_v7  ;;  %v1756_v0 = vpack.c.bf16 %v1633_v47, %v1633_v47 }
 0x385   : > { %v1634_v29 = vpop.f32.mrf.mxu2  ;;  %v1326_v55 = vpop.f32.mrf.mxu1 }
 0x386   : > { %v1635_v31 = vadd.f32 %v6728_v12, %v1634_v29  ;;  %v1411_v63 = vmax.f32 %v1326_v55, 0.0 }
 0x388   : > { %v1757_v27 = vpack.c.bf16 %v1635_v31, %v1635_v31 }
 0x38a   : > { %5748 = vmatmul.msk.bf16.gmra.mxu2 %vm451_vm0, %v1446_v41 }
 0x38d   : > { %v1637_v26 = vpop.f32.mrf.mxu2  ;;  %1867 = vmatmul.bf16.gmra.mxu3 %v6547_v1  ;;  %v1328_v4 = vpop.f32.mrf.mxu1 }
 0x38e   : > { %v1638_v36 = vadd.f32 %v6728_v12, %v1637_v26 }
 0x395   : > { %v1639_v52 = vpop.f32.mrf.mxu2  ;;  %v6884_v5 = vpop.f32.mrf.mxu1 }
 0x396   : > { %v1640_v14 = vadd.f32 %v6728_v12, %v1639_v52  ;;  %v1758_v52 = vpack.c.bf16 %v1638_v36, %v1638_v36 }
 0x398   : > { %v1759_v41 = vpack.c.bf16 %v1640_v14, %v1640_v14  ;;  %v1919_v18 = vunpack.c.l.b16 %v1758_v52  ;;  %v6909_v14 = vld [vmem:[%s6510_s12 + $0x38] sm:$0xff] }
 0x39a   : > { %5749 = vmatmul.msk.bf16.gmra.mxu2 %vm451_vm0, %v1447_v44  ;;  %v1920_v44 = vunpack.c.l.b16 %v1759_v41 }
 0x39c   : > { %v1930_v46 = vpack.c.b16 %v1920_v44, %v1919_v18 }
 0x39d   : > { %v1642_v8 = vpop.f32.mrf.mxu2  ;;  %1872 = vmatmul.bf16.gmra.mxu3 %v6558_v33  ;;  %v1333_v59 = vpop.f32.mrf.mxu1 }
 0x39e   : > { %v1643_v2 = vadd.f32 %v6728_v12, %v1642_v8 }
 0x3a0   : > { %v1760_v11 = vpack.c.bf16 %v1643_v2, %v1643_v2 }
 0x3a2   : > { %v1921_v26 = vunpack.c.l.b16 %v1760_v11  ;;  %v1414_v11 = vmax.f32 %v1333_v59, 0.0 }
 0x3a5   : > { %v1644_v24 = vpop.f32.mrf.mxu2  ;;  %v1336_v7 = vpop.f32.mrf.mxu1 }
 0x3a6   : > { %v1645_v15 = vadd.f32 %v6728_v12, %v1644_v24  ;;  %v1412_v24 = vmax.f32 %v1328_v4, 0.0  ;;  %v1415_v23 = vmax.f32 %v1336_v7, 0.0 }
 0x3a8   : > { %v1761_v35 = vpack.c.bf16 %v1645_v15, %v1645_v15  ;;  %v1450_v15 = vpack.c.bf16 %v1412_v24, %v1411_v63 }
 0x3aa   : > { %5750 = vmatmul.msk.bf16.gmra.mxu2 %vm451_vm0, %v1448_v30  ;;  %v1922_v42 = vunpack.c.l.b16 %v1761_v35  ;;  %v1918_v30 = vunpack.c.l.b16 %v1757_v27 }
 0x3ac   : > { %v1931_v8 = vpack.c.b16 %v1922_v42, %v1921_v26 }
 0x3ad   : > { %v1647_v1 = vpop.f32.mrf.mxu2  ;;  %1877 = vmatmul.bf16.gmra.mxu3 %v6566_v6  ;;  %v1338_v35 = vpop.f32.mrf.mxu1 }
 0x3ae   : > { %v1648_v60 = vadd.f32 %v6728_v12, %v1647_v1  ;;  %v1416_v59 = vmax.f32 %v1338_v35, 0.0  ;;  %v6969_v35 = vld [vmem:[%s6510_s12 + $0x50] sm:$0xff] }
 0x3b0   : > { %v1762_v54 = vpack.c.bf16 %v1648_v60, %v1648_v60  ;;  %v1917_v60 = vunpack.c.l.b16 %v1756_v0  ;;  %v1452_v62 = vpack.c.bf16 %v1416_v59, %v1415_v23 }
 0x3b2   : > { %v1923_v45 = vunpack.c.l.b16 %v1762_v54  ;;  %v1929_v54 = vpack.c.b16 %v1918_v30, %v1917_v60 }
 0x3b5   : > { %v1649_v33 = vpop.f32.mrf.mxu2  ;;  %v1341_v40 = vpop.f32.mrf.mxu1 }
 0x3b6   : > { %v1650_v25 = vadd.f32 %v6728_v12, %v1649_v33  ;;  %v1417_v63 = vmax.f32 %v1341_v40, 0.0 }
 0x3b8   : > { %v1763_v6 = vpack.c.bf16 %v1650_v25, %v1650_v25 }
 0x3ba   : > { %v1924_v53 = vunpack.c.l.b16 %v1763_v6  ;;  %5751 = vmatmul.msk.bf16.gmra.mxu2 %vm451_vm0, %v1449_v57  ;;  %v1413_v6 = vmax.f32 %v6884_v5, 0.0 }
 0x3bc   : > { %v1932_v3 = vpack.c.b16 %v1924_v53, %v1923_v45  ;;  %v1451_v31 = vpack.c.bf16 %v1414_v11, %v1413_v6 }
 0x3bd   : > { %v1652_v56 = vpop.f32.mrf.mxu2  ;;  %1882 = vmatmul.bf16.gmra.mxu3 %v6896_v58  ;;  %v1343_v42 = vpop.f32.mrf.mxu1 }
 0x3be   : > { %1941 = vmatpush.bf16.msra.mxu1 %v1932_v3  ;;  %v1653_v29 = vadd.f32 %v6728_v12, %v1652_v56  ;;  %v1418_v24 = vmax.f32 %v1343_v42, 0.0 }
 0x3c0   : > { %v1764_v20 = vpack.c.bf16 %v1653_v29, %v1653_v29 }
 0x3c2   : > { %1942 = vmatpush.bf16.msra.mxu1 %v1931_v8  ;;  %v6901_v57 = vunpack.c.l.b16 %v1764_v20  ;;  %v6952_v8 = vld [vmem:[%s6510_s12 + $0x48] sm:$0xff] }
 0x3c5   : > { %v1654_v1 = vpop.f32.mrf.mxu2  ;;  %v1346_v0 = vpop.f32.mrf.mxu1 }
 0x3c6   : > { %v1655_v33 = vadd.f32 %v6728_v12, %v1654_v1  ;;  %1943 = vmatpush.bf16.msra.mxu1 %v1930_v46  ;;  %v1453_v1 = vpack.c.bf16 %v1418_v24, %v1417_v63  ;;  %v1419_v11 = vmax.f32 %v1346_v0, 0.0 }
 0x3c8   : > { %v1765_v2 = vpack.c.bf16 %v1655_v33, %v1655_v33 }
 0x3ca   : > { %v6903_v55 = vunpack.c.l.b16 %v1765_v2  ;;  %5752 = vmatmul.msk.bf16.gmra.mxu2 %vm451_vm0, %v1450_v15  ;;  %1944 = vmatpush.bf16.msra.mxu1 %v1929_v54 }
 0x3cd   : > { %v1657_v25 = vpop.f32.mrf.mxu2  ;;  %1887 = vmatmul.bf16.gmra.mxu3 %v6909_v14  ;;  %v1348_v60 = vpop.f32.mrf.mxu1 }
 0x3ce   : > { %1945 = vmatpush.bf16.msra.mxu1 %v1928_v22  ;;  %v1658_v36 = vadd.f32 %v6728_v12, %v1657_v25 }
 0x3d0   : > { %v1766_v53 = vpack.c.bf16 %v1658_v36, %v1658_v36 }
 0x3d2   : > { %1946 = vmatpush.bf16.msra.mxu1 %v1927_v16  ;;  %v6924_v22 = vunpack.c.l.b16 %v1766_v53  ;;  %v6935_v16 = vld [vmem:[%s6510_s12 + $0x40] sm:$0xff] }
 0x3d5   : > { %v1659_v45 = vpop.f32.mrf.mxu2  ;;  %v1351_v36 = vpop.f32.mrf.mxu1 }
 0x3d6   : > { %v1660_v41 = vadd.f32 %v6728_v12, %v1659_v45  ;;  %1947 = vmatpush.bf16.msra.mxu1 %v1926_v9  ;;  %v1420_v45 = vmax.f32 %v1348_v60, 0.0 }
 0x3d8   : > { %v1767_v37 = vpack.c.bf16 %v1660_v41, %v1660_v41 }
 0x3da   : > { %v6926_v5 = vunpack.c.l.b16 %v1767_v37  ;;  %5753 = vmatmul.msk.bf16.gmra.mxu2 %vm451_vm0, %v1451_v31  ;;  %1948 = vmatpush.bf16.msra.mxu1 %v1925_v39  ;;  %v1454_v31 = vpack.c.bf16 %v1420_v45, %v1419_v11 }
 0x3dd   : > { %v1662_v61 = vpop.f32.mrf.mxu2  ;;  %1949 = vmatmul.bf16.vlgmr.msra.gmra.mxu1 %v6935_v16  ;;  %v1353_v37 = vpop.f32.mrf.mxu1 }
 0x3de   : > { %v1663_v9 = vadd.f32 %v6728_v12, %v1662_v61  ;;  %v6978_v61 = vld [vmem:[%s6510_s12 + $0x58] sm:$0xff]  ;;  %v1422_v59 = vmax.f32 %v1353_v37, 0.0 }
 0x3e0   : > { %v6938_v28 = vpop.f32.mrf.mxu3  ;;  %v1768_v47 = vpack.c.bf16 %v1663_v9, %v1663_v9  ;;  %v1421_v9 = vmax.f32 %v1351_v36, 0.0 }
 0x3e2   : > { %v6944_v52 = vunpack.c.l.b16 %v1768_v47  ;;  %v1455_v47 = vpack.c.bf16 %v1422_v59, %v1421_v9 }
 0x3e5   : > { %v1664_v3 = vpop.f32.mrf.mxu2 }
 0x3e6   : > { %v1665_v51 = vadd.f32 %v6728_v12, %v1664_v3  ;;  %v1356_v3 = vpop.f32.mrf.mxu1 }
 0x3e7   : > { %v1423_v63 = vmax.f32 %v1356_v3, 0.0 }
 0x3e8   : > { %v1769_v39 = vpack.c.bf16 %v1665_v51, %v1665_v51  ;;  %v6942_v56 = vpop.f32.mrf.mxu3 }
 0x3e9   : > { %10243 = vst [vmem:[#allocation5_spill] sm:$0xff] %v6942_v56 }
 0x3ea   : > { %v6946_v26 = vunpack.c.l.b16 %v1769_v39  ;;  %5754 = vmatmul.msk.bf16.gmra.mxu2 %vm451_vm0, %v1452_v62  ;;  %v6987_v39 = vld [vmem:[%s6510_s12 + $0x60] sm:$0xff] }
 0x3ed   : > { %v1667_v44 = vpop.f32.mrf.mxu2  ;;  %1954 = vmatmul.bf16.gmra.mxu1 %v6952_v8 }
 0x3ee   : > { %v1668_v29 = vadd.f32 %v6728_v12, %v1667_v44  ;;  %v1358_v44 = vpop.f32.mrf.mxu1 }
 0x3f0   : > { %v6955_v18 = vpop.f32.mrf.mxu3  ;;  %v1770_v46 = vpack.c.bf16 %v1668_v29, %v1668_v29  ;;  %v1424_v29 = vmax.f32 %v1358_v44, 0.0 }
 0x3f2   : > { %v6961_v33 = vunpack.c.l.b16 %v1770_v46 }
 0x3f5   : > { %v1669_v30 = vpop.f32.mrf.mxu2 }
 0x3f6   : > { %v1670_v7 = vadd.f32 %v6728_v12, %v1669_v30  ;;  %v1456_v30 = vpack.c.bf16 %v1424_v29, %v1423_v63 }
 0x3f8   : > { %v1771_v20 = vpack.c.bf16 %v1670_v7, %v1670_v7  ;;  %v6959_v15 = vpop.f32.mrf.mxu3  ;;  %v6996_v7 = vld [vmem:[%s6510_s12 + $0x68] sm:$0xff] }
 0x3f9   : > { %10244 = vst [vmem:[#allocation6_spill] sm:$0xff] %v6959_v15 }
 0x3fa   : > { %v6963_v2 = vunpack.c.l.b16 %v1771_v20  ;;  %5755 = vmatmul.msk.bf16.gmra.mxu2 %vm451_vm0, %v1453_v1 }
 0x3fc   : > { %v2025_v54 = vpack.c.b16 %v6963_v2, %v6961_v33 }
 0x3fd   : > { %v1672_v25 = vpop.f32.mrf.mxu2  ;;  %1959 = vmatmul.bf16.gmra.mxu1 %v6969_v35 }
 0x400   : > { %v6972_v6 = vpop.f32.mrf.mxu3 }
 0x405   : > { %v1674_v53 = vpop.f32.mrf.mxu2 }
 0x408   : > { %v6974_v41 = vpop.f32.mrf.mxu3 }
 0x409   : > { %10245 = vst [vmem:[#allocation7_spill] sm:$0xff] %v6974_v41 }
 0x40a   : > { %5756 = vmatmul.msk.bf16.gmra.mxu2 %vm451_vm0, %v1454_v31 }
 0x40d   : > { %v1677_v40 = vpop.f32.mrf.mxu2  ;;  %1964 = vmatmul.bf16.gmra.mxu1 %v6978_v61 }
 0x40e   : > { %v1678_v44 = vadd.f32 %v6728_v12, %v1677_v40 }
 0x410   : > { %v6981_v23 = vpop.f32.mrf.mxu3 }
 0x411   : > { %10246 = vst [vmem:[#allocation8_spill] sm:$0xff] %v6981_v23 }
 0x415   : > { %v1679_v42 = vpop.f32.mrf.mxu2 }
 0x416   : > { %v1680_v9 = vadd.f32 %v6728_v12, %v1679_v42  ;;  %v1673_v42 = vadd.f32 %v6728_v12, %v1672_v25 }
 0x418   : > { %v6983_v62 = vpop.f32.mrf.mxu3 }
 0x419   : > { %10247 = vst [vmem:[#allocation9_spill] sm:$0xff] %v6983_v62 }
 0x41a   : > { %5757 = vmatmul.msk.bf16.gmra.mxu2 %vm451_vm0, %v1455_v47 }
 0x41d   : > { %v1682_v51 = vpop.f32.mrf.mxu2  ;;  %1969 = vmatmul.bf16.gmra.mxu1 %v6987_v39 }
 0x41e   : > { %v1683_v45 = vadd.f32 %v6728_v12, %v1682_v51 }
 0x420   : > { %v6990_v0 = vpop.f32.mrf.mxu3  ;;  %v1776_v63 = vpack.c.bf16 %v1683_v45, %v1683_v45 }
 0x421   : > { %10248 = vst [vmem:[#allocation10_spill] sm:$0xff] %v6990_v0 }
 0x425   : > { %v1684_v24 = vpop.f32.mrf.mxu2 }
 0x426   : > { %v1685_v36 = vadd.f32 %v6728_v12, %v1684_v24  ;;  %v1675_v24 = vadd.f32 %v6728_v12, %v1674_v53  ;;  %v1772_v53 = vpack.c.bf16 %v1673_v42, %v1673_v42 }
 0x428   : > { %v6992_v46 = vpop.f32.mrf.mxu3  ;;  %v1777_v59 = vpack.c.bf16 %v1685_v36, %v1685_v36  ;;  %v1774_v36 = vpack.c.bf16 %v1678_v44, %v1678_v44  ;;  %v1773_v40 = vpack.c.bf16 %v1675_v24, %v1675_v24  ;;  %v10255_v24 = vpack.c.b16 %v6946_v26, %v6944_v52 }
 0x429   : > { %10249 = vst [vmem:[#allocation11_spill] sm:$0xff] %v6992_v46 }
 0x42a   : > { %5758 = vmatmul.msk.bf16.gmra.mxu2 %vm451_vm0, %v1456_v30  ;;  %v2019_v4 = vunpack.c.l.b16 %v1777_v59  ;;  %v2015_v59 = vunpack.c.l.b16 %v1773_v40 }
 0x42d   : > { %v1687_v1 = vpop.f32.mrf.mxu2  ;;  %1974 = vmatmul.bf16.gmra.mxu1 %v6996_v7 }
 0x42e   : > { %v1688_v20 = vadd.f32 %v6728_v12, %v1687_v1  ;;  %v1775_v1 = vpack.c.bf16 %v1680_v9, %v1680_v9  ;;  %v2016_v9 = vunpack.c.l.b16 %v1774_v36  ;;  %v10258_v36 = vpack.c.b16 %v6903_v55, %v6901_v57 }
 0x42f   : > { %v2192_v57 = vpack.c.bf16 %v6990_v0, %v6990_v0  ;;  %v2193_v55 = vpack.c.bf16 %v6992_v46, %v6992_v46 }
 0x430   : > { %v6999_v60 = vpop.f32.mrf.mxu3  ;;  %v1778_v31 = vpack.c.bf16 %v1688_v20, %v1688_v20  ;;  %v7013_v20 = vld [vmem:[%s6510_s12 + $0x70] sm:$0xff]  ;;  %v2017_v45 = vunpack.c.l.b16 %v1775_v1 }
 0x431   : > { %10250 = vst [vmem:[#allocation12_spill] sm:$0xff] %v6999_v60 }
 0x432   : > { %v2020_v29 = vunpack.c.l.b16 %v1778_v31 }
 0x435   : > { %v1689_v11 = vpop.f32.mrf.mxu2 }
 0x436   : > { %v1690_v37 = vadd.f32 %v6728_v12, %v1689_v11  ;;  %v2018_v11 = vunpack.c.l.b16 %v1776_v63  ;;  %v7026_v63 = vld [vmem:[%s6510_s12 + $0x78] sm:$0xff] }
 0x438   : > { %v1779_v3 = vpack.c.bf16 %v1690_v37, %v1690_v37  ;;  %v7006_v47 = vpop.f32.mrf.mxu3  ;;  %v2028_v31 = vpack.c.b16 %v2019_v4, %v2018_v11 }
 0x439   : > { %10251 = vst [vmem:[#allocation13_spill] sm:$0xff] %v7006_v47 }
 0x43a   : > { %v2021_v30 = vunpack.c.l.b16 %v1779_v3  ;;  %v2027_v3 = vpack.c.b16 %v2017_v45, %v2016_v9 }
 0x43c   : > { %v2029_v51 = vpack.c.b16 %v2021_v30, %v2020_v29  ;;  %v2014_v30 = vunpack.c.l.b16 %v1772_v53  ;;  %v7064_v53 = vld [vmem:[%s6510_s12 + $0x80] sm:$0xff] }
 0x43d   : > { %v7010_v34 = vpop.f32.mrf.mxu2  ;;  %1979 = vmatmul.bf16.gmra.mxu1 %v7013_v20 }
 0x43e   : > { %2038 = vmatpush.bf16.msra.mxu3 %v2029_v51  ;;  %v2026_v27 = vpack.c.b16 %v2015_v59, %v2014_v30  ;;  %v10256_v51 = vpack.c.b16 %v6926_v5, %v6924_v22  ;;  %v2194_v22 = vpack.c.bf16 %v6999_v60, %v6999_v60  ;;  %v2195_v5 = vpack.c.bf16 %v7006_v47, %v7006_v47 }
 0x440   : > { %v7017_v37 = vpop.f32.mrf.mxu3  ;;  %v2274_v59 = vunpack.c.l.b16 %v2194_v22 }
 0x441   : > { %10252 = vst [vmem:[#allocation14_spill] sm:$0xff] %v7017_v37  ;;  %v2196_v33 = vpack.c.bf16 %v7017_v37, %v7017_v37 }
 0x442   : > { %2039 = vmatpush.bf16.msra.mxu3 %v2028_v31 }
 0x443   : > { %v2276_v11 = vunpack.c.l.b16 %v2196_v33  ;;  %v2191_v33 = vpack.c.bf16 %v6983_v62, %v6983_v62 }
 0x445   : > { %v7019_v29 = vpop.f32.mrf.mxu2  ;;  %v2271_v22 = vunpack.c.l.b16 %v2191_v33  ;;  %v2185_v33 = vpack.c.bf16 %v6942_v56, %v6942_v56 }
 0x446   : > { %2040 = vmatpush.bf16.msra.mxu3 %v2027_v3  ;;  %v2275_v3 = vunpack.c.l.b16 %v2195_v5 }
 0x448   : > { %v7021_v25 = vpop.f32.mrf.mxu3 }
 0x449   : > { %10253 = vst [vmem:[#allocation15_spill] sm:$0xff] %v7021_v25  ;;  %v2197_v2 = vpack.c.bf16 %v7021_v25, %v7021_v25 }
 0x44a   : > { %2041 = vmatpush.bf16.msra.mxu3 %v2026_v27 }
 0x44b   : > { %v2277_v40 = vunpack.c.l.b16 %v2197_v2  ;;  %v2272_v2 = vunpack.c.l.b16 %v2192_v57 }
 0x44d   : > { %v7023_v44 = vpop.f32.mrf.mxu2  ;;  %1984 = vmatmul.bf16.gmra.mxu1 %v7026_v63  ;;  %v2286_v30 = vpack.c.b16 %v2277_v40, %v2276_v11  ;;  %v2188_v11 = vpack.c.bf16 %v6972_v6, %v6972_v6  ;;  %v2189_v40 = vpack.c.bf16 %v6974_v41, %v6974_v41 }
 0x44e   : > { %2042 = vmatpush.bf16.msra.mxu3 %v2025_v54 }
 0x44f   : > { %v2268_v57 = vunpack.c.l.b16 %v2188_v11  ;;  %v2265_v11 = vunpack.c.l.b16 %v2185_v33 }
 0x450   : > { %v7032_v4 = vpop.f32.mrf.mxu3 }
 0x451   : > { %10254 = vst [vmem:[#allocation16_spill] sm:$0xff] %v7032_v4  ;;  %v2198_v27 = vpack.c.bf16 %v7032_v4, %v7032_v4 }
 0x452   : > { %2043 = vmatpush.bf16.msra.mxu3 %v10255_v24 }
 0x453   : > { %v2278_v52 = vunpack.c.l.b16 %v2198_v27  ;;  %v2285_v27 = vpack.c.b16 %v2275_v3, %v2274_v59  ;;  %v2186_v59 = vpack.c.bf16 %v6955_v18, %v6955_v18  ;;  %v2187_v3 = vpack.c.bf16 %v6959_v15, %v6959_v15 }
 0x455   : > { %v7037_v1 = vpop.f32.mrf.mxu2 }
 0x456   : > { %2044 = vmatpush.bf16.msra.mxu3 %v10256_v51  ;;  %v2190_v51 = vpack.c.bf16 %v6981_v23, %v6981_v23 }
 0x458   : > { %v7048_v54 = vpop.f32.mrf.mxu3 }
 0x459   : > { %10257 = vst [vmem:[#allocation17_spill] sm:$0xff] %v7048_v54  ;;  %v2199_v26 = vpack.c.bf16 %v7048_v54, %v7048_v54 }
 0x45a   : > { %v7052_v42 = vpop.f32.mrf.mxu1  ;;  %2045 = vmatpush.bf16.msra.mxu3 %v10258_v36  ;;  %v2270_v36 = vunpack.c.l.b16 %v2190_v51  ;;  %v2184_v51 = vpack.c.bf16 %v6938_v28, %v6938_v28 }
 0x45b   : > { %v2279_v45 = vunpack.c.l.b16 %v2199_v26 }
 0x45d   : > { %v7061_v31 = vpop.f32.mrf.mxu2  ;;  %2046 = vmatmul.bf16.vlgmr.msra.gmra.mxu3 %v7064_v53  ;;  %v2287_v9 = vpack.c.b16 %v2279_v45, %v2278_v52  ;;  %v2273_v52 = vunpack.c.l.b16 %v2193_v55  ;;  %v2269_v55 = vunpack.c.l.b16 %v2189_v40 }
 0x45f   : > { %2296 = vmatpush.bf16.msrb.mxu3 %v2287_v9  ;;  %v2284_v5 = vpack.c.b16 %v2273_v52, %v2272_v2  ;;  %v2283_v9 = vpack.c.b16 %v2271_v22, %v2270_v36  ;;  %v2266_v2 = vunpack.c.l.b16 %v2186_v59  ;;  %v2267_v52 = vunpack.c.l.b16 %v2187_v3 }
 0x460   : > { %v2282_v36 = vpack.c.b16 %v2269_v55, %v2268_v57 }
 0x461   : > { %v2281_v41 = vpack.c.b16 %v2267_v52, %v2266_v2 }
 0x462   : > { %v7071_v24 = vpop.f32.mrf.mxu1 }
 0x463   : > { %10259 = vst [vmem:[#allocation18_spill] sm:$0xff] %v7071_v24  ;;  %2297 = vmatpush.bf16.msrb.mxu3 %v2286_v30 }
 0x465   : > { %v7077_v26 = vpop.f32.mrf.mxu2 }
 0x467   : > { %2298 = vmatpush.bf16.msrb.mxu3 %v2285_v27  ;;  %v7090_v27 = vld [vmem:[%s6510_s12 + $0x88] sm:$0xff] }
 0x468   : > { %10260 = vst [vmem:[#allocation19_spill] sm:$0xff] %v7090_v27 }
 0x46a   : > { %v7083_v45 = vpop.f32.mrf.mxu1 }
 0x46b   : > { %2299 = vmatpush.bf16.msrb.mxu3 %v2284_v5  ;;  %v2264_v5 = vunpack.c.l.b16 %v2184_v51 }
 0x46d   : > { %v1707_v30 = vpop.f32.mrf.mxu2  ;;  %2051 = vmatmul.bf16.gmra.mxu3 %v7090_v27  ;;  %v2280_v15 = vpack.c.b16 %v2265_v11, %v2264_v5 }
 0x46f   : > { %2300 = vmatpush.bf16.msrb.mxu3 %v2283_v9 }
 0x472   : > { %v7097_v22 = vpop.f32.mrf.mxu1 }
 0x473   : > { %10261 = vst [vmem:[#allocation20_spill] sm:$0xff] %v7097_v22  ;;  %2301 = vmatpush.bf16.msrb.mxu3 %v2282_v36 }
 0x475   : > { %v1709_v40 = vpop.f32.mrf.mxu2 }
 0x477   : > { %2302 = vmatpush.bf16.msrb.mxu3 %v2281_v41 }
 0x47a   : > { %v7099_v62 = vpop.f32.mrf.mxu1 }
 0x47b   : > { %2303 = vmatpush.bf16.msrb.mxu3 %v2280_v15 }
 0x47d   : > { %v1712_v9 = vpop.f32.mrf.mxu2  ;;  %2056 = vmatmul.bf16.gmra.mxu3 %v6710_v10 }
 0x482   : > { %v7102_v60 = vpop.f32.mrf.mxu1 }
 0x483   : > { %10262 = vst [vmem:[#allocation21_spill] sm:$0xff] %v7102_v60 }
 0x485   : > { %v1714_v59 = vpop.f32.mrf.mxu2 }
 0x48a   : > { %v7104_v3 = vpop.f32.mrf.mxu1 }
 0x48d   : > { %v1717_v57 = vpop.f32.mrf.mxu2  ;;  %2061 = vmatmul.bf16.gmra.mxu3 %v6718_v38 }
 0x48e   : > { %v1718_v37 = vadd.f32 %v6728_v12, %v1717_v57  ;;  %v1708_v57 = vadd.f32 %v6728_v12, %v1707_v30 }
 0x490   : > { %v1790_v27 = vpack.c.bf16 %v1718_v37, %v1718_v37  ;;  %v6120_v37 = vld [vmem:[%s10058_s5] ss:$0 sm:$0xff] }
 0x492   : > { %v7107_v55 = vpop.f32.mrf.mxu1 }
 0x495   : > { %v1719_v51 = vpop.f32.mrf.mxu2 }
 0x496   : > { %v1720_v25 = vadd.f32 %v6728_v12, %v1719_v51  ;;  %v2113_v51 = vunpack.c.l.b16 %v1790_v27  ;;  %v1698_v27 = vadd.f32 %v6120_v37, %v7023_v44 }
 0x49a   : > { %v7109_v33 = vpop.f32.mrf.mxu1 }
 0x49d   : > { %v1722_v41 = vpop.f32.mrf.mxu2  ;;  %2066 = vmatmul.bf16.gmra.mxu3 %v6732_v50 }
 0x49e   : > { %v1723_v38 = vadd.f32 %v6728_v12, %v1722_v41 }
 0x4a0   : > { %v1792_v47 = vpack.c.bf16 %v1723_v38, %v1723_v38  ;;  %v1791_v38 = vpack.c.bf16 %v1720_v25, %v1720_v25 }
 0x4a2   : > { %v7112_v15 = vpop.f32.mrf.mxu1  ;;  %v2115_v0 = vunpack.c.l.b16 %v1792_v47 }
 0x4a5   : > { %v1724_v2 = vpop.f32.mrf.mxu2 }
 0x4a6   : > { %v1725_v5 = vadd.f32 %v6728_v12, %v1724_v2  ;;  %v1713_v2 = vadd.f32 %v6728_v12, %v1712_v9 }
 0x4a8   : > { %v1793_v50 = vpack.c.bf16 %v1725_v5, %v1725_v5  ;;  %v1788_v47 = vpack.c.bf16 %v1713_v2, %v1713_v2 }
 0x4aa   : > { %v7114_v10 = vpop.f32.mrf.mxu1 }
 0x4ad   : > { %v1727_v52 = vpop.f32.mrf.mxu2  ;;  %2071 = vmatmul.bf16.gmra.mxu3 %v6746_v43 }
 0x4ae   : > { %v1728_v36 = vadd.f32 %v6728_v12, %v1727_v52  ;;  %v2116_v52 = vunpack.c.l.b16 %v1793_v50  ;;  %v2114_v50 = vunpack.c.l.b16 %v1791_v38 }
 0x4b0   : > { %v1794_v56 = vpack.c.bf16 %v1728_v36, %v1728_v36  ;;  %v1715_v36 = vadd.f32 %v6728_v12, %v1714_v59 }
 0x4b2   : > { %v7120_v11 = vpop.f32.mrf.mxu1  ;;  %v2117_v4 = vunpack.c.l.b16 %v1794_v56  ;;  %v1710_v56 = vadd.f32 %v6728_v12, %v1709_v40  ;;  %v1700_v40 = vadd.f32 %v6120_v37, %v7037_v1 }
 0x4b4   : > { %v1787_v25 = vpack.c.bf16 %v1710_v56, %v1710_v56 }
 0x4b5   : > { %v1729_v46 = vpop.f32.mrf.mxu2 }
 0x4b6   : > { %v1730_v54 = vadd.f32 %v6728_v12, %v1729_v46  ;;  %v2125_v46 = vpack.c.b16 %v2116_v52, %v2115_v0  ;;  %v1786_v0 = vpack.c.bf16 %v1708_v57, %v1708_v57  ;;  %v2124_v12 = vpack.c.b16 %v2114_v50, %v2113_v51 }
 0x4b7   : > { %v2110_v2 = vunpack.c.l.b16 %v1787_v25 }
 0x4b8   : > { %v1795_v43 = vpack.c.bf16 %v1730_v54, %v1730_v54  ;;  %v1789_v54 = vpack.c.bf16 %v1715_v36, %v1715_v36  ;;  %v2109_v52 = vunpack.c.l.b16 %v1786_v0 }
 0x4ba   : > { %v2118_v23 = vunpack.c.l.b16 %v1795_v43  ;;  %v7125_v41 = vpop.f32.mrf.mxu1  ;;  %v2112_v30 = vunpack.c.l.b16 %v1789_v54 }
 0x4bc   : > { %v2126_v5 = vpack.c.b16 %v2118_v23, %v2117_v4  ;;  %v1703_v23 = vadd.f32 %v6120_v37, %v7061_v31  ;;  %v2111_v4 = vunpack.c.l.b16 %v1788_v47  ;;  %v1693_v31 = vadd.f32 %v6120_v37, %v7010_v34 }
 0x4bd   : > { %2076 = vmatmul.bf16.gmra.mxu3 %v6760_v17  ;;  %v1705_v17 = vadd.f32 %v6120_v37, %v7077_v26  ;;  %v1695_v26 = vadd.f32 %v6120_v37, %v7019_v29  ;;  %v2122_v47 = vpack.c.b16 %v2110_v2, %v2109_v52  ;;  %v2209_v2 = vpack.c.bf16 %v7112_v15, %v7112_v15 }
 0x4be   : > { %2135 = vmatpush.bf16.msrb.mxu1 %v2126_v5  ;;  %v1784_v9 = vpack.c.bf16 %v1703_v23, %v1703_v23  ;;  %v2123_v36 = vpack.c.b16 %v2112_v30, %v2111_v4  ;;  %v1782_v5 = vpack.c.bf16 %v1698_v27, %v1698_v27  ;;  %v1780_v44 = vpack.c.bf16 %v1693_v31, %v1693_v31 }
 0x4bf   : > { %v1785_v59 = vpack.c.bf16 %v1705_v17, %v1705_v17  ;;  %v1781_v1 = vpack.c.bf16 %v1695_v26, %v1695_v26  ;;  %v2212_v30 = vpack.c.bf16 %v7125_v41, %v7125_v41  ;;  %v2211_v27 = vpack.c.bf16 %v7120_v11, %v7120_v11  ;;  %v7163_v26 = vld [vmem:[%s6510_s12 + $0xc0] sm:$0xff] }
 0x4c0   : > { %v2107_v57 = vunpack.c.l.b16 %v1784_v9  ;;  %v2105_v54 = vunpack.c.l.b16 %v1782_v5  ;;  %v2103_v29 = vunpack.c.l.b16 %v1780_v44  ;;  %v2208_v5 = vpack.c.bf16 %v7109_v33, %v7109_v33 }
 0x4c1   : > { %v2108_v56 = vunpack.c.l.b16 %v1785_v59  ;;  %v2104_v37 = vunpack.c.l.b16 %v1781_v1  ;;  %v2210_v59 = vpack.c.bf16 %v7114_v10, %v7114_v10  ;;  %v2373_v52 = vunpack.c.l.b16 %v2212_v30 }
 0x4c2   : > { %v7132_v43 = vpop.f32.mrf.mxu1  ;;  %2136 = vmatpush.bf16.msrb.mxu1 %v2125_v46  ;;  %v1783_v46 = vpack.c.bf16 %v1700_v40, %v1700_v40  ;;  %v2372_v31 = vunpack.c.l.b16 %v2211_v27  ;;  %v2370_v44 = vunpack.c.l.b16 %v2209_v2  ;;  %v2206_v1 = vpack.c.bf16 %v7104_v3, %v7104_v3  ;;  %v7196_v2 = vld [vmem:[%s6510_s12 + $0xc8] sm:$0xff] }
 0x4c3   : > { %v2121_v50 = vpack.c.b16 %v2108_v56, %v2107_v57  ;;  %v2119_v40 = vpack.c.b16 %v2104_v37, %v2103_v29  ;;  %v2207_v57 = vpack.c.bf16 %v7107_v55, %v7107_v55  ;;  %v2203_v37 = vpack.c.bf16 %v7097_v22, %v7097_v22  ;;  %10265 = vst [vmem:[#allocation24_spill] sm:$0xff] %v7196_v2  ;;  %v10317_v22 = vld [vmem:[#allocation14_spill] sm:$0xff] }
 0x4c4   : > { %v2106_v51 = vunpack.c.l.b16 %v1783_v46  ;;  %v2371_v46 = vunpack.c.l.b16 %v2210_v59  ;;  %v2202_v30 = vpack.c.bf16 %v7083_v45, %v7083_v45 }
 0x4c6   : > { %2137 = vmatpush.bf16.msrb.mxu1 %v2124_v12  ;;  %v2120_v0 = vpack.c.b16 %v2106_v51, %v2105_v54  ;;  %v2369_v54 = vunpack.c.l.b16 %v2208_v5  ;;  %v2363_v5 = vunpack.c.l.b16 %v2202_v30 }
 0x4c8   : > { %v2381_v51 = vpack.c.b16 %v2370_v44, %v2369_v54 }
 0x4ca   : > { %v7141_v38 = vpop.f32.mrf.mxu1  ;;  %2138 = vmatpush.bf16.msrb.mxu1 %v2123_v36 }
 0x4cb   : > { %v2214_v23 = vpack.c.bf16 %v7141_v38, %v7141_v38 }
 0x4cd   : > { %2081 = vmatmul.bf16.gmra.mxu3 %v6774_v13  ;;  %v2213_v13 = vpack.c.bf16 %v7132_v43, %v7132_v43  ;;  %v2375_v25 = vunpack.c.l.b16 %v2214_v23  ;;  %v2204_v23 = vpack.c.bf16 %v7099_v62, %v7099_v62 }
 0x4ce   : > { %2139 = vmatpush.bf16.msrb.mxu1 %v2122_v47  ;;  %v2382_v47 = vpack.c.b16 %v2372_v31, %v2371_v46  ;;  %v2200_v31 = vpack.c.bf16 %v7052_v42, %v7052_v42 }
 0x4cf   : > { %v2374_v9 = vunpack.c.l.b16 %v2213_v13 }
 0x4d0   : > { %v2361_v44 = vunpack.c.l.b16 %v2200_v31 }
 0x4d1   : > { %v2383_v36 = vpack.c.b16 %v2374_v9, %v2373_v52  ;;  %v2201_v9 = vpack.c.bf16 %v7071_v24, %v7071_v24  ;;  %v2364_v52 = vunpack.c.l.b16 %v2203_v37 }
 0x4d2   : > { %v7148_v17 = vpop.f32.mrf.mxu1  ;;  %2140 = vmatpush.bf16.msrb.mxu1 %v2121_v50  ;;  %v2368_v50 = vunpack.c.l.b16 %v2207_v57 }
 0x4d3   : > { %v2215_v34 = vpack.c.bf16 %v7148_v17, %v7148_v17  ;;  %v2378_v57 = vpack.c.b16 %v2364_v52, %v2363_v5 }
 0x4d5   : > { %v2376_v4 = vunpack.c.l.b16 %v2215_v34  ;;  %v2367_v34 = vunpack.c.l.b16 %v2206_v1 }
 0x4d6   : > { %2141 = vmatpush.bf16.msrb.mxu1 %v2120_v0 }
 0x4d7   : > { %v2384_v12 = vpack.c.b16 %v2376_v4, %v2375_v25  ;;  %v2380_v0 = vpack.c.b16 %v2368_v50, %v2367_v34  ;;  %v7222_v34 = vld [vmem:[%s6510_s12 + $0x10] sm:$0xff] }
 0x4d8   : > { %10269 = vst [vmem:[#allocation28_spill] sm:$0xff] %v7222_v34 }
 0x4d9   : > { %2393 = vmatpush.bf16.msrb.mxu0 %v2384_v12  ;;  %v2365_v12 = vunpack.c.l.b16 %v2204_v23  ;;  %v7218_v23 = vld [vmem:[%s6510_s12 + $0xd0] sm:$0xff] }
 0x4da   : > { %2142 = vmatpush.bf16.msrb.mxu1 %v2119_v40  ;;  %10268 = vst [vmem:[#allocation27_spill] sm:$0xff] %v7218_v23 }
 0x4dd   : > { %2143 = vmatmul.bf16.vlgmr.msrb.gmra.mxu1 %v7163_v26  ;;  %2304 = vmatmul.bf16.vlgmr.msrb.gmra.mxu3 %v6840_v19  ;;  %v2205_v19 = vpack.c.bf16 %v7102_v60, %v7102_v60 }
 0x4de   : > { %2394 = vmatpush.bf16.msrb.mxu0 %v2383_v36 }
 0x4df   : > { %v2366_v25 = vunpack.c.l.b16 %v2205_v19 }
 0x4e0   : > { %v7171_v56 = vpop.f32.mrf.mxu3 }
 0x4e1   : > { %10263 = vst [vmem:[#allocation22_spill] sm:$0xff] %v7171_v56  ;;  %v2216_v29 = vpack.c.bf16 %v7171_v56, %v7171_v56  ;;  %v2379_v59 = vpack.c.b16 %v2366_v25, %v2365_v12  ;;  %v7241_v12 = vld [vmem:[%s6510_s12 + $0xd8] sm:$0xff] }
 0x4e2   : > { %2395 = vmatpush.bf16.msrb.mxu0 %v2382_v47  ;;  %v2362_v47 = vunpack.c.l.b16 %v2201_v9  ;;  %10272 = vst [vmem:[#allocation31_spill] sm:$0xff] %v7241_v12  ;;  %v7245_v9 = vld [vmem:[%s6510_s12 + $0x18] sm:$0xff] }
 0x4e3   : > { %v7189_v27 = vunpack.c.l.b16 %v2216_v29  ;;  %10273 = vst [vmem:[#allocation32_spill] sm:$0xff] %v7245_v9 }
 0x4e4   : > { %v2377_v1 = vpack.c.b16 %v2362_v47, %v2361_v44  ;;  %v7260_v44 = vld [vmem:[%s6510_s12 + $0xe0] sm:$0xff] }
 0x4e5   : > { %10276 = vst [vmem:[#allocation35_spill] sm:$0xff] %v7260_v44 }
 0x4e6   : > { %2396 = vmatpush.bf16.msrb.mxu0 %v2381_v51 }
 0x4e8   : > { %v7183_v13 = vpop.f32.mrf.mxu3 }
 0x4e9   : > { %10264 = vst [vmem:[#allocation23_spill] sm:$0xff] %v7183_v13  ;;  %v2217_v4 = vpack.c.bf16 %v7183_v13, %v7183_v13 }
 0x4ea   : > { %2397 = vmatpush.bf16.msrb.mxu0 %v2380_v0 }
 0x4eb   : > { %v7191_v40 = vunpack.c.l.b16 %v2217_v4 }
 0x4ed   : > { %2148 = vmatmul.bf16.gmra.mxu1 %v7196_v2  ;;  %2309 = vmatmul.bf16.gmra.mxu3 %v6857_v21 }
 0x4ee   : > { %2398 = vmatpush.bf16.msrb.mxu0 %v2379_v59 }
 0x4f0   : > { %v7204_v46 = vpop.f32.mrf.mxu3 }
 0x4f1   : > { %10266 = vst [vmem:[#allocation25_spill] sm:$0xff] %v7204_v46  ;;  %v2218_v21 = vpack.c.bf16 %v7204_v46, %v7204_v46 }
 0x4f2   : > { %2399 = vmatpush.bf16.msrb.mxu0 %v2378_v57 }
 0x4f3   : > { %v7213_v51 = vunpack.c.l.b16 %v2218_v21 }
 0x4f6   : > { %2400 = vmatpush.bf16.msrb.mxu0 %v2377_v1  ;;  %v7264_v1 = vld [vmem:[%s6510_s12 + $0x20] sm:$0xff] }
 0x4f7   : > { %10277 = vst [vmem:[#allocation36_spill] sm:$0xff] %v7264_v1 }
 0x4f8   : > { %v7208_v54 = vpop.f32.mrf.mxu3 }
 0x4f9   : > { %10267 = vst [vmem:[#allocation26_spill] sm:$0xff] %v7208_v54  ;;  %v2219_v19 = vpack.c.bf16 %v7208_v54, %v7208_v54  ;;  %2401 = vmatmul.bf16.vlgmr.msrb.gmra.mxu0 %v6935_v16 }
 0x4fb   : > { %v7215_v50 = vunpack.c.l.b16 %v2219_v19 }
 0x4fd   : > { %2153 = vmatmul.bf16.gmra.mxu1 %v7218_v23  ;;  %2314 = vmatmul.bf16.gmra.mxu3 %v7222_v34 }
 0x500   : > { %v7227_v37 = vpop.f32.mrf.mxu3 }
 0x501   : > { %10270 = vst [vmem:[#allocation29_spill] sm:$0xff] %v7227_v37  ;;  %v2220_v16 = vpack.c.bf16 %v7227_v37, %v7227_v37 }
 0x503   : > { %v7236_v4 = vunpack.c.l.b16 %v2220_v16 }
 0x508   : > { %v7231_v0 = vpop.f32.mrf.mxu3 }
 0x509   : > { %10271 = vst [vmem:[#allocation30_spill] sm:$0xff] %v7231_v0  ;;  %v2221_v25 = vpack.c.bf16 %v7231_v0, %v7231_v0  ;;  %2406 = vmatmul.bf16.gmra.mxu0 %v6952_v8 }
 0x50b   : > { %v7238_v30 = vunpack.c.l.b16 %v2221_v25 }
 0x50d   : > { %2158 = vmatmul.bf16.gmra.mxu1 %v7241_v12  ;;  %2319 = vmatmul.bf16.gmra.mxu3 %v7245_v9  ;;  %v6132_v9 = vld [vmem:[%s6510_s12 + $0xa0] sm:$0xff] }
 0x510   : > { %v7250_v52 = vpop.f32.mrf.mxu3 }
 0x511   : > { %10274 = vst [vmem:[#allocation33_spill] sm:$0xff] %v7250_v52  ;;  %v2222_v8 = vpack.c.bf16 %v7250_v52, %v7250_v52 }
 0x513   : > { %v2464_v57 = vunpack.c.l.b16 %v2222_v8 }
 0x518   : > { %v7254_v31 = vpop.f32.mrf.mxu3 }
 0x519   : > { %10275 = vst [vmem:[#allocation34_spill] sm:$0xff] %v7254_v31  ;;  %v2223_v5 = vpack.c.bf16 %v7254_v31, %v7254_v31  ;;  %2411 = vmatmul.bf16.gmra.mxu0 %v6969_v35  ;;  %v7274_v35 = vld [vmem:[%s6510_s12 + $0x28] sm:$0xff] }
 0x51a   : > { %10280 = vst [vmem:[#allocation39_spill] sm:$0xff] %v7274_v35 }
 0x51b   : > { %v2465_v47 = vunpack.c.l.b16 %v2223_v5 }
 0x51d   : > { %2163 = vmatmul.bf16.gmra.mxu1 %v7260_v44  ;;  %2324 = vmatmul.bf16.gmra.mxu3 %v7264_v1  ;;  %v2477_v21 = vpack.c.b16 %v2465_v47, %v2464_v57  ;;  %v7396_v44 = vld [vmem:[%s6510_s12 + $0x98] sm:$0xff] }
 0x51e   : > { %10307 = vst [vmem:[#allocation57_spill] sm:$0xff] %v7396_v44 }
 0x520   : > { %v7267_v19 = vpop.f32.mrf.mxu3 }
 0x521   : > { %10278 = vst [vmem:[#allocation37_spill] sm:$0xff] %v7267_v19 }
 0x528   : > { %v7269_v16 = vpop.f32.mrf.mxu3 }
 0x529   : > { %10279 = vst [vmem:[#allocation38_spill] sm:$0xff] %v7269_v16  ;;  %2416 = vmatmul.bf16.gmra.mxu0 %v6978_v61 }
 0x52d   : > { %2168 = vmatmul.bf16.gmra.mxu1 %v6844_v48  ;;  %2329 = vmatmul.bf16.gmra.mxu3 %v7274_v35  ;;  %v2225_v35 = vpack.c.bf16 %v7269_v16, %v7269_v16 }
 0x530   : > { %v7277_v25 = vpop.f32.mrf.mxu3 }
 0x531   : > { %10281 = vst [vmem:[#allocation40_spill] sm:$0xff] %v7277_v25 }
 0x538   : > { %v7279_v8 = vpop.f32.mrf.mxu3 }
 0x539   : > { %10282 = vst [vmem:[#allocation41_spill] sm:$0xff] %v7279_v8  ;;  %2421 = vmatmul.bf16.gmra.mxu0 %v6987_v39  ;;  %v2227_v36 = vpack.c.bf16 %v7279_v8, %v7279_v8 }
 0x53b   : > { %v2469_v1 = vunpack.c.l.b16 %v2227_v36 }
 0x53d   : > { %2173 = vmatmul.bf16.gmra.mxu1 %v6861_v49  ;;  %2334 = vmatmul.bf16.gmra.mxu3 %v6896_v58 }
 0x540   : > { %v7284_v5 = vpop.f32.mrf.mxu3 }
 0x541   : > { %10283 = vst [vmem:[#allocation42_spill] sm:$0xff] %v7284_v5 }
 0x548   : > { %v7286_v57 = vpop.f32.mrf.mxu3 }
 0x549   : > { %10284 = vst [vmem:[#allocation43_spill] sm:$0xff] %v7286_v57  ;;  %2426 = vmatmul.bf16.gmra.mxu0 %v6996_v7  ;;  %v2229_v49 = vpack.c.bf16 %v7286_v57, %v7286_v57  ;;  %v2226_v57 = vpack.c.bf16 %v7277_v25, %v7277_v25 }
 0x54b   : > { %v2471_v29 = vunpack.c.l.b16 %v2229_v49  ;;  %v2224_v49 = vpack.c.bf16 %v7267_v19, %v7267_v19 }
 0x54d   : > { %2178 = vmatmul.bf16.gmra.mxu1 %v6875_v32  ;;  %2339 = vmatmul.bf16.gmra.mxu3 %v6909_v14  ;;  %v2228_v32 = vpack.c.bf16 %v7284_v5, %v7284_v5  ;;  %v2466_v25 = vunpack.c.l.b16 %v2224_v49 }
 0x550   : > { %v7291_v48 = vpop.f32.mrf.mxu3 }
 0x551   : > { %10285 = vst [vmem:[#allocation44_spill] sm:$0xff] %v7291_v48  ;;  %v2230_v61 = vpack.c.bf16 %v7291_v48, %v7291_v48  ;;  %v2470_v48 = vunpack.c.l.b16 %v2228_v32  ;;  %v2467_v32 = vunpack.c.l.b16 %v2225_v35 }
 0x553   : > { %v2472_v14 = vunpack.c.l.b16 %v2230_v61  ;;  %v2480_v61 = vpack.c.b16 %v2471_v29, %v2470_v48  ;;  %v2478_v36 = vpack.c.b16 %v2467_v32, %v2466_v25  ;;  %v2702_v48 = vmul.f32 0.5, %v6955_v18 }
 0x558   : > { %v7295_v39 = vpop.f32.mrf.mxu3 }
 0x559   : > { %10286 = vst [vmem:[#allocation45_spill] sm:$0xff] %v7295_v39  ;;  %v2231_v58 = vpack.c.bf16 %v7295_v39, %v7295_v39  ;;  %2431 = vmatmul.bf16.gmra.mxu0 %v7013_v20  ;;  %v2700_v39 = vmul.f32 0.5, %v6938_v28 }
 0x55a   : > { %v7302_v7 = vpop.f32.mrf.mxu1 }
 0x55b   : > { %v2473_v47 = vunpack.c.l.b16 %v2231_v58 }
 0x55d   : > { %v2481_v59 = vpack.c.b16 %v2473_v47, %v2472_v14  ;;  %v2468_v14 = vunpack.c.l.b16 %v2226_v57 }
 0x55f   : > { %2490 = vmatpush.bf16.msra.mxu1 %v2481_v59  ;;  %v2479_v59 = vpack.c.b16 %v2469_v1, %v2468_v14  ;;  %v10289_v1 = vpack.c.b16 %v7238_v30, %v7236_v4  ;;  %v10292_v14 = vpack.c.b16 %v7191_v40, %v7189_v27  ;;  %v2704_v30 = vmul.f32 0.5, %v6972_v6 }
 0x560   : > { %v2305_v20 = vpop.f32.mrf.mxu3 }
 0x561   : > { %v2636_v5 = vmul.f32 0.5, %v2305_v20 }
 0x562   : > { %v7313_v58 = vpop.f32.mrf.mxu1 }
 0x563   : > { %10287 = vst [vmem:[#allocation46_spill] sm:$0xff] %v7313_v58  ;;  %v7317_v47 = vadd.f32 %v2700_v39, %v2636_v5  ;;  %2491 = vmatpush.bf16.msra.mxu1 %v2480_v61  ;;  %v10290_v61 = vpack.c.b16 %v7215_v50, %v7213_v51 }
 0x567   : > { %2492 = vmatpush.bf16.msra.mxu1 %v2479_v59 }
 0x568   : > { %v7319_v28 = vpop.f32.mrf.mxu3 }
 0x569   : > { %2436 = vmatmul.bf16.gmra.mxu0 %v7026_v63  ;;  %v2716_v63 = vmul.f32 0.5, %v7052_v42 }
 0x56a   : > { %v7322_v20 = vpop.f32.mrf.mxu1 }
 0x56b   : > { %2493 = vmatpush.bf16.msra.mxu1 %v2478_v36  ;;  %v2718_v36 = vmul.f32 0.5, %v7083_v45 }
 0x56f   : > { %2494 = vmatpush.bf16.msra.mxu1 %v2477_v21 }
 0x570   : > { %v2310_v29 = vpop.f32.mrf.mxu3 }
 0x571   : > { %v2638_v57 = vmul.f32 0.5, %v2310_v29 }
 0x572   : > { %v7325_v5 = vpop.f32.mrf.mxu1 }
 0x573   : > { %10288 = vst [vmem:[#allocation47_spill] sm:$0xff] %v7325_v5  ;;  %v7327_v39 = vadd.f32 %v2702_v48, %v2638_v57  ;;  %2495 = vmatpush.bf16.msra.mxu1 %v10289_v1  ;;  %v10297_v57 = vld [vmem:[#allocation19_spill] sm:$0xff]  ;;  %v10298_v1 = vld [vmem:[#allocation8_spill] sm:$0xff] }
 0x576   : > { %v2402_v35 = vpop.f32.mrf.mxu0 }
 0x577   : > { %v2652_v25 = vmul.f32 0.5, %v2402_v35  ;;  %2496 = vmatpush.bf16.msra.mxu1 %v10290_v61  ;;  %v2706_v35 = vmul.f32 0.5, %v10298_v1 }
 0x578   : > { %v7336_v21 = vpop.f32.mrf.mxu3 }
 0x579   : > { %v7338_v18 = vadd.f32 %v2716_v63, %v2652_v25 }
 0x57a   : > { %v7340_v49 = vpop.f32.mrf.mxu1 }
 0x57b   : > { %10291 = vst [vmem:[#allocation48_spill] sm:$0xff] %v7338_v18  ;;  %2497 = vmatpush.bf16.msra.mxu1 %v10292_v14  ;;  %v2720_v14 = vmul.f32 0.5, %v7099_v62 }
 0x57e   : > { %v7345_v4 = vpop.f32.mrf.mxu0  ;;  %2498 = vmatmul.bf16.vlgmr.msra.gmra.mxu1 %v7064_v53 }
 0x57f   : > { %10293 = vst [vmem:[#allocation49_spill] sm:$0xff] %v7345_v4  ;;  %v10315_v4 = vld [vmem:[#allocation15_spill] sm:$0xff] }
 0x580   : > { %v2315_v42 = vpop.f32.mrf.mxu3 }
 0x581   : > { %v2640_v32 = vmul.f32 0.5, %v2315_v42 }
 0x582   : > { %v7349_v51 = vpop.f32.mrf.mxu1 }
 0x583   : > { %10294 = vst [vmem:[#allocation50_spill] sm:$0xff] %v7349_v51  ;;  %v7351_v50 = vadd.f32 %v2704_v30, %v2640_v32 }
 0x586   : > { %v2407_v59 = vpop.f32.mrf.mxu0 }
 0x587   : > { %v2654_v29 = vmul.f32 0.5, %v2407_v59 }
 0x588   : > { %v7354_v48 = vpop.f32.mrf.mxu3 }
 0x589   : > { %v7356_v27 = vadd.f32 %v2718_v36, %v2654_v29  ;;  %v7378_v29 = vld [vmem:[%s6510_s12 + $0x90] sm:$0xff] }
 0x58a   : > { %v7358_v40 = vpop.f32.mrf.mxu1  ;;  %10302 = vst [vmem:[#allocation54_spill] sm:$0xff] %v7378_v29 }
 0x58b   : > { %10295 = vst [vmem:[#allocation51_spill] sm:$0xff] %v7356_v27  ;;  %v10314_v27 = vld [vmem:[#allocation16_spill] sm:$0xff] }
 0x58c   : > { %v2714_v2 = vmul.f32 0.5, %v10314_v27  ;;  %v2712_v27 = vmul.f32 0.5, %v10317_v22 }
 0x58e   : > { %v7360_v53 = vpop.f32.mrf.mxu0  ;;  %2503 = vmatmul.bf16.gmra.mxu1 %v10297_v57 }
 0x58f   : > { %10296 = vst [vmem:[#allocation52_spill] sm:$0xff] %v7360_v53  ;;  %v10318_v53 = vld [vmem:[#allocation17_spill] sm:$0xff] }
 0x590   : > { %v2320_v6 = vpop.f32.mrf.mxu3 }
 0x591   : > { %v2642_v63 = vmul.f32 0.5, %v2320_v6  ;;  %v10303_v6 = vld [vmem:[#allocation10_spill] sm:$0xff] }
 0x592   : > { %v7364_v25 = vpop.f32.mrf.mxu1  ;;  %v2708_v1 = vmul.f32 0.5, %v10303_v6 }
 0x593   : > { %10299 = vst [vmem:[#allocation19_spill] sm:$0xff] %v7364_v25  ;;  %v7366_v61 = vadd.f32 %v2706_v35, %v2642_v63 }
 0x596   : > { %v2412_v45 = vpop.f32.mrf.mxu0 }
 0x597   : > { %v2656_v42 = vmul.f32 0.5, %v2412_v45 }
 0x598   : > { %v7369_v30 = vpop.f32.mrf.mxu3 }
 0x599   : > { %v7371_v32 = vadd.f32 %v2720_v14, %v2656_v42  ;;  %v2722_v14 = vmul.f32 0.5, %v7104_v3  ;;  %v2724_v3 = vmul.f32 0.5, %v7109_v33  ;;  %v6133_v33 = vld [vmem:[%s6510_s12 + $0xa8] sm:$0xff] }
 0x59a   : > { %v7373_v59 = vpop.f32.mrf.mxu1 }
 0x59b   : > { %10300 = vst [vmem:[#allocation8_spill] sm:$0xff] %v7371_v32 }
 0x59e   : > { %v7375_v36 = vpop.f32.mrf.mxu0  ;;  %2508 = vmatmul.bf16.gmra.mxu1 %v7378_v29 }
 0x59f   : > { %10301 = vst [vmem:[#allocation53_spill] sm:$0xff] %v7375_v36 }
 0x5a0   : > { %v2325_v57 = vpop.f32.mrf.mxu3 }
 0x5a1   : > { %v2644_v35 = vmul.f32 0.5, %v2325_v57 }
 0x5a2   : > { %v7382_v63 = vpop.f32.mrf.mxu1 }
 0x5a3   : > { %10304 = vst [vmem:[#allocation10_spill] sm:$0xff] %v7382_v63  ;;  %v7384_v62 = vadd.f32 %v2708_v1, %v2644_v35 }
 0x5a6   : > { %v2417_v45 = vpop.f32.mrf.mxu0 }
 0x5a7   : > { %v2658_v42 = vmul.f32 0.5, %v2417_v45 }
 0x5a8   : > { %v7387_v16 = vpop.f32.mrf.mxu3 }
 0x5a9   : > { %v7389_v8 = vadd.f32 %v2722_v14, %v2658_v42 }
 0x5aa   : > { %v7391_v19 = vpop.f32.mrf.mxu1 }
 0x5ab   : > { %10305 = vst [vmem:[#allocation55_spill] sm:$0xff] %v7389_v8 }
 0x5ac   : > { %10306 = vst [vmem:[#allocation56_spill] sm:$0xff] %v7391_v19 }
 0x5ae   : > { %v7393_v29 = vpop.f32.mrf.mxu0  ;;  %2513 = vmatmul.bf16.gmra.mxu1 %v7396_v44 }
 0x5b0   : > { %v2330_v57 = vpop.f32.mrf.mxu3 }
 0x5b1   : > { %v2646_v22 = vmul.f32 0.5, %v2330_v57 }
 0x5b2   : > { %v7399_v6 = vpop.f32.mrf.mxu1 }
 0x5b3   : > { %10308 = vst [vmem:[#allocation58_spill] sm:$0xff] %v7399_v6 }
 0x5b6   : > { %v2422_v1 = vpop.f32.mrf.mxu0 }
 0x5b7   : > { %v2660_v35 = vmul.f32 0.5, %v2422_v1 }
 0x5b8   : > { %v2332_v45 = vpop.f32.mrf.mxu3 }
 0x5b9   : > { %v7402_v31 = vadd.f32 %v2724_v3, %v2660_v35 }
 0x5ba   : > { %v7404_v14 = vpop.f32.mrf.mxu1 }
 0x5bb   : > { %10309 = vst [vmem:[#allocation59_spill] sm:$0xff] %v7402_v31  ;;  %v2244_v35 = vpack.c.bf16 %v7404_v14, %v7404_v14  ;;  %v2715_v31 = vmul.f32 0.5, %v10318_v53 }
 0x5bc   : > { %10310 = vst [vmem:[#allocation60_spill] sm:$0xff] %v7404_v14 }
 0x5bd   : > { %v2567_v32 = vunpack.c.l.b16 %v2244_v35 }
 0x5be   : > { %v7406_v42 = vpop.f32.mrf.mxu0  ;;  %2518 = vmatmul.bf16.gmra.mxu1 %v6132_v9 }
 0x5c0   : > { %v2335_v52 = vpop.f32.mrf.mxu3 }
 0x5c2   : > { %v7409_v12 = vpop.f32.mrf.mxu1 }
 0x5c3   : > { %10311 = vst [vmem:[#allocation61_spill] sm:$0xff] %v7409_v12  ;;  %v2245_v9 = vpack.c.bf16 %v7409_v12, %v7409_v12 }
 0x5c5   : > { %v2568_v14 = vunpack.c.l.b16 %v2245_v9  ;;  %v10319_v9 = vld [vmem:[#allocation13_spill] sm:$0xff] }
 0x5c6   : > { %v7411_v44 = vpop.f32.mrf.mxu0  ;;  %v2711_v36 = vmul.f32 0.5, %v10319_v9 }
 0x5c8   : > { %v2337_v0 = vpop.f32.mrf.mxu3 }
 0x5c9   : > { %v2649_v24 = vmul.f32 0.5, %v2337_v0 }
 0x5ca   : > { %v7413_v34 = vpop.f32.mrf.mxu1 }
 0x5cb   : > { %10312 = vst [vmem:[#allocation62_spill] sm:$0xff] %v7413_v34  ;;  %v2246_v1 = vpack.c.bf16 %v7413_v34, %v7413_v34  ;;  %v2243_v34 = vpack.c.bf16 %v7399_v6, %v7399_v6  ;;  %v2647_v6 = vmul.f32 0.5, %v2332_v45 }
 0x5cd   : > { %v2569_v54 = vunpack.c.l.b16 %v2246_v1  ;;  %v2713_v1 = vmul.f32 0.5, %v10315_v4  ;;  %v2566_v60 = vunpack.c.l.b16 %v2243_v34  ;;  %v2645_v4 = vmul.f32 0.5, %v7387_v16  ;;  %v6134_v16 = vld [vmem:[%s6510_s12 + $0xb0] sm:$0xff] }
 0x5ce   : > { %v7415_v37 = vpop.f32.mrf.mxu0  ;;  %2523 = vmatmul.bf16.gmra.mxu1 %v6133_v33  ;;  %v2242_v33 = vpack.c.bf16 %v7391_v19, %v7391_v19  ;;  %v7456_v53 = vadd.f32 %v2711_v36, %v2647_v6 }
 0x5cf   : > { %v7440_v35 = vadd.f32 %v2713_v1, %v2649_v24 }
 0x5d0   : > { %v2340_v3 = vpop.f32.mrf.mxu3  ;;  %v2565_v19 = vunpack.c.l.b16 %v2242_v33 }
 0x5d1   : > { %v2650_v18 = vmul.f32 0.5, %v2340_v3  ;;  %v2648_v3 = vmul.f32 0.5, %v2335_v52  ;;  %v10322_v52 = vld [vmem:[#allocation12_spill] sm:$0xff] }
 0x5d2   : > { %v7424_v23 = vpop.f32.mrf.mxu1  ;;  %v2576_v45 = vpack.c.b16 %v2566_v60, %v2565_v19  ;;  %v2643_v19 = vmul.f32 0.5, %v7369_v30 }
 0x5d3   : > { %10313 = vst [vmem:[#allocation63_spill] sm:$0xff] %v7424_v23  ;;  %v2247_v46 = vpack.c.bf16 %v7424_v23, %v7424_v23  ;;  %v7436_v8 = vadd.f32 %v2714_v2, %v2650_v18  ;;  %v2240_v2 = vpack.c.bf16 %v7373_v59, %v7373_v59  ;;  %v2710_v18 = vmul.f32 0.5, %v10322_v52 }
 0x5d5   : > { %v2570_v13 = vunpack.c.l.b16 %v2247_v46  ;;  %10316 = vst [vmem:[#allocation16_spill] sm:$0xff] %v7436_v8  ;;  %v2577_v46 = vpack.c.b16 %v2568_v14, %v2567_v32  ;;  %v2842_v34 = vpack.c.bf16 %v7436_v8, %v7436_v8  ;;  %v2841_v32 = vpack.c.bf16 %v7440_v35, %v7440_v35 }
 0x5d6   : > { %v7433_v12 = vpop.f32.mrf.mxu0  ;;  %v2239_v14 = vpack.c.bf16 %v7364_v25, %v7364_v25  ;;  %v2563_v33 = vunpack.c.l.b16 %v2240_v2  ;;  %v7467_v36 = vadd.f32 %v2710_v18, %v2646_v22  ;;  %v2839_v2 = vpack.c.bf16 %v7456_v53, %v7456_v53  ;;  %v10324_v22 = vld [vmem:[#allocation9_spill] sm:$0xff] }
 0x5d7   : > { %v2578_v23 = vpack.c.b16 %v2570_v13, %v2569_v54  ;;  %v2241_v13 = vpack.c.bf16 %v7382_v63, %v7382_v63  ;;  %v7447_v54 = vadd.f32 %v2712_v27, %v2648_v3  ;;  %v2922_v27 = vunpack.c.l.b16 %v2842_v34 }
 0x5d8   : > { %v2342_v56 = vpop.f32.mrf.mxu3  ;;  %v2707_v52 = vmul.f32 0.5, %v10324_v22  ;;  %v2236_v18 = vpack.c.bf16 %v7340_v49, %v7340_v49  ;;  %v2237_v34 = vpack.c.bf16 %v7349_v51, %v7349_v51  ;;  %v2838_v30 = vpack.c.bf16 %v7467_v36, %v7467_v36 }
 0x5d9   : > { %v2651_v0 = vmul.f32 0.5, %v2342_v56  ;;  %2587 = vmatpush.bf16.msra.mxu3 %v2578_v23  ;;  %v10321_v56 = vld [vmem:[#allocation11_spill] sm:$0xff]  ;;  %v2564_v1 = vunpack.c.l.b16 %v2241_v13  ;;  %v2840_v6 = vpack.c.bf16 %v7447_v54, %v7447_v54  ;;  %v7492_v25 = vmul.f32 0.5, %v7120_v11 }
 0x5da   : > { %v2709_v23 = vmul.f32 0.5, %v10321_v56  ;;  %v2921_v56 = vunpack.c.l.b16 %v2841_v32  ;;  %v7489_v22 = vadd.f32 %v2707_v52, %v2643_v19  ;;  %v2919_v51 = vunpack.c.l.b16 %v2839_v2 }
 0x5db   : > { %v7451_v24 = vadd.f32 %v2715_v31, %v2651_v0  ;;  %v2238_v31 = vpack.c.bf16 %v7358_v40, %v7358_v40  ;;  %v2836_v11 = vpack.c.bf16 %v7384_v62, %v7384_v62  ;;  %v2918_v52 = vunpack.c.l.b16 %v2838_v30 }
 0x5dc   : > { %v7475_v9 = vadd.f32 %v2709_v23, %v2645_v4  ;;  %v2920_v23 = vunpack.c.l.b16 %v2840_v6  ;;  %v2575_v4 = vpack.c.b16 %v2564_v1, %v2563_v33  ;;  %v2728_v6 = vmul.f32 0.5, %v7125_v41 }
 0x5dd   : > { %10320 = vst [vmem:[#allocation15_spill] sm:$0xff] %v7451_v24  ;;  %v2843_v57 = vpack.c.bf16 %v7451_v24, %v7451_v24  ;;  %2588 = vmatpush.bf16.msra.mxu3 %v2577_v46  ;;  %v10323_v46 = vld [vmem:[#allocation5_spill] sm:$0xff]  ;;  %v2234_v33 = vpack.c.bf16 %v7322_v20, %v7322_v20  ;;  %v2235_v1 = vpack.c.bf16 %v7325_v5, %v7325_v5  ;;  %v2639_v2 = vmul.f32 0.5, %v7336_v21 }
 0x5de   : > { %v2434_v3 = vpop.f32.mrf.mxu0  ;;  %2528 = vmatmul.bf16.gmra.mxu1 %v6134_v16  ;;  %v7472_v60 = vmul.f32 0.5, %v10323_v46  ;;  %v2562_v16 = vunpack.c.l.b16 %v2239_v14  ;;  %v10325_v46 = vld [vmem:[#allocation6_spill] sm:$0xff]  ;;  %v2930_v14 = vpack.c.b16 %v2921_v56, %v2920_v23  ;;  %v2729_v56 = vmul.f32 0.5, %v7132_v43 }
 0x5df   : > { %v2923_v0 = vunpack.c.l.b16 %v2843_v57  ;;  %v2561_v57 = vunpack.c.l.b16 %v2238_v31  ;;  %v2837_v31 = vpack.c.bf16 %v7475_v9, %v7475_v9  ;;  %v2835_v23 = vpack.c.bf16 %v7489_v22, %v7489_v22 }
 0x5e0   : > { %v2232_v30 = vpack.c.bf16 %v7302_v7, %v7302_v7  ;;  %v2557_v43 = vunpack.c.l.b16 %v2234_v33  ;;  %v2834_v21 = vpack.c.bf16 %v7366_v61, %v7366_v61  ;;  %v2664_v33 = vmul.f32 0.5, %v7433_v12 }
 0x5e1   : > { %2589 = vmatpush.bf16.msra.mxu3 %v2576_v45  ;;  %v2931_v13 = vpack.c.b16 %v2923_v0, %v2922_v27  ;;  %v2703_v45 = vmul.f32 0.5, %v10325_v46  ;;  %v10326_v27 = vld [vmem:[#allocation7_spill] sm:$0xff]  ;;  %v2641_v0 = vmul.f32 0.5, %v7354_v48  ;;  %v2559_v48 = vunpack.c.l.b16 %v2236_v18 }
 0x5e2   : > { %v2705_v32 = vmul.f32 0.5, %v10326_v27  ;;  %v2574_v46 = vpack.c.b16 %v2562_v16, %v2561_v57  ;;  %v2917_v27 = vunpack.c.l.b16 %v2837_v31  ;;  %v2233_v57 = vpack.c.bf16 %v7313_v58, %v7313_v58  ;;  %v10383_v58 = vld [vmem:[#allocation42_spill] sm:$0xff] }
 0x5e3   : > { %2940 = vmatpush.bf16.msra.mxu0 %v2931_v13  ;;  %v2560_v13 = vunpack.c.l.b16 %v2237_v34  ;;  %v2929_v34 = vpack.c.b16 %v2919_v51, %v2918_v52  ;;  %v2558_v16 = vunpack.c.l.b16 %v2235_v1  ;;  %v7517_v51 = vadd.f32 %v2703_v45, %v2639_v2 }
 0x5e4   : > { %v7505_v41 = vadd.f32 %v2705_v32, %v2641_v0  ;;  %v2916_v32 = vunpack.c.l.b16 %v2836_v11  ;;  %v2665_v0 = vmul.f32 0.5, %v2434_v3  ;;  %v2731_v52 = vmul.f32 0.5, %v7148_v17 }
 0x5e5   : > { %2590 = vmatpush.bf16.msra.mxu3 %v2575_v4  ;;  %v2730_v4 = vmul.f32 0.5, %v7141_v38  ;;  %v2573_v38 = vpack.c.b16 %v2560_v13, %v2559_v48  ;;  %v2555_v3 = vunpack.c.l.b16 %v2232_v30  ;;  %v2556_v11 = vunpack.c.l.b16 %v2233_v57  ;;  %v6135_v13 = vld [vmem:[%s6510_s12 + $0xb8] sm:$0xff] }
 0x5e6   : > { %v2437_v19 = vpop.f32.mrf.mxu0  ;;  %v2833_v31 = vpack.c.bf16 %v7505_v41, %v7505_v41  ;;  %v2928_v1 = vpack.c.b16 %v2917_v27, %v2916_v32  ;;  %v2832_v48 = vpack.c.bf16 %v7351_v50, %v7351_v50  ;;  %v2663_v2 = vmul.f32 0.5, %v7415_v37 }
 0x5e7   : > { %2941 = vmatpush.bf16.msra.mxu0 %v2930_v14  ;;  %v2666_v18 = vmul.f32 0.5, %v2437_v19  ;;  %v2637_v14 = vmul.f32 0.5, %v7319_v28  ;;  %v2915_v19 = vunpack.c.l.b16 %v2835_v23  ;;  %v2914_v28 = vunpack.c.l.b16 %v2834_v21 }
 0x5e8   : > { %v7529_v23 = vadd.f32 %v2729_v56, %v2665_v0  ;;  %v2572_v12 = vpack.c.b16 %v2558_v16, %v2557_v43  ;;  %v2913_v27 = vunpack.c.l.b16 %v2833_v31  ;;  %v2662_v30 = vmul.f32 0.5, %v7411_v44 }
 0x5e9   : > { %2591 = vmatpush.bf16.msra.mxu3 %v2574_v46  ;;  %v7523_v46 = vadd.f32 %v2730_v4, %v2666_v18  ;;  %v7532_v4 = vadd.f32 %v7472_v60, %v2637_v14  ;;  %v2831_v18 = vpack.c.bf16 %v7517_v51, %v7517_v51  ;;  %v7537_v57 = vadd.f32 %v2728_v6, %v2664_v33 }
 0x5ea   : > { %10328 = vst [vmem:[#allocation17_spill] sm:$0xff] %v7529_v23  ;;  %v2726_v43 = vmul.f32 0.5, %v7114_v10  ;;  %v2830_v60 = vpack.c.bf16 %v7327_v39, %v7327_v39  ;;  %v2912_v21 = vunpack.c.l.b16 %v2832_v48  ;;  %v2571_v16 = vpack.c.b16 %v2556_v11, %v2555_v3 }
 0x5eb   : > { %2942 = vmatpush.bf16.msra.mxu0 %v2929_v34  ;;  %10327 = vst [vmem:[#allocation14_spill] sm:$0xff] %v7523_v46  ;;  %v2927_v34 = vpack.c.b16 %v2915_v19, %v2914_v28  ;;  %v2858_v37 = vpack.c.bf16 %v7523_v46, %v7523_v46  ;;  %v2661_v32 = vmul.f32 0.5, %v7406_v42  ;;  %v7548_v0 = vadd.f32 %v7492_v25, %v2663_v2 }
 0x5ec   : > { %10329 = vst [vmem:[#allocation13_spill] sm:$0xff] %v7537_v57  ;;  %v2857_v44 = vpack.c.bf16 %v7529_v23, %v7529_v23  ;;  %v2829_v10 = vpack.c.bf16 %v7532_v4, %v7532_v4  ;;  %v2926_v14 = vpack.c.b16 %v2913_v27, %v2912_v21  ;;  %v2911_v31 = vunpack.c.l.b16 %v2831_v18  ;;  %v10331_v18 = vld [vmem:[#allocation53_spill] sm:$0xff] }
 0x5ed   : > { %2592 = vmatpush.bf16.msra.mxu3 %v2573_v38  ;;  %v2725_v38 = vmul.f32 0.5, %v7112_v15  ;;  %v7557_v19 = vadd.f32 %v2726_v43, %v2662_v30  ;;  %v2856_v25 = vpack.c.bf16 %v7537_v57, %v7537_v57  ;;  %v3019_v42 = vunpack.c.l.b16 %v2858_v37  ;;  %v10384_v23 = vld [vmem:[#allocation45_spill] sm:$0xff] }
 0x5ee   : > { %v2439_v45 = vpop.f32.mrf.mxu0  ;;  %2533 = vmatmul.bf16.gmra.mxu1 %v6135_v13  ;;  %v2828_v33 = vpack.c.bf16 %v7317_v47, %v7317_v47  ;;  %v2659_v3 = vmul.f32 0.5, %v7393_v29  ;;  %v2855_v11 = vpack.c.bf16 %v7548_v0, %v7548_v0  ;;  %v3018_v28 = vunpack.c.l.b16 %v2857_v44  ;;  %v10334_v44 = vld [vmem:[#allocation59_spill] sm:$0xff] }
 0x5ef   : > { %v2667_v17 = vmul.f32 0.5, %v2439_v45  ;;  %2943 = vmatpush.bf16.msra.mxu0 %v2928_v1  ;;  %v2910_v1 = vunpack.c.l.b16 %v2830_v60  ;;  %v7564_v15 = vadd.f32 %v2725_v38, %v2661_v32  ;;  %v2723_v45 = vmul.f32 0.5, %v7107_v55 }
 0x5f0   : > { %v2854_v13 = vpack.c.bf16 %v7557_v19, %v7557_v19  ;;  %v3017_v2 = vunpack.c.l.b16 %v2856_v25  ;;  %v2908_v29 = vunpack.c.l.b16 %v2828_v33  ;;  %v3016_v43 = vunpack.c.l.b16 %v2855_v11 }
 0x5f1   : > { %v7541_v56 = vadd.f32 %v2731_v52, %v2667_v17  ;;  %2593 = vmatpush.bf16.msra.mxu3 %v2572_v12  ;;  %v2925_v17 = vpack.c.b16 %v2911_v31, %v2910_v1  ;;  %v2909_v12 = vunpack.c.l.b16 %v2829_v10  ;;  %v7573_v27 = vadd.f32 %v2723_v45, %v2659_v3  ;;  %v10337_v3 = vld [vmem:[#allocation20_spill] sm:$0xff] }
 0x5f2   : > { %v2853_v30 = vpack.c.bf16 %v7564_v15, %v7564_v15  ;;  %v3027_v55 = vpack.c.b16 %v3018_v28, %v3017_v2  ;;  %v3015_v38 = vunpack.c.l.b16 %v2854_v13  ;;  %v2719_v11 = vmul.f32 0.5, %v10337_v3  ;;  %v10339_v13 = vld [vmem:[#allocation49_spill] sm:$0xff]  ;;  %v10346_v3 = vld [vmem:[#allocation51_spill] sm:$0xff] }
 0x5f3   : > { %10330 = vst [vmem:[#allocation11_spill] sm:$0xff] %v7541_v56  ;;  %v2859_v6 = vpack.c.bf16 %v7541_v56, %v7541_v56  ;;  %2944 = vmatpush.bf16.msra.mxu0 %v2927_v34  ;;  %v2657_v34 = vmul.f32 0.5, %v10331_v18  ;;  %v2924_v10 = vpack.c.b16 %v2909_v12, %v2908_v29  ;;  %v2653_v2 = vmul.f32 0.5, %v10339_v13 }
 0x5f4   : > { %v3026_v33 = vpack.c.b16 %v3016_v43, %v3015_v38  ;;  %v3014_v1 = vunpack.c.l.b16 %v2853_v30 }
 0x5f5   : > { %v3020_v52 = vunpack.c.l.b16 %v2859_v6  ;;  %2594 = vmatpush.bf16.msra.mxu3 %v2571_v16  ;;  %v10333_v16 = vld [vmem:[#allocation21_spill] sm:$0xff]  ;;  %v2852_v6 = vpack.c.bf16 %v10334_v44, %v10334_v44 }
 0x5f6   : > { %v2721_v32 = vmul.f32 0.5, %v10333_v16 }
 0x5f7   : > { %2945 = vmatpush.bf16.msra.mxu0 %v2926_v14  ;;  %v3028_v48 = vpack.c.b16 %v3020_v52, %v3019_v42  ;;  %v10335_v14 = vld [vmem:[#allocation52_spill] sm:$0xff]  ;;  %v2851_v52 = vpack.c.bf16 %v7573_v27, %v7573_v27  ;;  %v3013_v45 = vunpack.c.l.b16 %v2852_v6 }
 0x5f8   : > { %2595 = vmatmul.bf16.vlgmr.msra.gmra.mxu3 %v7163_v26  ;;  %v10332_v26 = vld [vmem:[#allocation22_spill] sm:$0xff]  ;;  %v2655_v31 = vmul.f32 0.5, %v10335_v14  ;;  %v7584_v42 = vadd.f32 %v2721_v32, %v2657_v34 }
 0x5f9   : > { %3037 = vmatpush.bf16.msrb.mxu1 %v3028_v48  ;;  %v2732_v60 = vmul.f32 0.5, %v10332_v26  ;;  %v10338_v48 = vld [vmem:[#allocation55_spill] sm:$0xff]  ;;  %v3025_v34 = vpack.c.b16 %v3014_v1, %v3013_v45  ;;  %v3012_v30 = vunpack.c.l.b16 %v2851_v52  ;;  %v10342_v26 = vld [vmem:[#allocation18_spill] sm:$0xff]  ;;  %v10345_v1 = vld [vmem:[#allocation24_spill] sm:$0xff] }
 0x5fa   : > { %v2850_v28 = vpack.c.bf16 %v10338_v48, %v10338_v48  ;;  %v7596_v12 = vadd.f32 %v2719_v11, %v2655_v31  ;;  %v2849_v29 = vpack.c.bf16 %v7584_v42, %v7584_v42  ;;  %v2846_v11 = vpack.c.bf16 %v10346_v3, %v10346_v3 }
 0x5fb   : > { %v2499_v37 = vpop.f32.mrf.mxu1  ;;  %2946 = vmatpush.bf16.msra.mxu0 %v2925_v17  ;;  %v7593_v17 = vld [vmem:[%s6510_s12] sm:$0xff] }
 0x5fc   : > { %v2668_v21 = vmul.f32 0.5, %v2499_v37  ;;  %10340 = vst [vmem:[#allocation5_spill] sm:$0xff] %v7593_v17  ;;  %v10341_v37 = vld [vmem:[#allocation23_spill] sm:$0xff]  ;;  %v3011_v32 = vunpack.c.l.b16 %v2850_v28  ;;  %v2847_v14 = vpack.c.bf16 %v7596_v12, %v7596_v12  ;;  %v3010_v52 = vunpack.c.l.b16 %v2849_v29 }
 0x5fd   : > { %3038 = vmatpush.bf16.msrb.mxu1 %v3027_v55  ;;  %v2733_v55 = vmul.f32 0.5, %v10341_v37 }
 0x5fe   : > { %v7582_v25 = vadd.f32 %v2732_v60, %v2668_v21  ;;  %v2717_v60 = vmul.f32 0.5, %v10342_v26  ;;  %v10343_v21 = vld [vmem:[#allocation8_spill] sm:$0xff]  ;;  %v3024_v31 = vpack.c.b16 %v3012_v30, %v3011_v32  ;;  %v10347_v30 = vld [vmem:[#allocation25_spill] sm:$0xff] }
 0x5ff   : > { %2947 = vmatpush.bf16.msra.mxu0 %v2924_v10  ;;  %v2848_v16 = vpack.c.bf16 %v10343_v21, %v10343_v21  ;;  %v2734_v37 = vmul.f32 0.5, %v10347_v30  ;;  %v10348_v26 = vld [vmem:[#allocation48_spill] sm:$0xff] }
 0x600   : > { %10336 = vst [vmem:[#allocation12_spill] sm:$0xff] %v7582_v25  ;;  %v2860_v6 = vpack.c.bf16 %v7582_v25, %v7582_v25  ;;  %v7608_v10 = vadd.f32 %v2717_v60, %v2653_v2  ;;  %v2844_v60 = vpack.c.bf16 %v10348_v26, %v10348_v26 }
 0x601   : > { %3039 = vmatpush.bf16.msrb.mxu1 %v3026_v33  ;;  %v3009_v28 = vunpack.c.l.b16 %v2848_v16  ;;  %v3007_v16 = vunpack.c.l.b16 %v2846_v11 }
 0x602   : > { %2948 = vmatmul.bf16.vlgmr.msra.gmra.mxu0 %v7593_v17  ;;  %v7617_v45 = vunpack.c.l.b16 %v2860_v6  ;;  %v2845_v2 = vpack.c.bf16 %v7608_v10, %v7608_v10  ;;  %v10380_v17 = vld [vmem:[#allocation43_spill] sm:$0xff] }
 0x603   : > { %v2501_v18 = vpop.f32.mrf.mxu1  ;;  %v3023_v29 = vpack.c.b16 %v3010_v52, %v3009_v28  ;;  %v7631_v52 = vld [vmem:[%s6510_s12 + $0x8] sm:$0xff]  ;;  %v2745_v25 = vmul.f32 0.5, %v10380_v17 }
 0x604   : > { %v2669_v43 = vmul.f32 0.5, %v2501_v18  ;;  %10350 = vst [vmem:[#allocation7_spill] sm:$0xff] %v7631_v52  ;;  %v10351_v28 = vld [vmem:[#allocation26_spill] sm:$0xff] }
 0x605   : > { %3040 = vmatpush.bf16.msrb.mxu1 %v3025_v34  ;;  %v3008_v34 = vunpack.c.l.b16 %v2847_v14 }
 0x606   : > { %v7606_v38 = vadd.f32 %v2733_v55, %v2669_v43 }
 0x607   : > { %v3022_v6 = vpack.c.b16 %v3008_v34, %v3007_v16  ;;  %v7642_v34 = vld [vmem:[%s6510_s12 + $0x40] sm:$0xff] }
 0x608   : > { %10344 = vst [vmem:[#allocation9_spill] sm:$0xff] %v7606_v38  ;;  %v2861_v33 = vpack.c.bf16 %v7606_v38, %v7606_v38  ;;  %2600 = vmatmul.bf16.gmra.mxu3 %v10345_v1 }
 0x609   : > { %3041 = vmatpush.bf16.msrb.mxu1 %v3024_v31  ;;  %v3006_v31 = vunpack.c.l.b16 %v2845_v2  ;;  %10353 = vst [vmem:[#allocation22_spill] sm:$0xff] %v7642_v34 }
 0x60a   : > { %v7619_v13 = vunpack.c.l.b16 %v2861_v33  ;;  %v3005_v33 = vunpack.c.l.b16 %v2844_v60 }
 0x60b   : > { %v2504_v18 = vpop.f32.mrf.mxu1 }
 0x60c   : > { %v2670_v55 = vmul.f32 0.5, %v2504_v18  ;;  %v3021_v1 = vpack.c.b16 %v3006_v31, %v3005_v33  ;;  %v2735_v18 = vmul.f32 0.5, %v10351_v28  ;;  %v10357_v28 = vld [vmem:[#allocation28_spill] sm:$0xff] }
 0x60d   : > { %3042 = vmatpush.bf16.msrb.mxu1 %v3023_v29 }
 0x60e   : > { %v7628_v32 = vadd.f32 %v2734_v37, %v2670_v55  ;;  %v10354_v37 = vld [vmem:[#allocation27_spill] sm:$0xff] }
 0x610   : > { %10349 = vst [vmem:[#allocation6_spill] sm:$0xff] %v7628_v32  ;;  %v2862_v11 = vpack.c.bf16 %v7628_v32, %v7628_v32  ;;  %v10379_v32 = vld [vmem:[#allocation44_spill] sm:$0xff] }
 0x611   : > { %3043 = vmatpush.bf16.msrb.mxu1 %v3022_v6  ;;  %v10355_v6 = vld [vmem:[#allocation29_spill] sm:$0xff]  ;;  %v2746_v38 = vmul.f32 0.5, %v10379_v32 }
 0x612   : > { %2953 = vmatmul.bf16.gmra.mxu0 %v7631_v52  ;;  %v7646_v55 = vunpack.c.l.b16 %v2862_v11  ;;  %v2736_v31 = vmul.f32 0.5, %v10355_v6  ;;  %v10361_v6 = vld [vmem:[#allocation31_spill] sm:$0xff] }
 0x613   : > { %v2506_v14 = vpop.f32.mrf.mxu1 }
 0x614   : > { %v2671_v30 = vmul.f32 0.5, %v2506_v14 }
 0x615   : > { %3044 = vmatpush.bf16.msrb.mxu1 %v3021_v1 }
 0x616   : > { %v7637_v29 = vadd.f32 %v2735_v18, %v2671_v30  ;;  %v10358_v30 = vld [vmem:[#allocation30_spill] sm:$0xff] }
 0x617   : > { %v2737_v43 = vmul.f32 0.5, %v10358_v30 }
 0x618   : > { %10352 = vst [vmem:[#allocation53_spill] sm:$0xff] %v7637_v29  ;;  %v2863_v2 = vpack.c.bf16 %v7637_v29, %v7637_v29  ;;  %3045 = vmatmul.bf16.vlgmr.msrb.gmra.mxu1 %v7642_v34  ;;  %2605 = vmatmul.bf16.gmra.mxu3 %v10354_v37 }
 0x61a   : > { %v7648_v60 = vunpack.c.l.b16 %v2863_v2 }
 0x61b   : > { %v2509_v16 = vpop.f32.mrf.mxu1 }
 0x61c   : > { %v2672_v33 = vmul.f32 0.5, %v2509_v16  ;;  %v7664_v16 = vld [vmem:[%s6510_s12 + $0x48] sm:$0xff] }
 0x61d   : > { %10360 = vst [vmem:[#allocation52_spill] sm:$0xff] %v7664_v16 }
 0x61e   : > { %v7653_v1 = vadd.f32 %v2736_v31, %v2672_v33 }
 0x620   : > { %10356 = vst [vmem:[#allocation21_spill] sm:$0xff] %v7653_v1  ;;  %v2864_v11 = vpack.c.bf16 %v7653_v1, %v7653_v1 }
 0x622   : > { %2958 = vmatmul.bf16.gmra.mxu0 %v10357_v28  ;;  %v7668_v31 = vunpack.c.l.b16 %v2864_v11 }
 0x623   : > { %v2511_v18 = vpop.f32.mrf.mxu1 }
 0x624   : > { %v2673_v29 = vmul.f32 0.5, %v2511_v18  ;;  %v10362_v18 = vld [vmem:[#allocation33_spill] sm:$0xff] }
 0x625   : > { %v2738_v30 = vmul.f32 0.5, %v10362_v18  ;;  %v10369_v18 = vld [vmem:[#allocation37_spill] sm:$0xff] }
 0x626   : > { %v7659_v2 = vadd.f32 %v2737_v43, %v2673_v29 }
 0x628   : > { %10359 = vst [vmem:[#allocation59_spill] sm:$0xff] %v7659_v2  ;;  %v2865_v37 = vpack.c.bf16 %v7659_v2, %v7659_v2  ;;  %3050 = vmatmul.bf16.gmra.mxu1 %v7664_v16  ;;  %2610 = vmatmul.bf16.gmra.mxu3 %v10361_v6  ;;  %v10364_v2 = vld [vmem:[#allocation32_spill] sm:$0xff]  ;;  %v10365_v16 = vld [vmem:[#allocation34_spill] sm:$0xff] }
 0x629   : > { %v2739_v34 = vmul.f32 0.5, %v10365_v16 }
 0x62a   : > { %v7670_v33 = vunpack.c.l.b16 %v2865_v37 }
 0x62b   : > { %v2514_v28 = vpop.f32.mrf.mxu1 }
 0x62c   : > { %v2674_v14 = vmul.f32 0.5, %v2514_v28  ;;  %v7686_v28 = vld [vmem:[%s6510_s12 + $0x50] sm:$0xff] }
 0x62d   : > { %10367 = vst [vmem:[#allocation49_spill] sm:$0xff] %v7686_v28 }
 0x62e   : > { %v7675_v29 = vadd.f32 %v2738_v30, %v2674_v14  ;;  %v10368_v14 = vld [vmem:[#allocation35_spill] sm:$0xff]  ;;  %v7710_v30 = vld [vmem:[%s6510_s12 + $0x60] sm:$0xff] }
 0x62f   : > { %10374 = vst [vmem:[#allocation8_spill] sm:$0xff] %v7710_v30 }
 0x630   : > { %10363 = vst [vmem:[#allocation20_spill] sm:$0xff] %v7675_v29  ;;  %v2866_v11 = vpack.c.bf16 %v7675_v29, %v7675_v29 }
 0x632   : > { %2963 = vmatmul.bf16.gmra.mxu0 %v10364_v2  ;;  %v7690_v2 = vunpack.c.l.b16 %v2866_v11  ;;  %v7701_v11 = vld [vmem:[%s6510_s12 + $0x58] sm:$0xff] }
 0x633   : > { %v2516_v1 = vpop.f32.mrf.mxu1  ;;  %10371 = vst [vmem:[#allocation23_spill] sm:$0xff] %v7701_v11 }
 0x634   : > { %v2675_v52 = vmul.f32 0.5, %v2516_v1 }
 0x636   : > { %v7681_v37 = vadd.f32 %v2739_v34, %v2675_v52  ;;  %v2740_v52 = vmul.f32 0.5, %v10369_v18 }
 0x638   : > { %10366 = vst [vmem:[#allocation55_spill] sm:$0xff] %v7681_v37  ;;  %v2867_v6 = vpack.c.bf16 %v7681_v37, %v7681_v37  ;;  %3055 = vmatmul.bf16.gmra.mxu1 %v7686_v28  ;;  %2615 = vmatmul.bf16.gmra.mxu3 %v10368_v14  ;;  %v10370_v37 = vld [vmem:[#allocation36_spill] sm:$0xff] }
 0x63a   : > { %v7692_v1 = vunpack.c.l.b16 %v2867_v6  ;;  %v7705_v6 = vld [vmem:[%s6510_s12 + $0xe8] sm:$0xff] }
 0x63b   : > { %v2519_v16 = vpop.f32.mrf.mxu1  ;;  %10372 = vst [vmem:[#allocation18_spill] sm:$0xff] %v7705_v6 }
 0x63c   : > { %v2676_v34 = vmul.f32 0.5, %v2519_v16  ;;  %v10373_v16 = vld [vmem:[#allocation39_spill] sm:$0xff] }
 0x63e   : > { %v7697_v43 = vadd.f32 %v2740_v52, %v2676_v34  ;;  %v7718_v34 = vld [vmem:[%s6510_s12 + $0x30] sm:$0xff] }
 0x63f   : > { %10376 = vst [vmem:[#allocation51_spill] sm:$0xff] %v7718_v34 }
 0x642   : > { %2968 = vmatmul.bf16.gmra.mxu0 %v10370_v37  ;;  %v7714_v37 = vld [vmem:[%s6510_s12 + $0xf0] sm:$0xff] }
 0x643   : > { %v2521_v28 = vpop.f32.mrf.mxu1  ;;  %10375 = vst [vmem:[#allocation24_spill] sm:$0xff] %v7714_v37 }
 0x648   : > { %3060 = vmatmul.bf16.gmra.mxu1 %v7701_v11  ;;  %2620 = vmatmul.bf16.gmra.mxu3 %v7705_v6  ;;  %v7722_v6 = vld [vmem:[%s6510_s12 + $0x68] sm:$0xff] }
 0x649   : > { %10377 = vst [vmem:[#allocation25_spill] sm:$0xff] %v7722_v6 }
 0x64b   : > { %v2524_v14 = vpop.f32.mrf.mxu1 }
 0x64c   : > { %v2678_v17 = vmul.f32 0.5, %v2524_v14 }
 0x652   : > { %2973 = vmatmul.bf16.gmra.mxu0 %v10373_v16  ;;  %v7726_v16 = vld [vmem:[%s6510_s12 + $0xf8] sm:$0xff] }
 0x653   : > { %v2526_v18 = vpop.f32.mrf.mxu1  ;;  %10378 = vst [vmem:[#allocation48_spill] sm:$0xff] %v7726_v16 }
 0x654   : > { %v2679_v57 = vmul.f32 0.5, %v2526_v18 }
 0x658   : > { %3065 = vmatmul.bf16.gmra.mxu1 %v7710_v30  ;;  %2625 = vmatmul.bf16.gmra.mxu3 %v7714_v37 }
 0x65b   : > { %v2529_v52 = vpop.f32.mrf.mxu1 }
 0x65c   : > { %v2680_v56 = vmul.f32 0.5, %v2529_v52 }
 0x662   : > { %2978 = vmatmul.bf16.gmra.mxu0 %v7718_v34  ;;  %v7734_v34 = vld [vmem:[%s6510_s12 + $0x38] sm:$0xff] }
 0x663   : > { %v2531_v11 = vpop.f32.mrf.mxu1  ;;  %10382 = vst [vmem:[#allocation27_spill] sm:$0xff] %v7734_v34 }
 0x664   : > { %v2681_v37 = vmul.f32 0.5, %v2531_v11  ;;  %v10386_v11 = vld [vmem:[#allocation41_spill] sm:$0xff] }
 0x665   : > { %v2743_v63 = vmul.f32 0.5, %v10386_v11 }
 0x667   : > { %v7749_v8 = vadd.f32 %v2743_v63, %v2679_v57  ;;  %v2748_v57 = vmul.f32 0.5, %v7302_v7 }
 0x668   : > { %3070 = vmatmul.bf16.gmra.mxu1 %v7722_v6  ;;  %2630 = vmatmul.bf16.gmra.mxu3 %v7726_v16  ;;  %v2744_v6 = vmul.f32 0.5, %v10383_v58  ;;  %v2747_v16 = vmul.f32 0.5, %v10384_v23  ;;  %v10389_v58 = vld [vmem:[#allocation40_spill] sm:$0xff] }
 0x669   : > { %v2742_v24 = vmul.f32 0.5, %v10389_v58 }
 0x66a   : > { %v7742_v52 = vadd.f32 %v2744_v6, %v2680_v56  ;;  %v10391_v56 = vld [vmem:[#allocation38_spill] sm:$0xff] }
 0x66b   : > { %v2534_v30 = vpop.f32.mrf.mxu1  ;;  %v2741_v6 = vmul.f32 0.5, %v10391_v56  ;;  %v7760_v14 = vadd.f32 %v2742_v24, %v2678_v17 }
 0x66c   : > { %v2682_v29 = vmul.f32 0.5, %v2534_v30  ;;  %v7739_v30 = vadd.f32 %v2745_v25, %v2681_v37  ;;  %10387 = vst [vmem:[#allocation28_spill] sm:$0xff] %v7742_v52  ;;  %v7756_v25 = vld [vmem:[%s6510_s12 + $0x70] sm:$0xff] }
 0x66d   : > { %10390 = vst [vmem:[#allocation31_spill] sm:$0xff] %v7756_v25  ;;  %v2870_v24 = vpack.c.bf16 %v7760_v14, %v7760_v14 }
 0x66e   : > { %v7731_v46 = vadd.f32 %v2746_v38, %v2682_v29  ;;  %10385 = vst [vmem:[#allocation29_spill] sm:$0xff] %v7739_v30  ;;  %v2873_v23 = vpack.c.bf16 %v7739_v30, %v7739_v30 }
 0x670   : > { %10381 = vst [vmem:[#allocation26_spill] sm:$0xff] %v7731_v46  ;;  %v2874_v38 = vpack.c.bf16 %v7731_v46, %v7731_v46  ;;  %v3345_v46 = vmul.f32 0.5, %v7532_v4 }
 0x672   : > { %2983 = vmatmul.bf16.gmra.mxu0 %v7734_v34  ;;  %v2677_v34 = vmul.f32 0.5, %v2521_v28  ;;  %v2872_v28 = vpack.c.bf16 %v7742_v52, %v7742_v52  ;;  %v3116_v18 = vunpack.c.l.b16 %v2874_v38 }
 0x673   : > { %v2536_v5 = vpop.f32.mrf.mxu1 }
 0x674   : > { %v2683_v32 = vmul.f32 0.5, %v2536_v5  ;;  %v7765_v37 = vadd.f32 %v2741_v6, %v2677_v34  ;;  %v3114_v17 = vunpack.c.l.b16 %v2872_v28 }
 0x676   : > { %v7746_v29 = vadd.f32 %v2747_v16, %v2683_v32  ;;  %v2871_v32 = vpack.c.bf16 %v7749_v8, %v7749_v8  ;;  %v2869_v7 = vpack.c.bf16 %v7765_v37, %v7765_v37 }
 0x678   : > { %10388 = vst [vmem:[#allocation30_spill] sm:$0xff] %v7746_v29  ;;  %v2875_v5 = vpack.c.bf16 %v7746_v29, %v7746_v29  ;;  %3075 = vmatmul.bf16.gmra.mxu1 %v7756_v25  ;;  %v3115_v29 = vunpack.c.l.b16 %v2873_v23  ;;  %v3113_v25 = vunpack.c.l.b16 %v2871_v32  ;;  %v2868_v23 = vpack.c.bf16 %v7697_v43, %v7697_v43 }
 0x67a   : > { %v3117_v63 = vunpack.c.l.b16 %v2875_v5  ;;  %v3344_v5 = vmul.f32 0.5, %v7317_v47  ;;  %v3124_v6 = vpack.c.b16 %v3115_v29, %v3114_v17 }
 0x67b   : > { %v2596_v16 = vpop.f32.mrf.mxu3 }
 0x67c   : > { %v2684_v11 = vmul.f32 0.5, %v2596_v16  ;;  %v3125_v58 = vpack.c.b16 %v3117_v63, %v3116_v18  ;;  %v3112_v18 = vunpack.c.l.b16 %v2870_v24  ;;  %v3111_v16 = vunpack.c.l.b16 %v2869_v7 }
 0x67e   : > { %v7771_v56 = vadd.f32 %v2748_v57, %v2684_v11  ;;  %3134 = vmatpush.bf16.msra.mxu2 %v3125_v58  ;;  %v3123_v57 = vpack.c.b16 %v3113_v25, %v3112_v18  ;;  %v3110_v11 = vunpack.c.l.b16 %v2868_v23  ;;  %v2750_v25 = vmul.f32 0.5, %v7322_v20 }
 0x67f   : > { %v2949_v38 = vpop.f32.mrf.mxu0 }
 0x680   : > { %v3280_v34 = vmul.f32 0.5, %v2949_v38  ;;  %v7784_v38 = vld [vmem:[%s6510_s12 + $0x78] sm:$0xff]  ;;  %v3122_v29 = vpack.c.b16 %v3111_v16, %v3110_v11  ;;  %v10397_v11 = vpack.c.b16 %v7670_v33, %v7668_v31 }
 0x681   : > { %10393 = vst [vmem:[#allocation32_spill] sm:$0xff] %v7784_v38 }
 0x682   : > { %v7778_v63 = vadd.f32 %v3344_v5, %v3280_v34  ;;  %3135 = vmatpush.bf16.msra.mxu2 %v3124_v6  ;;  %v10395_v6 = vpack.c.b16 %v7692_v1, %v7690_v2  ;;  %v3360_v1 = vmul.f32 0.5, %v10348_v26 }
 0x683   : > { %v7780_v28 = vpop.f32.mrf.mxu3 }
 0x684   : > { %10392 = vst [vmem:[#allocation33_spill] sm:$0xff] %v7778_v63  ;;  %v3472_v32 = vpack.c.bf16 %v7778_v63, %v7778_v63 }
 0x686   : > { %3136 = vmatpush.bf16.msra.mxu2 %v3123_v57  ;;  %v7794_v34 = vunpack.c.l.b16 %v3472_v32  ;;  %v3346_v57 = vmul.f32 0.5, %v7327_v39 }
 0x687   : > { %v2951_v47 = vpop.f32.mrf.mxu0 }
 0x688   : > { %v3281_v58 = vmul.f32 0.5, %v2951_v47  ;;  %3080 = vmatmul.bf16.gmra.mxu1 %v7784_v38 }
 0x68a   : > { %v7789_v24 = vadd.f32 %v3345_v46, %v3281_v58  ;;  %3137 = vmatpush.bf16.msra.mxu2 %v3122_v29  ;;  %v10398_v29 = vpack.c.b16 %v7648_v60, %v7646_v55 }
 0x68b   : > { %v2601_v17 = vpop.f32.mrf.mxu3 }
 0x68c   : > { %10394 = vst [vmem:[#allocation34_spill] sm:$0xff] %v7789_v24  ;;  %v3473_v5 = vpack.c.bf16 %v7789_v24, %v7789_v24  ;;  %v2686_v7 = vmul.f32 0.5, %v2601_v17 }
 0x68e   : > { %v7796_v4 = vadd.f32 %v2750_v25, %v2686_v7  ;;  %3138 = vmatpush.bf16.msra.mxu2 %v10395_v6  ;;  %v7801_v23 = vunpack.c.l.b16 %v3473_v5  ;;  %v3347_v25 = vmul.f32 0.5, %v7517_v51  ;;  %v10401_v5 = vpack.c.b16 %v7619_v13, %v7617_v45  ;;  %v7832_v51 = vld [vmem:[%s6510_s12 + $0x80] sm:$0xff] }
 0x68f   : > { %v2954_v46 = vpop.f32.mrf.mxu0  ;;  %v2752_v7 = vmul.f32 0.5, %v7340_v49  ;;  %10402 = vst [vmem:[#allocation39_spill] sm:$0xff] %v7832_v51  ;;  %v3348_v49 = vmul.f32 0.5, %v7351_v50 }
 0x690   : > { %v3282_v18 = vmul.f32 0.5, %v2954_v46  ;;  %v3361_v46 = vmul.f32 0.5, %v7608_v10 }
 0x692   : > { %v7806_v16 = vadd.f32 %v3346_v57, %v3282_v18  ;;  %3139 = vmatpush.bf16.msra.mxu2 %v10397_v11 }
 0x693   : > { %v7811_v47 = vpop.f32.mrf.mxu3 }
 0x694   : > { %10396 = vst [vmem:[#allocation35_spill] sm:$0xff] %v7806_v16  ;;  %v3474_v31 = vpack.c.bf16 %v7806_v16, %v7806_v16 }
 0x695   : > { %v3046_v58 = vpop.f32.mrf.mxu1 }
 0x696   : > { %v3296_v2 = vmul.f32 0.5, %v3046_v58  ;;  %3140 = vmatpush.bf16.msra.mxu2 %v10398_v29  ;;  %v7835_v18 = vunpack.c.l.b16 %v3474_v31 }
 0x697   : > { %v2956_v39 = vpop.f32.mrf.mxu0 }
 0x698   : > { %v7817_v32 = vadd.f32 %v3360_v1, %v3296_v2  ;;  %v3283_v17 = vmul.f32 0.5, %v2956_v39 }
 0x69a   : > { %10399 = vst [vmem:[#allocation37_spill] sm:$0xff] %v7817_v32  ;;  %v7822_v33 = vadd.f32 %v3347_v25, %v3283_v17  ;;  %3141 = vmatpush.bf16.msra.mxu2 %v10401_v5  ;;  %v3488_v58 = vpack.c.bf16 %v7817_v32, %v7817_v32 }
 0x69b   : > { %v2606_v26 = vpop.f32.mrf.mxu3 }
 0x69c   : > { %10400 = vst [vmem:[#allocation36_spill] sm:$0xff] %v7822_v33  ;;  %v3475_v55 = vpack.c.bf16 %v7822_v33, %v7822_v33  ;;  %v2688_v60 = vmul.f32 0.5, %v2606_v26  ;;  %v7854_v25 = vunpack.c.l.b16 %v3488_v58  ;;  %v3362_v26 = vmul.f32 0.5, %v10346_v3 }
 0x69d   : > { %v3048_v6 = vpop.f32.mrf.mxu1  ;;  %3142 = vmatmul.bf16.vlgmr.msra.gmra.mxu2 %v7832_v51  ;;  %v2754_v58 = vmul.f32 0.5, %v7358_v40  ;;  %v3350_v40 = vmul.f32 0.5, %v7366_v61 }
 0x69e   : > { %v7837_v57 = vadd.f32 %v2752_v7, %v2688_v60  ;;  %v3297_v45 = vmul.f32 0.5, %v3048_v6  ;;  %v7839_v13 = vunpack.c.l.b16 %v3475_v55 }
 0x69f   : > { %v2959_v11 = vpop.f32.mrf.mxu0 }
 0x6a0   : > { %v7844_v2 = vadd.f32 %v3361_v46, %v3297_v45  ;;  %v3284_v10 = vmul.f32 0.5, %v2959_v11  ;;  %v3349_v46 = vmul.f32 0.5, %v7505_v41 }
 0x6a2   : > { %10403 = vst [vmem:[#allocation44_spill] sm:$0xff] %v7844_v2  ;;  %v3489_v29 = vpack.c.bf16 %v7844_v2, %v7844_v2  ;;  %v7850_v39 = vadd.f32 %v3348_v49, %v3284_v10 }
 0x6a3   : > { %v7852_v17 = vpop.f32.mrf.mxu3 }
 0x6a4   : > { %10404 = vst [vmem:[#allocation43_spill] sm:$0xff] %v7850_v39  ;;  %v7856_v31 = vunpack.c.l.b16 %v3489_v29  ;;  %v3476_v45 = vpack.c.bf16 %v7850_v39, %v7850_v39 }
 0x6a5   : > { %v3051_v50 = vpop.f32.mrf.mxu1 }
 0x6a6   : > { %v3298_v5 = vmul.f32 0.5, %v3051_v50  ;;  %v3363_v50 = vmul.f32 0.5, %v7596_v12  ;;  %v7876_v41 = vunpack.c.l.b16 %v3476_v45 }
 0x6a7   : > { %v2961_v55 = vpop.f32.mrf.mxu0 }
 0x6a8   : > { %v7861_v60 = vadd.f32 %v3362_v26, %v3298_v5  ;;  %v3285_v6 = vmul.f32 0.5, %v2961_v55  ;;  %v7873_v5 = vld [vmem:[%s6510_s12 + $0x88] sm:$0xff] }
 0x6a9   : > { %10407 = vst [vmem:[#allocation41_spill] sm:$0xff] %v7873_v5 }
 0x6aa   : > { %10405 = vst [vmem:[#allocation42_spill] sm:$0xff] %v7861_v60  ;;  %v7866_v11 = vadd.f32 %v3349_v46, %v3285_v6 }
 0x6ab   : > { %v2611_v49 = vpop.f32.mrf.mxu3 }
 0x6ac   : > { %10406 = vst [vmem:[#allocation45_spill] sm:$0xff] %v7866_v11  ;;  %v3477_v3 = vpack.c.bf16 %v7866_v11, %v7866_v11  ;;  %v2690_v10 = vmul.f32 0.5, %v2611_v49  ;;  %v3490_v49 = vpack.c.bf16 %v7861_v60, %v7861_v60 }
 0x6ad   : > { %v3053_v29 = vpop.f32.mrf.mxu1  ;;  %3147 = vmatmul.bf16.gmra.mxu2 %v7873_v5 }
 0x6ae   : > { %v7878_v26 = vadd.f32 %v2754_v58, %v2690_v10  ;;  %v3299_v55 = vmul.f32 0.5, %v3053_v29  ;;  %v7880_v6 = vunpack.c.l.b16 %v3477_v3  ;;  %v7895_v3 = vunpack.c.l.b16 %v3490_v49 }
 0x6af   : > { %v2964_v46 = vpop.f32.mrf.mxu0 }
 0x6b0   : > { %v7885_v7 = vadd.f32 %v3363_v50, %v3299_v55  ;;  %v3286_v12 = vmul.f32 0.5, %v2964_v46  ;;  %v3364_v50 = vmul.f32 0.5, %v10343_v21  ;;  %v3365_v55 = vmul.f32 0.5, %v7584_v42 }
 0x6b2   : > { %10408 = vst [vmem:[#allocation40_spill] sm:$0xff] %v7885_v7  ;;  %v3491_v45 = vpack.c.bf16 %v7885_v7, %v7885_v7  ;;  %v7891_v58 = vadd.f32 %v3350_v40, %v3286_v12  ;;  %v3351_v40 = vmul.f32 0.5, %v7489_v22  ;;  %v2756_v7 = vmul.f32 0.5, %v7373_v59 }
 0x6b3   : > { %v7893_v10 = vpop.f32.mrf.mxu3 }
 0x6b4   : > { %10409 = vst [vmem:[#allocation38_spill] sm:$0xff] %v7891_v58  ;;  %v7897_v29 = vunpack.c.l.b16 %v3491_v45  ;;  %v3478_v12 = vpack.c.bf16 %v7891_v58, %v7891_v58 }
 0x6b5   : > { %v3056_v61 = vpop.f32.mrf.mxu1 }
 0x6b6   : > { %v3300_v1 = vmul.f32 0.5, %v3056_v61 }
 0x6b7   : > { %v2966_v46 = vpop.f32.mrf.mxu0 }
 0x6b8   : > { %v7902_v20 = vadd.f32 %v3364_v50, %v3300_v1  ;;  %v3287_v11 = vmul.f32 0.5, %v2966_v46  ;;  %v10412_v1 = vld [vmem:[#allocation54_spill] sm:$0xff]  ;;  %v7914_v50 = vunpack.c.l.b16 %v3478_v12 }
 0x6ba   : > { %10410 = vst [vmem:[#allocation64_spill] sm:$0xff] %v7902_v20  ;;  %v7907_v49 = vadd.f32 %v3351_v40, %v3287_v11  ;;  %v3352_v40 = vmul.f32 0.5, %v7384_v62  ;;  %v3492_v59 = vpack.c.bf16 %v7902_v20, %v7902_v20 }
 0x6bb   : > { %v2616_v45 = vpop.f32.mrf.mxu3 }
 0x6bc   : > { %10411 = vst [vmem:[#allocation65_spill] sm:$0xff] %v7907_v49  ;;  %v3479_v21 = vpack.c.bf16 %v7907_v49, %v7907_v49  ;;  %v2692_v61 = vmul.f32 0.5, %v2616_v45 }
 0x6bd   : > { %v3058_v60 = vpop.f32.mrf.mxu1  ;;  %3152 = vmatmul.bf16.gmra.mxu2 %v10412_v1 }
 0x6be   : > { %v7916_v22 = vadd.f32 %v2756_v7, %v2692_v61  ;;  %v3301_v46 = vmul.f32 0.5, %v3058_v60  ;;  %v7918_v58 = vunpack.c.l.b16 %v3479_v21  ;;  %v7933_v21 = vunpack.c.l.b16 %v3492_v59 }
 0x6bf   : > { %v2969_v11 = vpop.f32.mrf.mxu0 }
 0x6c0   : > { %v7923_v49 = vadd.f32 %v3365_v55, %v3301_v46  ;;  %v3288_v45 = vmul.f32 0.5, %v2969_v11  ;;  %v3366_v55 = vmul.f32 0.5, %v10338_v48 }
 0x6c2   : > { %10413 = vst [vmem:[#allocation54_spill] sm:$0xff] %v7923_v49  ;;  %v3493_v12 = vpack.c.bf16 %v7923_v49, %v7923_v49  ;;  %v7929_v7 = vadd.f32 %v3352_v40, %v3288_v45  ;;  %v3353_v40 = vmul.f32 0.5, %v7475_v9  ;;  %v10417_v49 = vld [vmem:[#allocation57_spill] sm:$0xff]  ;;  %v3367_v9 = vmul.f32 0.5, %v7573_v27 }
 0x6c3   : > { %v7931_v60 = vpop.f32.mrf.mxu3 }
 0x6c4   : > { %10414 = vst [vmem:[#allocation66_spill] sm:$0xff] %v7929_v7  ;;  %v7935_v61 = vunpack.c.l.b16 %v3493_v12  ;;  %v3480_v45 = vpack.c.bf16 %v7929_v7, %v7929_v7 }
 0x6c5   : > { %v3061_v62 = vpop.f32.mrf.mxu1 }
 0x6c6   : > { %v3302_v1 = vmul.f32 0.5, %v3061_v62  ;;  %v7952_v46 = vunpack.c.l.b16 %v3480_v45 }
 0x6c7   : > { %v2971_v11 = vpop.f32.mrf.mxu0 }
 0x6c8   : > { %v7940_v42 = vadd.f32 %v3366_v55, %v3302_v1  ;;  %v3289_v20 = vmul.f32 0.5, %v2971_v11 }
 0x6ca   : > { %10415 = vst [vmem:[#allocation67_spill] sm:$0xff] %v7940_v42  ;;  %v7945_v59 = vadd.f32 %v3353_v40, %v3289_v20  ;;  %v3494_v20 = vpack.c.bf16 %v7940_v42, %v7940_v42 }
 0x6cb   : > { %v7947_v12 = vpop.f32.mrf.mxu3 }
 0x6cc   : > { %10416 = vst [vmem:[#allocation68_spill] sm:$0xff] %v7945_v59  ;;  %v3481_v62 = vpack.c.bf16 %v7945_v59, %v7945_v59 }
 0x6cd   : > { %v3063_v48 = vpop.f32.mrf.mxu1  ;;  %3157 = vmatmul.bf16.gmra.mxu2 %v10417_v49 }
 0x6ce   : > { %v7954_v1 = vunpack.c.l.b16 %v3481_v62  ;;  %v3303_v55 = vmul.f32 0.5, %v3063_v48  ;;  %v7967_v62 = vunpack.c.l.b16 %v3494_v20  ;;  %v3354_v48 = vmul.f32 0.5, %v7467_v36 }
 0x6cf   : > { %v2974_v11 = vpop.f32.mrf.mxu0  ;;  %v3355_v20 = vmul.f32 0.5, %v7456_v53  ;;  %v3369_v53 = vmul.f32 0.5, %v7564_v15  ;;  %v3356_v15 = vmul.f32 0.5, %v7447_v54 }
 0x6d0   : > { %v7959_v40 = vadd.f32 %v3367_v9, %v3303_v55  ;;  %v3290_v49 = vmul.f32 0.5, %v2974_v11  ;;  %v3368_v9 = vmul.f32 0.5, %v10334_v44  ;;  %v7987_v44 = vld [vmem:[%s6510_s12 + $0xa0] sm:$0xff] }
 0x6d1   : > { %10422 = vst [vmem:[#allocation72_spill] sm:$0xff] %v7987_v44 }
 0x6d2   : > { %10418 = vst [vmem:[#allocation57_spill] sm:$0xff] %v7959_v40  ;;  %v3495_v59 = vpack.c.bf16 %v7959_v40, %v7959_v40  ;;  %v7972_v42 = vadd.f32 %v3354_v48, %v3290_v49 }
 0x6d3   : > { %v7965_v45 = vpop.f32.mrf.mxu3 }
 0x6d4   : > { %v7970_v27 = vunpack.c.l.b16 %v3495_v59  ;;  %10419 = vst [vmem:[#allocation69_spill] sm:$0xff] %v7972_v42  ;;  %v3482_v36 = vpack.c.bf16 %v7972_v42, %v7972_v42 }
 0x6d5   : > { %v3066_v39 = vpop.f32.mrf.mxu1 }
 0x6d6   : > { %v3304_v55 = vmul.f32 0.5, %v3066_v39  ;;  %v7990_v48 = vunpack.c.l.b16 %v3482_v36 }
 0x6d7   : > { %v2976_v40 = vpop.f32.mrf.mxu0 }
 0x6d8   : > { %v7977_v11 = vadd.f32 %v3368_v9, %v3304_v55  ;;  %v3291_v2 = vmul.f32 0.5, %v2976_v40 }
 0x6da   : > { %10420 = vst [vmem:[#allocation70_spill] sm:$0xff] %v7977_v11  ;;  %v7982_v59 = vadd.f32 %v3355_v20, %v3291_v2  ;;  %v3496_v2 = vpack.c.bf16 %v7977_v11, %v7977_v11 }
 0x6db   : > { %v2626_v5 = vpop.f32.mrf.mxu3 }
 0x6dc   : > { %10421 = vst [vmem:[#allocation71_spill] sm:$0xff] %v7982_v59  ;;  %v3483_v39 = vpack.c.bf16 %v7982_v59, %v7982_v59  ;;  %v8003_v59 = vunpack.c.l.b16 %v3496_v2  ;;  %v2696_v24 = vmul.f32 0.5, %v2626_v5 }
 0x6dd   : > { %v3068_v49 = vpop.f32.mrf.mxu1  ;;  %3162 = vmatmul.bf16.gmra.mxu2 %v7987_v44 }
 0x6de   : > { %v7992_v55 = vunpack.c.l.b16 %v3483_v39  ;;  %v3305_v40 = vmul.f32 0.5, %v3068_v49 }
 0x6df   : > { %v2979_v9 = vpop.f32.mrf.mxu0 }
 0x6e0   : > { %v7997_v20 = vadd.f32 %v3369_v53, %v3305_v40  ;;  %v3292_v44 = vmul.f32 0.5, %v2979_v9  ;;  %v3371_v40 = vmul.f32 0.5, %v7548_v0 }
 0x6e2   : > { %10423 = vst [vmem:[#allocation73_spill] sm:$0xff] %v7997_v20  ;;  %v3497_v42 = vpack.c.bf16 %v7997_v20, %v7997_v20  ;;  %v8008_v51 = vadd.f32 %v3356_v15, %v3292_v44  ;;  %v3357_v20 = vmul.f32 0.5, %v7440_v35 }
 0x6e3   : > { %v2628_v36 = vpop.f32.mrf.mxu3 }
 0x6e4   : > { %v8005_v39 = vunpack.c.l.b16 %v3497_v42  ;;  %10424 = vst [vmem:[#allocation74_spill] sm:$0xff] %v8008_v51  ;;  %v3484_v9 = vpack.c.bf16 %v8008_v51, %v8008_v51  ;;  %v3370_v42 = vmul.f32 0.5, %v7557_v19 }
 0x6e5   : > { %v3071_v49 = vpop.f32.mrf.mxu1 }
 0x6e6   : > { %v3306_v7 = vmul.f32 0.5, %v3071_v49  ;;  %v8024_v49 = vld [vmem:[%s6510_s12 + $0xa8] sm:$0xff]  ;;  %v8027_v35 = vunpack.c.l.b16 %v3484_v9 }
 0x6e7   : > { %v2981_v53 = vpop.f32.mrf.mxu0  ;;  %10427 = vst [vmem:[#allocation77_spill] sm:$0xff] %v8024_v49 }
 0x6e8   : > { %v3293_v11 = vmul.f32 0.5, %v2981_v53  ;;  %v8018_v33 = vadd.f32 %v3370_v42, %v3306_v7  ;;  %v2697_v42 = vmul.f32 0.5, %v2628_v36  ;;  %v10433_v36 = vld [vmem:[#allocation63_spill] sm:$0xff] }
 0x6e9   : > { %v2763_v38 = vmul.f32 0.5, %v10433_v36 }
 0x6ea   : > { %v8016_v2 = vadd.f32 %v3357_v20, %v3293_v11  ;;  %10426 = vst [vmem:[#allocation76_spill] sm:$0xff] %v8018_v33  ;;  %v10428_v20 = vld [vmem:[#allocation62_spill] sm:$0xff] }
 0x6eb   : > { %v2631_v54 = vpop.f32.mrf.mxu3  ;;  %v2762_v51 = vmul.f32 0.5, %v10428_v20 }
 0x6ec   : > { %10425 = vst [vmem:[#allocation75_spill] sm:$0xff] %v8016_v2  ;;  %v3485_v44 = vpack.c.bf16 %v8016_v2, %v8016_v2  ;;  %v2698_v19 = vmul.f32 0.5, %v2631_v54  ;;  %v3498_v2 = vpack.c.bf16 %v8018_v33, %v8018_v33  ;;  %v2695_v33 = vmul.f32 0.5, %v7965_v45 }
 0x6ed   : > { %v3073_v15 = vpop.f32.mrf.mxu1  ;;  %3167 = vmatmul.bf16.gmra.mxu2 %v8024_v49  ;;  %v10430_v49 = vld [vmem:[#allocation61_spill] sm:$0xff] }
 0x6ee   : > { %v8029_v53 = vunpack.c.l.b16 %v3485_v44  ;;  %v3307_v11 = vmul.f32 0.5, %v3073_v15  ;;  %v2761_v9 = vmul.f32 0.5, %v10430_v49  ;;  %v8039_v16 = vadd.f32 %v2762_v51, %v2698_v19  ;;  %v10432_v15 = vld [vmem:[#allocation60_spill] sm:$0xff]  ;;  %v10436_v19 = vld [vmem:[#allocation58_spill] sm:$0xff] }
 0x6ef   : > { %v2984_v7 = vpop.f32.mrf.mxu0  ;;  %v2760_v20 = vmul.f32 0.5, %v10432_v15  ;;  %v8049_v5 = vunpack.c.l.b16 %v3498_v2  ;;  %v2759_v0 = vmul.f32 0.5, %v10436_v19 }
 0x6f0   : > { %v8034_v32 = vadd.f32 %v3371_v40, %v3307_v11  ;;  %10431 = vst [vmem:[#allocation61_spill] sm:$0xff] %v8039_v16  ;;  %v3294_v44 = vmul.f32 0.5, %v2984_v7  ;;  %v10434_v40 = vld [vmem:[#allocation16_spill] sm:$0xff]  ;;  %v8047_v30 = vadd.f32 %v2761_v9, %v2697_v42  ;;  %v2694_v7 = vmul.f32 0.5, %v7947_v12 }
 0x6f1   : > { %v3358_v11 = vmul.f32 0.5, %v10434_v40  ;;  %v2890_v45 = vpack.c.bf16 %v8039_v16, %v8039_v16  ;;  %v10440_v42 = vld [vmem:[#allocation56_spill] sm:$0xff] }
 0x6f2   : > { %10429 = vst [vmem:[#allocation62_spill] sm:$0xff] %v8034_v32  ;;  %v3499_v54 = vpack.c.bf16 %v8034_v32, %v8034_v32  ;;  %v8055_v32 = vadd.f32 %v2760_v20, %v2696_v24  ;;  %v2758_v9 = vmul.f32 0.5, %v10440_v42  ;;  %v10442_v24 = vld [vmem:[#allocation15_spill] sm:$0xff]  ;;  %v2889_v19 = vpack.c.bf16 %v8047_v30, %v8047_v30 }
 0x6f3   : > { %v2633_v63 = vpop.f32.mrf.mxu3  ;;  %10435 = vst [vmem:[#allocation60_spill] sm:$0xff] %v8047_v30  ;;  %v8059_v36 = vadd.f32 %v3358_v11, %v3294_v44  ;;  %v3359_v20 = vmul.f32 0.5, %v10442_v24  ;;  %v3213_v42 = vunpack.c.l.b16 %v2890_v45 }
 0x6f4   : > { %v8051_v49 = vunpack.c.l.b16 %v3499_v54  ;;  %v2699_v51 = vmul.f32 0.5, %v2633_v63  ;;  %10437 = vst [vmem:[#allocation63_spill] sm:$0xff] %v8055_v32  ;;  %v2693_v63 = vmul.f32 0.5, %v7931_v60  ;;  %v8067_v54 = vadd.f32 %v2759_v0, %v2695_v33  ;;  %v10444_v33 = vld [vmem:[#allocation13_spill] sm:$0xff] }
 0x6f5   : > { %v3076_v15 = vpop.f32.mrf.mxu1  ;;  %10438 = vst [vmem:[#allocation16_spill] sm:$0xff] %v8059_v36  ;;  %v8075_v2 = vadd.f32 %v2758_v9, %v2694_v7  ;;  %v2888_v60 = vpack.c.bf16 %v8055_v32, %v8055_v32  ;;  %v3372_v0 = vmul.f32 0.5, %v10444_v33  ;;  %v3486_v24 = vpack.c.bf16 %v8059_v36, %v8059_v36 }
 0x6f6   : > { %v8061_v40 = vadd.f32 %v2763_v38, %v2699_v51  ;;  %10441 = vst [vmem:[#allocation56_spill] sm:$0xff] %v8067_v54  ;;  %v3308_v38 = vmul.f32 0.5, %v3076_v15  ;;  %v10443_v51 = vld [vmem:[#allocation10_spill] sm:$0xff]  ;;  %v2691_v15 = vmul.f32 0.5, %v7893_v10  ;;  %v2887_v7 = vpack.c.bf16 %v8067_v54, %v8067_v54 }
 0x6f7   : > { %v2986_v12 = vpop.f32.mrf.mxu0  ;;  %v2757_v16 = vmul.f32 0.5, %v10443_v51  ;;  %v3212_v45 = vunpack.c.l.b16 %v2889_v19 }
 0x6f8   : > { %10439 = vst [vmem:[#allocation58_spill] sm:$0xff] %v8061_v40  ;;  %v2891_v44 = vpack.c.bf16 %v8061_v40, %v8061_v40  ;;  %v3295_v11 = vmul.f32 0.5, %v2986_v12  ;;  %v8089_v9 = vadd.f32 %v3372_v0, %v3308_v38  ;;  %v10446_v40 = vld [vmem:[#allocation19_spill] sm:$0xff]  ;;  %v3566_v38 = vunpack.c.l.b16 %v3486_v24 }
 0x6f9   : > { %v8085_v12 = vadd.f32 %v2757_v16, %v2693_v63  ;;  %v2755_v32 = vmul.f32 0.5, %v10446_v40  ;;  %v8098_v16 = vld [vmem:[%s6510_s12 + $0xb0] sm:$0xff]  ;;  %v3211_v63 = vunpack.c.l.b16 %v2888_v60  ;;  %v10449_v60 = vld [vmem:[#allocation50_spill] sm:$0xff] }
 0x6fa   : > { %v3214_v30 = vunpack.c.l.b16 %v2891_v44  ;;  %v8082_v52 = vadd.f32 %v3359_v20, %v3295_v11  ;;  %v2886_v20 = vpack.c.bf16 %v8075_v2, %v8075_v2  ;;  %v10447_v11 = vld [vmem:[#allocation17_spill] sm:$0xff]  ;;  %10448 = vst [vmem:[#allocation10_spill] sm:$0xff] %v8098_v16  ;;  %v2753_v24 = vmul.f32 0.5, %v10449_v60 }
 0x6fb   : > { %v3373_v10 = vmul.f32 0.5, %v10447_v11  ;;  %v8102_v19 = vadd.f32 %v2755_v32, %v2691_v15  ;;  %v2885_v40 = vpack.c.bf16 %v8085_v12, %v8085_v12  ;;  %v3500_v11 = vpack.c.bf16 %v8089_v9, %v8089_v9 }
 0x6fc   : > { %10445 = vst [vmem:[#allocation15_spill] sm:$0xff] %v8082_v52  ;;  %v3487_v51 = vpack.c.bf16 %v8082_v52, %v8082_v52  ;;  %v3222_v33 = vpack.c.b16 %v3214_v30, %v3213_v42  ;;  %v2689_v30 = vmul.f32 0.5, %v7852_v17  ;;  %v3210_v42 = vunpack.c.l.b16 %v2887_v7 }
 0x6fd   : > { %v3078_v44 = vpop.f32.mrf.mxu1  ;;  %3172 = vmatmul.bf16.gmra.mxu2 %v8098_v16  ;;  %v3221_v16 = vpack.c.b16 %v3212_v45, %v3211_v63  ;;  %v2687_v17 = vmul.f32 0.5, %v7811_v47  ;;  %v3661_v7 = vunpack.c.l.b16 %v3500_v11  ;;  %v10450_v63 = vld [vmem:[#allocation47_spill] sm:$0xff] }
 0x6fe   : > { %v3567_v0 = vunpack.c.l.b16 %v3487_v51  ;;  %v3309_v36 = vmul.f32 0.5, %v3078_v44  ;;  %3231 = vmatpush.bf16.msrb.mxu3 %v3222_v33  ;;  %v2884_v51 = vpack.c.bf16 %v7916_v22, %v7916_v22  ;;  %v3209_v33 = vunpack.c.l.b16 %v2886_v20 }
 0x6ff   : > { %v8116_v15 = vadd.f32 %v2753_v24, %v2689_v30  ;;  %v2882_v20 = vpack.c.bf16 %v7878_v26, %v7878_v26 }
 0x700   : > { %v3575_v52 = vpack.c.b16 %v3567_v0, %v3566_v38  ;;  %v8108_v54 = vadd.f32 %v3373_v10, %v3309_v36  ;;  %v2883_v36 = vpack.c.bf16 %v8102_v19, %v8102_v19  ;;  %v3220_v44 = vpack.c.b16 %v3210_v42, %v3209_v33  ;;  %v10452_v33 = vld [vmem:[#allocation46_spill] sm:$0xff] }
 0x701   : > { %v3208_v10 = vunpack.c.l.b16 %v2885_v40  ;;  %v2751_v38 = vmul.f32 0.5, %v10450_v63  ;;  %v3207_v60 = vunpack.c.l.b16 %v2884_v51  ;;  %v2881_v40 = vpack.c.bf16 %v8116_v15, %v8116_v15 }
 0x702   : > { %v3501_v32 = vpack.c.bf16 %v8108_v54, %v8108_v54  ;;  %3232 = vmatpush.bf16.msrb.mxu3 %v3221_v16  ;;  %3584 = vmatpush.bf16.msrb.mxu0 %v3575_v52  ;;  %v10451_v52 = vpack.c.b16 %v8029_v53, %v8027_v35  ;;  %v2685_v16 = vmul.f32 0.5, %v7780_v28  ;;  %v3206_v24 = vunpack.c.l.b16 %v2883_v36  ;;  %v10453_v35 = vld [vmem:[#allocation14_spill] sm:$0xff] }
 0x703   : > { %v8127_v30 = vadd.f32 %v2751_v38, %v2687_v17  ;;  %v3219_v11 = vpack.c.b16 %v3208_v10, %v3207_v60  ;;  %v2880_v51 = vpack.c.bf16 %v7837_v57, %v7837_v57  ;;  %v3374_v53 = vmul.f32 0.5, %v10453_v35  ;;  %v8145_v38 = vld [vmem:[%s6510_s12 + $0xb8] sm:$0xff] }
 0x704   : > { %v3662_v45 = vunpack.c.l.b16 %v3501_v32  ;;  %v2749_v32 = vmul.f32 0.5, %v10452_v33  ;;  %v10454_v28 = vpack.c.b16 %v7992_v55, %v7990_v48  ;;  %v3204_v10 = vunpack.c.l.b16 %v2881_v40  ;;  %v10455_v55 = vld [vmem:[#allocation11_spill] sm:$0xff] }
 0x705   : > { %v3081_v0 = vpop.f32.mrf.mxu1  ;;  %v3375_v60 = vmul.f32 0.5, %v10455_v55  ;;  %v2876_v33 = vpack.c.bf16 %v7771_v56, %v7771_v56 }
 0x706   : > { %3233 = vmatpush.bf16.msrb.mxu3 %v3220_v44  ;;  %3585 = vmatpush.bf16.msrb.mxu0 %v10451_v52  ;;  %v3671_v47 = vpack.c.b16 %v3662_v45, %v3661_v7  ;;  %v3310_v42 = vmul.f32 0.5, %v3081_v0  ;;  %v3205_v44 = vunpack.c.l.b16 %v2882_v20  ;;  %v8138_v17 = vadd.f32 %v2749_v32, %v2685_v16 }
 0x707   : > { %v2879_v7 = vpack.c.bf16 %v8127_v30, %v8127_v30  ;;  %v2878_v0 = vpack.c.bf16 %v7796_v4, %v7796_v4  ;;  %v3203_v20 = vunpack.c.l.b16 %v2880_v51  ;;  %v10456_v52 = vpack.c.b16 %v7954_v1, %v7952_v46 }
 0x708   : > { %v8142_v45 = vadd.f32 %v3374_v53, %v3310_v42  ;;  %v3218_v36 = vpack.c.b16 %v3206_v24, %v3205_v44  ;;  %v2877_v16 = vpack.c.bf16 %v8138_v17, %v8138_v17  ;;  %v10457_v46 = vpack.c.b16 %v7918_v58, %v7914_v50  ;;  %v8174_v58 = vld [vmem:[%s6510_s12 + $0xc0] sm:$0xff] }
 0x709   : > { %v3202_v24 = vunpack.c.l.b16 %v2879_v7  ;;  %v3201_v32 = vunpack.c.l.b16 %v2878_v0  ;;  %v10458_v7 = vpack.c.b16 %v7880_v6, %v7876_v41  ;;  %v10460_v50 = vpack.c.b16 %v7801_v23, %v7794_v34 }
 0x70a   : > { %3234 = vmatpush.bf16.msrb.mxu3 %v3219_v11  ;;  %3586 = vmatpush.bf16.msrb.mxu0 %v10454_v28  ;;  %v3502_v40 = vpack.c.bf16 %v8142_v45, %v8142_v45  ;;  %v3217_v11 = vpack.c.b16 %v3204_v10, %v3203_v20  ;;  %v3200_v53 = vunpack.c.l.b16 %v2877_v16  ;;  %v3199_v28 = vunpack.c.l.b16 %v2876_v33  ;;  %v10462_v20 = vld [vmem:[#allocation12_spill] sm:$0xff]  ;;  %v10470_v33 = vld [vmem:[#allocation7_spill] sm:$0xff] }
 0x70b   : > { %v3216_v35 = vpack.c.b16 %v3202_v24, %v3201_v32  ;;  %v10461_v41 = vpack.c.b16 %v8051_v49, %v8049_v5  ;;  %v10465_v34 = vpack.c.b16 %v7970_v27, %v7967_v62  ;;  %v10466_v49 = vld [vmem:[#allocation9_spill] sm:$0xff]  ;;  %v10467_v16 = vpack.c.b16 %v7935_v61, %v7933_v21  ;;  %v10469_v21 = vld [vmem:[#allocation6_spill] sm:$0xff] }
 0x70c   : > { %v3663_v1 = vunpack.c.l.b16 %v3502_v40  ;;  %v3215_v10 = vpack.c.b16 %v3200_v53, %v3199_v28  ;;  %v3377_v55 = vmul.f32 0.5, %v10466_v49  ;;  %v10468_v40 = vpack.c.b16 %v7897_v29, %v7895_v3 }
 0x70d   : > { %v3083_v63 = vpop.f32.mrf.mxu1  ;;  %3177 = vmatmul.bf16.gmra.mxu2 %v8145_v38  ;;  %v3378_v61 = vmul.f32 0.5, %v10469_v21 }
 0x70e   : > { %v3311_v48 = vmul.f32 0.5, %v3083_v63  ;;  %3235 = vmatpush.bf16.msrb.mxu3 %v3218_v36  ;;  %3587 = vmatpush.bf16.msrb.mxu0 %v10456_v52  ;;  %v10459_v63 = vpack.c.b16 %v7839_v13, %v7835_v18  ;;  %v10463_v18 = vld [vmem:[#allocation5_spill] sm:$0xff] }
 0x710   : > { %v8158_v42 = vadd.f32 %v3375_v60, %v3311_v48  ;;  %v3376_v48 = vmul.f32 0.5, %v10462_v20 }
 0x712   : > { %v3503_v51 = vpack.c.bf16 %v8158_v42, %v8158_v42  ;;  %3236 = vmatpush.bf16.msrb.mxu3 %v3217_v11  ;;  %3588 = vmatpush.bf16.msrb.mxu0 %v10457_v46  ;;  %v10471_v46 = vpack.c.b16 %v7856_v31, %v7854_v25 }
 0x714   : > { %v3664_v44 = vunpack.c.l.b16 %v3503_v51 }
 0x716   : > { %v3672_v36 = vpack.c.b16 %v3664_v44, %v3663_v1  ;;  %3237 = vmatpush.bf16.msrb.mxu3 %v3216_v35  ;;  %3589 = vmatpush.bf16.msrb.mxu0 %v10458_v7  ;;  %v10472_v1 = vld [vmem:[#allocation22_spill] sm:$0xff]  ;;  %v10473_v44 = vld [vmem:[#allocation53_spill] sm:$0xff]  ;;  %v8232_v7 = vld [vmem:[%s6510_s12 + $0xd0] sm:$0xff] }
 0x717   : > { %v3379_v35 = vmul.f32 0.5, %v10473_v44  ;;  %v10482_v44 = vld [vmem:[#allocation55_spill] sm:$0xff] }
 0x718   : > { %3681 = vmatpush.bf16.msra.mxu1 %v3672_v36 }
 0x71a   : > { %3238 = vmatpush.bf16.msrb.mxu3 %v3215_v10  ;;  %3590 = vmatpush.bf16.msrb.mxu0 %v10459_v63 }
 0x71c   : > { %3682 = vmatpush.bf16.msra.mxu1 %v3671_v47  ;;  %v10464_v47 = vpack.c.b16 %v8005_v39, %v8003_v59  ;;  %v8204_v39 = vld [vmem:[%s6510_s12 + $0xc8] sm:$0xff] }
 0x71d   : > { %3239 = vmatmul.bf16.vlgmr.msrb.gmra.mxu3 %v8174_v58 }
 0x71e   : > { %3591 = vmatpush.bf16.msrb.mxu0 %v10460_v50  ;;  %v10474_v50 = vld [vmem:[#allocation21_spill] sm:$0xff] }
 0x720   : > { %3683 = vmatpush.bf16.msra.mxu1 %v10461_v41  ;;  %v3143_v6 = vpop.f32.mrf.mxu2  ;;  %v3380_v41 = vmul.f32 0.5, %v10474_v50 }
 0x721   : > { %v3312_v0 = vmul.f32 0.5, %v3143_v6  ;;  %3592 = vmatmul.bf16.vlgmr.msrb.gmra.mxu0 %v10463_v18  ;;  %v6160_v6 = vld [vmem:[%s6510_s12 + $0x10] sm:$0xff] }
 0x723   : > { %v8185_v13 = vadd.f32 %v3376_v48, %v3312_v0  ;;  %v10476_v48 = vld [vmem:[#allocation52_spill] sm:$0xff]  ;;  %v10502_v0 = vld [vmem:[#allocation31_spill] sm:$0xff] }
 0x724   : > { %3684 = vmatpush.bf16.msra.mxu1 %v10464_v47 }
 0x725   : > { %v3504_v60 = vpack.c.bf16 %v8185_v13, %v8185_v13 }
 0x727   : > { %v8207_v62 = vunpack.c.l.b16 %v3504_v60  ;;  %v8254_v60 = vld [vmem:[%s6510_s12 + $0xd8] sm:$0xff] }
 0x728   : > { %3685 = vmatpush.bf16.msra.mxu1 %v10465_v34  ;;  %v3145_v23 = vpop.f32.mrf.mxu2  ;;  %v10477_v34 = vld [vmem:[#allocation59_spill] sm:$0xff] }
 0x729   : > { %v3313_v5 = vmul.f32 0.5, %v3145_v23  ;;  %v3381_v23 = vmul.f32 0.5, %v10477_v34 }
 0x72b   : > { %v8196_v52 = vadd.f32 %v3377_v55, %v3313_v5 }
 0x72c   : > { %3686 = vmatpush.bf16.msra.mxu1 %v10467_v16 }
 0x72d   : > { %v3505_v59 = vpack.c.bf16 %v8196_v52, %v8196_v52  ;;  %3244 = vmatmul.bf16.gmra.mxu3 %v8204_v39 }
 0x72f   : > { %v8209_v27 = vunpack.c.l.b16 %v3505_v59 }
 0x730   : > { %3687 = vmatpush.bf16.msra.mxu1 %v10468_v40  ;;  %v3148_v11 = vpop.f32.mrf.mxu2 }
 0x731   : > { %v3314_v24 = vmul.f32 0.5, %v3148_v11  ;;  %3597 = vmatmul.bf16.gmra.mxu0 %v10470_v33  ;;  %v10503_v33 = vld [vmem:[#allocation30_spill] sm:$0xff] }
 0x732   : > { %v3391_v34 = vmul.f32 0.5, %v10503_v33 }
 0x733   : > { %v8218_v51 = vadd.f32 %v3378_v61, %v3314_v24  ;;  %v10479_v24 = vld [vmem:[#allocation20_spill] sm:$0xff] }
 0x734   : > { %3688 = vmatpush.bf16.msra.mxu1 %v10471_v46  ;;  %v3382_v21 = vmul.f32 0.5, %v10479_v24  ;;  %v6162_v61 = vld [vmem:[%s6510_s12 + $0x18] sm:$0xff] }
 0x735   : > { %v3506_v53 = vpack.c.bf16 %v8218_v51, %v8218_v51 }
 0x737   : > { %3689 = vmatmul.bf16.vlgmr.msra.gmra.mxu1 %v10472_v1  ;;  %v8235_v25 = vunpack.c.l.b16 %v3506_v53  ;;  %v10481_v1 = vld [vmem:[#allocation49_spill] sm:$0xff] }
 0x738   : > { %v3150_v3 = vpop.f32.mrf.mxu2 }
 0x739   : > { %v3315_v29 = vmul.f32 0.5, %v3150_v3 }
 0x73b   : > { %v8227_v28 = vadd.f32 %v3379_v35, %v3315_v29  ;;  %v3383_v35 = vmul.f32 0.5, %v10482_v44  ;;  %v6165_v44 = vld [vmem:[%s6510_s12 + $0x28] sm:$0xff] }
 0x73d   : > { %v3507_v36 = vpack.c.bf16 %v8227_v28, %v8227_v28  ;;  %3249 = vmatmul.bf16.gmra.mxu3 %v8232_v7 }
 0x73f   : > { %v8237_v31 = vunpack.c.l.b16 %v3507_v36 }
 0x740   : > { %v3153_v10 = vpop.f32.mrf.mxu2 }
 0x741   : > { %v3316_v63 = vmul.f32 0.5, %v3153_v10  ;;  %3602 = vmatmul.bf16.gmra.mxu0 %v6160_v6 }
 0x743   : > { %v8243_v20 = vadd.f32 %v3380_v41, %v3316_v63  ;;  %v8276_v63 = vld [vmem:[%s6510_s12 + $0xe0] sm:$0xff] }
 0x745   : > { %10475 = vst [vmem:[#allocation13_spill] sm:$0xff] %v8243_v20  ;;  %v3508_v5 = vpack.c.bf16 %v8243_v20, %v8243_v20 }
 0x747   : > { %3694 = vmatmul.bf16.gmra.mxu1 %v10476_v48  ;;  %v8257_v16 = vunpack.c.l.b16 %v3508_v5  ;;  %v10485_v5 = vld [vmem:[#allocation23_spill] sm:$0xff] }
 0x748   : > { %v3155_v18 = vpop.f32.mrf.mxu2 }
 0x749   : > { %v3317_v47 = vmul.f32 0.5, %v3155_v18  ;;  %v3384_v18 = vmul.f32 0.5, %v7697_v43 }
 0x74b   : > { %v8249_v49 = vadd.f32 %v3381_v23, %v3317_v47  ;;  %v6164_v47 = vld [vmem:[%s6510_s12 + $0x20] sm:$0xff] }
 0x74d   : > { %10478 = vst [vmem:[#allocation19_spill] sm:$0xff] %v8249_v49  ;;  %v3509_v55 = vpack.c.bf16 %v8249_v49, %v8249_v49  ;;  %3254 = vmatmul.bf16.gmra.mxu3 %v8254_v60 }
 0x74f   : > { %v8259_v59 = vunpack.c.l.b16 %v3509_v55 }
 0x750   : > { %v3158_v40 = vpop.f32.mrf.mxu2 }
 0x751   : > { %v3318_v11 = vmul.f32 0.5, %v3158_v40  ;;  %3607 = vmatmul.bf16.gmra.mxu0 %v6162_v61  ;;  %v10487_v61 = vld [vmem:[#allocation18_spill] sm:$0xff] }
 0x753   : > { %v8265_v46 = vadd.f32 %v3382_v21, %v3318_v11  ;;  %v3385_v11 = vmul.f32 0.5, %v7765_v37  ;;  %v3392_v37 = vmul.f32 0.5, %v7771_v56 }
 0x755   : > { %10480 = vst [vmem:[#allocation17_spill] sm:$0xff] %v8265_v46  ;;  %v3510_v53 = vpack.c.bf16 %v8265_v46, %v8265_v46  ;;  %v10541_v46 = vld [vmem:[#allocation61_spill] sm:$0xff] }
 0x757   : > { %3699 = vmatmul.bf16.gmra.mxu1 %v10481_v1  ;;  %v8279_v50 = vunpack.c.l.b16 %v3510_v53  ;;  %v3386_v53 = vmul.f32 0.5, %v7760_v14 }
 0x758   : > { %v3160_v3 = vpop.f32.mrf.mxu2 }
 0x759   : > { %v3319_v29 = vmul.f32 0.5, %v3160_v3 }
 0x75b   : > { %v8271_v36 = vadd.f32 %v3383_v35, %v3319_v29 }
 0x75d   : > { %10483 = vst [vmem:[#allocation50_spill] sm:$0xff] %v8271_v36  ;;  %v3511_v10 = vpack.c.bf16 %v8271_v36, %v8271_v36  ;;  %3259 = vmatmul.bf16.gmra.mxu3 %v8276_v63 }
 0x75f   : > { %v8281_v41 = vunpack.c.l.b16 %v3511_v10 }
 0x760   : > { %v3163_v6 = vpop.f32.mrf.mxu2 }
 0x761   : > { %v3320_v48 = vmul.f32 0.5, %v3163_v6  ;;  %3612 = vmatmul.bf16.gmra.mxu0 %v6164_v47  ;;  %v10489_v6 = vld [vmem:[#allocation8_spill] sm:$0xff]  ;;  %v3387_v47 = vmul.f32 0.5, %v7749_v8 }
 0x763   : > { %v8287_v23 = vadd.f32 %v3384_v18, %v3320_v48 }
 0x765   : > { %10484 = vst [vmem:[#allocation47_spill] sm:$0xff] %v8287_v23  ;;  %v3512_v24 = vpack.c.bf16 %v8287_v23, %v8287_v23 }
 0x767   : > { %3704 = vmatmul.bf16.gmra.mxu1 %v10485_v5  ;;  %v8298_v1 = vunpack.c.l.b16 %v3512_v24 }
 0x768   : > { %v3165_v55 = vpop.f32.mrf.mxu2 }
 0x769   : > { %v3321_v40 = vmul.f32 0.5, %v3165_v55 }
 0x76b   : > { %v8293_v21 = vadd.f32 %v3385_v11, %v3321_v40  ;;  %v10491_v11 = vld [vmem:[#allocation24_spill] sm:$0xff] }
 0x76d   : > { %10486 = vst [vmem:[#allocation46_spill] sm:$0xff] %v8293_v21  ;;  %v3513_v43 = vpack.c.bf16 %v8293_v21, %v8293_v21  ;;  %3264 = vmatmul.bf16.gmra.mxu3 %v10487_v61  ;;  %v10492_v61 = vld [vmem:[#allocation51_spill] sm:$0xff] }
 0x76f   : > { %v8300_v3 = vunpack.c.l.b16 %v3513_v43 }
 0x770   : > { %v3168_v29 = vpop.f32.mrf.mxu2 }
 0x771   : > { %3617 = vmatmul.bf16.gmra.mxu0 %v6165_v44  ;;  %v3322_v35 = vmul.f32 0.5, %v3168_v29 }
 0x773   : > { %v8306_v10 = vadd.f32 %v3386_v53, %v3322_v35  ;;  %v10493_v35 = vld [vmem:[#allocation28_spill] sm:$0xff] }
 0x774   : > { %v3388_v53 = vmul.f32 0.5, %v10493_v35 }
 0x775   : > { %10488 = vst [vmem:[#allocation14_spill] sm:$0xff] %v8306_v10  ;;  %v3514_v5 = vpack.c.bf16 %v8306_v10, %v8306_v10 }
 0x777   : > { %3709 = vmatmul.bf16.gmra.mxu1 %v10489_v6  ;;  %v3756_v24 = vunpack.c.l.b16 %v3514_v5  ;;  %v10495_v6 = vld [vmem:[#allocation25_spill] sm:$0xff] }
 0x778   : > { %v3170_v48 = vpop.f32.mrf.mxu2 }
 0x779   : > { %v3323_v18 = vmul.f32 0.5, %v3170_v48 }
 0x77b   : > { %v8312_v55 = vadd.f32 %v3387_v47, %v3323_v18  ;;  %v10496_v47 = vld [vmem:[#allocation29_spill] sm:$0xff] }
 0x77c   : > { %v3389_v32 = vmul.f32 0.5, %v10496_v47 }
 0x77d   : > { %10490 = vst [vmem:[#allocation11_spill] sm:$0xff] %v8312_v55  ;;  %v3515_v40 = vpack.c.bf16 %v8312_v55, %v8312_v55  ;;  %3269 = vmatmul.bf16.gmra.mxu3 %v10491_v11 }
 0x77f   : > { %v3757_v14 = vunpack.c.l.b16 %v3515_v40 }
 0x780   : > { %v3173_v43 = vpop.f32.mrf.mxu2 }
 0x781   : > { %3622 = vmatmul.bf16.gmra.mxu0 %v10492_v61  ;;  %v3767_v29 = vpack.c.b16 %v3757_v14, %v3756_v24  ;;  %v3324_v44 = vmul.f32 0.5, %v3173_v43  ;;  %v10498_v24 = vld [vmem:[#allocation48_spill] sm:$0xff] }
 0x783   : > { %v8319_v8 = vadd.f32 %v3388_v53, %v3324_v44  ;;  %v10499_v44 = vld [vmem:[#allocation27_spill] sm:$0xff] }
 0x785   : > { %10494 = vst [vmem:[#allocation12_spill] sm:$0xff] %v8319_v8  ;;  %v3516_v11 = vpack.c.bf16 %v8319_v8, %v8319_v8 }
 0x787   : > { %3714 = vmatmul.bf16.gmra.mxu1 %v10495_v6  ;;  %v3758_v14 = vunpack.c.l.b16 %v3516_v11  ;;  %v10500_v6 = vld [vmem:[#allocation26_spill] sm:$0xff] }
 0x788   : > { %v3175_v48 = vpop.f32.mrf.mxu2 }
 0x789   : > { %v3325_v18 = vmul.f32 0.5, %v3175_v48  ;;  %v3390_v48 = vmul.f32 0.5, %v10500_v6 }
 0x78b   : > { %v8325_v5 = vadd.f32 %v3389_v32, %v3325_v18 }
 0x78d   : > { %10497 = vst [vmem:[#allocation5_spill] sm:$0xff] %v8325_v5  ;;  %v3517_v40 = vpack.c.bf16 %v8325_v5, %v8325_v5  ;;  %3274 = vmatmul.bf16.gmra.mxu3 %v10498_v24 }
 0x78f   : > { %v3759_v43 = vunpack.c.l.b16 %v3517_v40 }
 0x790   : > { %v3178_v61 = vpop.f32.mrf.mxu2 }
 0x791   : > { %3627 = vmatmul.bf16.gmra.mxu0 %v10499_v44  ;;  %v3768_v35 = vpack.c.b16 %v3759_v43, %v3758_v14  ;;  %v3326_v53 = vmul.f32 0.5, %v3178_v61 }
 0x793   : > { %v8332_v47 = vadd.f32 %v3390_v48, %v3326_v53  ;;  %v10505_v53 = vld [vmem:[#allocation33_spill] sm:$0xff] }
 0x794   : > { %v3988_v6 = vmul.f32 0.5, %v10505_v53 }
 0x795   : > { %10501 = vst [vmem:[#allocation9_spill] sm:$0xff] %v8332_v47  ;;  %v3518_v24 = vpack.c.bf16 %v8332_v47, %v8332_v47 }
 0x797   : > { %3719 = vmatmul.bf16.gmra.mxu1 %v10502_v0  ;;  %v3760_v43 = vunpack.c.l.b16 %v3518_v24  ;;  %v10507_v24 = vld [vmem:[#allocation32_spill] sm:$0xff] }
 0x798   : > { %v3180_v32 = vpop.f32.mrf.mxu2 }
 0x799   : > { %v3327_v18 = vmul.f32 0.5, %v3180_v32 }
 0x79b   : > { %v8338_v11 = vadd.f32 %v3391_v34, %v3327_v18 }
 0x79d   : > { %10504 = vst [vmem:[#allocation6_spill] sm:$0xff] %v8338_v11  ;;  %v3519_v40 = vpack.c.bf16 %v8338_v11, %v8338_v11 }
 0x79e   : > { %v3593_v14 = vpop.f32.mrf.mxu0 }
 0x79f   : > { %v3761_v61 = vunpack.c.l.b16 %v3519_v40  ;;  %v3924_v44 = vmul.f32 0.5, %v3593_v14 }
 0x7a0   : > { %v3240_v48 = vpop.f32.mrf.mxu3 }
 0x7a1   : > { %v3769_v0 = vpack.c.b16 %v3761_v61, %v3760_v43  ;;  %v8343_v32 = vadd.f32 %v3988_v6, %v3924_v44  ;;  %v3328_v33 = vmul.f32 0.5, %v3240_v48  ;;  %v3393_v43 = vmul.f32 0.5, %v8138_v17  ;;  %v10509_v48 = vld [vmem:[#allocation35_spill] sm:$0xff] }
 0x7a3   : > { %v8346_v47 = vadd.f32 %v3392_v37, %v3328_v33  ;;  %4901 = vrot.lane.b32.xlu2 %v8343_v32, %s6235_s13  ;;  %3778 = vmatpush.bf16.msrb.mxu2 %v3769_v0  ;;  %v4117_v34 = vsel %vm4116_vm1, %v8343_v32, -inf  ;;  %v3990_v0 = vmul.f32 0.5, %v10509_v48 }
 0x7a4   : > { %4118 = vmax.xlane.f32.xlu0 %v4117_v34 }
 0x7a5   : > { %10506 = vst [vmem:[#allocation7_spill] sm:$0xff] %v8346_v47  ;;  %v3520_v56 = vpack.c.bf16 %v8346_v47, %v8346_v47 }
 0x7a6   : > { %v3595_v18 = vpop.f32.mrf.mxu0 }
 0x7a7   : > { %3724 = vmatmul.bf16.gmra.mxu1 %v10507_v24  ;;  %3779 = vmatpush.bf16.msrb.mxu2 %v3768_v35  ;;  %v8360_v53 = vunpack.c.l.b16 %v3520_v56  ;;  %v10510_v35 = vpack.c.b16 %v8300_v3, %v8298_v1  ;;  %v10511_v1 = vpack.c.b16 %v8281_v41, %v8279_v50  ;;  %v10512_v3 = vld [vmem:[#allocation34_spill] sm:$0xff] }
 0x7a8   : > { %v3242_v40 = vpop.f32.mrf.mxu3  ;;  %v3989_v56 = vmul.f32 0.5, %v10512_v3 }
 0x7a9   : > { %v3329_v14 = vmul.f32 0.5, %v3242_v40  ;;  %v3400_v40 = vmul.f32 0.5, %v7916_v22 }
 0x7ab   : > { %v8356_v37 = vadd.f32 %v3393_v43, %v3329_v14  ;;  %3780 = vmatpush.bf16.msrb.mxu2 %v3767_v29  ;;  %v3394_v29 = vmul.f32 0.5, %v7796_v4  ;;  %v3925_v14 = vmul.f32 0.5, %v3595_v18  ;;  %v10515_v18 = vpack.c.b16 %v8259_v59, %v8257_v16  ;;  %v10518_v59 = vld [vmem:[#allocation36_spill] sm:$0xff] }
 0x7ac   : > { %v10517_v16 = vpack.c.b16 %v8237_v31, %v8235_v25  ;;  %v3396_v31 = vmul.f32 0.5, %v7837_v57 }
 0x7ad   : > { %10508 = vst [vmem:[#allocation22_spill] sm:$0xff] %v8356_v37  ;;  %v3521_v61 = vpack.c.bf16 %v8356_v37, %v8356_v37  ;;  %v8382_v4 = vadd.f32 %v3989_v56, %v3925_v14  ;;  %v10530_v37 = vld [vmem:[#allocation71_spill] sm:$0xff] }
 0x7ae   : > { %v3598_v44 = vpop.f32.mrf.mxu0  ;;  %v3999_v47 = vmul.f32 0.5, %v10530_v37 }
 0x7af   : > { %v3926_v6 = vmul.f32 0.5, %v3598_v44  ;;  %3781 = vmatpush.bf16.msrb.mxu2 %v10510_v35  ;;  %v8366_v17 = vunpack.c.l.b16 %v3521_v61 }
 0x7b0   : > { %v3245_v33 = vpop.f32.mrf.mxu3 }
 0x7b1   : > { %v8368_v34 = vadd.f32 %v3990_v0, %v3926_v6  ;;  %v3330_v24 = vmul.f32 0.5, %v3245_v33  ;;  %v10513_v6 = vld [vmem:[#allocation37_spill] sm:$0xff]  ;;  %v3395_v33 = vmul.f32 0.5, %v8127_v30  ;;  %v10519_v30 = vpack.c.b16 %v8209_v27, %v8207_v62 }
 0x7b2   : > { %v4004_v48 = vmul.f32 0.5, %v10513_v6 }
 0x7b3   : > { %v8373_v43 = vadd.f32 %v3394_v29, %v3330_v24  ;;  %4905 = vrot.lane.b32.xlu1 %v8368_v34, %s6235_s13  ;;  %3782 = vmatpush.bf16.msrb.mxu2 %v10511_v1  ;;  %v3991_v1 = vmul.f32 0.5, %v10518_v59 }
 0x7b4   : > { %v3690_v61 = vpop.f32.mrf.mxu1 }
 0x7b5   : > { %v3940_v44 = vmul.f32 0.5, %v3690_v61  ;;  %v3522_v24 = vpack.c.bf16 %v8373_v43, %v8373_v43 }
 0x7b6   : > { %v3600_v0 = vpop.f32.mrf.mxu0 }
 0x7b7   : > { %v8384_v35 = vadd.f32 %v4004_v48, %v3940_v44  ;;  %3783 = vmatpush.bf16.msrb.mxu2 %v10515_v18  ;;  %v3927_v29 = vmul.f32 0.5, %v3600_v0  ;;  %v8404_v61 = vunpack.c.l.b16 %v3522_v24  ;;  %v10520_v18 = vld [vmem:[#allocation39_spill] sm:$0xff] }
 0x7b8   : > { %4903 = vrot.lane.b32.xlu0 %v8382_v4, %s6235_s13  ;;  %v3247_v50 = vpop.f32.mrf.mxu3 }
 0x7b9   : > { %10514 = vst [vmem:[#allocation53_spill] sm:$0xff] %v8384_v35  ;;  %5029 = vrot.lane.b32.xlu2 %v8384_v35, %s6236_s14  ;;  %v3331_v41 = vmul.f32 0.5, %v3247_v50  ;;  %v8406_v44 = vadd.f32 %v3991_v1, %v3927_v29 }
 0x7bb   : > { %v8396_v14 = vadd.f32 %v3395_v33, %v3331_v41  ;;  %3784 = vmatpush.bf16.msrb.mxu2 %v10517_v16  ;;  %v3397_v33 = vmul.f32 0.5, %v8116_v15  ;;  %v3401_v15 = vmul.f32 0.5, %v8085_v12 }
 0x7bd   : > { %10516 = vst [vmem:[#allocation21_spill] sm:$0xff] %v8396_v14  ;;  %v3523_v3 = vpack.c.bf16 %v8396_v14, %v8396_v14 }
 0x7be   : > { %v3603_v56 = vpop.f32.mrf.mxu0 }
 0x7bf   : > { %3785 = vmatpush.bf16.msrb.mxu2 %v10519_v30  ;;  %v8411_v6 = vunpack.c.l.b16 %v3523_v3 }
 0x7c0   : > { %v3250_v48 = vpop.f32.mrf.mxu3 }
 0x7c1   : > { %4907 = vrot.lane.b32.xlu2 %v8406_v44, %s6235_s13  ;;  %v3332_v25 = vmul.f32 0.5, %v3250_v48  ;;  %v3398_v48 = vmul.f32 0.5, %v7878_v26  ;;  %v4123_v26 = vsel %vm4116_vm1, %v8368_v34, -inf }
 0x7c2   : > { %3786 = vmatmul.bf16.vlgmr.msrb.gmra.mxu2 %v10520_v18 }
 0x7c3   : > { %v8419_v50 = vadd.f32 %v3396_v31, %v3332_v25  ;;  %v10522_v25 = vld [vmem:[#allocation41_spill] sm:$0xff] }
 0x7c5   : > { %10521 = vst [vmem:[#allocation52_spill] sm:$0xff] %v8419_v50  ;;  %v3524_v24 = vpack.c.bf16 %v8419_v50, %v8419_v50 }
 0x7c6   : > { %v8421_v41 = vpop.f32.mrf.mxu0 }
 0x7c7   : > { %v8432_v59 = vunpack.c.l.b16 %v3524_v24 }
 0x7c8   : > { %v3252_v62 = vpop.f32.mrf.mxu3 }
 0x7c9   : > { %v3333_v27 = vmul.f32 0.5, %v3252_v62 }
 0x7cb   : > { %v8426_v29 = vadd.f32 %v3397_v33, %v3333_v27  ;;  %v3399_v33 = vmul.f32 0.5, %v8102_v19 }
 0x7cd   : > { %v3525_v57 = vpack.c.bf16 %v8426_v29, %v8426_v29 }
 0x7ce   : > { %v8430_v16 = vpop.f32.mrf.mxu0 }
 0x7cf   : > { %v8434_v1 = vunpack.c.l.b16 %v3525_v57 }
 0x7d0   : > { %v3255_v3 = vpop.f32.mrf.mxu3 }
 0x7d1   : > { %v3334_v30 = vmul.f32 0.5, %v3255_v3 }
 0x7d2   : > { %3791 = vmatmul.bf16.gmra.mxu2 %v10522_v25 }
 0x7d3   : > { %v8440_v31 = vadd.f32 %v3398_v48, %v3334_v30  ;;  %v3692_v30 = vpop.f32.mrf.mxu1 }
 0x7d4   : > { %v3941_v0 = vmul.f32 0.5, %v3692_v30 }
 0x7d5   : > { %10523 = vst [vmem:[#allocation59_spill] sm:$0xff] %v8440_v31  ;;  %v3526_v24 = vpack.c.bf16 %v8440_v31, %v8440_v31 }
 0x7d6   : > { %v8442_v18 = vpop.f32.mrf.mxu0 }
 0x7d7   : > { %v8455_v25 = vunpack.c.l.b16 %v3526_v24 }
 0x7d8   : > { %v3257_v62 = vpop.f32.mrf.mxu3 }
 0x7d9   : > { %v3335_v27 = vmul.f32 0.5, %v3257_v62 }
 0x7db   : > { %v8447_v57 = vadd.f32 %v3399_v33, %v3335_v27  ;;  %v4120_v33 = vsel %vm4116_vm1, %v8382_v4, -inf }
 0x7dd   : > { %10524 = vst [vmem:[#allocation20_spill] sm:$0xff] %v8447_v57  ;;  %v3527_v3 = vpack.c.bf16 %v8447_v57, %v8447_v57  ;;  %4124 = vmax.xlane.f32.xlu1 %v4123_v26  ;;  %v6166_v26 = vld [vmem:[%s6510_s12 + $0x90] sm:$0xff]  ;;  %v10525_v57 = vld [vmem:[#allocation44_spill] sm:$0xff] }
 0x7de   : > { %v8453_v48 = vpop.f32.mrf.mxu0  ;;  %v4005_v31 = vmul.f32 0.5, %v10525_v57 }
 0x7df   : > { %v8457_v62 = vunpack.c.l.b16 %v3527_v3  ;;  %v4165_v3 = vsel %vm4116_vm1, %v8384_v35, -inf }
 0x7e0   : > { %v3260_v19 = vpop.f32.mrf.mxu3  ;;  %v8470_v50 = vadd.f32 %v4005_v31, %v3941_v0  ;;  %v4126_v31 = vsel %vm4116_vm1, %v8406_v44, -inf }
 0x7e1   : > { %v3336_v27 = vmul.f32 0.5, %v3260_v19  ;;  %v3928_v19 = vmul.f32 0.5, %v3603_v56 }
 0x7e2   : > { %4121 = vmax.xlane.f32.xlu0 %v4120_v33  ;;  %3796 = vmatmul.bf16.gmra.mxu2 %v6166_v26  ;;  %v4168_v33 = vsel %vm4116_vm1, %v8470_v50, -inf }
 0x7e3   : > { %v8466_v24 = vadd.f32 %v3400_v40, %v3336_v27  ;;  %v10526_v40 = vld [vmem:[#allocation43_spill] sm:$0xff] }
 0x7e4   : > { %v3992_v57 = vmul.f32 0.5, %v10526_v40 }
 0x7e5   : > { %4166 = vmax.xlane.f32.xlu1 %v4165_v3  ;;  %v3528_v27 = vpack.c.bf16 %v8466_v24, %v8466_v24 }
 0x7e6   : > { %v8472_v22 = vpop.f32.mrf.mxu0  ;;  %v8484_v26 = vadd.f32 %v3992_v57, %v3928_v19  ;;  %v6167_v19 = vld [vmem:[%s6510_s12 + $0x98] sm:$0xff]  ;;  %v3695_v57 = vpop.f32.mrf.mxu1 }
 0x7e7   : > { %v8490_v3 = vunpack.c.l.b16 %v3528_v27  ;;  %v3942_v11 = vmul.f32 0.5, %v3695_v57  ;;  %v10533_v57 = vld [vmem:[#allocation72_spill] sm:$0xff] }
 0x7e8   : > { %v3262_v30 = vpop.f32.mrf.mxu3  ;;  %10528 = vst [vmem:[#allocation55_spill] sm:$0xff] %v8484_v26 }
 0x7e9   : > { %v3337_v14 = vmul.f32 0.5, %v3262_v30 }
 0x7ea   : > { %4169 = vmax.xlane.f32.xlu2 %v4168_v33 }
 0x7eb   : > { %v8480_v0 = vadd.f32 %v3401_v15, %v3337_v14  ;;  %v4129_v14 = vsel %vm4116_vm1, %v8484_v26, -inf  ;;  %v10531_v15 = vld [vmem:[#allocation56_spill] sm:$0xff] }
 0x7ed   : > { %10527 = vst [vmem:[#allocation49_spill] sm:$0xff] %v8480_v0  ;;  %v3529_v12 = vpack.c.bf16 %v8480_v0, %v8480_v0  ;;  %4127 = vmax.xlane.f32.xlu1 %v4126_v31  ;;  %v3402_v31 = vmul.f32 0.5, %v8075_v2 }
 0x7ee   : > { %v8488_v56 = vpop.f32.mrf.mxu0 }
 0x7ef   : > { %v8492_v30 = vunpack.c.l.b16 %v3529_v12 }
 0x7f0   : > { %v3265_v33 = vpop.f32.mrf.mxu3 }
 0x7f1   : > { %v3338_v40 = vmul.f32 0.5, %v3265_v33  ;;  %v10532_v33 = vld [vmem:[#allocation42_spill] sm:$0xff] }
 0x7f2   : > { %4130 = vmax.xlane.f32.xlu2 %v4129_v14  ;;  %3801 = vmatmul.bf16.gmra.mxu2 %v6167_v19  ;;  %v3403_v19 = vmul.f32 0.5, %v10531_v15  ;;  %v4006_v55 = vmul.f32 0.5, %v10532_v33 }
 0x7f3   : > { %v8502_v12 = vadd.f32 %v3402_v31, %v3338_v40 }
 0x7f4   : > { %v8513_v21 = vadd.f32 %v4006_v55, %v3942_v11  ;;  %v10535_v11 = vld [vmem:[#allocation45_spill] sm:$0xff] }
 0x7f5   : > { %10529 = vst [vmem:[#allocation23_spill] sm:$0xff] %v8502_v12  ;;  %v3530_v2 = vpack.c.bf16 %v8502_v12, %v8502_v12 }
 0x7f6   : > { %4909 = vrot.lane.b32.xlu0 %v8484_v26, %s6235_s13  ;;  %v3620_v27 = vpop.f32.mrf.mxu0  ;;  %v10540_v26 = vld [vmem:[#allocation77_spill] sm:$0xff] }
 0x7f7   : > { %v3935_v0 = vmul.f32 0.5, %v3620_v27  ;;  %v3929_v27 = vmul.f32 0.5, %v8421_v41 }
 0x7f8   : > { %v3267_v5 = vpop.f32.mrf.mxu3 }
 0x7f9   : > { %v8505_v8 = vadd.f32 %v3999_v47, %v3935_v0  ;;  %v3339_v14 = vmul.f32 0.5, %v3267_v5  ;;  %v3853_v5 = vunpack.c.l.b16 %v3530_v2 }
 0x7fb   : > { %v8511_v10 = vadd.f32 %v3403_v19, %v3339_v14  ;;  %v10534_v14 = vld [vmem:[#allocation63_spill] sm:$0xff]  ;;  %v3993_v19 = vmul.f32 0.5, %v10535_v11 }
 0x7fc   : > { %v3404_v55 = vmul.f32 0.5, %v10534_v14 }
 0x7fd   : > { %v3531_v40 = vpack.c.bf16 %v8511_v10, %v8511_v10  ;;  %v8531_v2 = vadd.f32 %v3993_v19, %v3929_v27  ;;  %v10539_v19 = vld [vmem:[#allocation16_spill] sm:$0xff] }
 0x7fe   : > { %v8517_v37 = vpop.f32.mrf.mxu0  ;;  %5033 = vrot.lane.b32.xlu0 %v8513_v21, %s6236_s14  ;;  %v4002_v23 = vmul.f32 0.5, %v10539_v19 }
 0x7ff   : > { %v3854_v47 = vunpack.c.l.b16 %v3531_v40 }
 0x800   : > { %v3270_v0 = vpop.f32.mrf.mxu3 }
 0x801   : > { %v3864_v15 = vpack.c.b16 %v3854_v47, %v3853_v5  ;;  %v3340_v31 = vmul.f32 0.5, %v3270_v0  ;;  %v10537_v47 = vld [vmem:[#allocation60_spill] sm:$0xff] }
 0x802   : > { %3806 = vmatmul.bf16.gmra.mxu2 %v10533_v57  ;;  %v3405_v57 = vmul.f32 0.5, %v10537_v47 }
 0x803   : > { %v8529_v12 = vadd.f32 %v3404_v55, %v3340_v31 }
 0x805   : > { %10536 = vst [vmem:[#allocation18_spill] sm:$0xff] %v8529_v12  ;;  %v3532_v41 = vpack.c.bf16 %v8529_v12, %v8529_v12  ;;  %v3406_v12 = vmul.f32 0.5, %v10541_v46  ;;  %v3697_v46 = vpop.f32.mrf.mxu1 }
 0x806   : > { %v8525_v33 = vpop.f32.mrf.mxu0  ;;  %5031 = vrot.lane.b32.xlu1 %v8470_v50, %s6236_s14 }
 0x807   : > { %v3855_v31 = vunpack.c.l.b16 %v3532_v41 }
 0x808   : > { %v3272_v40 = vpop.f32.mrf.mxu3 }
 0x809   : > { %v3341_v5 = vmul.f32 0.5, %v3272_v40 }
 0x80a   : > { %4911 = vrot.lane.b32.xlu2 %v8531_v2, %s6235_s13 }
 0x80b   : > { %v8538_v0 = vadd.f32 %v3405_v57, %v3341_v5 }
 0x80d   : > { %10538 = vst [vmem:[#allocation8_spill] sm:$0xff] %v8538_v0  ;;  %v3533_v14 = vpack.c.bf16 %v8538_v0, %v8538_v0  ;;  %v10542_v0 = vld [vmem:[#allocation58_spill] sm:$0xff] }
 0x80e   : > { %v3628_v11 = vpop.f32.mrf.mxu0  ;;  %v3407_v20 = vmul.f32 0.5, %v10542_v0  ;;  %v4171_v0 = vsel %vm4116_vm1, %v8513_v21, -inf }
 0x80f   : > { %v3856_v55 = vunpack.c.l.b16 %v3533_v14  ;;  %v3938_v27 = vmul.f32 0.5, %v3628_v11 }
 0x810   : > { %v3275_v40 = vpop.f32.mrf.mxu3 }
 0x811   : > { %v8543_v36 = vadd.f32 %v4002_v23, %v3938_v27  ;;  %v3865_v47 = vpack.c.b16 %v3856_v55, %v3855_v31  ;;  %v3342_v35 = vmul.f32 0.5, %v3275_v40  ;;  %v10543_v55 = vld [vmem:[#allocation10_spill] sm:$0xff] }
 0x812   : > { %3811 = vmatmul.bf16.gmra.mxu2 %v10540_v26  ;;  %v10545_v27 = vld [vmem:[#allocation38_spill] sm:$0xff] }
 0x813   : > { %v8547_v5 = vadd.f32 %v3406_v12, %v3342_v35  ;;  %v3943_v35 = vmul.f32 0.5, %v3697_v46  ;;  %v3930_v12 = vmul.f32 0.5, %v8430_v16  ;;  %v3994_v19 = vmul.f32 0.5, %v10545_v27 }
 0x815   : > { %v3534_v41 = vpack.c.bf16 %v8547_v5, %v8547_v5 }
 0x817   : > { %v3857_v11 = vunpack.c.l.b16 %v3534_v41  ;;  %v10546_v41 = vpack.c.b16 %v8492_v30, %v8490_v3  ;;  %v10548_v3 = vpack.c.b16 %v8434_v1, %v8432_v59  ;;  %v3700_v30 = vpop.f32.mrf.mxu1  ;;  %v10552_v1 = vld [vmem:[#allocation54_spill] sm:$0xff] }
 0x818   : > { %v3277_v57 = vpop.f32.mrf.mxu3 }
 0x819   : > { %v3343_v49 = vmul.f32 0.5, %v3277_v57  ;;  %v8564_v57 = vadd.f32 %v3994_v19, %v3930_v12 }
 0x81b   : > { %v8552_v14 = vadd.f32 %v3407_v20, %v3343_v49  ;;  %v10544_v20 = vld [vmem:[#allocation40_spill] sm:$0xff]  ;;  %v4135_v16 = vsel %vm4116_vm1, %v8564_v57, -inf }
 0x81c   : > { %v4007_v49 = vmul.f32 0.5, %v10544_v20  ;;  %v10554_v20 = vld [vmem:[#allocation68_spill] sm:$0xff] }
 0x81d   : > { %v3535_v23 = vpack.c.bf16 %v8552_v14, %v8552_v14 }
 0x81e   : > { %v8562_v40 = vadd.f32 %v4007_v49, %v3943_v35  ;;  %v3933_v35 = vmul.f32 0.5, %v8472_v22  ;;  %v3997_v49 = vmul.f32 0.5, %v10554_v20  ;;  %v10560_v20 = vld [vmem:[#allocation74_spill] sm:$0xff] }
 0x81f   : > { %v3858_v31 = vunpack.c.l.b16 %v3535_v23  ;;  %v4132_v23 = vsel %vm4116_vm1, %v8531_v2, -inf }
 0x820   : > { %v8618_v27 = vadd.f32 %v3997_v49, %v3933_v35  ;;  %v4000_v49 = vmul.f32 0.5, %v10560_v20  ;;  %v4041_v20 = vmul.f32 0.5, %v8426_v29 }
 0x821   : > { %v3866_v26 = vpack.c.b16 %v3858_v31, %v3857_v11  ;;  %v10549_v11 = vpack.c.b16 %v8411_v6, %v8404_v61  ;;  %v3931_v31 = vmul.f32 0.5, %v8442_v18  ;;  %v4009_v61 = vmul.f32 0.5, %v10552_v1 }
 0x822   : > { %3816 = vmatmul.bf16.gmra.mxu2 %v10543_v55 }
 0x823   : > { %3875 = vmatpush.bf16.msra.mxu3 %v3866_v26  ;;  %v10550_v26 = vpack.c.b16 %v8366_v17, %v8360_v53  ;;  %v3944_v53 = vmul.f32 0.5, %v3700_v30 }
 0x827   : > { %3876 = vmatpush.bf16.msra.mxu3 %v3865_v47  ;;  %v4174_v47 = vsel %vm4116_vm1, %v8562_v40, -inf }
 0x828   : > { %4172 = vmax.xlane.f32.xlu0 %v4171_v0 }
 0x82b   : > { %3877 = vmatpush.bf16.msra.mxu3 %v3864_v15  ;;  %v10547_v15 = vpack.c.b16 %v8457_v62, %v8455_v25  ;;  %v3702_v25 = vpop.f32.mrf.mxu1 }
 0x82c   : > { %v3945_v59 = vmul.f32 0.5, %v3702_v25  ;;  %v10558_v25 = vld [vmem:[#allocation70_spill] sm:$0xff] }
 0x82e   : > { %v8598_v6 = vadd.f32 %v4009_v61, %v3945_v59  ;;  %v4012_v59 = vmul.f32 0.5, %v10558_v25  ;;  %v10559_v61 = vld [vmem:[#allocation57_spill] sm:$0xff]  ;;  %v10562_v25 = vld [vmem:[#allocation75_spill] sm:$0xff] }
 0x82f   : > { %3878 = vmatpush.bf16.msra.mxu3 %v10546_v41  ;;  %v4144_v41 = vsel %vm4116_vm1, %v8618_v27, -inf }
 0x830   : > { %4136 = vmax.xlane.f32.xlu0 %v4135_v16  ;;  %4175 = vmax.xlane.f32.xlu1 %v4174_v47  ;;  %v4180_v12 = vsel %vm4116_vm1, %v8598_v6, -inf  ;;  %v3932_v47 = vmul.f32 0.5, %v8453_v48  ;;  %v6168_v48 = vld [vmem:[%s6510_s12 + $0xe8] sm:$0xff] }
 0x832   : > { %3821 = vmatmul.bf16.gmra.mxu2 %v8145_v38  ;;  %v10551_v38 = vld [vmem:[#allocation65_spill] sm:$0xff] }
 0x833   : > { %4133 = vmax.xlane.f32.xlu2 %v4132_v23  ;;  %3879 = vmatpush.bf16.msra.mxu3 %v10547_v15  ;;  %v3995_v55 = vmul.f32 0.5, %v10551_v38  ;;  %v3705_v0 = vpop.f32.mrf.mxu1  ;;  %v10556_v15 = vld [vmem:[#allocation66_spill] sm:$0xff] }
 0x835   : > { %v8590_v46 = vadd.f32 %v3995_v55, %v3931_v31  ;;  %v10557_v31 = vld [vmem:[#allocation69_spill] sm:$0xff] }
 0x837   : > { %3880 = vmatpush.bf16.msra.mxu3 %v10548_v3  ;;  %v3996_v3 = vmul.f32 0.5, %v10556_v15 }
 0x839   : > { %v8632_v30 = vadd.f32 %v3996_v3, %v3932_v47  ;;  %v10561_v47 = vld [vmem:[#allocation73_spill] sm:$0xff] }
 0x83b   : > { %3881 = vmatpush.bf16.msra.mxu3 %v10549_v11  ;;  %v3707_v23 = vpop.f32.mrf.mxu1  ;;  %v3934_v11 = vmul.f32 0.5, %v8488_v56  ;;  %v4141_v35 = vsel %vm4116_vm1, %v8632_v30, -inf }
 0x83c   : > { %v3947_v56 = vmul.f32 0.5, %v3707_v23  ;;  %v4013_v23 = vmul.f32 0.5, %v10561_v47 }
 0x83f   : > { %3882 = vmatpush.bf16.msra.mxu3 %v10550_v26  ;;  %v3998_v26 = vmul.f32 0.5, %v10557_v31 }
 0x842   : > { %3883 = vmatmul.bf16.vlgmr.msra.gmra.mxu3 %v8174_v58  ;;  %v10553_v58 = vld [vmem:[#allocation64_spill] sm:$0xff] }
 0x843   : > { %v4008_v17 = vmul.f32 0.5, %v10553_v58  ;;  %v3710_v38 = vpop.f32.mrf.mxu1 }
 0x844   : > { %4915 = vrot.lane.b32.xlu0 %v8590_v46, %s6235_s13  ;;  %v3948_v55 = vmul.f32 0.5, %v3710_v38  ;;  %v4038_v38 = vmul.f32 0.5, %v8373_v43 }
 0x845   : > { %v8605_v18 = vadd.f32 %v4008_v17, %v3944_v53  ;;  %v4011_v53 = vmul.f32 0.5, %v10559_v61  ;;  %v6169_v17 = vld [vmem:[%s6510_s12 + $0xf0] sm:$0xff] }
 0x846   : > { %v8644_v1 = vadd.f32 %v4012_v59, %v3948_v55  ;;  %v3937_v55 = vmul.f32 0.5, %v8525_v33  ;;  %v4001_v59 = vmul.f32 0.5, %v10562_v25 }
 0x847   : > { %v4177_v62 = vsel %vm4116_vm1, %v8605_v18, -inf  ;;  %v8651_v58 = vadd.f32 %v4011_v53, %v3947_v56 }
 0x848   : > { %v8687_v61 = vadd.f32 %v4001_v59, %v3937_v55  ;;  %v3630_v55 = vpop.f32.mrf.mxu0 }
 0x849   : > { %4913 = vrot.lane.b32.xlu1 %v8564_v57, %s6235_s13  ;;  %v4186_v47 = vsel %vm4116_vm1, %v8651_v58, -inf  ;;  %v3939_v59 = vmul.f32 0.5, %v3630_v55 }
 0x84b   : > { %5035 = vrot.lane.b32.xlu2 %v8562_v40, %s6236_s14 }
 0x84c   : > { %5039 = vrot.lane.b32.xlu0 %v8598_v6, %s6236_s14 }
 0x851   : > { %5037 = vrot.lane.b32.xlu1 %v8605_v18, %s6236_s14 }
 0x852   : > { %3888 = vmatmul.bf16.gmra.mxu3 %v8204_v39  ;;  %v3946_v39 = vmul.f32 0.5, %v3705_v0  ;;  %v4189_v0 = vsel %vm4116_vm1, %v8644_v1, -inf }
 0x862   : > { %3893 = vmatmul.bf16.gmra.mxu3 %v8232_v7  ;;  %v4138_v7 = vsel %vm4116_vm1, %v8590_v46, -inf }
 0x872   : > { %3898 = vmatmul.bf16.gmra.mxu3 %v8254_v60  ;;  %v10555_v60 = vld [vmem:[#allocation67_spill] sm:$0xff] }
 0x873   : > { %v4010_v19 = vmul.f32 0.5, %v10555_v60  ;;  %v3712_v60 = vpop.f32.mrf.mxu1 }
 0x874   : > { %4178 = vmax.xlane.f32.xlu2 %v4177_v62  ;;  %v6170_v62 = vld [vmem:[%s6510_s12 + $0xf8] sm:$0xff]  ;;  %s6237_s12 = smov 80  }
 0x875   : > { %v8625_v22 = vadd.f32 %v4010_v19, %v3946_v39 }
 0x876   : > { %4181 = vmax.xlane.f32.xlu0 %v4180_v12  ;;  %v3936_v12 = vmul.f32 0.5, %v8517_v37 }
 0x877   : > { %v4183_v16 = vsel %vm4116_vm1, %v8625_v22, -inf }
 0x87b   : > { %4139 = vmax.xlane.f32.xlu1 %v4138_v7  ;;  %v8665_v7 = vadd.f32 %v4000_v49, %v3936_v12  ;;  %v3715_v3 = vpop.f32.mrf.mxu1 }
 0x87d   : > { %v4153_v19 = vsel %vm4116_vm1, %v8665_v7, -inf }
 0x87e   : > { %4145 = vmax.xlane.f32.xlu0 %v4144_v41  ;;  %v3949_v41 = vmul.f32 0.5, %v3712_v60  ;;  %v3950_v60 = vmul.f32 0.5, %v3715_v3 }
 0x880   : > { %v8676_v15 = vadd.f32 %v4013_v23, %v3949_v41 }
 0x882   : > { %3903 = vmatmul.bf16.gmra.mxu3 %v8276_v63  ;;  %v8638_v63 = vadd.f32 %v3998_v26, %v3934_v11  ;;  %v4192_v31 = vsel %vm4116_vm1, %v8676_v15, -inf }
 0x883   : > { %4184 = vmax.xlane.f32.xlu1 %v4183_v16  ;;  %v3717_v53 = vpop.f32.mrf.mxu1 }
 0x884   : > { %v4147_v16 = vsel %vm4116_vm1, %v8638_v63, -inf }
 0x88b   : > { %v3720_v25 = vpop.f32.mrf.mxu1 }
 0x88c   : > { %4917 = vrot.lane.b32.xlu2 %v8632_v30, %s6235_s13 }
 0x892   : > { %4921 = vrot.lane.b32.xlu0 %v8638_v63, %s6235_s13  ;;  %3908 = vmatmul.bf16.gmra.mxu3 %v6168_v48 }
 0x89a   : > { %5045 = vrot.lane.b32.xlu0 %v8644_v1, %s6236_s14 }
 0x89c   : > { %4919 = vrot.lane.b32.xlu1 %v8618_v27, %s6235_s13 }
 0x8a2   : > { %3913 = vmatmul.bf16.gmra.mxu3 %v6169_v17  ;;  %v3951_v17 = vmul.f32 0.5, %v3717_v53 }
 0x8a4   : > { %5043 = vrot.lane.b32.xlu1 %v8651_v58, %s6236_s14 }
 0x8b2   : > { %3918 = vmatmul.bf16.gmra.mxu3 %v6170_v62  ;;  %v10563_v62 = vld [vmem:[#allocation62_spill] sm:$0xff] }
 0x8b5   : > { %4142 = vmax.xlane.f32.xlu2 %v4141_v35  ;;  %v4015_v35 = vmul.f32 0.5, %v10563_v62 }
 0x8b7   : > { %v8694_v43 = vadd.f32 %v4015_v35, %v3951_v17  ;;  %v10565_v17 = vld [vmem:[#allocation15_spill] sm:$0xff] }
 0x8b8   : > { %v4003_v62 = vmul.f32 0.5, %v10565_v17 }
 0x8b9   : > { %v4198_v53 = vsel %vm4116_vm1, %v8694_v43, -inf }
 0x8ba   : > { %v8724_v35 = vadd.f32 %v4003_v62, %v3939_v59 }
 0x8c4   : > { %4190 = vmax.xlane.f32.xlu0 %v4189_v0 }
 0x8c5   : > { %v8663_v39 = vpop.f32.mrf.mxu3 }
 0x8cc   : > { %4154 = vmax.xlane.f32.xlu0 %v4153_v19  ;;  %v10564_v19 = vld [vmem:[#allocation76_spill] sm:$0xff] }
 0x8cd   : > { %5041 = vrot.lane.b32.xlu2 %v8625_v22, %s6236_s14  ;;  %v8671_v37 = vpop.f32.mrf.mxu3  ;;  %v4014_v41 = vmul.f32 0.5, %v10564_v19  ;;  %v4047_v19 = vmul.f32 0.5, %v8511_v10  ;;  %v4018_v10 = vmul.f32 0.5, %v8142_v45 }
 0x8ce   : > { %4148 = vmax.xlane.f32.xlu1 %v4147_v16 }
 0x8cf   : > { %v8704_v16 = vadd.f32 %v4014_v41, %v3950_v60  ;;  %v3952_v41 = vmul.f32 0.5, %v3720_v25 }
 0x8d5   : > { %v3889_v11 = vpop.f32.mrf.mxu3 }
 0x8d6   : > { %v3974_v26 = vmul.f32 0.5, %v3889_v11  ;;  %4193 = vmax.xlane.f32.xlu1 %v4192_v31 }
 0x8d8   : > { %v8681_v48 = vadd.f32 %v4038_v38, %v3974_v26  ;;  %v4044_v26 = vmul.f32 0.5, %v8466_v24  ;;  %v4162_v24 = vsel %vm4116_vm1, %v8724_v35, -inf }
 0x8dd   : > { %v8685_v56 = vpop.f32.mrf.mxu3 }
 0x8e0   : > { %4927 = vrot.lane.b32.xlu0 %v8687_v61, %s6235_s13 }
 0x8e5   : > { %v8692_v12 = vpop.f32.mrf.mxu3 }
 0x8e8   : > { %5051 = vrot.lane.b32.xlu0 %v8694_v43, %s6236_s14 }
 0x8ed   : > { %v3896_v33 = vpop.f32.mrf.mxu3 }
 0x8ee   : > { %v3977_v0 = vmul.f32 0.5, %v3896_v33 }
 0x8ef   : > { %4925 = vrot.lane.b32.xlu1 %v8665_v7, %s6235_s13 }
 0x8f0   : > { %v8701_v49 = vadd.f32 %v4041_v20, %v3977_v0  ;;  %v3722_v0 = vpop.f32.mrf.mxu1 }
 0x8f5   : > { %v8708_v23 = vpop.f32.mrf.mxu3 }
 0x8f6   : > { %4187 = vmax.xlane.f32.xlu2 %v4186_v47 }
 0x8f7   : > { %5049 = vrot.lane.b32.xlu1 %v8704_v16, %s6236_s14 }
 0x8f8   : > { %v3725_v55 = vpop.f32.mrf.mxu1 }
 0x8fd   : > { %v8712_v29 = vpop.f32.mrf.mxu3 }
 0x905   : > { %v3904_v11 = vpop.f32.mrf.mxu3 }
 0x906   : > { %v3980_v31 = vmul.f32 0.5, %v3904_v11  ;;  %v4156_v11 = vsel %vm4116_vm1, %v8687_v61, -inf }
 0x908   : > { %v8715_v3 = vadd.f32 %v4044_v26, %v3980_v31  ;;  %v4016_v31 = vmul.f32 0.5, %v8089_v9 }
 0x90a   : > { %v8736_v26 = vadd.f32 %v4016_v31, %v3952_v41  ;;  %v8754_v41 = vpop.permute.xlu2 %4901  ;;  %v3953_v31 = vmul.f32 0.5, %v3722_v0 }
 0x90b   : > { %10568 = vst [vmem:[#allocation28_spill] sm:$0xff] %v8754_v41  ;;  %v4019_v41 = vmul.f32 0.5, %v8158_v42 }
 0x90c   : > { %v4201_v17 = vsel %vm4116_vm1, %v8736_v26, -inf }
 0x90d   : > { %v8717_v38 = vpop.f32.mrf.mxu3 }
 0x90e   : > { %4923 = vrot.lane.b32.xlu2 %v8505_v8, %s6235_s13 }
 0x912   : > { %4199 = vmax.xlane.f32.xlu0 %v4198_v53  ;;  %v3954_v53 = vmul.f32 0.5, %v3725_v55  ;;  %v8756_v45 = vpop.permute.xlu2 %5029  ;;  %v4017_v55 = vmul.f32 0.5, %v8108_v54 }
 0x913   : > { %10569 = vst [vmem:[#allocation25_spill] sm:$0xff] %v8756_v45 }
 0x914   : > { %v8743_v25 = vadd.f32 %v4018_v10, %v3954_v53  ;;  %v8763_v53 = vadd.f32 %v4017_v55, %v3953_v31 }
 0x915   : > { %v8726_v33 = vpop.f32.mrf.mxu3 }
 0x91a   : > { %4163 = vmax.xlane.f32.xlu0 %v4162_v24 }
 0x91d   : > { %v3911_v20 = vpop.f32.mrf.mxu3 }
 0x91e   : > { %v3983_v60 = vmul.f32 0.5, %v3911_v20  ;;  %v4050_v20 = vmul.f32 0.5, %v8547_v5  ;;  %v4119_v5 = vpop.xlane.xlu0 %4118 }
 0x920   : > { %v8731_v47 = vadd.f32 %v4047_v19, %v3983_v60  ;;  %v4150_v60 = vsel %vm4116_vm1, %v8505_v8, -inf }
 0x921   : > { %4157 = vmax.xlane.f32.xlu1 %v4156_v11  ;;  %v8760_v11 = vpop.permute.xlu1 %4905 }
 0x922   : > { %10566 = vst [vmem:[#allocation24_spill] sm:$0xff] %v8731_v47 }
 0x923   : > { %10570 = vst [vmem:[#allocation29_spill] sm:$0xff] %v8760_v11  ;;  %v8787_v11 = vsub.f32 %v8343_v32, %v4119_v5  ;;  %v3787_v5 = vpop.f32.mrf.mxu2 }
 0x925   : > { %v8738_v59 = vpop.f32.mrf.mxu3  ;;  %10574 = vst [vmem:[#allocation31_spill] sm:$0xff] %v8787_v11 }
 0x926   : > { %v8775_v0 = vpop.permute.xlu0 %4903 }
 0x927   : > { %10573 = vst [vmem:[#allocation26_spill] sm:$0xff] %v8775_v0  ;;  %v3956_v0 = vmul.f32 0.5, %v3787_v5 }
 0x929   : > { %4202 = vmax.xlane.f32.xlu1 %v4201_v17  ;;  %v8767_v17 = vpop.permute.xlu2 %4907  ;;  %v4125_v10 = vpop.xlane.xlu1 %4124 }
 0x92a   : > { %10571 = vst [vmem:[#allocation48_spill] sm:$0xff] %v8767_v17 }
 0x92d   : > { %v8745_v62 = vpop.f32.mrf.mxu3 }
 0x92e   : > { %5057 = vrot.lane.b32.xlu0 %v8743_v25, %s6236_s14 }
 0x931   : > { %v4170_v54 = vpop.xlane.xlu2 %4169 }
 0x935   : > { %v3919_v9 = vpop.f32.mrf.mxu3 }
 0x936   : > { %v3986_v24 = vmul.f32 0.5, %v3919_v9  ;;  %v8770_v9 = vsub.f32 %v8368_v34, %v4125_v10  ;;  %v8783_v34 = vpop.xlane.xlu0 %4121 }
 0x937   : > { %4151 = vmax.xlane.f32.xlu2 %v4150_v60  ;;  %v4207_v60 = vsel %vm4116_vm1, %v8743_v25, -inf }
 0x938   : > { %v8752_v19 = vadd.f32 %v4050_v20, %v3986_v24  ;;  %10572 = vst [vmem:[#allocation27_spill] sm:$0xff] %v8770_v9  ;;  %v4377_v24 = vmul.f32 1.442695, %v8770_v9  ;;  %v8778_v20 = vsub.f32 %v8470_v50, %v4170_v54  ;;  %v8791_v54 = vpop.xlane.xlu1 %4166  ;;  %v4373_v9 = vmul.f32 1.442695, %v8787_v11 }
 0x93a   : > { %10567 = vst [vmem:[#allocation51_spill] sm:$0xff] %v8752_v19  ;;  %5849 = vpow2.f32 %v4377_v24  ;;  %v4407_v31 = vmul.f32 1.442695, %v8778_v20 }
 0x93c   : > { %5851 = vpow2.f32 %v4407_v31 }
 0x93d   : > { %5853 = vpow2.f32 %v4373_v9 }
 0x93e   : > { %v8789_v24 = vpop.permute.xlu0 %4909 }
 0x93f   : > { %10575 = vst [vmem:[#allocation30_spill] sm:$0xff] %v8789_v24 }
 0x940   : > { %v5850_v55 = vpop.eup %5849  ;;  %v4128_v31 = vpop.xlane.xlu1 %4127 }
 0x941   : > { %v4507_v10 = vsel %vm4116_vm1, %v5850_v55, 0.0  ;;  %v3727_v55 = vpop.f32.mrf.mxu1 }
 0x942   : > { %4931 = vrot.lane.b32.xlu1 %v8724_v35, %s6235_s13  ;;  %v5852_v50 = vpop.eup %5851  ;;  %v3955_v32 = vmul.f32 0.5, %v3727_v55 }
 0x943   : > { %v5854_v45 = vpop.eup %5853 }
 0x944   : > { %v4501_v24 = vsel %vm4116_vm1, %v5854_v45, 0.0  ;;  %v8803_v9 = vadd.f32 %v4019_v41, %v3955_v32  ;;  %v8817_v41 = vpop.xlane.xlu2 %4130 }
 0x946   : > { %v8795_v17 = vpop.permute.xlu0 %5033  ;;  %v4210_v42 = vsel %vm4116_vm1, %v8803_v9, -inf }
 0x947   : > { %10576 = vst [vmem:[#allocation33_spill] sm:$0xff] %v8795_v17  ;;  %v4020_v17 = vmul.f32 0.5, %v8185_v13 }
 0x94a   : > { %5055 = vrot.lane.b32.xlu1 %v8763_v53, %s6236_s14 }
 0x94e   : > { %v4173_v11 = vpop.xlane.xlu0 %4172 }
 0x94f   : > { %5047 = vrot.lane.b32.xlu2 %v8676_v15, %s6236_s14  ;;  %v8811_v45 = vsub.f32 %v8513_v21, %v4173_v11 }
 0x956   : > { %v4137_v13 = vpop.xlane.xlu0 %4136 }
 0x958   : > { %4208 = vmax.xlane.f32.xlu0 %v4207_v60  ;;  %v4552_v60 = vsel %vm4116_vm1, %v5852_v50, 0.0 }
 0x960   : > { %4508 = vadd.xlane.f32.xlu0 %v4507_v10  ;;  %v8798_v10 = vsub.f32 %v8406_v44, %v4128_v31  ;;  %v8808_v44 = vadd.f32 %v4020_v17, %v3956_v0  ;;  %v8821_v17 = vsub.f32 %v8564_v57, %v4137_v13  ;;  %v8825_v0 = vpop.permute.xlu2 %4911  ;;  %v3789_v13 = vpop.f32.mrf.mxu2 }
 0x961   : > { %10579 = vst [vmem:[#allocation34_spill] sm:$0xff] %v8825_v0 }
 0x962   : > { %10577 = vst [vmem:[#allocation32_spill] sm:$0xff] %v8798_v10  ;;  %v4379_v50 = vmul.f32 1.442695, %v8798_v10  ;;  %v4385_v11 = vmul.f32 1.442695, %v8821_v17 }
 0x963   : > { %10578 = vst [vmem:[#allocation35_spill] sm:$0xff] %v8821_v17 }
 0x964   : > { %5855 = vpow2.f32 %v4379_v50 }
 0x968   : > { %4553 = vadd.xlane.f32.xlu0 %v4552_v60  ;;  %v4195_v60 = vsel %vm4116_vm1, %v8704_v16, -inf  ;;  %v4134_v5 = vpop.xlane.xlu2 %4133 }
 0x96a   : > { %v5856_v31 = vpop.eup %5855 }
 0x96b   : > { %v4510_v21 = vsel %vm4116_vm1, %v5856_v31, 0.0 }
 0x974   : > { %4502 = vadd.xlane.f32.xlu1 %v4501_v24  ;;  %v4409_v24 = vmul.f32 1.442695, %v8811_v45 }
 0x976   : > { %5857 = vpow2.f32 %v4409_v24  ;;  %v8835_v24 = vpop.permute.xlu2 %5035 }
 0x977   : > { %5859 = vpow2.f32 %v4385_v11  ;;  %10581 = vst [vmem:[#allocation36_spill] sm:$0xff] %v8835_v24  ;;  %v3792_v11 = vpop.f32.mrf.mxu2 }
 0x978   : > { %4196 = vmax.xlane.f32.xlu2 %v4195_v60  ;;  %v8832_v60 = vsub.f32 %v8531_v2, %v4134_v5  ;;  %v4021_v2 = vmul.f32 0.5, %v8196_v52  ;;  %v3958_v5 = vmul.f32 0.5, %v3792_v11  ;;  %v4023_v11 = vmul.f32 0.5, %v8227_v28 }
 0x97a   : > { %10580 = vst [vmem:[#allocation37_spill] sm:$0xff] %v8832_v60 }
 0x97c   : > { %4211 = vmax.xlane.f32.xlu1 %v4210_v42  ;;  %5157 = vrot.lane.b32.xlu0 %v8808_v44, %s6237_s12  ;;  %v5858_v55 = vpop.eup %5857  ;;  %v4383_v42 = vmul.f32 1.442695, %v8832_v60  ;;  %v4022_v60 = vmul.f32 0.5, %v8218_v51 }
 0x97d   : > { %v4555_v32 = vsel %vm4116_vm1, %v5858_v55, 0.0  ;;  %v5860_v50 = vpop.eup %5859 }
 0x97e   : > { %v4519_v57 = vsel %vm4116_vm1, %v5860_v50, 0.0  ;;  %5861 = vpow2.f32 %v4383_v42  ;;  %v4179_v31 = vpop.xlane.xlu2 %4178  ;;  %v8846_v42 = vadd.f32 %v4022_v60, %v3958_v5 }
 0x97f   : > { %v8838_v55 = vsub.f32 %v8605_v18, %v4179_v31  ;;  %v4159_v31 = vsel %vm4116_vm1, %v8543_v36, -inf  ;;  %v3794_v60 = vpop.f32.mrf.mxu2 }
 0x981   : > { %v4413_v50 = vmul.f32 1.442695, %v8838_v55 }
 0x983   : > { %5863 = vpow2.f32 %v4413_v50 }
 0x984   : > { %4511 = vadd.xlane.f32.xlu1 %v4510_v21  ;;  %v5862_v21 = vpop.eup %5861 }
 0x985   : > { %v4516_v0 = vsel %vm4116_vm1, %v5862_v21, 0.0  ;;  %v3959_v21 = vmul.f32 0.5, %v3794_v60 }
 0x98c   : > { %4556 = vadd.xlane.f32.xlu1 %v4555_v32  ;;  %v3957_v32 = vmul.f32 0.5, %v3789_v13  ;;  %v8853_v13 = vpop.permute.xlu0 %4915 }
 0x98d   : > { %10582 = vst [vmem:[#allocation39_spill] sm:$0xff] %v8853_v13 }
 0x990   : > { %4929 = vrot.lane.b32.xlu2 %v8543_v36, %s6235_s13  ;;  %s5467_s13 = scalar_lea.sflag [#allocation3], %s263_s19 }
 0x994   : > { %4520 = vadd.xlane.f32.xlu1 %v4519_v57  ;;  %v8843_v57 = vadd.f32 %v4021_v2, %v3957_v32  ;;  %v8857_v51 = vpop.permute.xlu0 %5039  ;;  %v8860_v32 = vadd.f32 %v4023_v11, %v3959_v21 }
 0x995   : > { %10583 = vst [vmem:[#allocation41_spill] sm:$0xff] %v8857_v51 }
 0x996   : > { %v4216_v18 = vsel %vm4116_vm1, %v8843_v57, -inf }
 0x99c   : > { %v4182_v2 = vpop.xlane.xlu0 %4181 }
 0x99d   : > { %v8865_v5 = vsub.f32 %v8598_v6, %v4182_v2 }
 0x99f   : > { %v4415_v50 = vmul.f32 1.442695, %v8865_v5 }
 0x9a1   : > { %5865 = vpow2.f32 %v4415_v50 }
 0x9a6   : > { %4517 = vadd.xlane.f32.xlu0 %v4516_v0  ;;  %v5864_v0 = vpop.eup %5863 }
 0x9a7   : > { %v4561_v52 = vsel %vm4116_vm1, %v5864_v0, 0.0  ;;  %v8870_v0 = vpop.permute.xlu2 %4917  ;;  %v5866_v6 = vpop.eup %5865 }
 0x9a8   : > { %10584 = vst [vmem:[#allocation44_spill] sm:$0xff] %v8870_v0  ;;  %v4564_v21 = vsel %vm4116_vm1, %v5866_v6, 0.0 }
 0x9ad   : > { %5161 = vrot.lane.b32.xlu1 %v8846_v42, %s6237_s12 }
 0x9ae   : > { %4217 = vmax.xlane.f32.xlu0 %v4216_v18  ;;  %v4146_v18 = vpop.xlane.xlu0 %4145 }
 0x9af   : > { %v8873_v28 = vsub.f32 %v8618_v27, %v4146_v18  ;;  %v4143_v60 = vpop.xlane.xlu2 %4142 }
 0x9b0   : > { %v8880_v11 = vsub.f32 %v8632_v30, %v4143_v60 }
 0x9b1   : > { %10585 = vst [vmem:[#allocation43_spill] sm:$0xff] %v8873_v28 }
 0x9b2   : > { %10586 = vst [vmem:[#allocation71_spill] sm:$0xff] %v8880_v11  ;;  %v4389_v50 = vmul.f32 1.442695, %v8880_v11 }
 0x9b6   : > { %4562 = vadd.xlane.f32.xlu0 %v4561_v52  ;;  %v4219_v52 = vsel %vm4116_vm1, %v8846_v42, -inf }
 0x9b7   : > { %v8884_v18 = vpop.permute.xlu2 %5041 }
 0x9b8   : > { %10587 = vst [vmem:[#allocation56_spill] sm:$0xff] %v8884_v18 }
 0x9b9   : > { %4160 = vmax.xlane.f32.xlu2 %v4159_v31  ;;  %v4391_v31 = vmul.f32 1.442695, %v8873_v28 }
 0x9bb   : > { %5867 = vpow2.f32 %v4391_v31  ;;  %v8888_v31 = vsub.f32 %v8382_v4, %v8783_v34  ;;  %v4204_v4 = vsel %vm4116_vm1, %v8763_v53, -inf }
 0x9bc   : > { %5869 = vpow2.f32 %v4389_v50 }
 0x9bd   : > { %10588 = vst [vmem:[#allocation42_spill] sm:$0xff] %v8888_v31 }
 0x9bf   : > { %v4188_v0 = vpop.xlane.xlu2 %4187 }
 0x9c0   : > { %v8891_v6 = vsub.f32 %v8651_v58, %v4188_v0 }
 0x9c1   : > { %v5868_v2 = vpop.eup %5867 }
 0x9c2   : > { %v4528_v27 = vsel %vm4116_vm1, %v5868_v2, 0.0  ;;  %v5870_v51 = vpop.eup %5869  ;;  %v10589_v2 = vld [vmem:[#allocation13_spill] sm:$0xff]  ;;  %v4419_v50 = vmul.f32 1.442695, %v8891_v6 }
 0x9c3   : > { %v4525_v60 = vsel %vm4116_vm1, %v5870_v51, 0.0  ;;  %v4024_v11 = vmul.f32 0.5, %v10589_v2  ;;  %v10590_v51 = vld [vmem:[#allocation19_spill] sm:$0xff] }
 0x9c4   : > { %v4025_v0 = vmul.f32 0.5, %v10590_v51 }
 0x9ca   : > { %5163 = vrot.lane.b32.xlu0 %v8860_v32, %s6237_s12 }
 0x9d1   : > { %5053 = vrot.lane.b32.xlu2 %v8736_v26, %s6236_s14 }
 0x9d7   : > { %4220 = vmax.xlane.f32.xlu1 %v4219_v52  ;;  %v3797_v52 = vpop.f32.mrf.mxu2 }
 0x9d8   : > { %v3960_v30 = vmul.f32 0.5, %v3797_v52 }
 0x9df   : > { %4565 = vadd.xlane.f32.xlu1 %v4564_v21  ;;  %v4375_v21 = vmul.f32 1.442695, %v8888_v31  ;;  %v3799_v28 = vpop.f32.mrf.mxu2 }
 0x9e0   : > { %v3961_v34 = vmul.f32 0.5, %v3799_v28 }
 0x9e1   : > { %5871 = vpow2.f32 %v4375_v21 }
 0x9e2   : > { %5873 = vpow2.f32 %v4419_v50 }
 0x9e7   : > { %4529 = vadd.xlane.f32.xlu1 %v4528_v27  ;;  %v8897_v27 = vadd.f32 %v4024_v11, %v3960_v30  ;;  %v5872_v52 = vpop.eup %5871  ;;  %v8910_v30 = vpop.permute.xlu0 %4921 }
 0x9e8   : > { %v5874_v2 = vpop.eup %5873  ;;  %v4504_v11 = vsel %vm4116_vm1, %v5872_v52, 0.0  ;;  %10591 = vst [vmem:[#allocation72_spill] sm:$0xff] %v8910_v30  ;;  %v3802_v21 = vpop.f32.mrf.mxu2 }
 0x9e9   : > { %v4225_v58 = vsel %vm4116_vm1, %v8897_v27, -inf  ;;  %v4570_v28 = vsel %vm4116_vm1, %v5874_v2, 0.0  ;;  %v3962_v50 = vmul.f32 0.5, %v3802_v21  ;;  %v8924_v2 = vpop.permute.xlu2 %4923 }
 0x9f0   : > { %v3804_v13 = vpop.f32.mrf.mxu2 }
 0x9f4   : > { %4526 = vadd.xlane.f32.xlu0 %v4525_v60  ;;  %v8904_v60 = vadd.f32 %v4025_v0, %v3961_v34 }
 0x9fa   : > { %4205 = vmax.xlane.f32.xlu2 %v4204_v4  ;;  %v8912_v4 = vpop.permute.xlu0 %5045 }
 0x9fb   : > { %10592 = vst [vmem:[#allocation63_spill] sm:$0xff] %v8912_v4 }
 0x9fc   : > { %4226 = vmax.xlane.f32.xlu0 %v4225_v58  ;;  %v10593_v58 = vld [vmem:[#allocation17_spill] sm:$0xff] }
 0x9fd   : > { %v4026_v51 = vmul.f32 0.5, %v10593_v58  ;;  %v4152_v58 = vpop.xlane.xlu2 %4151 }
 0x9ff   : > { %v8915_v34 = vadd.f32 %v4026_v51, %v3962_v50  ;;  %v4228_v50 = vsel %vm4116_vm1, %v8904_v60, -inf }
 0xa00   : > { %5167 = vrot.lane.b32.xlu1 %v8904_v60, %s6237_s12 }
 0xa02   : > { %4505 = vadd.xlane.f32.xlu2 %v4504_v11  ;;  %v4191_v0 = vpop.xlane.xlu0 %4190 }
 0xa03   : > { %v8922_v52 = vsub.f32 %v8644_v1, %v4191_v0  ;;  %v8934_v1 = vsub.f32 %v8505_v8, %v4152_v58  ;;  %v10594_v0 = vld [vmem:[#allocation53_spill] sm:$0xff] }
 0xa04   : > { %4571 = vadd.xlane.f32.xlu0 %v4570_v28  ;;  %v8938_v18 = vsub.f32 %v10594_v0, %v8791_v54 }
 0xa05   : > { %v4421_v11 = vmul.f32 1.442695, %v8922_v52 }
 0xa07   : > { %5875 = vpow2.f32 %v4421_v11 }
 0xa0a   : > { %v4155_v28 = vpop.xlane.xlu0 %4154 }
 0xa0b   : > { %v8928_v21 = vsub.f32 %v8665_v7, %v4155_v28  ;;  %v4395_v7 = vmul.f32 1.442695, %v8934_v1  ;;  %v4405_v28 = vmul.f32 1.442695, %v8938_v18 }
 0xa0d   : > { %v4397_v51 = vmul.f32 1.442695, %v8928_v21  ;;  %v5876_v4 = vpop.eup %5875 }
 0xa0e   : > { %v4573_v11 = vsel %vm4116_vm1, %v5876_v4, 0.0 }
 0xa0f   : > { %5877 = vpow2.f32 %v4397_v51  ;;  %v10596_v51 = vld [vmem:[#allocation55_spill] sm:$0xff] }
 0xa10   : > { %5879 = vpow2.f32 %v4395_v7  ;;  %v8947_v8 = vsub.f32 %v10596_v51, %v8817_v41  ;;  %v3963_v7 = vmul.f32 0.5, %v3804_v13 }
 0xa11   : > { %5881 = vpow2.f32 %v4405_v28 }
 0xa12   : > { %10597 = vst [vmem:[#allocation60_spill] sm:$0xff] %v8947_v8  ;;  %v4381_v54 = vmul.f32 1.442695, %v8947_v8 }
 0xa14   : > { %5883 = vpow2.f32 %v4381_v54  ;;  %v3807_v54 = vpop.f32.mrf.mxu2 }
 0xa15   : > { %v5878_v17 = vpop.eup %5877 }
 0xa16   : > { %v4537_v58 = vsel %vm4116_vm1, %v5878_v17, 0.0  ;;  %v5880_v0 = vpop.eup %5879  ;;  %v10599_v17 = vld [vmem:[#allocation50_spill] sm:$0xff] }
 0xa17   : > { %v5882_v24 = vpop.eup %5881  ;;  %v4534_v28 = vsel %vm4116_vm1, %v5880_v0, 0.0  ;;  %v4027_v51 = vmul.f32 0.5, %v10599_v17 }
 0xa18   : > { %5169 = vrot.lane.b32.xlu0 %v8915_v34, %s6237_s12  ;;  %v4549_v41 = vsel %vm4116_vm1, %v5882_v24, 0.0 }
 0xa19   : > { %v8960_v10 = vadd.f32 %v4027_v51, %v3963_v7  ;;  %v10600_v7 = vld [vmem:[#allocation47_spill] sm:$0xff] }
 0xa1a   : > { %5059 = vrot.lane.b32.xlu2 %v8803_v9, %s6236_s14  ;;  %s6185_s14 = sshra.s32 %s5482_s25, 4  ;;  %s6186_s14 = int_to_ptr.hbm [resolvable:$true] %s6185_s14 }
 0xa1b   : > { %v4234_v13 = vsel %vm4116_vm1, %v8960_v10, -inf  ;;  %p6192_p0 = scmp.lt.s32.totalorder %s6186_s14, %s10059_s6 }
 0xa2a   : > { %4229 = vmax.xlane.f32.xlu1 %v4228_v50  ;;  %v8943_v50 = vpop.permute.xlu2 %5047 }
 0xa2b   : > { %10595 = vst [vmem:[#allocation45_spill] sm:$0xff] %v8943_v50 }
 0xa32   : > { %4574 = vadd.xlane.f32.xlu1 %v4573_v11  ;;  %v4197_v4 = vpop.xlane.xlu2 %4196  ;;  %v8951_v11 = vpop.permute.xlu1 %5031 }
 0xa33   : > { %10598 = vst [vmem:[#allocation16_spill] sm:$0xff] %v8951_v11  ;;  %v8954_v50 = vsub.f32 %v8704_v16, %v4197_v4  ;;  %v5884_v11 = vpop.eup %5883  ;;  %v3964_v4 = vmul.f32 0.5, %v3807_v54 }
 0xa34   : > { %v4513_v24 = vsel %vm4116_vm1, %v5884_v11, 0.0 }
 0xa3a   : > { %4538 = vadd.xlane.f32.xlu1 %v4537_v58  ;;  %v4425_v58 = vmul.f32 1.442695, %v8954_v50  ;;  %v4176_v8 = vpop.xlane.xlu1 %4175 }
 0xa3b   : > { %v8963_v16 = vsub.f32 %v8562_v40, %v4176_v8  ;;  %v4213_v8 = vsel %vm4116_vm1, %v8808_v44, -inf }
 0xa3c   : > { %5885 = vpow2.f32 %v4425_v58  ;;  %v8978_v58 = vpop.permute.xlu0 %4927 }
 0xa3d   : > { %v4411_v0 = vmul.f32 1.442695, %v8963_v16  ;;  %10601 = vst [vmem:[#allocation77_spill] sm:$0xff] %v8978_v58 }
 0xa3f   : > { %5887 = vpow2.f32 %v4411_v0 }
 0xa42   : > { %4535 = vadd.xlane.f32.xlu0 %v4534_v28  ;;  %v5886_v28 = vpop.eup %5885 }
 0xa43   : > { %4550 = vadd.xlane.f32.xlu2 %v4549_v41  ;;  %v4028_v41 = vmul.f32 0.5, %v10600_v7  ;;  %v4579_v40 = vsel %vm4116_vm1, %v5886_v28, 0.0 }
 0xa44   : > { %v8983_v28 = vpop.permute.xlu0 %5051 }
 0xa45   : > { %v8970_v17 = vadd.f32 %v4028_v41, %v3964_v4  ;;  %v5888_v11 = vpop.eup %5887  ;;  %10603 = vst [vmem:[#allocation61_spill] sm:$0xff] %v8983_v28  ;;  %v8987_v41 = vpop.permute.xlu2 %4929 }
 0xa46   : > { %v4558_v51 = vsel %vm4116_vm1, %v5888_v11, 0.0  ;;  %10604 = vst [vmem:[#allocation58_spill] sm:$0xff] %v8987_v41 }
 0xa4a   : > { %4235 = vmax.xlane.f32.xlu0 %v4234_v13  ;;  %v3809_v13 = vpop.f32.mrf.mxu2 }
 0xa4b   : > { %4514 = vadd.xlane.f32.xlu2 %v4513_v24  ;;  %v3965_v54 = vmul.f32 0.5, %v3809_v13  ;;  %v10602_v24 = vld [vmem:[#allocation46_spill] sm:$0xff] }
 0xa4c   : > { %v4029_v4 = vmul.f32 0.5, %v10602_v24  ;;  %v4200_v7 = vpop.xlane.xlu0 %4199  ;;  %v4237_v24 = vsel %vm4116_vm1, %v8970_v17, -inf }
 0xa4d   : > { %v4161_v13 = vpop.xlane.xlu2 %4160 }
 0xa4e   : > { %v8981_v0 = vadd.f32 %v4029_v4, %v3965_v54 }
 0xa52   : > { %4580 = vadd.xlane.f32.xlu0 %v4579_v40  ;;  %v8990_v40 = vsub.f32 %v8694_v43, %v4200_v7  ;;  %v9003_v43 = vsub.f32 %v8543_v36, %v4161_v13 }
 0xa53   : > { %4214 = vmax.xlane.f32.xlu2 %v4213_v8  ;;  %5173 = vrot.lane.b32.xlu1 %v8970_v17, %s6237_s12  ;;  %v8994_v8 = vpop.permute.xlu1 %4913 }
 0xa54   : > { %10605 = vst [vmem:[#allocation10_spill] sm:$0xff] %v8994_v8  ;;  %v4427_v11 = vmul.f32 1.442695, %v8990_v40  ;;  %v4401_v8 = vmul.f32 1.442695, %v9003_v43 }
 0xa55   : > { %10606 = vst [vmem:[#allocation40_spill] sm:$0xff] %v9003_v43  ;;  %v9009_v58 = vpop.permute.xlu2 %5053 }
 0xa56   : > { %5889 = vpow2.f32 %v4427_v11  ;;  %10608 = vst [vmem:[#allocation65_spill] sm:$0xff] %v9009_v58 }
 0xa5b   : > { %4559 = vadd.xlane.f32.xlu2 %v4558_v51  ;;  %v4164_v51 = vpop.xlane.xlu0 %4163  ;;  %v9005_v4 = vpop.permute.xlu1 %5037 }
 0xa5c   : > { %v8998_v54 = vsub.f32 %v8724_v35, %v4164_v51  ;;  %10607 = vst [vmem:[#allocation38_spill] sm:$0xff] %v9005_v4  ;;  %v5890_v28 = vpop.eup %5889  ;;  %v3812_v4 = vpop.f32.mrf.mxu2 }
 0xa5d   : > { %v4582_v35 = vsel %vm4116_vm1, %v5890_v28, 0.0  ;;  %v3966_v58 = vmul.f32 0.5, %v3812_v4 }
 0xa5e   : > { %v4403_v7 = vmul.f32 1.442695, %v8998_v54 }
 0xa60   : > { %5891 = vpow2.f32 %v4403_v7 }
 0xa61   : > { %5893 = vpow2.f32 %v4401_v8  ;;  %v10611_v8 = vld [vmem:[#allocation14_spill] sm:$0xff] }
 0xa63   : > { %v4140_v11 = vpop.xlane.xlu1 %4139 }
 0xa66   : > { %5175 = vrot.lane.b32.xlu0 %v8981_v0, %s6237_s12  ;;  %v5892_v51 = vpop.eup %5891 }
 0xa67   : > { %v5894_v13 = vpop.eup %5893  ;;  %v4546_v19 = vsel %vm4116_vm1, %v5892_v51, 0.0 }
 0xa68   : > { %v4543_v28 = vsel %vm4116_vm1, %v5894_v13, 0.0  ;;  %v3814_v13 = vpop.f32.mrf.mxu2 }
 0xa6b   : > { %v4185_v30 = vpop.xlane.xlu1 %4184 }
 0xa6d   : > { %v4206_v36 = vpop.xlane.xlu2 %4205 }
 0xa6e   : > { %v9018_v7 = vsub.f32 %v8763_v53, %v4206_v36  ;;  %v9028_v53 = vsub.f32 %v8625_v22, %v4185_v30 }
 0xa70   : > { %10610 = vst [vmem:[#allocation64_spill] sm:$0xff] %v9018_v7 }
 0xa73   : > { %5159 = vrot.lane.b32.xlu2 %v8843_v57, %s6237_s12  ;;  %v9040_v30 = vpop.permute.xlu1 %4919 }
 0xa74   : > { %10614 = vst [vmem:[#allocation67_spill] sm:$0xff] %v9040_v30 }
 0xa7d   : > { %4238 = vmax.xlane.f32.xlu1 %v4237_v24  ;;  %v9013_v24 = vsub.f32 %v8590_v46, %v4140_v11  ;;  %v4431_v46 = vmul.f32 1.442695, %v9018_v7 }
 0xa7f   : > { %10609 = vst [vmem:[#allocation54_spill] sm:$0xff] %v9013_v24  ;;  %v4387_v31 = vmul.f32 1.442695, %v9013_v24  ;;  %v10619_v24 = vld [vmem:[#allocation5_spill] sm:$0xff] }
 0xa80   : > { %v4033_v47 = vmul.f32 0.5, %v10619_v24 }
 0xa81   : > { %5895 = vpow2.f32 %v4387_v31  ;;  %v4417_v31 = vmul.f32 1.442695, %v9028_v53 }
 0xa82   : > { %5897 = vpow2.f32 %v4431_v46  ;;  %v4222_v46 = vsel %vm4116_vm1, %v8860_v32, -inf }
 0xa83   : > { %5899 = vpow2.f32 %v4417_v31 }
 0xa85   : > { %4583 = vadd.xlane.f32.xlu1 %v4582_v35  ;;  %v4030_v35 = vmul.f32 0.5, %v10611_v8  ;;  %v10612_v8 = vld [vmem:[#allocation11_spill] sm:$0xff] }
 0xa87   : > { %v9023_v11 = vadd.f32 %v4030_v35, %v3966_v58  ;;  %v5896_v51 = vpop.eup %5895  ;;  %v4031_v35 = vmul.f32 0.5, %v10612_v8  ;;  %v9046_v8 = vpop.permute.xlu1 %5043 }
 0xa88   : > { %v4522_v4 = vsel %vm4116_vm1, %v5896_v51, 0.0  ;;  %v5898_v36 = vpop.eup %5897  ;;  %v3817_v51 = vpop.f32.mrf.mxu2  ;;  %10616 = vst [vmem:[#allocation66_spill] sm:$0xff] %v9046_v8 }
 0xa89   : > { %v4588_v58 = vsel %vm4116_vm1, %v5898_v36, 0.0  ;;  %v5900_v22 = vpop.eup %5899  ;;  %v3968_v36 = vmul.f32 0.5, %v3817_v51 }
 0xa8d   : > { %4547 = vadd.xlane.f32.xlu1 %v4546_v19  ;;  %v4243_v19 = vsel %vm4116_vm1, %v9023_v11, -inf }
 0xa90   : > { %4544 = vadd.xlane.f32.xlu0 %v4543_v28  ;;  %v3967_v28 = vmul.f32 0.5, %v3814_v13  ;;  %v10615_v13 = vld [vmem:[#allocation12_spill] sm:$0xff] }
 0xa98   : > { %4244 = vmax.xlane.f32.xlu0 %v4243_v19  ;;  %v9036_v19 = vadd.f32 %v4031_v35, %v3967_v28  ;;  %v9050_v28 = vpop.permute.xlu0 %5057  ;;  %v4149_v35 = vpop.xlane.xlu1 %4148 }
 0xa99   : > { %10617 = vst [vmem:[#allocation69_spill] sm:$0xff] %v9050_v28 }
 0xa9a   : > { %10613 = vst [vmem:[#allocation68_spill] sm:$0xff] %v9036_v19 }
 0xa9c   : > { %4523 = vadd.xlane.f32.xlu2 %v4522_v4  ;;  %v4567_v4 = vsel %vm4116_vm1, %v5900_v22, 0.0 }
 0xaa0   : > { %4589 = vadd.xlane.f32.xlu0 %v4588_v58  ;;  %v4032_v58 = vmul.f32 0.5, %v10615_v13  ;;  %v4194_v30 = vpop.xlane.xlu1 %4193  ;;  %v4246_v13 = vsel %vm4116_vm1, %v9036_v19, -inf }
 0xaa2   : > { %v9044_v31 = vadd.f32 %v4032_v58, %v3968_v36  ;;  %v9060_v36 = vpop.xlane.xlu2 %4505  ;;  %v3819_v58 = vpop.f32.mrf.mxu2 }
 0xaa3   : > { %10618 = vst [vmem:[#allocation70_spill] sm:$0xff] %v9060_v36  ;;  %v3969_v8 = vmul.f32 0.5, %v3819_v58 }
 0xaa4   : > { %4223 = vmax.xlane.f32.xlu2 %v4222_v46  ;;  %v4209_v46 = vpop.xlane.xlu0 %4208 }
 0xaa5   : > { %v9055_v22 = vsub.f32 %v8743_v25, %v4209_v46  ;;  %v9070_v43 = vadd.f32 %v4033_v47, %v3969_v8  ;;  %v9079_v47 = vsub.f32 %v8676_v15, %v4194_v30 }
 0xaa6   : > { %5179 = vrot.lane.b32.xlu1 %v9036_v19, %s6237_s12 }
 0xaa7   : > { %v4433_v51 = vmul.f32 1.442695, %v9055_v22 }
 0xaa9   : > { %5901 = vpow2.f32 %v4433_v51  ;;  %v9073_v51 = vsub.f32 %v8638_v63, %v4149_v35  ;;  %v10623_v35 = vld [vmem:[#allocation9_spill] sm:$0xff] }
 0xaaa   : > { %v9068_v46 = vpop.permute.xlu2 %5059  ;;  %v4034_v7 = vmul.f32 0.5, %v10623_v35 }
 0xaab   : > { %10621 = vst [vmem:[#allocation74_spill] sm:$0xff] %v9068_v46  ;;  %v4393_v36 = vmul.f32 1.442695, %v9073_v51 }
 0xaac   : > { %4568 = vadd.xlane.f32.xlu2 %v4567_v4  ;;  %v9058_v4 = vpop.permute.xlu1 %4925  ;;  %10622 = vst [vmem:[#allocation73_spill] sm:$0xff] %v9073_v51 }
 0xaad   : > { %5903 = vpow2.f32 %v4393_v36 }
 0xaaf   : > { %v5902_v28 = vpop.eup %5901 }
 0xab0   : > { %v4591_v41 = vsel %vm4116_vm1, %v5902_v28, 0.0  ;;  %v3822_v28 = vpop.f32.mrf.mxu2 }
 0xab4   : > { %5181 = vrot.lane.b32.xlu0 %v9044_v31, %s6237_s12  ;;  %v9066_v25 = vpop.permute.xlu1 %5049 }
 0xab5   : > { %10620 = vst [vmem:[#allocation57_spill] sm:$0xff] %v9066_v25  ;;  %v5904_v25 = vpop.eup %5903 }
 0xab6   : > { %v4551_v24 = vpop.xlane.xlu2 %4550  ;;  %v4531_v8 = vsel %vm4116_vm1, %v5904_v25, 0.0 }
 0xab7   : > { %5905 = vlog2.f32 %v4551_v24 }
 0xab8   : > { %v3824_v24 = vpop.f32.mrf.mxu2 }
 0xab9   : > { %v3971_v15 = vmul.f32 0.5, %v3824_v24 }
 0xabc   : > { %v4158_v58 = vpop.xlane.xlu1 %4157 }
 0xabd   : > { %v5906_v19 = vpop.eup %5905 }
 0xabe   : > { %v4726_v63 = vmul.f32 0.6931472, %v5906_v19  ;;  %v4231_v19 = vsel %vm4116_vm1, %v8915_v34, -inf  ;;  %v9104_v35 = vpop.xlane.xlu2 %4514 }
 0xabf   : > { %10628 = vst [vmem:[#allocation15_spill] sm:$0xff] %v9104_v35 }
 0xac0   : > { %v4837_v36 = vsub.f32 %v8938_v18, %v4726_v63 }
 0xac4   : > { %5165 = vrot.lane.b32.xlu2 %v8897_v27, %s6237_s12  ;;  %v4203_v46 = vpop.xlane.xlu1 %4202 }
 0xad0   : > { %4247 = vmax.xlane.f32.xlu1 %v4246_v13  ;;  %v4252_v13 = vsel %vm4116_vm1, %v9070_v43, -inf }
 0xad8   : > { %4592 = vadd.xlane.f32.xlu1 %v4591_v41  ;;  %v3970_v41 = vmul.f32 0.5, %v3822_v28  ;;  %v9089_v28 = vpop.permute.xlu1 %4931 }
 0xada   : > { %v9083_v51 = vadd.f32 %v4034_v7, %v3970_v41  ;;  %v10625_v7 = vld [vmem:[#allocation6_spill] sm:$0xff] }
 0xadb   : > { %v4035_v30 = vmul.f32 0.5, %v10625_v7  ;;  %v3972_v7 = vmul.f32 0.5, %v8663_v39  ;;  %v9126_v39 = vsub.f32 %v8687_v61, %v4158_v58 }
 0xadc   : > { %10624 = vst [vmem:[#allocation75_spill] sm:$0xff] %v9083_v51 }
 0xadd   : > { %v9095_v25 = vadd.f32 %v4035_v30, %v3971_v15  ;;  %v10630_v30 = vld [vmem:[#allocation7_spill] sm:$0xff] }
 0xade   : > { %4253 = vmax.xlane.f32.xlu0 %v4252_v13  ;;  %v4423_v13 = vmul.f32 1.442695, %v9079_v47 }
 0xae0   : > { %5907 = vpow2.f32 %v4423_v13  ;;  %v9099_v41 = vpop.permute.xlu1 %5055 }
 0xae1   : > { %10626 = vst [vmem:[#allocation62_spill] sm:$0xff] %v9099_v41 }
 0xae6   : > { %v5908_v18 = vpop.eup %5907 }
 0xae7   : > { %v4576_v63 = vsel %vm4116_vm1, %v5908_v18, 0.0  ;;  %v4036_v18 = vmul.f32 0.5, %v10630_v30 }
 0xae9   : > { %v9120_v41 = vadd.f32 %v4036_v18, %v3972_v7  ;;  %v4399_v7 = vmul.f32 1.442695, %v9126_v39 }
 0xaed   : > { %4532 = vadd.xlane.f32.xlu2 %v4531_v8  ;;  %v9102_v8 = vpop.xlane.xlu1 %4502 }
 0xaee   : > { %10627 = vst [vmem:[#allocation76_spill] sm:$0xff] %v9102_v8 }
 0xaf1   : > { %5185 = vrot.lane.b32.xlu1 %v9083_v51, %s6237_s12 }
 0xaf2   : > { %4965 = vrot.lane.b32.xlu0 %v4837_v36, %s6238_s15  ;;  %v4215_v36 = vpop.xlane.xlu2 %4214 }
 0xaf3   : > { %v9113_v15 = vsub.f32 %v8808_v44, %v4215_v36 }
 0xaf5   : > { %4232 = vmax.xlane.f32.xlu2 %v4231_v19  ;;  %v9106_v13 = vpop.xlane.xlu1 %4211  ;;  %v4255_v19 = vsel %vm4116_vm1, %v9083_v51, -inf }
 0xafa   : > { %5187 = vrot.lane.b32.xlu0 %v9095_v25, %s6237_s12  ;;  %v4560_v30 = vpop.xlane.xlu2 %4559 }
 0xafd   : > { %4577 = vadd.xlane.f32.xlu2 %v4576_v63  ;;  %v9110_v24 = vpop.xlane.xlu1 %4511  ;;  %v4437_v63 = vmul.f32 1.442695, %v9113_v15 }
 0xafe   : > { %10629 = vst [vmem:[#allocation13_spill] sm:$0xff] %v9110_v24  ;;  %v4261_v24 = vsel %vm4116_vm1, %v9120_v41, -inf }
 0xaff   : > { %5909 = vpow2.f32 %v4437_v63 }
 0xb05   : > { %v4557_v35 = vpop.xlane.xlu1 %4556  ;;  %v5910_v44 = vpop.eup %5909 }
 0xb06   : > { %5911 = vlog2.f32 %v4557_v35  ;;  %v4597_v8 = vsel %vm4116_vm1, %v5910_v44, 0.0  ;;  %v9134_v44 = vsub.f32 %v8736_v26, %v4203_v46  ;;  %v4240_v46 = vsel %vm4116_vm1, %v8981_v0, -inf }
 0xb07   : > { %5913 = vlog2.f32 %v4560_v30 }
 0xb08   : > { %5915 = vpow2.f32 %v4399_v7 }
 0xb0c   : > { %v5912_v36 = vpop.eup %5911 }
 0xb0d   : > { %v5914_v35 = vpop.eup %5913 }
 0xb0e   : > { %v5916_v63 = vpop.eup %5915  ;;  %v4732_v51 = vmul.f32 0.6931472, %v5914_v35 }
 0xb0f   : > { %v4540_v61 = vsel %vm4116_vm1, %v5916_v63, 0.0  ;;  %v9159_v63 = vpop.xlane.xlu1 %4520 }
 0xb10   : > { %10636 = vst [vmem:[#allocation50_spill] sm:$0xff] %v9159_v63 }
 0xb15   : > { %5171 = vrot.lane.b32.xlu2 %v8960_v10, %s6237_s12 }
 0xb1b   : > { %4256 = vmax.xlane.f32.xlu1 %v4255_v19  ;;  %v4730_v19 = vmul.f32 0.6931472, %v5912_v36  ;;  %v3973_v36 = vmul.f32 0.5, %v8671_v37  ;;  %v9157_v37 = vpop.permute.xlu2 %5159 }
 0xb1c   : > { %10635 = vst [vmem:[#allocation55_spill] sm:$0xff] %v9157_v37 }
 0xb1d   : > { %v4839_v18 = vsub.f32 %v8811_v45, %v4730_v19  ;;  %v4840_v45 = vsub.f32 %v8963_v16, %v4732_v51  ;;  %v10632_v19 = vld [vmem:[#allocation22_spill] sm:$0xff] }
 0xb1e   : > { %v4037_v26 = vmul.f32 0.5, %v10632_v19 }
 0xb20   : > { %v9148_v30 = vadd.f32 %v4037_v26, %v3973_v36  ;;  %v9167_v36 = vpop.permute.xlu1 %5161 }
 0xb21   : > { %10638 = vst [vmem:[#allocation46_spill] sm:$0xff] %v9167_v36 }
 0xb22   : > { %v4264_v26 = vsel %vm4116_vm1, %v9148_v30, -inf }
 0xb24   : > { %4262 = vmax.xlane.f32.xlu0 %v4261_v24  ;;  %v9131_v24 = vpop.xlane.xlu0 %4508 }
 0xb25   : > { %10631 = vst [vmem:[#allocation19_spill] sm:$0xff] %v9131_v24 }
 0xb28   : > { %v9178_v37 = vpop.xlane.xlu1 %4220 }
 0xb2c   : > { %4598 = vadd.xlane.f32.xlu0 %v4597_v8  ;;  %v9140_v58 = vpop.xlane.xlu0 %4553  ;;  %v4429_v8 = vmul.f32 1.442695, %v9134_v44 }
 0xb2e   : > { %5917 = vpow2.f32 %v4429_v8 }
 0xb34   : > { %4969 = vrot.lane.b32.xlu1 %v4839_v18, %s6238_s15  ;;  %v9150_v7 = vpop.permute.xlu0 %5157  ;;  %v5918_v16 = vpop.eup %5917 }
 0xb35   : > { %10633 = vst [vmem:[#allocation17_spill] sm:$0xff] %v9150_v7  ;;  %v4585_v51 = vsel %vm4116_vm1, %v5918_v16, 0.0  ;;  %v3975_v16 = vmul.f32 0.5, %v8685_v56 }
 0xb3c   : > { %5285 = vrot.lane.b32.xlu1 %v9120_v41, %s6239_s16  ;;  %v9155_v18 = vpop.xlane.xlu0 %4517 }
 0xb3d   : > { %10634 = vst [vmem:[#allocation53_spill] sm:$0xff] %v9155_v18 }
 0xb3e   : > { %4541 = vadd.xlane.f32.xlu2 %v4540_v61  ;;  %v9161_v61 = vpop.xlane.xlu2 %4523 }
 0xb3f   : > { %10637 = vst [vmem:[#allocation47_spill] sm:$0xff] %v9161_v61 }
 0xb40   : > { %4971 = vrot.lane.b32.xlu0 %v4840_v45, %s6238_s15 }
 0xb44   : > { %v4218_v35 = vpop.xlane.xlu0 %4217 }
 0xb45   : > { %v9164_v45 = vsub.f32 %v8843_v57, %v4218_v35 }
 0xb46   : > { %4241 = vmax.xlane.f32.xlu2 %v4240_v46  ;;  %v4224_v19 = vpop.xlane.xlu2 %4223 }
 0xb47   : > { %v4439_v8 = vmul.f32 1.442695, %v9164_v45  ;;  %v9174_v46 = vsub.f32 %v8860_v32, %v4224_v19  ;;  %v4566_v32 = vpop.xlane.xlu1 %4565 }
 0xb48   : > { %5287 = vrot.lane.b32.xlu0 %v9148_v30, %s6239_s16 }
 0xb49   : > { %5919 = vpow2.f32 %v4439_v8  ;;  %v4443_v8 = vmul.f32 1.442695, %v9174_v46 }
 0xb4b   : > { %5921 = vpow2.f32 %v4443_v8 }
 0xb4c   : > { %5923 = vlog2.f32 %v4566_v32 }
 0xb4e   : > { %4586 = vadd.xlane.f32.xlu2 %v4585_v51  ;;  %v10639_v51 = vld [vmem:[#allocation21_spill] sm:$0xff] }
 0xb4f   : > { %v5920_v57 = vpop.eup %5919  ;;  %v4039_v35 = vmul.f32 0.5, %v10639_v51  ;;  %v4569_v51 = vpop.xlane.xlu2 %4568 }
 0xb50   : > { %v4600_v36 = vsel %vm4116_vm1, %v5920_v57, 0.0  ;;  %5925 = vlog2.f32 %v4569_v51  ;;  %v9189_v57 = vsub.f32 %v8803_v9, %v9106_v13  ;;  %v3976_v9 = vmul.f32 0.5, %v8692_v12  ;;  %v10641_v13 = vld [vmem:[#allocation52_spill] sm:$0xff] }
 0xb51   : > { %v9181_v7 = vadd.f32 %v4039_v35, %v3975_v16  ;;  %v5922_v19 = vpop.eup %5921  ;;  %v9193_v35 = vpop.xlane.xlu0 %4562 }
 0xb52   : > { %v4606_v56 = vsel %vm4116_vm1, %v5922_v19, 0.0  ;;  %v5924_v18 = vpop.eup %5923 }
 0xb53   : > { %v4736_v24 = vmul.f32 0.6931472, %v5924_v18  ;;  %v4249_v18 = vsel %vm4116_vm1, %v9044_v31, -inf }
 0xb56   : > { %v5926_v16 = vpop.eup %5925 }
 0xb57   : > { %v4738_v8 = vmul.f32 0.6931472, %v5926_v16  ;;  %v9213_v16 = vpop.permute.xlu2 %5165 }
 0xb58   : > { %10644 = vst [vmem:[#allocation5_spill] sm:$0xff] %v9213_v16 }
 0xb59   : > { %v4843_v32 = vsub.f32 %v9028_v53, %v4738_v8 }
 0xb60   : > { %v9216_v12 = vpop.xlane.xlu2 %4532 }
 0xb66   : > { %5177 = vrot.lane.b32.xlu2 %v9023_v11, %s6237_s12  ;;  %4265 = vmax.xlane.f32.xlu1 %v4264_v26  ;;  %v4270_v26 = vsel %vm4116_vm1, %v9181_v7, -inf }
 0xb6e   : > { %4601 = vadd.xlane.f32.xlu1 %v4600_v36  ;;  %v4842_v36 = vsub.f32 %v8865_v5, %v4736_v24  ;;  %v9203_v5 = vpop.permute.xlu0 %5163  ;;  %v4040_v24 = vmul.f32 0.5, %v10641_v13 }
 0xb6f   : > { %10640 = vst [vmem:[#allocation14_spill] sm:$0xff] %v9203_v5  ;;  %v3978_v5 = vmul.f32 0.5, %v8708_v23 }
 0xb72   : > { %4271 = vmax.xlane.f32.xlu0 %v4270_v26  ;;  %v4435_v26 = vmul.f32 1.442695, %v9189_v57 }
 0xb74   : > { %5927 = vpow2.f32 %v4435_v26 }
 0xb75   : > { %5929 = vlog2.f32 %v9140_v58 }
 0xb76   : > { %v9211_v51 = vpop.xlane.xlu0 %4526 }
 0xb77   : > { %10643 = vst [vmem:[#allocation12_spill] sm:$0xff] %v9211_v51 }
 0xb7a   : > { %4607 = vadd.xlane.f32.xlu0 %v4606_v56  ;;  %v5928_v19 = vpop.eup %5927  ;;  %v9206_v56 = vadd.f32 %v4040_v24, %v3976_v9  ;;  %v4233_v24 = vpop.xlane.xlu2 %4232 }
 0xb7b   : > { %v4594_v53 = vsel %vm4116_vm1, %v5928_v19, 0.0  ;;  %v5930_v26 = vpop.eup %5929  ;;  %v9234_v16 = vsub.f32 %v8915_v34, %v4233_v24 }
 0xb7c   : > { %10642 = vst [vmem:[#allocation11_spill] sm:$0xff] %v9206_v56  ;;  %v4728_v9 = vmul.f32 0.6931472, %v5930_v26 }
 0xb7d   : > { %10648 = vst [vmem:[#allocation22_spill] sm:$0xff] %v9234_v16 }
 0xb7e   : > { %v4838_v58 = vsub.f32 %v8778_v20, %v4728_v9 }
 0xb87   : > { %4975 = vrot.lane.b32.xlu1 %v4842_v36, %s6238_s15  ;;  %v4227_v36 = vpop.xlane.xlu0 %4226 }
 0xb8e   : > { %4977 = vrot.lane.b32.xlu0 %v4843_v32, %s6238_s15  ;;  %v9220_v32 = vpop.xlane.xlu1 %4529 }
 0xb8f   : > { %4250 = vmax.xlane.f32.xlu2 %v4249_v18  ;;  %5291 = vrot.lane.b32.xlu1 %v9181_v7, %s6239_s16  ;;  %v9218_v8 = vpop.xlane.xlu0 %4571  ;;  %10645 = vst [vmem:[#allocation9_spill] sm:$0xff] %v9220_v32  ;;  %v9223_v18 = vsub.f32 %v8897_v27, %v4227_v36  ;;  %v4273_v27 = vsel %vm4116_vm1, %v9206_v56, -inf  ;;  %v10649_v36 = vld [vmem:[#allocation59_spill] sm:$0xff] }
 0xb90   : > { %v4042_v26 = vmul.f32 0.5, %v10649_v36 }
 0xb91   : > { %v4445_v13 = vmul.f32 1.442695, %v9223_v18 }
 0xb92   : > { %v9242_v51 = vadd.f32 %v4042_v26, %v3978_v5  ;;  %v4578_v5 = vpop.xlane.xlu2 %4577 }
 0xb93   : > { %5931 = vpow2.f32 %v4445_v13 }
 0xb94   : > { %10650 = vst [vmem:[#allocation21_spill] sm:$0xff] %v9242_v51  ;;  %v4279_v23 = vsel %vm4116_vm1, %v9242_v51, -inf }
 0xb96   : > { %5293 = vrot.lane.b32.xlu0 %v9206_v56, %s6239_s16 }
 0xb97   : > { %4595 = vadd.xlane.f32.xlu2 %v4594_v53  ;;  %v9228_v19 = vpop.permute.xlu0 %5169  ;;  %v9231_v53 = vpop.permute.xlu1 %5167 }
 0xb98   : > { %10646 = vst [vmem:[#allocation6_spill] sm:$0xff] %v9228_v19  ;;  %v4449_v19 = vmul.f32 1.442695, %v9234_v16 }
 0xb99   : > { %10647 = vst [vmem:[#allocation7_spill] sm:$0xff] %v9231_v53  ;;  %v5932_v9 = vpop.eup %5931 }
 0xb9a   : > { %5933 = vpow2.f32 %v4449_v19  ;;  %v4609_v13 = vsel %vm4116_vm1, %v5932_v9, 0.0 }
 0xb9f   : > { %v9244_v20 = vpop.xlane.xlu0 %4535  ;;  %v9246_v34 = vpop.xlane.xlu1 %4229 }
 0xba0   : > { %v5934_v24 = vpop.eup %5933 }
 0xba7   : > { %v4575_v36 = vpop.xlane.xlu1 %4574 }
 0xba8   : > { %5935 = vlog2.f32 %v4575_v36  ;;  %v10652_v36 = vld [vmem:[#allocation20_spill] sm:$0xff] }
 0xba9   : > { %5937 = vlog2.f32 %v4578_v5 }
 0xbaa   : > { %5939 = vlog2.f32 %v9193_v35 }
 0xbae   : > { %v5936_v53 = vpop.eup %5935 }
 0xbaf   : > { %5183 = vrot.lane.b32.xlu2 %v9070_v43, %s6237_s12  ;;  %v5938_v19 = vpop.eup %5937  ;;  %v4742_v32 = vmul.f32 0.6931472, %v5936_v53  ;;  %v4043_v53 = vmul.f32 0.5, %v10652_v36  ;;  %s6187_s12 = scalar_lea.hbm %s6186_s14, 128 }
 0xbb0   : > { %v4744_v63 = vmul.f32 0.6931472, %v5938_v19  ;;  %v9281_v19 = vpop.permute.xlu2 %5171  ;;  %p6188_p11 = scmp.ne.s32.totalorder %s6186_s14, %s6187_s12 }
 0xbb1   : > { %10655 = vst [vmem:[#allocation78_spill] sm:$0xff] %v9281_v19 }
 0xbb2   : > { %v4846_v9 = vsub.f32 %v9079_v47, %v4744_v63  ;;  %p6189_p12 = pnand %p6188_p11, %p6317_p5 }
 0xbb4   : > { %p6190_p13 = pneg %p6189_p12 }
 0xbb7   : > { %4967 = vrot.lane.b32.xlu2 %v4838_v58, %s6238_s15  ;;  %v4236_v58 = vpop.xlane.xlu0 %4235 }
 0xbb8   : > { %v9286_v36 = vpop.xlane.xlu2 %4541  ;;  %v9296_v19 = vsub.f32 %v8960_v10, %v4236_v58 }
 0xbb9   : > { %4274 = vmax.xlane.f32.xlu1 %v4273_v27  ;;  %v4615_v27 = vsel %vm4116_vm1, %v5934_v24, 0.0  ;;  %v3979_v24 = vmul.f32 0.5, %v8712_v29 }
 0xbbf   : > { %v9252_v26 = vpop.xlane.xlu0 %4580 }
 0xbc0   : > { %4280 = vmax.xlane.f32.xlu0 %v4279_v23  ;;  %v4845_v23 = vsub.f32 %v8922_v52, %v4742_v32  ;;  %v9268_v52 = vadd.f32 %v4043_v53, %v3979_v24  ;;  %v5940_v32 = vpop.eup %5939 }
 0xbc1   : > { %4610 = vadd.xlane.f32.xlu1 %v4609_v13  ;;  %v9260_v13 = vpop.xlane.xlu1 %4538 }
 0xbc2   : > { %10653 = vst [vmem:[#allocation59_spill] sm:$0xff] %v9268_v52  ;;  %v4282_v10 = vsel %vm4116_vm1, %v9268_v52, -inf }
 0xbc7   : > { %v9255_v61 = vpop.permute.xlu0 %5175 }
 0xbc8   : > { %4616 = vadd.xlane.f32.xlu0 %v4615_v27  ;;  %10651 = vst [vmem:[#allocation52_spill] sm:$0xff] %v9255_v61  ;;  %v4258_v27 = vsel %vm4116_vm1, %v9095_v25, -inf  ;;  %v4242_v61 = vpop.xlane.xlu2 %4241 }
 0xbc9   : > { %v9274_v47 = vpop.permute.xlu1 %5173 }
 0xbca   : > { %10654 = vst [vmem:[#allocation20_spill] sm:$0xff] %v9274_v47  ;;  %v10658_v47 = vld [vmem:[#allocation49_spill] sm:$0xff] }
 0xbcf   : > { %v9266_v5 = vpop.xlane.xlu0 %4544 }
 0xbd1   : > { %v9279_v63 = vpop.xlane.xlu1 %4238 }
 0xbd7   : > { %v9277_v29 = vpop.xlane.xlu0 %4244 }
 0xbda   : > { %4981 = vrot.lane.b32.xlu1 %v4845_v23, %s6238_s15  ;;  %v4734_v23 = vmul.f32 0.6931472, %v5940_v32 }
 0xbdc   : > { %4983 = vrot.lane.b32.xlu0 %v4846_v9, %s6238_s15  ;;  %v4841_v24 = vsub.f32 %v8838_v55, %v4734_v23  ;;  %v9301_v55 = vsub.f32 %v8981_v0, %v4242_v61  ;;  %v3981_v23 = vmul.f32 0.5, %v8717_v38 }
 0xbde   : > { %10657 = vst [vmem:[#allocation80_spill] sm:$0xff] %v9301_v55 }
 0xbdf   : > { %v9283_v9 = vpop.xlane.xlu0 %4589 }
 0xbe0   : > { %4259 = vmax.xlane.f32.xlu2 %v4258_v27  ;;  %v4584_v27 = vpop.xlane.xlu1 %4583 }
 0xbe2   : > { %5297 = vrot.lane.b32.xlu1 %v9242_v51, %s6239_s16  ;;  %v4455_v51 = vmul.f32 1.442695, %v9301_v55 }
 0xbe4   : > { %5299 = vrot.lane.b32.xlu0 %v9268_v52, %s6239_s16 }
 0xbe7   : > { %v9289_v53 = vpop.permute.xlu0 %5181 }
 0xbe8   : > { %10656 = vst [vmem:[#allocation79_spill] sm:$0xff] %v9289_v53  ;;  %v9293_v35 = vpop.xlane.xlu1 %4547  ;;  %v4045_v53 = vmul.f32 0.5, %v10658_v47 }
 0xbea   : > { %v9307_v56 = vadd.f32 %v4045_v53, %v3981_v23 }
 0xbec   : > { %10659 = vst [vmem:[#allocation49_spill] sm:$0xff] %v9307_v56  ;;  %v4288_v38 = vsel %vm4116_vm1, %v9307_v56, -inf }
 0xbef   : > { %v9298_v32 = vpop.xlane.xlu0 %4253 }
 0xbf0   : > { %v9309_v16 = vpop.permute.xlu1 %5179 }
 0xbf1   : > { %10660 = vst [vmem:[#allocation81_spill] sm:$0xff] %v9309_v16  ;;  %v4587_v16 = vpop.xlane.xlu2 %4586 }
 0xbf7   : > { %v9313_v58 = vpop.permute.xlu0 %4965 }
 0xbf8   : > { %4973 = vrot.lane.b32.xlu2 %v4841_v24, %s6238_s15  ;;  %v4451_v24 = vmul.f32 1.442695, %v9296_v19  ;;  %v9317_v61 = vpop.xlane.xlu1 %4247 }
 0xbfa   : > { %5941 = vpow2.f32 %v4451_v24 }
 0xbfb   : > { %5943 = vpow2.f32 %v4455_v51 }
 0xbfc   : > { %5945 = vlog2.f32 %v4587_v16 }
 0xbfd   : > { %5947 = vlog2.f32 %v4584_v27  ;;  %v4267_v27 = vsel %vm4116_vm1, %v8681_v48, -inf }
 0xbff   : > { %v9321_v24 = vpop.permute.xlu0 %5187 }
 0xc00   : > { %5289 = vrot.lane.b32.xlu2 %v8681_v48, %s6239_s16  ;;  %v5942_v0 = vpop.eup %5941  ;;  %10661 = vst [vmem:[#allocation82_spill] sm:$0xff] %v9321_v24  ;;  %v9323_v52 = vpop.xlane.xlu1 %4592 }
 0xc01   : > { %v5944_v47 = vpop.eup %5943  ;;  %v4618_v53 = vsel %vm4116_vm1, %v5942_v0, 0.0 }
 0xc02   : > { %v4624_v23 = vsel %vm4116_vm1, %v5944_v47, 0.0 }
 0xc07   : > { %v9325_v51 = vpop.xlane.xlu0 %4262 }
 0xc0c   : > { %4283 = vmax.xlane.f32.xlu1 %v4282_v10  ;;  %v9329_v10 = vsub.f32 %v8846_v42, %v9178_v37 }
 0xc0e   : > { %4289 = vmax.xlane.f32.xlu0 %v4288_v38  ;;  %10662 = vst [vmem:[#allocation83_spill] sm:$0xff] %v9329_v10  ;;  %v5946_v38 = vpop.eup %5945  ;;  %v4441_v0 = vmul.f32 1.442695, %v9329_v10 }
 0xc0f   : > { %v5948_v47 = vpop.eup %5947  ;;  %v4750_v55 = vmul.f32 0.6931472, %v5946_v38  ;;  %v9334_v24 = vpop.xlane.xlu0 %4598  ;;  %v10664_v38 = vld [vmem:[#allocation23_spill] sm:$0xff] }
 0xc10   : > { %5949 = vpow2.f32 %v4441_v0  ;;  %v4046_v0 = vmul.f32 0.5, %v10664_v38  ;;  %v9367_v38 = vpop.permute.xlu2 %5177 }
 0xc11   : > { %v4849_v16 = vsub.f32 %v9134_v44, %v4750_v55  ;;  %5951 = vlog2.f32 %v9218_v8  ;;  %10670 = vst [vmem:[#allocation89_spill] sm:$0xff] %v9367_v38 }
 0xc14   : > { %4619 = vadd.xlane.f32.xlu1 %v4618_v53  ;;  %v9332_v53 = vpop.permute.xlu1 %5185 }
 0xc15   : > { %10663 = vst [vmem:[#allocation84_spill] sm:$0xff] %v9332_v53  ;;  %v3982_v53 = vmul.f32 0.5, %v8726_v33 }
 0xc16   : > { %4625 = vadd.xlane.f32.xlu0 %v4624_v23  ;;  %v4748_v23 = vmul.f32 0.6931472, %v5948_v47  ;;  %v5950_v10 = vpop.eup %5949 }
 0xc17   : > { %v9346_v47 = vadd.f32 %v4046_v0, %v3982_v53  ;;  %v9348_v44 = vpop.permute.xlu0 %4971  ;;  %v4603_v55 = vsel %vm4116_vm1, %v5950_v10, 0.0  ;;  %v5952_v53 = vpop.eup %5951 }
 0xc18   : > { %v4848_v42 = vsub.f32 %v8990_v40, %v4748_v23  ;;  %10666 = vst [vmem:[#allocation85_spill] sm:$0xff] %v9348_v44  ;;  %v4251_v8 = vpop.xlane.xlu2 %4250 }
 0xc19   : > { %10665 = vst [vmem:[#allocation23_spill] sm:$0xff] %v9346_v47 }
 0xc1c   : > { %v9341_v37 = vpop.xlane.xlu1 %4256 }
 0xc1f   : > { %v9358_v33 = vpop.permute.xlu0 %5287 }
 0xc20   : > { %10668 = vst [vmem:[#allocation87_spill] sm:$0xff] %v9358_v33  ;;  %v9377_v33 = vsub.f32 %v9044_v31, %v4251_v8 }
 0xc22   : > { %10671 = vst [vmem:[#allocation90_spill] sm:$0xff] %v9377_v33  ;;  %v4461_v38 = vmul.f32 1.442695, %v9377_v33 }
 0xc24   : > { %v9353_v40 = vpop.permute.xlu1 %4969  ;;  %5953 = vpow2.f32 %v4461_v38 }
 0xc25   : > { %10667 = vst [vmem:[#allocation86_spill] sm:$0xff] %v9353_v40 }
 0xc29   : > { %4268 = vmax.xlane.f32.xlu2 %v4267_v27  ;;  %v4740_v27 = vmul.f32 0.6931472, %v5952_v53  ;;  %v3984_v53 = vmul.f32 0.5, %v8738_v59 }
 0xc2a   : > { %4989 = vrot.lane.b32.xlu0 %v4849_v16, %s6238_s15  ;;  %v9362_v16 = vpop.xlane.xlu0 %4271 }
 0xc2c   : > { %v9360_v23 = vpop.permute.xlu1 %5285 }
 0xc2d   : > { %4987 = vrot.lane.b32.xlu1 %v4848_v42, %s6238_s15  ;;  %10669 = vst [vmem:[#allocation88_spill] sm:$0xff] %v9360_v23  ;;  %v4844_v42 = vsub.f32 %v8891_v6, %v4740_v27  ;;  %v10673_v6 = vld [vmem:[#allocation18_spill] sm:$0xff] }
 0xc2e   : > { %v4048_v27 = vmul.f32 0.5, %v10673_v6 }
 0xc30   : > { %v9388_v40 = vadd.f32 %v4048_v27, %v3984_v53  ;;  %v4596_v27 = vpop.xlane.xlu2 %4595 }
 0xc31   : > { %4604 = vadd.xlane.f32.xlu2 %v4603_v55 }
 0xc32   : > { %5305 = vrot.lane.b32.xlu0 %v9346_v47, %s6239_s16  ;;  %v9370_v0 = vpop.xlane.xlu0 %4607  ;;  %10674 = vst [vmem:[#allocation18_spill] sm:$0xff] %v9388_v40  ;;  %v4297_v59 = vsel %vm4116_vm1, %v9388_v40, -inf }
 0xc34   : > { %v9364_v10 = vpop.xlane.xlu1 %4265 }
 0xc35   : > { %5303 = vrot.lane.b32.xlu1 %v9307_v56, %s6239_s16 }
 0xc3a   : > { %v9380_v23 = vpop.permute.xlu0 %4977 }
 0xc3b   : > { %10672 = vst [vmem:[#allocation91_spill] sm:$0xff] %v9380_v23 }
 0xc3c   : > { %v9372_v55 = vpop.xlane.xlu1 %4601 }
 0xc42   : > { %v9395_v31 = vpop.permute.xlu0 %5293 }
 0xc43   : > { %10676 = vst [vmem:[#allocation93_spill] sm:$0xff] %v9395_v31 }
 0xc44   : > { %v9390_v56 = vpop.permute.xlu1 %4975 }
 0xc45   : > { %10675 = vst [vmem:[#allocation92_spill] sm:$0xff] %v9390_v56 }
 0xc49   : > { %4979 = vrot.lane.b32.xlu2 %v4844_v42, %s6238_s15  ;;  %v9385_v42 = vsub.f32 %v9023_v11, %v9277_v29  ;;  %v4291_v11 = vsel %vm4116_vm1, %v9346_v47, -inf  ;;  %v5954_v29 = vpop.eup %5953 }
 0xc4a   : > { %v4633_v6 = vsel %vm4116_vm1, %v5954_v29, 0.0  ;;  %v9402_v38 = vpop.xlane.xlu0 %4280 }
 0xc4b   : > { %v4457_v44 = vmul.f32 1.442695, %v9385_v42 }
 0xc4c   : > { %v9399_v8 = vpop.permute.xlu1 %5291 }
 0xc4d   : > { %5955 = vpow2.f32 %v4457_v44  ;;  %10677 = vst [vmem:[#allocation94_spill] sm:$0xff] %v9399_v8 }
 0xc4e   : > { %5957 = vlog2.f32 %v4596_v27 }
 0xc4f   : > { %5959 = vlog2.f32 %v9323_v52 }
 0xc51   : > { %5295 = vrot.lane.b32.xlu2 %v8701_v49, %s6239_s16 }
 0xc52   : > { %v9411_v31 = vpop.xlane.xlu0 %4616 }
 0xc53   : > { %v5956_v53 = vpop.eup %5955 }
 0xc54   : > { %v4627_v56 = vsel %vm4116_vm1, %v5956_v53, 0.0  ;;  %v9405_v44 = vpop.xlane.xlu1 %4274 }
 0xc5a   : > { %v9418_v27 = vpop.permute.xlu0 %4983 }
 0xc5b   : > { %10678 = vst [vmem:[#allocation95_spill] sm:$0xff] %v9418_v27 }
 0xc5c   : > { %4298 = vmax.xlane.f32.xlu0 %v4297_v59  ;;  %v5958_v59 = vpop.eup %5957 }
 0xc5d   : > { %v4756_v29 = vmul.f32 0.6931472, %v5958_v59 }
 0xc5f   : > { %4292 = vmax.xlane.f32.xlu1 %v4291_v11  ;;  %v9409_v11 = vsub.f32 %v8904_v60, %v9246_v34  ;;  %v4852_v53 = vsub.f32 %v9189_v57, %v4756_v29  ;;  %v4276_v60 = vsel %vm4116_vm1, %v8701_v49, -inf }
 0xc61   : > { %v4447_v8 = vmul.f32 1.442695, %v9409_v11 }
 0xc62   : > { %v9428_v29 = vpop.permute.xlu0 %5299 }
 0xc63   : > { %5961 = vpow2.f32 %v4447_v8  ;;  %10680 = vst [vmem:[#allocation97_spill] sm:$0xff] %v9428_v29  ;;  %v9430_v8 = vpop.permute.xlu2 %5183 }
 0xc64   : > { %4634 = vadd.xlane.f32.xlu0 %v4633_v6  ;;  %v9414_v6 = vpop.xlane.xlu1 %4610  ;;  %10681 = vst [vmem:[#allocation98_spill] sm:$0xff] %v9430_v8  ;;  %5963 = vlog2.f32 %v9260_v13 }
 0xc65   : > { %5965 = vlog2.f32 %v9252_v26 }
 0xc66   : > { %5967 = vlog2.f32 %v9244_v20 }
 0xc67   : > { %4628 = vadd.xlane.f32.xlu1 %v4627_v56  ;;  %v5960_v56 = vpop.eup %5959 }
 0xc68   : > { %v4754_v34 = vmul.f32 0.6931472, %v5960_v56 }
 0xc69   : > { %v5962_v52 = vpop.eup %5961 }
 0xc6a   : > { %v4851_v59 = vsub.f32 %v9055_v22, %v4754_v34  ;;  %v4612_v57 = vsel %vm4116_vm1, %v5962_v52, 0.0  ;;  %v5964_v34 = vpop.eup %5963 }
 0xc6b   : > { %v9440_v22 = vpop.permute.xlu2 %4967  ;;  %v5966_v52 = vpop.eup %5965 }
 0xc6c   : > { %v9423_v47 = vpop.permute.xlu1 %4981  ;;  %v4746_v8 = vmul.f32 0.6931472, %v5966_v52 }
 0xc6d   : > { %10679 = vst [vmem:[#allocation96_spill] sm:$0xff] %v9423_v47  ;;  %v3921_v47 = vpop.f32.mrf.mxu3 }
 0xc6e   : > { %v3987_v20 = vmul.f32 0.5, %v3921_v47  ;;  %v9476_v47 = vsub.f32 %v9070_v43, %v9298_v32 }
 0xc78   : > { %4995 = vrot.lane.b32.xlu0 %v4852_v53, %s6238_s15  ;;  %v9432_v53 = vpop.permute.xlu1 %5297 }
 0xc79   : > { %10682 = vst [vmem:[#allocation99_spill] sm:$0xff] %v9432_v53  ;;  %v4260_v53 = vpop.xlane.xlu2 %4259 }
 0xc7a   : > { %4277 = vmax.xlane.f32.xlu2 %v4276_v60  ;;  %v9452_v33 = vsub.f32 %v9095_v25, %v4260_v53  ;;  %v4463_v53 = vmul.f32 1.442695, %v9476_v47 }
 0xc7c   : > { %v4467_v23 = vmul.f32 1.442695, %v9452_v33 }
 0xc7e   : > { %5969 = vpow2.f32 %v4467_v23  ;;  %v10685_v23 = vld [vmem:[#allocation8_spill] sm:$0xff] }
 0xc7f   : > { %5971 = vlog2.f32 %v9372_v55  ;;  %v9496_v55 = vsub.f32 %v8970_v17, %v9279_v63 }
 0xc80   : > { %4993 = vrot.lane.b32.xlu1 %v4851_v59, %s6238_s15  ;;  %v9442_v60 = vpop.xlane.xlu1 %4283  ;;  %v5968_v59 = vpop.eup %5967  ;;  %5973 = vpow2.f32 %v4463_v53 }
 0xc81   : > { %v9437_v56 = vpop.xlane.xlu0 %4289  ;;  %10684 = vst [vmem:[#allocation101_spill] sm:$0xff] %v9442_v60  ;;  %v4716_v13 = vmul.f32 0.6931472, %v5968_v59  ;;  %v9487_v32 = vpop.permute.xlu2 %4973  ;;  %5975 = vlog2.f32 %v9334_v24 }
 0xc82   : > { %4613 = vadd.xlane.f32.xlu2 %v4612_v57  ;;  %10683 = vst [vmem:[#allocation100_spill] sm:$0xff] %v9437_v56  ;;  %v4718_v57 = vmul.f32 0.6931472, %v5964_v34  ;;  %v4051_v34 = vmul.f32 0.5, %v8552_v14 }
 0xc83   : > { %v4832_v52 = vsub.f32 %v8934_v1, %v4716_v13 }
 0xc84   : > { %v4833_v26 = vsub.f32 %v8928_v21, %v4718_v57  ;;  %v9460_v60 = vadd.f32 %v4051_v34, %v3987_v20 }
 0xc86   : > { %v5345_v59 = vsel %vm4116_vm1, %v4833_v26, %v9058_v4  ;;  %v4306_v1 = vsel %vm4116_vm1, %v9460_v60, -inf  ;;  %v5970_v4 = vpop.eup %5969 }
 0xc87   : > { %v5972_v43 = vpop.eup %5971 }
 0xc88   : > { %5309 = vrot.lane.b32.xlu1 %v9388_v40, %s6239_s16  ;;  %v9447_v27 = vpop.xlane.xlu1 %4619  ;;  %v4847_v40 = vsub.f32 %v8954_v50, %v4746_v8  ;;  %v5344_v50 = vsel %vm4116_vm1, %v4832_v52, %v8924_v2  ;;  %v4642_v2 = vsel %vm4116_vm1, %v5970_v4, 0.0  ;;  %v4049_v8 = vmul.f32 0.5, %v10685_v23 }
 0xc89   : > { %v9445_v29 = vpop.xlane.xlu0 %4625  ;;  %v4760_v13 = vmul.f32 0.6931472, %v5972_v43  ;;  %v9492_v34 = vpop.permute.xlu2 %5289  ;;  %v4453_v52 = vmul.f32 1.442695, %v9496_v55 }
 0xc8b   : > { %v4854_v20 = vsub.f32 %v9164_v45, %v4760_v13  ;;  %5977 = vpow2.f32 %v4453_v52 }
 0xc8c   : > { %5979 = vlog2.f32 %v9293_v35 }
 0xc8d   : > { %5981 = vlog2.f32 %v9283_v9  ;;  %v10686_v9 = vld [vmem:[#allocation64_spill] sm:$0xff] }
 0xc9a   : > { %4985 = vrot.lane.b32.xlu2 %v4847_v40, %s6238_s15  ;;  %v3985_v40 = vmul.f32 0.5, %v8745_v62  ;;  %v5974_v62 = vpop.eup %5973 }
 0xc9b   : > { %v4636_v26 = vsel %vm4116_vm1, %v5974_v62, 0.0 }
 0xc9c   : > { %v4990_v56 = vpop.permute.xlu0 %4989 }
 0xc9d   : > { %v9463_v21 = vsel %vm451_vm0, %v5345_v59, %v4990_v56  ;;  %v9482_v56 = vadd.f32 %v4049_v8, %v3985_v40  ;;  %v4269_v59 = vpop.xlane.xlu2 %4268 }
 0xc9e   : > { %v9510_v63 = vsub.f32 %v8681_v48, %v4269_v59 }
 0xc9f   : > { %v4988_v25 = vpop.permute.xlu1 %4987  ;;  %v4300_v57 = vsel %vm4116_vm1, %v9482_v56, -inf }
 0xca0   : > { %v9468_v14 = vsel %vm451_vm0, %v5344_v50, %v4988_v25  ;;  %v5976_v50 = vpop.eup %5975  ;;  %v4285_v25 = vsel %vm4116_vm1, %v8715_v3, -inf  ;;  %v4473_v8 = vmul.f32 1.442695, %v9510_v63 }
 0xca1   : > { %v4758_v45 = vmul.f32 0.6931472, %v5976_v50 }
 0xca2   : > { %5301 = vrot.lane.b32.xlu2 %v8715_v3, %s6239_s16  ;;  %4307 = vmax.xlane.f32.xlu0 %v4306_v1  ;;  %v5978_v1 = vpop.eup %5977  ;;  %5983 = vpow2.f32 %v4473_v8  ;;  %v10687_v8 = vld [vmem:[#allocation40_spill] sm:$0xff] }
 0xca3   : > { %v4853_v40 = vsub.f32 %v9113_v15, %v4758_v45  ;;  %v4621_v17 = vsel %vm4116_vm1, %v5978_v1, 0.0  ;;  %v5980_v15 = vpop.eup %5979  ;;  %5985 = vlog2.f32 %v9266_v5 }
 0xca4   : > { %v9502_v4 = vpop.permute.xlu0 %5305  ;;  %v5982_v48 = vpop.eup %5981  ;;  %v4724_v43 = vmul.f32 0.6931472, %v5980_v15  ;;  %5987 = vlog2.f32 %v9216_v12 }
 0xca5   : > { %5989 = vlog2.f32 %v9414_v6 }
 0xca6   : > { %v4836_v35 = vsub.f32 %v8998_v54, %v4724_v43  ;;  %v10688_v43 = vld [vmem:[#allocation58_spill] sm:$0xff] }
 0xca7   : > { %v9512_v24 = vpop.permute.xlu1 %5303 }
 0xca8   : > { %v5984_v13 = vpop.eup %5983  ;;  %v5348_v5 = vsel %vm4116_vm1, %v4836_v35, %v9089_v28  ;;  %v10689_v35 = vld [vmem:[#allocation24_spill] sm:$0xff] }
 0xca9   : > { %v5986_v52 = vpop.eup %5985  ;;  %v4651_v59 = vsel %vm4116_vm1, %v5984_v13, 0.0 }
 0xcaa   : > { %4643 = vadd.xlane.f32.xlu0 %v4642_v2  ;;  %v9505_v2 = vpop.xlane.xlu2 %4604  ;;  %v5988_v28 = vpop.eup %5987 }
 0xcab   : > { %v4714_v12 = vmul.f32 0.6931472, %v5988_v28 }
 0xcb2   : > { %4301 = vmax.xlane.f32.xlu1 %v4300_v57  ;;  %v9518_v53 = vpop.permute.xlu2 %4979 }
 0xcba   : > { %4637 = vadd.xlane.f32.xlu1 %v4636_v26  ;;  %v4752_v26 = vmul.f32 0.6931472, %v5982_v48 }
 0xcbc   : > { %v4850_v50 = vsub.f32 %v10686_v9, %v4752_v26  ;;  %v10690_v9 = vld [vmem:[#allocation73_spill] sm:$0xff] }
 0xcbe   : > { %5095 = vrot.lane.b32.xlu0 %v4854_v20, %s6240_s17  ;;  %v9526_v20 = vpop.permute.xlu2 %5295 }
 0xccb   : > { %4286 = vmax.xlane.f32.xlu2 %v4285_v25  ;;  %v4722_v25 = vmul.f32 0.6931472, %v5986_v52 }
 0xccd   : > { %v4835_v15 = vsub.f32 %v10687_v8, %v4722_v25 }
 0xccf   : > { %v9514_v23 = vpop.xlane.xlu0 %4298  ;;  %v5347_v13 = vsel %vm4116_vm1, %v4835_v15, %v10688_v43 }
 0xcd2   : > { %v9521_v57 = vpop.xlane.xlu1 %4292 }
 0xcd3   : > { %4622 = vadd.xlane.f32.xlu2 %v4621_v17  ;;  %5093 = vrot.lane.b32.xlu1 %v4853_v40, %s6240_s17  ;;  %v9537_v40 = vsub.f32 %v9120_v41, %v9325_v51  ;;  %v5990_v51 = vpop.eup %5989 }
 0xcd4   : > { %v4766_v52 = vmul.f32 0.6931472, %v5990_v51 }
 0xcd5   : > { %v4469_v48 = vmul.f32 1.442695, %v9537_v40 }
 0xcd6   : > { %v4857_v25 = vsub.f32 %v9223_v18, %v4766_v52 }
 0xcd7   : > { %v9524_v62 = vpop.xlane.xlu0 %4634  ;;  %5991 = vpow2.f32 %v4469_v48 }
 0xcd8   : > { %5993 = vlog2.f32 %v9370_v0  ;;  %v4294_v0 = vsel %vm4116_vm1, %v10689_v35, -inf }
 0xcda   : > { %v9531_v45 = vpop.xlane.xlu1 %4628 }
 0xce8   : > { %4652 = vadd.xlane.f32.xlu0 %v4651_v59  ;;  %v5992_v59 = vpop.eup %5991 }
 0xce9   : > { %v5994_v28 = vpop.eup %5993 }
 0xcea   : > { %v4996_v1 = vpop.permute.xlu0 %4995  ;;  %v4764_v43 = vmul.f32 0.6931472, %v5994_v28 }
 0xceb   : > { %4991 = vrot.lane.b32.xlu2 %v4850_v50, %s6238_s15  ;;  %v9541_v54 = vsel %vm451_vm0, %v5348_v5, %v4996_v1  ;;  %v4831_v50 = vsub.f32 %v10690_v9, %v4714_v12  ;;  %v4645_v5 = vsel %vm4116_vm1, %v5992_v59, 0.0  ;;  %v10691_v1 = vld [vmem:[#allocation72_spill] sm:$0xff]  ;;  %v10693_v59 = vld [vmem:[#allocation70_spill] sm:$0xff] }
 0xcec   : > { %v4856_v18 = vsub.f32 %v9174_v46, %v4764_v43 }
 0xced   : > { %v4278_v17 = vpop.xlane.xlu2 %4277  ;;  %v5343_v8 = vsel %vm4116_vm1, %v4831_v50, %v10691_v1 }
 0xcee   : > { %v9572_v51 = vsub.f32 %v8701_v49, %v4278_v17  ;;  %v10694_v17 = vld [vmem:[#allocation75_spill] sm:$0xff] }
 0xcef   : > { %v9584_v50 = vsub.f32 %v10694_v17, %v9341_v37 }
 0xcf0   : > { %v4479_v52 = vmul.f32 1.442695, %v9572_v51 }
 0xcf2   : > { %v4994_v41 = vpop.permute.xlu1 %4993 }
 0xcf3   : > { %v9550_v26 = vsel %vm451_vm0, %v5347_v13, %v4994_v41  ;;  %5307 = vrot.lane.b32.xlu2 %v10689_v35, %s6239_s16  ;;  %v10692_v13 = vld [vmem:[#allocation68_spill] sm:$0xff] }
 0xcf4   : > { %v9568_v41 = vsub.f32 %v10692_v13, %v9317_v61  ;;  %v9594_v13 = vsub.f32 %v9148_v30, %v9364_v10  ;;  %v9608_v30 = vsub.f32 %v9181_v7, %v9362_v16 }
 0xcf5   : > { %v9554_v6 = vpop.xlane.xlu2 %4613 }
 0xcf6   : > { %v4459_v12 = vmul.f32 1.442695, %v9568_v41 }
 0xcf8   : > { %5995 = vpow2.f32 %v4459_v12 }
 0xcf9   : > { %5997 = vlog2.f32 %v10693_v59 }
 0xcfa   : > { %5999 = vpow2.f32 %v4479_v52  ;;  %v9597_v37 = vpop.permute.xlu1 %5309  ;;  %v10697_v52 = vld [vmem:[#allocation26_spill] sm:$0xff] }
 0xcfc   : > { %5101 = vrot.lane.b32.xlu0 %v4857_v25, %s6240_s17 }
 0xcfd   : > { %v4986_v15 = vpop.permute.xlu2 %4985  ;;  %4646 = vadd.xlane.f32.xlu1 %v4645_v5 }
 0xcfe   : > { %v9563_v48 = vsel %vm451_vm0, %v5343_v8, %v4986_v15  ;;  %v5996_v46 = vpop.eup %5995  ;;  %v4465_v8 = vmul.f32 1.442695, %v9584_v50  ;;  %v10695_v15 = vld [vmem:[#allocation42_spill] sm:$0xff] }
 0xcff   : > { %v5998_v9 = vpop.eup %5997  ;;  %v4630_v25 = vsel %vm4116_vm1, %v5996_v46, 0.0  ;;  %v4471_v46 = vmul.f32 1.442695, %v9594_v13 }
 0xd00   : > { %v6000_v49 = vpop.eup %5999  ;;  %v4696_v5 = vmul.f32 0.6931472, %v5998_v9  ;;  %6001 = vpow2.f32 %v4465_v8  ;;  %v10699_v9 = vld [vmem:[#allocation16_spill] sm:$0xff] }
 0xd01   : > { %v4660_v1 = vsel %vm4116_vm1, %v6000_v49, 0.0  ;;  %6003 = vlog2.f32 %v9447_v27  ;;  %v10698_v27 = vld [vmem:[#allocation76_spill] sm:$0xff] }
 0xd02   : > { %v4822_v28 = vsub.f32 %v10695_v15, %v4696_v5  ;;  %6005 = vlog2.f32 %v10698_v27 }
 0xd03   : > { %6007 = vpow2.f32 %v4471_v46  ;;  %v10700_v46 = vld [vmem:[#allocation31_spill] sm:$0xff] }
 0xd04   : > { %v5334_v59 = vsel %vm4116_vm1, %v4822_v28, %v10697_v52 }
 0xd05   : > { %v9620_v15 = vpop.permute.xlu2 %5301 }
 0xd06   : > { %v6002_v10 = vpop.eup %6001 }
 0xd07   : > { %v4639_v7 = vsel %vm4116_vm1, %v6002_v10, 0.0 }
 0xd15   : > { %v9580_v61 = vpop.xlane.xlu0 %4307 }
 0xd16   : > { %5099 = vrot.lane.b32.xlu1 %v4856_v18, %s6240_s17  ;;  %v10696_v18 = vld [vmem:[#allocation51_spill] sm:$0xff] }
 0xd17   : > { %v4303_v12 = vsel %vm4116_vm1, %v10696_v18, -inf }
 0xd1c   : > { %4295 = vmax.xlane.f32.xlu2 %v4294_v0  ;;  %v5350_v0 = vsel %vm451_vm0, %v5334_v59, %v9440_v22  ;;  %v4475_v22 = vmul.f32 1.442695, %v9608_v30 }
 0xd1d   : > { %v9590_v43 = vpop.xlane.xlu0 %4643  ;;  %v5367_v49 = vsel %vm5365_vm3, %v5350_v0, %v10699_v9 }
 0xd1e   : > { %6009 = vpow2.f32 %v4475_v22 }
 0xd1f   : > { %6011 = vlog2.f32 %v9286_v36 }
 0xd20   : > { %6013 = vlog2.f32 %v9505_v2 }
 0xd21   : > { %6015 = vlog2.f32 %v9411_v31  ;;  %v10705_v31 = vld [vmem:[#allocation22_spill] sm:$0xff] }
 0xd24   : > { %4631 = vadd.xlane.f32.xlu2 %v4630_v25  ;;  %v6004_v25 = vpop.eup %6003 }
 0xd25   : > { %v4772_v16 = vmul.f32 0.6931472, %v6004_v25  ;;  %v6006_v8 = vpop.eup %6005 }
 0xd26   : > { %4661 = vadd.xlane.f32.xlu0 %v4660_v1  ;;  %v9617_v1 = vpop.xlane.xlu1 %4301  ;;  %v6008_v28 = vpop.eup %6007  ;;  %v4694_v52 = vmul.f32 0.6931472, %v6006_v8 }
 0xd27   : > { %v4648_v59 = vsel %vm4116_vm1, %v6008_v28, 0.0  ;;  %v6010_v0 = vpop.eup %6009 }
 0xd28   : > { %v4821_v27 = vsub.f32 %v10700_v46, %v4694_v52  ;;  %v6012_v22 = vpop.eup %6011 }
 0xd29   : > { %v4720_v36 = vmul.f32 0.6931472, %v6012_v22 }
 0xd2b   : > { %v4834_v52 = vsub.f32 %v9126_v39, %v4720_v36 }
 0xd2c   : > { %4304 = vmax.xlane.f32.xlu2 %v4303_v12  ;;  %v4860_v12 = vsub.f32 %v9296_v19, %v4772_v16 }
 0xd2e   : > { %v9627_v10 = vpop.xlane.xlu1 %4637 }
 0xd30   : > { %v5096_v17 = vpop.permute.xlu0 %5095 }
 0xd31   : > { %v9614_v5 = vsel %vm5382_vm2, %v5367_v49, %v5096_v17  ;;  %v4654_v49 = vsel %vm4116_vm1, %v6010_v0, 0.0  ;;  %v10701_v17 = vld [vmem:[#allocation28_spill] sm:$0xff] }
 0xd32   : > { %v5333_v19 = vsel %vm4116_vm1, %v4821_v27, %v10701_v17  ;;  %v10704_v17 = vld [vmem:[#allocation83_spill] sm:$0xff] }
 0xd33   : > { %v5349_v25 = vsel %vm451_vm0, %v5333_v19, %v9313_v58  ;;  %v10703_v58 = vld [vmem:[#allocation77_spill] sm:$0xff] }
 0xd34   : > { %4640 = vadd.xlane.f32.xlu2 %v4639_v7  ;;  %v10702_v7 = vld [vmem:[#allocation25_spill] sm:$0xff]  ;;  %v5346_v46 = vsel %vm4116_vm1, %v4834_v52, %v10703_v58  ;;  %v10708_v58 = vld [vmem:[#allocation30_spill] sm:$0xff] }
 0xd35   : > { %v5366_v16 = vsel %vm5365_vm3, %v5349_v25, %v10702_v7 }
 0xd3a   : > { %5107 = vrot.lane.b32.xlu0 %v4860_v12, %s6240_s17 }
 0xd3c   : > { %4649 = vadd.xlane.f32.xlu2 %v4648_v59  ;;  %v6014_v59 = vpop.eup %6013 }
 0xd3d   : > { %v4762_v0 = vmul.f32 0.6931472, %v6014_v59 }
 0xd3e   : > { %v4287_v9 = vpop.xlane.xlu2 %4286 }
 0xd3f   : > { %v4855_v19 = vsub.f32 %v10704_v17, %v4762_v0  ;;  %v9651_v25 = vsub.f32 %v8715_v3, %v4287_v9  ;;  %v10707_v3 = vld [vmem:[#allocation60_spill] sm:$0xff] }
 0xd40   : > { %4655 = vadd.xlane.f32.xlu1 %v4654_v49  ;;  %v6016_v49 = vpop.eup %6015 }
 0xd41   : > { %v4770_v22 = vmul.f32 0.6931472, %v6016_v49  ;;  %v4485_v39 = vmul.f32 1.442695, %v9651_v25 }
 0xd43   : > { %v4859_v7 = vsub.f32 %v10705_v31, %v4770_v22 }
 0xd45   : > { %v5094_v8 = vpop.permute.xlu1 %5093 }
 0xd46   : > { %v9637_v28 = vpop.xlane.xlu2 %4622  ;;  %v9640_v12 = vsel %vm5382_vm2, %v5366_v16, %v5094_v8  ;;  %v10706_v16 = vld [vmem:[#allocation15_spill] sm:$0xff] }
 0xd47   : > { %6017 = vlog2.f32 %v10706_v16 }
 0xd48   : > { %6019 = vpow2.f32 %v4485_v39 }
 0xd49   : > { %6021 = vlog2.f32 %v9531_v45  ;;  %v10711_v45 = vld [vmem:[#allocation21_spill] sm:$0xff] }
 0xd4d   : > { %v6018_v8 = vpop.eup %6017 }
 0xd4e   : > { %v4992_v2 = vpop.permute.xlu2 %4991  ;;  %v6020_v36 = vpop.eup %6019  ;;  %v4702_v52 = vmul.f32 0.6931472, %v6018_v8  ;;  %v9679_v8 = vsub.f32 %v10711_v45, %v9402_v38  ;;  %v10713_v38 = vld [vmem:[#allocation32_spill] sm:$0xff] }
 0xd4f   : > { %v9647_v27 = vsel %vm451_vm0, %v5346_v46, %v4992_v2  ;;  %v4669_v59 = vsel %vm4116_vm1, %v6020_v36, 0.0  ;;  %v10709_v2 = vld [vmem:[#allocation11_spill] sm:$0xff]  ;;  %v6022_v31 = vpop.eup %6021  ;;  %v10712_v36 = vld [vmem:[#allocation13_spill] sm:$0xff]  ;;  %v10716_v45 = vld [vmem:[#allocation36_spill] sm:$0xff] }
 0xd50   : > { %v4825_v9 = vsub.f32 %v10707_v3, %v4702_v52  ;;  %v9667_v49 = vsub.f32 %v10709_v2, %v9405_v44  ;;  %6023 = vlog2.f32 %v10712_v36  ;;  %v4778_v44 = vmul.f32 0.6931472, %v6022_v31 }
 0xd52   : > { %v5337_v46 = vsel %vm4116_vm1, %v4825_v9, %v10708_v58  ;;  %v4863_v52 = vsub.f32 %v9385_v42, %v4778_v44 }
 0xd53   : > { %v5353_v17 = vsel %vm451_vm0, %v5337_v46, %v9487_v32  ;;  %v4481_v32 = vmul.f32 1.442695, %v9679_v8 }
 0xd54   : > { %5097 = vrot.lane.b32.xlu2 %v4855_v19, %s6240_s17  ;;  %v10710_v19 = vld [vmem:[#allocation38_spill] sm:$0xff] }
 0xd55   : > { %v5370_v22 = vsel %vm5365_vm3, %v5353_v17, %v10710_v19 }
 0xd59   : > { %5105 = vrot.lane.b32.xlu1 %v4859_v7, %s6240_s17  ;;  %v4477_v7 = vmul.f32 1.442695, %v9667_v49 }
 0xd5b   : > { %v9660_v0 = vpop.xlane.xlu0 %4652  ;;  %6025 = vpow2.f32 %v4477_v7  ;;  %v9695_v7 = vpop.permute.xlu2 %5307 }
 0xd5c   : > { %6027 = vpow2.f32 %v4481_v32 }
 0xd5d   : > { %6029 = vlog2.f32 %v9554_v6 }
 0xd5e   : > { %6031 = vlog2.f32 %v9445_v29 }
 0xd64   : > { %4670 = vadd.xlane.f32.xlu0 %v4669_v59  ;;  %v6024_v59 = vpop.eup %6023 }
 0xd65   : > { %v6026_v3 = vpop.eup %6025  ;;  %v4700_v9 = vmul.f32 0.6931472, %v6024_v59 }
 0xd66   : > { %v4657_v58 = vsel %vm4116_vm1, %v6026_v3, 0.0  ;;  %v6028_v46 = vpop.eup %6027 }
 0xd67   : > { %v4824_v2 = vsub.f32 %v10713_v38, %v4700_v9  ;;  %v4663_v19 = vsel %vm4116_vm1, %v6028_v46, 0.0 }
 0xd6e   : > { %v5102_v39 = vpop.permute.xlu0 %5101 }
 0xd6f   : > { %v9675_v16 = vsel %vm5382_vm2, %v5370_v22, %v5102_v39  ;;  %v10714_v22 = vld [vmem:[#allocation48_spill] sm:$0xff]  ;;  %v10715_v39 = vld [vmem:[#allocation85_spill] sm:$0xff] }
 0xd70   : > { %v9687_v17 = vpop.xlane.xlu1 %4646  ;;  %v5336_v42 = vsel %vm4116_vm1, %v4824_v2, %v10714_v22  ;;  %v10717_v2 = vld [vmem:[#allocation47_spill] sm:$0xff] }
 0xd71   : > { %v5352_v31 = vsel %vm451_vm0, %v5336_v42, %v10715_v39  ;;  %6033 = vlog2.f32 %v10717_v2 }
 0xd72   : > { %v5369_v36 = vsel %vm5365_vm3, %v5352_v31, %v10716_v45  ;;  %v10719_v31 = vld [vmem:[#allocation54_spill] sm:$0xff] }
 0xd78   : > { %5113 = vrot.lane.b32.xlu0 %v4863_v52, %s6240_s17  ;;  %v6030_v52 = vpop.eup %6029 }
 0xd79   : > { %v4768_v59 = vmul.f32 0.6931472, %v6030_v52 }
 0xd7b   : > { %v4858_v6 = vsub.f32 %v9409_v11, %v4768_v59  ;;  %v10721_v59 = vld [vmem:[#allocation101_spill] sm:$0xff] }
 0xd7d   : > { %4658 = vadd.xlane.f32.xlu2 %v4657_v58  ;;  %v6032_v58 = vpop.eup %6031 }
 0xd7e   : > { %v4776_v38 = vmul.f32 0.6931472, %v6032_v58  ;;  %v6034_v29 = vpop.eup %6033 }
 0xd7f   : > { %v4708_v39 = vmul.f32 0.6931472, %v6034_v29  ;;  %v10724_v29 = vld [vmem:[#allocation100_spill] sm:$0xff] }
 0xd81   : > { %v4828_v11 = vsub.f32 %v10719_v31, %v4708_v39 }
 0xd83   : > { %4664 = vadd.xlane.f32.xlu1 %v4663_v19  ;;  %v10718_v19 = vld [vmem:[#allocation80_spill] sm:$0xff] }
 0xd84   : > { %v4862_v22 = vsub.f32 %v10718_v19, %v4776_v38 }
 0xd88   : > { %v5100_v44 = vpop.permute.xlu1 %5099 }
 0xd89   : > { %v9700_v32 = vsel %vm5382_vm2, %v5369_v36, %v5100_v44  ;;  %v10720_v36 = vld [vmem:[#allocation39_spill] sm:$0xff] }
 0xd8a   : > { %v5340_v44 = vsel %vm4116_vm1, %v4828_v11, %v10720_v36 }
 0xd8b   : > { %v5356_v52 = vsel %vm451_vm0, %v5340_v44, %v9518_v53 }
 0xd8f   : > { %v4296_v3 = vpop.xlane.xlu2 %4295 }
 0xd90   : > { %v9704_v9 = vsub.f32 %v10689_v35, %v4296_v3  ;;  %v10722_v3 = vld [vmem:[#allocation59_spill] sm:$0xff] }
 0xd91   : > { %v9721_v58 = vsub.f32 %v10722_v3, %v10721_v59 }
 0xd92   : > { %v4491_v46 = vmul.f32 1.442695, %v9704_v9 }
 0xd94   : > { %6035 = vpow2.f32 %v4491_v46 }
 0xd95   : > { %5103 = vrot.lane.b32.xlu2 %v4858_v6, %s6240_s17  ;;  %6037 = vlog2.f32 %v9627_v10  ;;  %v10723_v6 = vld [vmem:[#allocation66_spill] sm:$0xff]  ;;  %v4483_v10 = vmul.f32 1.442695, %v9721_v58 }
 0xd96   : > { %v5373_v46 = vsel %vm5365_vm3, %v5356_v52, %v10723_v6  ;;  %v10727_v6 = vld [vmem:[#allocation35_spill] sm:$0xff] }
 0xd97   : > { %6039 = vpow2.f32 %v4483_v10  ;;  %v4632_v59 = vpop.xlane.xlu2 %4631 }
 0xd99   : > { %v4662_v45 = vpop.xlane.xlu0 %4661 }
 0xd9a   : > { %v6036_v42 = vpop.eup %6035 }
 0xd9b   : > { %v4678_v35 = vsel %vm4116_vm1, %v6036_v42, 0.0  ;;  %v6038_v2 = vpop.eup %6037  ;;  %v10725_v42 = vld [vmem:[#allocation49_spill] sm:$0xff] }
 0xd9c   : > { %5111 = vrot.lane.b32.xlu1 %v4862_v22, %s6240_s17  ;;  %v4784_v22 = vmul.f32 0.6931472, %v6038_v2  ;;  %v9731_v39 = vsub.f32 %v10725_v42, %v10724_v29  ;;  %v10728_v2 = vld [vmem:[#allocation10_spill] sm:$0xff] }
 0xd9d   : > { %v6040_v11 = vpop.eup %6039 }
 0xd9e   : > { %v4866_v53 = vsub.f32 %v9476_v47, %v4784_v22  ;;  %v4487_v31 = vmul.f32 1.442695, %v9731_v39  ;;  %v4666_v44 = vsel %vm4116_vm1, %v6040_v11, 0.0  ;;  %v10729_v22 = vld [vmem:[#allocation91_spill] sm:$0xff] }
 0xd9f   : > { %v4305_v42 = vpop.xlane.xlu2 %4304 }
 0xda2   : > { %4679 = vadd.xlane.f32.xlu0 %v4678_v35  ;;  %v10726_v35 = vld [vmem:[#allocation50_spill] sm:$0xff] }
 0xda3   : > { %6041 = vlog2.f32 %v10726_v35 }
 0xda4   : > { %6043 = vpow2.f32 %v4487_v31 }
 0xda5   : > { %6045 = vlog2.f32 %v9637_v28 }
 0xda6   : > { %6047 = vlog2.f32 %v9524_v62  ;;  %v10732_v62 = vld [vmem:[#allocation57_spill] sm:$0xff] }
 0xda9   : > { %v6042_v36 = vpop.eup %6041 }
 0xdaa   : > { %v4706_v52 = vmul.f32 0.6931472, %v6042_v36  ;;  %v6044_v3 = vpop.eup %6043 }
 0xdab   : > { %v4672_v47 = vsel %vm4116_vm1, %v6044_v3, 0.0  ;;  %v6046_v36 = vpop.eup %6045 }
 0xdac   : > { %v5108_v38 = vpop.permute.xlu0 %5107 }
 0xdad   : > { %v9726_v19 = vsel %vm5382_vm2, %v5373_v46, %v5108_v38  ;;  %v4827_v46 = vsub.f32 %v10727_v6, %v4706_v52  ;;  %v4774_v52 = vmul.f32 0.6931472, %v6046_v36  ;;  %v6048_v6 = vpop.eup %6047 }
 0xdaf   : > { %v5339_v10 = vsel %vm4116_vm1, %v4827_v46, %v10728_v2  ;;  %v4861_v3 = vsub.f32 %v9496_v55, %v4774_v52  ;;  %v4782_v46 = vmul.f32 0.6931472, %v6048_v6  ;;  %v10731_v2 = vld [vmem:[#allocation90_spill] sm:$0xff]  ;;  %v5376_v55 = vsel %vm5365_vm3, %v9563_v48, %v10732_v62 }
 0xdb0   : > { %v5355_v29 = vsel %vm451_vm0, %v5339_v10, %v10729_v22  ;;  %v10734_v6 = vld [vmem:[#allocation18_spill] sm:$0xff] }
 0xdb1   : > { %v4865_v10 = vsub.f32 %v10731_v2, %v4782_v46  ;;  %v9778_v46 = vsub.f32 %v10734_v6, %v9514_v23  ;;  %v10739_v6 = vld [vmem:[#allocation45_spill] sm:$0xff] }
 0xdb3   : > { %v9739_v38 = vpop.xlane.xlu1 %4655 }
 0xdb6   : > { %5119 = vrot.lane.b32.xlu0 %v4866_v53, %s6240_s17  ;;  %v10730_v53 = vld [vmem:[#allocation56_spill] sm:$0xff] }
 0xdb7   : > { %v5372_v35 = vsel %vm5365_vm3, %v5355_v29, %v10730_v53 }
 0xdbe   : > { %4667 = vadd.xlane.f32.xlu2 %v4666_v44  ;;  %v9753_v44 = vsub.f32 %v10696_v18, %v4305_v42 }
 0xdc0   : > { %v4497_v28 = vmul.f32 1.442695, %v9753_v44 }
 0xdc2   : > { %6049 = vpow2.f32 %v4497_v28 }
 0xdc3   : > { %6051 = vlog2.f32 %v9660_v0 }
 0xdc4   : > { %6053 = vlog2.f32 %v4662_v45 }
 0xdc6   : > { %4673 = vadd.xlane.f32.xlu1 %v4672_v47 }
 0xdc8   : > { %v6050_v47 = vpop.eup %6049 }
 0xdc9   : > { %v4687_v22 = vsel %vm4116_vm1, %v6050_v47, 0.0  ;;  %v6052_v53 = vpop.eup %6051  ;;  %v10735_v47 = vld [vmem:[#allocation9_spill] sm:$0xff] }
 0xdca   : > { %v4794_v52 = vmul.f32 0.6931472, %v6052_v53  ;;  %v6054_v0 = vpop.eup %6053 }
 0xdcb   : > { %v5106_v31 = vpop.permute.xlu1 %5105  ;;  %v4800_v48 = vmul.f32 0.6931472, %v6054_v0 }
 0xdcc   : > { %v9750_v11 = vsel %vm5382_vm2, %v5372_v35, %v5106_v31  ;;  %v10733_v31 = vld [vmem:[#allocation23_spill] sm:$0xff] }
 0xdcd   : > { %v9771_v36 = vsub.f32 %v10733_v31, %v9521_v57  ;;  %v4874_v45 = vsub.f32 %v9572_v51, %v4800_v48 }
 0xdcf   : > { %v4489_v28 = vmul.f32 1.442695, %v9771_v36 }
 0xdd1   : > { %6055 = vpow2.f32 %v4489_v28 }
 0xdd6   : > { %5109 = vrot.lane.b32.xlu2 %v4861_v3, %s6240_s17  ;;  %v4871_v3 = vsub.f32 %v9510_v63, %v4794_v52  ;;  %v10737_v52 = vld [vmem:[#allocation67_spill] sm:$0xff] }
 0xdd7   : > { %v4671_v29 = vpop.xlane.xlu0 %4670  ;;  %v6056_v57 = vpop.eup %6055 }
 0xdd8   : > { %6057 = vlog2.f32 %v4671_v29 }
 0xdd9   : > { %6059 = vlog2.f32 %v10735_v47 }
 0xdde   : > { %v6058_v2 = vpop.eup %6057 }
 0xddf   : > { %5117 = vrot.lane.b32.xlu1 %v4865_v10, %s6240_s17  ;;  %v4493_v10 = vmul.f32 1.442695, %v9778_v46  ;;  %v4806_v63 = vmul.f32 0.6931472, %v6058_v2  ;;  %v6060_v62 = vpop.eup %6059 }
 0xde0   : > { %4688 = vadd.xlane.f32.xlu0 %v4687_v22  ;;  %v4675_v22 = vsel %vm4116_vm1, %v6056_v57, 0.0  ;;  %v4712_v29 = vmul.f32 0.6931472, %v6060_v62 }
 0xde1   : > { %6061 = vpow2.f32 %v4493_v10  ;;  %v4877_v23 = vsub.f32 %v9651_v25, %v4806_v63 }
 0xde2   : > { %6063 = vlog2.f32 %v4632_v59 }
 0xde3   : > { %6065 = vlog2.f32 %v9590_v43 }
 0xdea   : > { %v5114_v42 = vpop.permute.xlu0 %5113 }
 0xdeb   : > { %v9767_v35 = vsel %vm5382_vm2, %v5376_v55, %v5114_v42  ;;  %v6062_v55 = vpop.eup %6061  ;;  %v10736_v42 = vld [vmem:[#allocation43_spill] sm:$0xff] }
 0xdec   : > { %v4830_v53 = vsub.f32 %v10736_v42, %v4712_v29  ;;  %v4681_v31 = vsel %vm4116_vm1, %v6062_v55, 0.0  ;;  %v6064_v48 = vpop.eup %6063  ;;  %v10740_v55 = vld [vmem:[#allocation62_spill] sm:$0xff] }
 0xded   : > { %v6066_v10 = vpop.eup %6065 }
 0xdee   : > { %v5342_v28 = vsel %vm4116_vm1, %v4830_v53, %v10737_v52  ;;  %v9815_v53 = vsub.f32 %v9482_v56, %v9617_v1 }
 0xdf4   : > { %5225 = vrot.lane.b32.xlu0 %v4871_v3, %s6241_s18  ;;  %v10738_v3 = vld [vmem:[#allocation95_spill] sm:$0xff] }
 0xdf5   : > { %v5358_v0 = vsel %vm451_vm0, %v5342_v28, %v10738_v3 }
 0xdf6   : > { %v9788_v51 = vpop.xlane.xlu1 %4664  ;;  %v5375_v25 = vsel %vm5365_vm3, %v5358_v0, %v10739_v6 }
 0xdfc   : > { %5231 = vrot.lane.b32.xlu0 %v4874_v45, %s6241_s18  ;;  %v4780_v45 = vmul.f32 0.6931472, %v6064_v48 }
 0xdfe   : > { %v4864_v59 = vsub.f32 %v9568_v41, %v4780_v45  ;;  %v5379_v41 = vsel %vm5365_vm3, %v9647_v27, %v10740_v55  ;;  %v10742_v45 = vld [vmem:[#allocation65_spill] sm:$0xff] }
 0xdff   : > { %4676 = vadd.xlane.f32.xlu2 %v4675_v22  ;;  %v4788_v22 = vmul.f32 0.6931472, %v6066_v10 }
 0xe04   : > { %5237 = vrot.lane.b32.xlu0 %v4877_v23, %s6241_s18  ;;  %v4868_v23 = vsub.f32 %v9452_v33, %v4788_v22  ;;  %v9820_v33 = vsub.f32 %v9460_v60, %v9580_v61 }
 0xe06   : > { %v4499_v27 = vmul.f32 1.442695, %v9820_v33 }
 0xe09   : > { %4682 = vadd.xlane.f32.xlu1 %v4681_v31  ;;  %v4641_v31 = vpop.xlane.xlu2 %4640 }
 0xe0e   : > { %v5112_v47 = vpop.permute.xlu1 %5111 }
 0xe0f   : > { %v9798_v57 = vsel %vm5382_vm2, %v5375_v25, %v5112_v47  ;;  %v10741_v25 = vld [vmem:[#allocation19_spill] sm:$0xff] }
 0xe11   : > { %v4650_v28 = vpop.xlane.xlu2 %4649 }
 0xe15   : > { %v4680_v2 = vpop.xlane.xlu0 %4679 }
 0xe16   : > { %6067 = vlog2.f32 %v4680_v2 }
 0xe17   : > { %5115 = vrot.lane.b32.xlu2 %v4864_v59, %s6240_s17  ;;  %v5378_v59 = vsel %vm5365_vm3, %v9463_v21, %v10742_v45  ;;  %v10747_v45 = vld [vmem:[#allocation86_spill] sm:$0xff] }
 0xe19   : > { %v5098_v0 = vpop.permute.xlu2 %5097 }
 0xe1c   : > { %v6068_v63 = vpop.eup %6067 }
 0xe1d   : > { %v4812_v62 = vmul.f32 0.6931472, %v6068_v63 }
 0xe1f   : > { %v4880_v29 = vsub.f32 %v9704_v9, %v4812_v62  ;;  %v4495_v9 = vmul.f32 1.442695, %v9815_v53  ;;  %v10743_v62 = vld [vmem:[#allocation53_spill] sm:$0xff] }
 0xe21   : > { %5243 = vrot.lane.b32.xlu0 %v4880_v29, %s6241_s18  ;;  %6069 = vpow2.f32 %v4495_v9  ;;  %v4659_v61 = vpop.xlane.xlu2 %4658  ;;  %v10744_v9 = vld [vmem:[#allocation27_spill] sm:$0xff] }
 0xe22   : > { %5123 = vrot.lane.b32.xlu1 %v4868_v23, %s6240_s17  ;;  %6071 = vpow2.f32 %v4499_v27 }
 0xe23   : > { %6073 = vlog2.f32 %v4641_v31 }
 0xe24   : > { %6075 = vlog2.f32 %v10741_v25 }
 0xe25   : > { %6077 = vlog2.f32 %v9687_v17 }
 0xe26   : > { %6079 = vlog2.f32 %v10743_v62 }
 0xe27   : > { %v6070_v52 = vpop.eup %6069 }
 0xe28   : > { %v5120_v43 = vpop.permute.xlu0 %5119  ;;  %v4684_v3 = vsel %vm4116_vm1, %v6070_v52, 0.0  ;;  %v6072_v48 = vpop.eup %6071 }
 0xe29   : > { %v9811_v42 = vsel %vm5382_vm2, %v5379_v41, %v5120_v43  ;;  %v4690_v6 = vsel %vm4116_vm1, %v6072_v48, 0.0  ;;  %v6074_v47 = vpop.eup %6073  ;;  %v5104_v17 = vpop.permute.xlu2 %5103 }
 0xe2a   : > { %v4786_v10 = vmul.f32 0.6931472, %v6074_v47  ;;  %v6076_v22 = vpop.eup %6075 }
 0xe2b   : > { %v4698_v23 = vmul.f32 0.6931472, %v6076_v22  ;;  %v6078_v41 = vpop.eup %6077  ;;  %v10748_v22 = vld [vmem:[#allocation37_spill] sm:$0xff] }
 0xe2c   : > { %v4867_v55 = vsub.f32 %v9584_v50, %v4786_v10  ;;  %v6080_v43 = vpop.eup %6079  ;;  %v4790_v52 = vmul.f32 0.6931472, %v6078_v41 }
 0xe2d   : > { %v4823_v31 = vsub.f32 %v10744_v9, %v4698_v23  ;;  %v4704_v48 = vmul.f32 0.6931472, %v6080_v43  ;;  %v10750_v43 = vld [vmem:[#allocation34_spill] sm:$0xff] }
 0xe2e   : > { %v4869_v47 = vsub.f32 %v9537_v40, %v4790_v52 }
 0xe31   : > { %v4668_v10 = vpop.xlane.xlu2 %4667 }
 0xe39   : > { %v9824_v1 = vpop.xlane.xlu1 %4673 }
 0xe40   : > { %4685 = vadd.xlane.f32.xlu2 %v4684_v3 }
 0xe4c   : > { %4691 = vadd.xlane.f32.xlu1 %v4690_v6  ;;  %v10745_v6 = vld [vmem:[#allocation12_spill] sm:$0xff] }
 0xe51   : > { %v5118_v2 = vpop.permute.xlu1 %5117 }
 0xe52   : > { %v9833_v63 = vsel %vm5382_vm2, %v5378_v59, %v5118_v2 }
 0xe53   : > { %v4689_v29 = vpop.xlane.xlu0 %4688 }
 0xe54   : > { %6081 = vlog2.f32 %v4689_v29  ;;  %v10749_v29 = vld [vmem:[#allocation33_spill] sm:$0xff] }
 0xe55   : > { %6083 = vlog2.f32 %v4650_v28  ;;  %v10746_v28 = vld [vmem:[#allocation29_spill] sm:$0xff] }
 0xe56   : > { %6085 = vlog2.f32 %v9739_v38  ;;  %v5335_v25 = vsel %vm4116_vm1, %v4823_v31, %v10746_v28  ;;  %v10751_v31 = vld [vmem:[#allocation46_spill] sm:$0xff] }
 0xe57   : > { %6087 = vlog2.f32 %v10745_v6  ;;  %v5351_v59 = vsel %vm451_vm0, %v5335_v25, %v10747_v45  ;;  %v5110_v45 = vpop.permute.xlu2 %5109 }
 0xe58   : > { %5121 = vrot.lane.b32.xlu2 %v4867_v55, %s6240_s17  ;;  %6089 = vlog2.f32 %v4659_v61  ;;  %v5368_v40 = vsel %vm5365_vm3, %v5351_v59, %v10749_v29  ;;  %s6191_s17 = scalar_lea.hbm %s10059_s6, 256 }
 0xe59   : > { %6091 = vlog2.f32 %v9788_v51  ;;  %v5385_v55 = vsel %vm5382_vm2, %v5368_v40, %v5098_v0  ;;  %v10757_v40 = vld [vmem:[#allocation96_spill] sm:$0xff]  ;;  %p6193_p1 = scmp.lt.s32.totalorder %s6191_s17, %s6187_s12 }
 0xe5a   : > { %v6082_v21 = vpop.eup %6081  ;;  %6093 = vlog2.f32 %v4668_v10 }
 0xe5b   : > { %v4818_v27 = vmul.f32 0.6931472, %v6082_v21  ;;  %v6084_v3 = vpop.eup %6083  ;;  %6095 = vlog2.f32 %v9824_v1  ;;  %v10755_v1 = vld [vmem:[#allocation44_spill] sm:$0xff]  ;;  %p6194_p2 = por %p6193_p1, %p6192_p0 }
 0xe5c   : > { %v6086_v38 = vpop.eup %6085  ;;  %v4792_v2 = vmul.f32 0.6931472, %v6084_v3 }
 0xe5d   : > { %v4883_v50 = vsub.f32 %v9753_v44, %v4818_v27  ;;  %v4826_v44 = vsub.f32 %v10748_v22, %v4704_v48  ;;  %v4796_v62 = vmul.f32 0.6931472, %v6086_v38  ;;  %v6088_v61 = vpop.eup %6087  ;;  %v10752_v27 = vld [vmem:[#allocation92_spill] sm:$0xff]  ;;  %v10756_v22 = vld [vmem:[#allocation7_spill] sm:$0xff]  ;;  %p6195_p3 = pnand %p6194_p2, %p6190_p13 }
 0xe5e   : > { %v4870_v23 = vsub.f32 %v9594_v13, %v4792_v2  ;;  %v6090_v41 = vpop.eup %6089  ;;  %v4710_v51 = vmul.f32 0.6931472, %v6088_v61  ;;  %v5402_v13 = vsel %vm5399_vm5, %v5385_v55, %v10751_v31  ;;  %v10758_v55 = vld [vmem:[#allocation63_spill] sm:$0xff]  ;;  %v10759_v31 = vld [vmem:[#allocation20_spill] sm:$0xff] }
 0xe5f   : > { %5249 = vrot.lane.b32.xlu0 %v4883_v50, %s6241_s18  ;;  %v5338_v21 = vsel %vm4116_vm1, %v4826_v44, %v10750_v43  ;;  %v4872_v9 = vsub.f32 %v9608_v30, %v4796_v62  ;;  %v6092_v0 = vpop.eup %6091  ;;  %v4798_v48 = vmul.f32 0.6931472, %v6090_v41  ;;  %v10753_v30 = vld [vmem:[#allocation71_spill] sm:$0xff] }
 0xe60   : > { %5221 = vrot.lane.b32.xlu2 %v4869_v47, %s6241_s18  ;;  %v5354_v3 = vsel %vm451_vm0, %v5338_v21, %v10752_v27  ;;  %v4829_v28 = vsub.f32 %v10753_v30, %v4710_v51  ;;  %v4802_v25 = vmul.f32 0.6931472, %v6092_v0  ;;  %v10754_v47 = vld [vmem:[#allocation41_spill] sm:$0xff]  ;;  %v6094_v59 = vpop.eup %6093 }
 0xe61   : > { %v5371_v38 = vsel %vm5365_vm3, %v5354_v3, %v10754_v47  ;;  %v6096_v29 = vpop.eup %6095  ;;  %v10761_v47 = vld [vmem:[#allocation81_spill] sm:$0xff] }
 0xe62   : > { %v5341_v2 = vsel %vm4116_vm1, %v4829_v28, %v10755_v1  ;;  %v4875_v10 = vsub.f32 %v9679_v8, %v4802_v25  ;;  %v4808_v41 = vmul.f32 0.6931472, %v6096_v29 }
 0xe63   : > { %v5357_v61 = vsel %vm451_vm0, %v5341_v2, %v10757_v40  ;;  %v10764_v40 = vld [vmem:[#allocation17_spill] sm:$0xff] }
 0xe64   : > { %v5374_v8 = vsel %vm5365_vm3, %v5357_v61, %v10758_v55  ;;  %v5400_v61 = vsel %vm5399_vm5, %v9640_v12, %v10764_v40 }
 0xe65   : > { %5223 = vrot.lane.b32.xlu1 %v4870_v23, %s6241_s18  ;;  %v4804_v23 = vmul.f32 0.6931472, %v6094_v59  ;;  %v5391_v51 = vsel %vm5382_vm2, %v5374_v8, %v5110_v45 }
 0xe66   : > { %v5226_v52 = vpop.permute.xlu0 %5225 }
 0xe67   : > { %v5419_v6 = vsel %vm5416_vm4, %v5402_v13, %v5226_v52  ;;  %5311 = vrot.lane.b32.xlu0 %v9482_v56, %s6239_s16  ;;  %v4873_v56 = vsub.f32 %v9667_v49, %v4798_v48  ;;  %v4876_v21 = vsub.f32 %v9721_v58, %v4804_v23 }
 0xe68   : > { %v5436_v50 = vsel %vm5433_vm6, %v5419_v6, %v9492_v34  ;;  %5227 = vrot.lane.b32.xlu2 %v4872_v9, %s6241_s18  ;;  %v5388_v34 = vsel %vm5382_vm2, %v5371_v38, %v5104_v17  ;;  %v4878_v9 = vsub.f32 %v9731_v39, %v4808_v41  ;;  %v10766_v41 = vld [vmem:[#allocation14_spill] sm:$0xff] }
 0xe69   : > { %5452 = vst [vmem:[%s9873_s26 + $0x10] sm:$0xff] %v5436_v50  ;;  %v5405_v44 = vsel %vm5399_vm5, %v5388_v34, %v10756_v22  ;;  %v10763_v22 = vld [vmem:[#allocation69_spill] sm:$0xff] }
 0xe6d   : > { %5229 = vrot.lane.b32.xlu1 %v4873_v56, %s6241_s18  ;;  %v10762_v56 = vld [vmem:[#allocation74_spill] sm:$0xff] }
 0xe6e   : > { %v5232_v62 = vpop.permute.xlu0 %5231  ;;  %v5381_v34 = vsel %vm5365_vm3, %v9541_v54, %v10762_v56 }
 0xe6f   : > { %v5422_v49 = vsel %vm5416_vm4, %v5405_v44, %v5232_v62  ;;  %v5380_v44 = vsel %vm5365_vm3, %v9550_v26, %v10763_v22 }
 0xe70   : > { %v5439_v17 = vsel %vm5433_vm6, %v5422_v49, %v9526_v20  ;;  %5233 = vrot.lane.b32.xlu2 %v4875_v10, %s6241_s18  ;;  %v5408_v20 = vsel %vm5399_vm5, %v5391_v51, %v10759_v31  ;;  %v10767_v51 = vld [vmem:[#allocation94_spill] sm:$0xff] }
 0xe71   : > { %5455 = vst [vmem:[%s9873_s26 + $0x28] sm:$0xff] %v5439_v17  ;;  %v10765_v17 = vld [vmem:[#allocation88_spill] sm:$0xff]  ;;  %v10768_v31 = vld [vmem:[#allocation6_spill] sm:$0xff] }
 0xe72   : > { %v4677_v43 = vpop.xlane.xlu2 %4676 }
 0xe73   : > { %6097 = vlog2.f32 %v4677_v43  ;;  %v5403_v43 = vsel %vm5399_vm5, %v9700_v32, %v10766_v41 }
 0xe75   : > { %5235 = vrot.lane.b32.xlu1 %v4876_v21, %s6241_s18 }
 0xe76   : > { %v5238_v13 = vpop.permute.xlu0 %5237 }
 0xe77   : > { %v5425_v52 = vsel %vm5416_vm4, %v5408_v20, %v5238_v13  ;;  %v10769_v20 = vld [vmem:[#allocation99_spill] sm:$0xff] }
 0xe78   : > { %v5442_v0 = vsel %vm5433_vm6, %v5425_v52, %v9620_v15  ;;  %5239 = vrot.lane.b32.xlu2 %v4878_v9, %s6241_s18  ;;  %v10760_v15 = vld [vmem:[#allocation61_spill] sm:$0xff] }
 0xe79   : > { %v6098_v27 = vpop.eup %6097  ;;  %5458 = vst [vmem:[%s9873_s26 + $0x40] sm:$0xff] %v5442_v0  ;;  %v5377_v28 = vsel %vm5365_vm3, %v9468_v14, %v10760_v15  ;;  %v10770_v0 = vld [vmem:[#allocation55_spill] sm:$0xff] }
 0xe7a   : > { %v4810_v58 = vmul.f32 0.6931472, %v6098_v27  ;;  %v5116_v30 = vpop.permute.xlu2 %5115  ;;  %v5401_v27 = vsel %vm5399_vm5, %v9614_v5, %v10770_v0 }
 0xe7b   : > { %v5394_v25 = vsel %vm5382_vm2, %v5377_v28, %v5116_v30  ;;  %v10773_v30 = vld [vmem:[#allocation5_spill] sm:$0xff] }
 0xe7c   : > { %v4879_v3 = vsub.f32 %v9771_v36, %v4810_v58  ;;  %v4683_v48 = vpop.xlane.xlu1 %4682  ;;  %v5411_v36 = vsel %vm5399_vm5, %v5394_v25, %v10761_v47  ;;  %v5404_v15 = vsel %vm5399_vm5, %v9675_v16, %v10773_v30  ;;  %v10774_v25 = vld [vmem:[#allocation93_spill] sm:$0xff]  ;;  %v10776_v16 = vld [vmem:[#allocation78_spill] sm:$0xff] }
 0xe7d   : > { %6099 = vlog2.f32 %v4683_v48 }
 0xe7e   : > { %5241 = vrot.lane.b32.xlu1 %v4879_v3, %s6241_s18  ;;  %v10771_v3 = vld [vmem:[#allocation87_spill] sm:$0xff] }
 0xe83   : > { %v6100_v39 = vpop.eup %6099 }
 0xe84   : > { %v4814_v6 = vmul.f32 0.6931472, %v6100_v39 }
 0xe86   : > { %v4881_v50 = vsub.f32 %v9778_v46, %v4814_v6 }
 0xe88   : > { %5245 = vrot.lane.b32.xlu2 %v4881_v50, %s6241_s18 }
 0xe93   : > { %v5244_v38 = vpop.permute.xlu0 %5243 }
 0xe94   : > { %v5428_v45 = vsel %vm5416_vm4, %v5411_v36, %v5244_v38  ;;  %v5124_v46 = vpop.permute.xlu1 %5123 }
 0xe95   : > { %v5445_v59 = vsel %vm5433_vm6, %v5428_v45, %v9695_v7  ;;  %v9924_v1 = vsel %vm5382_vm2, %v5381_v34, %v5124_v46  ;;  %v5407_v34 = vsel %vm5399_vm5, %v9726_v19, %v10776_v16 }
 0xe96   : > { %5461 = vst [vmem:[%s9873_s26 + $0x58] sm:$0xff] %v5445_v59  ;;  %v10777_v59 = vld [vmem:[#allocation97_spill] sm:$0xff] }
 0xeb3   : > { %v4686_v14 = vpop.xlane.xlu2 %4685 }
 0xeb4   : > { %6101 = vlog2.f32 %v4686_v14 }
 0xeba   : > { %v6102_v2 = vpop.eup %6101 }
 0xebb   : > { %v4816_v10 = vmul.f32 0.6931472, %v6102_v2  ;;  %v5122_v62 = vpop.permute.xlu2 %5121  ;;  %v10778_v2 = vld [vmem:[#allocation89_spill] sm:$0xff] }
 0xebc   : > { %v5397_v54 = vsel %vm5382_vm2, %v5380_v44, %v5122_v62  ;;  %v10779_v62 = vld [vmem:[#allocation84_spill] sm:$0xff] }
 0xebd   : > { %v4882_v29 = vsub.f32 %v9815_v53, %v4816_v10  ;;  %v5410_v10 = vsel %vm5399_vm5, %v9767_v35, %v10778_v2 }
 0xebf   : > { %5247 = vrot.lane.b32.xlu1 %v4882_v29, %s6241_s18  ;;  %v4692_v7 = vpop.xlane.xlu1 %4691  ;;  %v5414_v29 = vsel %vm5399_vm5, %v5397_v54, %v10779_v62 }
 0xec0   : > { %6103 = vlog2.f32 %v4692_v7 }
 0xec3   : > { %v5222_v23 = vpop.permute.xlu2 %5221 }
 0xec4   : > { %v5417_v49 = vsel %vm5416_vm4, %v5400_v61, %v5222_v23  ;;  %v10780_v23 = vld [vmem:[#allocation98_spill] sm:$0xff] }
 0xec5   : > { %v5434_v26 = vsel %vm5433_vm6, %v5417_v49, %v10765_v17 }
 0xec6   : > { %v6104_v55 = vpop.eup %6103  ;;  %5450 = vst [vmem:[%s9873_s26] sm:$0xff] %v5434_v26  ;;  %v10781_v26 = vld [vmem:[#allocation82_spill] sm:$0xff] }
 0xec7   : > { %v4820_v8 = vmul.f32 0.6931472, %v6104_v55  ;;  %5315 = vrot.lane.b32.xlu1 %v9460_v60, %s6239_s16  ;;  %v5406_v60 = vsel %vm5399_vm5, %v9750_v11, %v10768_v31  ;;  %v5415_v55 = vsel %vm5399_vm5, %v9924_v1, %v10781_v26 }
 0xec9   : > { %v4884_v53 = vsub.f32 %v9820_v33, %v4820_v8 }
 0xecb   : > { %v5228_v12 = vpop.permute.xlu2 %5227  ;;  %5251 = vrot.lane.b32.xlu2 %v4884_v53, %s6241_s18 }
 0xecc   : > { %v5420_v21 = vsel %vm5416_vm4, %v5403_v43, %v5228_v12 }
 0xecd   : > { %v5437_v9 = vsel %vm5433_vm6, %v5420_v21, %v10767_v51 }
 0xece   : > { %5453 = vst [vmem:[%s9873_s26 + $0x18] sm:$0xff] %v5437_v9 }
 0xed1   : > { %v5250_v44 = vpop.permute.xlu0 %5249 }
 0xed2   : > { %v5431_v7 = vsel %vm5416_vm4, %v5414_v29, %v5250_v44 }
 0xed3   : > { %v5234_v33 = vpop.permute.xlu2 %5233  ;;  %5313 = vrot.lane.b32.xlu2 %v10696_v18, %s6239_s16  ;;  %v10772_v18 = vld [vmem:[#allocation52_spill] sm:$0xff] }
 0xed4   : > { %v5423_v32 = vsel %vm5416_vm4, %v5406_v60, %v5234_v33  ;;  %v5409_v48 = vsel %vm5399_vm5, %v9798_v57, %v10772_v18  ;;  %v10775_v57 = vld [vmem:[#allocation79_spill] sm:$0xff] }
 0xed5   : > { %v5440_v13 = vsel %vm5433_vm6, %v5423_v32, %v10769_v20  ;;  %v5412_v36 = vsel %vm5399_vm5, %v9833_v63, %v10775_v57 }
 0xed6   : > { %5456 = vst [vmem:[%s9873_s26 + $0x30] sm:$0xff] %v5440_v13 }
 0xed7   : > { %v5224_v52 = vpop.permute.xlu1 %5223 }
 0xed8   : > { %v5418_v58 = vsel %vm5416_vm4, %v5401_v27, %v5224_v52 }
 0xed9   : > { %v5435_v11 = vsel %vm5433_vm6, %v5418_v58, %v10771_v3  ;;  %v5312_v49 = vpop.permute.xlu0 %5311 }
 0xeda   : > { %5451 = vst [vmem:[%s9873_s26 + $0x8] sm:$0xff] %v5435_v11 }
 0xedb   : > { %v5240_v39 = vpop.permute.xlu2 %5239 }
 0xedc   : > { %v5426_v6 = vsel %vm5416_vm4, %v5409_v48, %v5240_v39 }
 0xedd   : > { %v5443_v50 = vsel %vm5433_vm6, %v5426_v6, %v9512_v24 }
 0xede   : > { %5459 = vst [vmem:[%s9873_s26 + $0x48] sm:$0xff] %v5443_v50 }
 0xedf   : > { %v5230_v5 = vpop.permute.xlu1 %5229 }
 0xee0   : > { %v5421_v28 = vsel %vm5416_vm4, %v5404_v15, %v5230_v5 }
 0xee1   : > { %v5438_v47 = vsel %vm5433_vm6, %v5421_v28, %v10774_v25 }
 0xee2   : > { %5454 = vst [vmem:[%s9873_s26 + $0x20] sm:$0xff] %v5438_v47 }
 0xee3   : > { %v5246_v38 = vpop.permute.xlu2 %5245 }
 0xee4   : > { %v5429_v24 = vsel %vm5416_vm4, %v5412_v36, %v5246_v38 }
 0xee5   : > { %v5446_v45 = vsel %vm5433_vm6, %v5429_v24, %v9597_v37 }
 0xee6   : > { %5462 = vst [vmem:[%s9873_s26 + $0x60] sm:$0xff] %v5446_v45 }
 0xee7   : > { %v5236_v56 = vpop.permute.xlu1 %5235 }
 0xee8   : > { %v5424_v46 = vsel %vm5416_vm4, %v5407_v34, %v5236_v56 }
 0xee9   : > { %v5441_v14 = vsel %vm5433_vm6, %v5424_v46, %v10777_v59 }
 0xeea   : > { %5457 = vst [vmem:[%s9873_s26 + $0x38] sm:$0xff] %v5441_v14 }
 0xef0   : > { %v5242_v63 = vpop.permute.xlu1 %5241 }
 0xef1   : > { %v5427_v37 = vsel %vm5416_vm4, %v5410_v10, %v5242_v63 }
 0xef2   : > { %v5444_v22 = vsel %vm5433_vm6, %v5427_v37, %v9502_v4  ;;  %v5413_v4 = vsel %vm5399_vm5, %v9811_v42, %v10780_v23 }
 0xef3   : > { %5460 = vst [vmem:[%s9873_s26 + $0x50] sm:$0xff] %v5444_v22 }
 0xf25   : > { %v5252_v19 = vpop.permute.xlu2 %5251 }
 0xf26   : > { %v5432_v42 = vsel %vm5416_vm4, %v5415_v55, %v5252_v19 }
 0xf2d   : > { %v5314_v40 = vpop.permute.xlu2 %5313 }
 0xf2e   : > { %v5448_v61 = vsel %vm5433_vm6, %v5431_v7, %v5314_v40 }
 0xf2f   : > { %5464 = vst [vmem:[%s9873_s26 + $0x70] sm:$0xff] %v5448_v61 }
 0xf31   : > { %v5248_v35 = vpop.permute.xlu1 %5247 }
 0xf32   : > { %v5430_v17 = vsel %vm5416_vm4, %v5413_v4, %v5248_v35 }
 0xf33   : > { %v5447_v54 = vsel %vm5433_vm6, %v5430_v17, %v5312_v49 }
 0xf34   : > { %5463 = vst [vmem:[%s9873_s26 + $0x68] sm:$0xff] %v5447_v54 }
 0xf39   : > { %v5316_v8 = vpop.permute.xlu1 %5315 }
 0xf3a   : > { %v5449_v53 = vsel %vm5433_vm6, %v5432_v42, %v5316_v8 }
 0xf3b   : > { %5465 = vst [vmem:[%s9873_s26 + $0x78] sm:$0xff] %v5449_v53 }
 0xf3c   : > { %6198 = shalt.err (!%p6195_p3)
}
 0xf3d   : > { %s6242_s19 = smov 128   ;;  %s6243_s26 = smov 8  }
 0xf3e   : > { %5799 = dma.vmem_to_hbm [thread:$0]  (%p6317_p5), %s5480_s11, 2048, %s5482_s25, %s5467_s13, %s6242_s19, %s6242_s19, %s6243_s26  }
 0xf3f PF: > { %p5805_p4 = scmp.ge.s32.totalorder %s6233_s24, 2  ;;  %s5496_s28 = sand.u32 1, %s6221_s21  }
 0xf40   : > { %s5497_s29 = scalar_lea.sflag [#allocation3], %s5496_s28 }
 0xf41   : > { %p5802_p7 = pnand %p5805_p4, %p6321_p6 }
 0xf43   : > { %p5803_p8 = pneg %p5802_p7 }
 0xf45   : > { %6216 = dma.done.wait (%p5803_p8), %s5497_s29, 2048  }
 0xf46   : > { %6218 = vsyncadd (%p5803_p8), %s5497_s29, 4294965248  ;;  %p16_p9 = scmp.ge.s32.totalorder %s6304_s27, 4   ;;  %s10782_s21 = smov %s6225_s22 }
 0xf47   : > { %s10783_s22 = smov %s6229_s23  ;;  %s10784_s23 = smov %s6315_s30 }
 0xf48   : > { %s10785_s24 = smov %s6304_s27  ;;  %18 = sbr.rel (!%p16_p9) target bundleno = 3 (0x3), region = 82 }
 0xf4d   :  { %5503 = vsyncpa [#allocation3], 1 }
 0xf4e   :  { %5505 = vsyncpa [#allocation3 + $0x1], 1 }

</bundles_post_ra>
